<compile_context>
chip_gen: v6e
topology: v6e:2x2x1
jax: 0.10.0
libtpu: 0.0.40
codegen_flags: <defaults>
</compile_context>

<pallas_src>
import functools
import math

import jax
import jax.numpy as jnp
from jax import lax
from jax.experimental import pallas as pl
from jax.experimental.pallas import tpu as pltpu

LN_EPS = 1e-5
VMEM_LIMIT_BYTES = 48 * 1024 * 1024   # safe on v5e/v6e (128 MiB) and v7x (64 MiB)


def _round_up(x, m):
    return (x + m - 1) // m * m


# --------------------------- tiled linear (matmul) ---------------------------

def _linear_kernel(x_ref, w_ref, b_ref, o_ref, acc_ref, *, activation):
    @pl.when(pl.program_id(2) == 0)
    def _init():
        acc_ref[...] = jnp.zeros_like(acc_ref)

    acc_ref[...] += jnp.dot(x_ref[...].astype(jnp.bfloat16),
                            w_ref[...].astype(jnp.bfloat16),
                            preferred_element_type=jnp.float32)

    @pl.when(pl.program_id(2) == pl.num_programs(2) - 1)
    def _finish():
        y = acc_ref[...] + b_ref[...]
        if activation == "relu":
            y = jnp.maximum(y, 0.0)
        o_ref[...] = y.astype(o_ref.dtype)


def linear(x, w, b, activation=None, tm=256, tn=256, tk=512):
    """x: (M, K) f32, w: (K, N) bf16/f32, b: (N,) f32  ->  (M, N) f32."""
    M, K = x.shape
    N = w.shape[1]
    tm = M if M <= tm else tm
    tn = N if N <= tn else tn
    tk = K if K <= tk else tk
    Mp, Np, Kp = _round_up(M, tm), _round_up(N, tn), _round_up(K, tk)
    xp = x if (Mp == M and Kp == K) else jnp.pad(x, ((0, Mp - M), (0, Kp - K)))
    wp = w if (Kp == K and Np == N) else jnp.pad(w, ((0, Kp - K), (0, Np - N)))
    bp = (b if Np == N else jnp.pad(b, (0, Np - N))).reshape(1, Np)

    cost = pl.CostEstimate(
        flops=int(2 * Mp * Kp * Np),
        transcendentals=0,
        bytes_accessed=int(x.dtype.itemsize * Mp * Kp
                           + w.dtype.itemsize * Kp * Np
                           + 4 * Mp * Np + 4 * Np))

    out = pl.pallas_call(
        functools.partial(_linear_kernel, activation=activation),
        out_shape=jax.ShapeDtypeStruct((Mp, Np), jnp.float32),
        grid=(Mp // tm, Np // tn, Kp // tk),
        in_specs=[
            pl.BlockSpec((tm, tk), lambda i, j, k: (i, k)),
            pl.BlockSpec((tk, tn), lambda i, j, k: (k, j)),
            pl.BlockSpec((1, tn), lambda i, j, k: (0, j)),
        ],
        out_specs=pl.BlockSpec((tm, tn), lambda i, j, k: (i, j)),
        scratch_shapes=[pltpu.VMEM((tm, tn), jnp.float32)],
        compiler_params=pltpu.CompilerParams(
            dimension_semantics=("parallel", "parallel", "arbitrary"),
            vmem_limit_bytes=VMEM_LIMIT_BYTES),
        cost_estimate=cost,
    )(xp, wp, bp)
    if Mp != M or Np != N:
        out = out[:M, :N]
    return out


# ------------------- fused multi-head attention + add + LN -------------------

def _attn_block_kernel(xq_ref, xkv_ref, mask_ref,
                       wq_ref, bq_ref, wk_ref, bk_ref, wv_ref, bv_ref,
                       wo_ref, bo_ref, g_ref, beta_ref,
                       *out_refs, n_heads, scale_inv, eps, return_attn):
    o_ref = out_refs[0]
    a_ref = out_refs[1] if return_attn else None

    xq = xq_ref[...]                      # (Lq, H) f32
    xkv = xkv_ref[...]                    # (Lk, H) f32
    mask = mask_ref[...]                  # (Lq, Lk) f32 (1=keep, 0=mask)
    xq16 = xq.astype(jnp.bfloat16)
    xkv16 = xkv.astype(jnp.bfloat16)

    acc = jnp.zeros(xq.shape, jnp.float32)   # projected attention output (Lq, H)

    for h in range(n_heads):              # static, small loop over heads
        # per-head projections (weights pre-sliced per head: (H, D) slabs)
        qh = (jnp.dot(xq16, wq_ref[h].astype(jnp.bfloat16),
                      preferred_element_type=jnp.float32) + bq_ref[h]) * scale_inv
        kh = jnp.dot(xkv16, wk_ref[h].astype(jnp.bfloat16),
                     preferred_element_type=jnp.float32) + bk_ref[h]
        vh = jnp.dot(xkv16, wv_ref[h].astype(jnp.bfloat16),
                     preferred_element_type=jnp.float32) + bv_ref[h]

        # energy = qh @ kh^T without an explicit transpose
        energy = lax.dot_general(qh.astype(jnp.bfloat16), kh.astype(jnp.bfloat16),
                                 dimension_numbers=(((1,), (1,)), ((), ())),
                                 preferred_element_type=jnp.float32)   # (Lq, Lk)
        energy = jnp.where(mask > 0.0, energy, jnp.float32(-1e10))

        # softmax in f32, EUP reciprocal for the denominator
        m = jnp.max(energy, axis=-1, keepdims=True)
        e = jnp.exp(energy - m)
        s = jnp.sum(e, axis=-1, keepdims=True)
        attn = e * pl.reciprocal(s, approx=True)
        if return_attn:
            a_ref[h] = attn

        oh = jnp.dot(attn.astype(jnp.bfloat16), vh.astype(jnp.bfloat16),
                     preferred_element_type=jnp.float32)               # (Lq, D)
        # fold the output projection per head: acc += oh @ Wo[h*D:(h+1)*D, :]
        acc = acc + jnp.dot(oh.astype(jnp.bfloat16),
                            wo_ref[h].astype(jnp.bfloat16),
                            preferred_element_type=jnp.float32)        # (Lq, H)

    y = acc + bo_ref[...]
    # residual + LayerNorm (f32)
    r = y + xq
    mu = jnp.mean(r, axis=-1, keepdims=True)
    var = jnp.mean((r - mu) ** 2, axis=-1, keepdims=True)
    o_ref[...] = ((r - mu) * lax.rsqrt(var + eps)) * g_ref[...] + beta_ref[...]


def fused_attention(x_q, x_kv, mask, p, gamma, beta, n_heads, return_attn=False):
    """LayerNorm(x_q + MHA(x_q, x_kv, x_kv, mask)).  x_q:(B,Lq,H) x_kv:(B,Lk,H)."""
    B, Lq, H = x_q.shape
    Lk = x_kv.shape[1]
    D = H // n_heads
    scale_inv = 1.0 / math.sqrt(D)

    # reshape weights into per-head slabs (cheap, on tiny weight tensors)
    wq_h = p["wq"].reshape(H, n_heads, D).transpose(1, 0, 2)   # (nh, H, D)
    wk_h = p["wk"].reshape(H, n_heads, D).transpose(1, 0, 2)
    wv_h = p["wv"].reshape(H, n_heads, D).transpose(1, 0, 2)
    wo_h = p["wo"].reshape(n_heads, D, H)                      # (nh, D, H)
    bq_h = p["bq"].reshape(n_heads, 1, D)
    bk_h = p["bk"].reshape(n_heads, 1, D)
    bv_h = p["bv"].reshape(n_heads, 1, D)

    if return_attn:
        out_shape = (jax.ShapeDtypeStruct((B, Lq, H), jnp.float32),
                     jax.ShapeDtypeStruct((B, n_heads, Lq, Lk), jnp.float32))
        out_specs = (pl.BlockSpec((None, Lq, H), lambda b: (b, 0, 0)),
                     pl.BlockSpec((None, n_heads, Lq, Lk), lambda b: (b, 0, 0, 0)))
    else:
        out_shape = jax.ShapeDtypeStruct((B, Lq, H), jnp.float32)
        out_specs = pl.BlockSpec((None, Lq, H), lambda b: (b, 0, 0))

    cost = pl.CostEstimate(
        flops=int(2 * B * H * H * (2 * Lq + 2 * Lk) + 4 * B * Lq * Lk * H),
        transcendentals=int(B * n_heads * Lq * (Lk + 1)),
        bytes_accessed=int(4 * B * (2 * Lq * H + Lk * H + Lq * Lk)
                           + 2 * 4 * H * H + 4 * 7 * H))

    res = pl.pallas_call(
        functools.partial(_attn_block_kernel, n_heads=n_heads,
                          scale_inv=scale_inv, eps=LN_EPS,
                          return_attn=return_attn),
        out_shape=out_shape,
        grid=(B,),
        in_specs=[
            pl.BlockSpec((None, Lq, H), lambda b: (b, 0, 0)),          # x_q
            pl.BlockSpec((None, Lk, H), lambda b: (b, 0, 0)),          # x_kv
            pl.BlockSpec((None, Lq, Lk), lambda b: (b, 0, 0)),         # mask
            pl.BlockSpec((n_heads, H, D), lambda b: (0, 0, 0)),        # wq
            pl.BlockSpec((n_heads, 1, D), lambda b: (0, 0, 0)),        # bq
            pl.BlockSpec((n_heads, H, D), lambda b: (0, 0, 0)),        # wk
            pl.BlockSpec((n_heads, 1, D), lambda b: (0, 0, 0)),        # bk
            pl.BlockSpec((n_heads, H, D), lambda b: (0, 0, 0)),        # wv
            pl.BlockSpec((n_heads, 1, D), lambda b: (0, 0, 0)),        # bv
            pl.BlockSpec((n_heads, D, H), lambda b: (0, 0, 0)),        # wo
            pl.BlockSpec((1, H), lambda b: (0, 0)),                    # bo
            pl.BlockSpec((1, H), lambda b: (0, 0)),                    # gamma
            pl.BlockSpec((1, H), lambda b: (0, 0)),                    # beta
        ],
        out_specs=out_specs,
        compiler_params=pltpu.CompilerParams(
            dimension_semantics=("parallel",),
            vmem_limit_bytes=VMEM_LIMIT_BYTES),
        cost_estimate=cost,
    )(x_q, x_kv, mask,
      wq_h, bq_h, wk_h, bk_h, wv_h, bv_h,
      wo_h, p["bo"].reshape(1, H),
      gamma.reshape(1, H), beta.reshape(1, H))

    if return_attn:
        return res[0], res[1]
    return res, None


# --------------------- fused FFN + residual + LayerNorm -----------------------

def _ffn_block_kernel(x_ref, w1_ref, b1_ref, w2_ref, b2_ref, g_ref, beta_ref,
                      o_ref, *, eps):
    x = x_ref[...]                                        # (tm, H) f32
    h = jnp.dot(x.astype(jnp.bfloat16), w1_ref[...].astype(jnp.bfloat16),
                preferred_element_type=jnp.float32) + b1_ref[...]
    h = jnp.maximum(h, 0.0)
    y = jnp.dot(h.astype(jnp.bfloat16), w2_ref[...].astype(jnp.bfloat16),
                preferred_element_type=jnp.float32) + b2_ref[...]
    r = y + x
    mu = jnp.mean(r, axis=-1, keepdims=True)
    var = jnp.mean((r - mu) ** 2, axis=-1, keepdims=True)
    o_ref[...] = ((r - mu) * lax.rsqrt(var + eps)) * g_ref[...] + beta_ref[...]


def fused_ffn_ln(x, w1, b1, w2, b2, gamma, beta, tm=256):
    """LayerNorm(x + ReLU(x@W1+b1)@W2+b2), tiled over rows of x:(B,L,H)."""
    B, L, H = x.shape
    PF = w1.shape[1]
    M = B * L
    x2 = x.reshape(M, H)
    tm_ = M if M <= tm else tm
    Mp = _round_up(M, tm_)
    xp = x2 if Mp == M else jnp.pad(x2, ((0, Mp - M), (0, 0)))

    cost = pl.CostEstimate(
        flops=int(4 * Mp * H * PF),
        transcendentals=0,
        bytes_accessed=int(4 * Mp * H * 2 + 2 * 2 * H * PF + 4 * (PF + 3 * H)))

    out = pl.pallas_call(
        functools.partial(_ffn_block_kernel, eps=LN_EPS),
        out_shape=jax.ShapeDtypeStruct((Mp, H), jnp.float32),
        grid=(Mp // tm_,),
        in_specs=[
            pl.BlockSpec((tm_, H), lambda i: (i, 0)),
            pl.BlockSpec((H, PF), lambda i: (0, 0)),
            pl.BlockSpec((1, PF), lambda i: (0, 0)),
            pl.BlockSpec((PF, H), lambda i: (0, 0)),
            pl.BlockSpec((1, H), lambda i: (0, 0)),
            pl.BlockSpec((1, H), lambda i: (0, 0)),
            pl.BlockSpec((1, H), lambda i: (0, 0)),
        ],
        out_specs=pl.BlockSpec((tm_, H), lambda i: (i, 0)),
        compiler_params=pltpu.CompilerParams(
            dimension_semantics=("parallel",),
            vmem_limit_bytes=VMEM_LIMIT_BYTES),
        cost_estimate=cost,
    )(xp, w1, b1.reshape(1, PF), w2, b2.reshape(1, H),
      gamma.reshape(1, H), beta.reshape(1, H))
    return out[:M].reshape(B, L, H)


# ----------------------------- model (JAX glue) ------------------------------

def encoder_layer(x, src_mask, p, n_heads):
    x, _ = fused_attention(x, x, src_mask, p["self_attn"],
                           p["ln1_g"], p["ln1_b"], n_heads)
    x = fused_ffn_ln(x, p["ff_w1"], p["ff_b1"], p["ff_w2"], p["ff_b2"],
                     p["ln2_g"], p["ln2_b"])
    return x


def decoder_layer(x, enc, trg_mask, src_mask, p, n_heads, need_attn):
    x, _ = fused_attention(x, x, trg_mask, p["self_attn"],
                           p["ln1_g"], p["ln1_b"], n_heads)
    x, attn = fused_attention(x, enc, src_mask, p["enc_attn"],
                              p["ln2_g"], p["ln2_b"], n_heads,
                              return_attn=need_attn)
    x = fused_ffn_ln(x, p["ff_w1"], p["ff_b1"], p["ff_w2"], p["ff_b2"],
                     p["ln3_g"], p["ln3_b"])
    return x, attn


def run_encoder(src, src_mask, params, n_heads):
    B, L = src.shape
    H = params["tok_emb"].shape[1]
    pos = jnp.arange(L)
    # TODO(synk): embedding gather stays in XLA; dropout omitted (eval-mode identity)
    x = params["tok_emb"][src] * math.sqrt(H) + params["pos_emb"][pos][None]
    for lp in params["layers"]:
        x = encoder_layer(x, src_mask, lp, n_heads)
    return x


def run_decoder(trg, enc, trg_mask, src_mask, params, n_heads):
    B, L = trg.shape
    H = params["tok_emb"].shape[1]
    pos = jnp.arange(L)
    x = params["tok_emb"][trg] * math.sqrt(H) + params["pos_emb"][pos][None]
    attn = None
    n_layers = len(params["layers"])
    for i, lp in enumerate(params["layers"]):
        # only the last layer's cross-attention weights are consumed
        x, a = decoder_layer(x, enc, trg_mask, src_mask, lp, n_heads,
                             need_attn=(i == n_layers - 1))
        if a is not None:
            attn = a
    logits = linear(x.reshape(B * L, H), params["fc_out_w"],
                    params["fc_out_b"]).reshape(B, L, -1)
    return logits, attn


def transformer_forward(src, trg, params, n_heads, src_pad_idx, trg_pad_idx):
    B, Ls = src.shape
    Lt = trg.shape[1]
    src_keep = (src != src_pad_idx).astype(jnp.float32)          # (B, Ls)
    trg_keep = (trg != trg_pad_idx).astype(jnp.float32)          # (B, Lt)
    src_mask_enc = jnp.broadcast_to(src_keep[:, None, :], (B, Ls, Ls))
    src_mask_cross = jnp.broadcast_to(src_keep[:, None, :], (B, Lt, Ls))
    causal = jnp.tril(jnp.ones((Lt, Lt), jnp.float32))
    trg_mask = trg_keep[:, None, :] * causal[None, :, :]         # (B, Lt, Lt)

    enc_src = run_encoder(src, src_mask_enc, params["encoder"], n_heads)
    output, attention = run_decoder(trg, enc_src, trg_mask, src_mask_cross,
                                    params["decoder"], n_heads)
    return output, attention


# -------------------------- parameter initialization -------------------------

def init_linear(key, d_in, d_out, w_dtype=jnp.bfloat16):
    k1, k2 = jax.random.split(key)
    bound = 1.0 / math.sqrt(d_in)
    w = jax.random.uniform(k1, (d_in, d_out), jnp.float32, -bound, bound)
    b = jax.random.uniform(k2, (d_out,), jnp.float32, -bound, bound)
    return w.astype(w_dtype), b                       # bf16 weights, f32 bias


def init_mha(key, H):
    ks = jax.random.split(key, 4)
    wq, bq = init_linear(ks[0], H, H)
    wk, bk = init_linear(ks[1], H, H)
    wv, bv = init_linear(ks[2], H, H)
    wo, bo = init_linear(ks[3], H, H)
    return dict(wq=wq, bq=bq, wk=wk, bk=bk, wv=wv, bv=bv, wo=wo, bo=bo)


def init_enc_layer(key, H, PF):
    ks = jax.random.split(key, 3)
    w1, b1 = init_linear(ks[1], H, PF)
    w2, b2 = init_linear(ks[2], PF, H)
    return dict(self_attn=init_mha(ks[0], H),
                ln1_g=jnp.ones((H,)), ln1_b=jnp.zeros((H,)),
                ln2_g=jnp.ones((H,)), ln2_b=jnp.zeros((H,)),
                ff_w1=w1, ff_b1=b1, ff_w2=w2, ff_b2=b2)


def init_dec_layer(key, H, PF):
    ks = jax.random.split(key, 4)
    w1, b1 = init_linear(ks[2], H, PF)
    w2, b2 = init_linear(ks[3], PF, H)
    return dict(self_attn=init_mha(ks[0], H), enc_attn=init_mha(ks[1], H),
                ln1_g=jnp.ones((H,)), ln1_b=jnp.zeros((H,)),
                ln2_g=jnp.ones((H,)), ln2_b=jnp.zeros((H,)),
                ln3_g=jnp.ones((H,)), ln3_b=jnp.zeros((H,)),
                ff_w1=w1, ff_b1=b1, ff_w2=w2, ff_b2=b2)


def init_params(key, input_dim, output_dim, H, PF, n_layers, max_length):
    keys = jax.random.split(key, 7 + 2 * n_layers)
    enc = dict(
        tok_emb=jax.random.normal(keys[0], (input_dim, H), jnp.float32),
        pos_emb=jax.random.normal(keys[1], (max_length, H), jnp.float32),
        layers=[init_enc_layer(keys[4 + i], H, PF) for i in range(n_layers)],
    )
    fc_w, fc_b = init_linear(keys[2], H, output_dim)
    dec = dict(
        tok_emb=jax.random.normal(keys[3], (output_dim, H), jnp.float32),
        pos_emb=jax.random.normal(keys[4 + n_layers], (max_length, H), jnp.float32),
        layers=[init_dec_layer(keys[5 + n_layers + i], H, PF)
                for i in range(n_layers)],
        fc_out_w=fc_w, fc_out_b=fc_b,
    )
    return dict(encoder=enc, decoder=dec)


# ----------------------------------- main ------------------------------------

if __name__ == "__main__":
    B = 2
    SRC_LEN, TRG_LEN = 8, 6
    HID, HEADS, PF, N_LAYERS = 32, 4, 64, 2
    INPUT_DIM, OUTPUT_DIM, MAX_LEN = 20, 18, 16
    SRC_PAD_IDX, TRG_PAD_IDX = 0, 0

    key = jax.random.PRNGKey(0)
    kp, ks, kt = jax.random.split(key, 3)
    params = init_params(kp, INPUT_DIM, OUTPUT_DIM, HID, PF, N_LAYERS, MAX_LEN)

    src = jax.random.randint(ks, (B, SRC_LEN), 1, INPUT_DIM, dtype=jnp.int32)
    trg = jax.random.randint(kt, (B, TRG_LEN), 1, OUTPUT_DIM, dtype=jnp.int32)
    # introduce padding tokens to exercise the masks
    src = src.at[1, 6:].set(SRC_PAD_IDX)
    trg = trg.at[1, 4:].set(TRG_PAD_IDX)

    fwd = jax.jit(functools.partial(transformer_forward, n_heads=HEADS,
                                    src_pad_idx=SRC_PAD_IDX,
                                    trg_pad_idx=TRG_PAD_IDX))
    output, attention = fwd(src, trg, params)
    jax.block_until_ready((output, attention))

    assert output.shape == (B, TRG_LEN, OUTPUT_DIM)
    assert attention.shape == (B, HEADS, TRG_LEN, SRC_LEN)
    assert bool(jnp.all(jnp.isfinite(output)))
    assert bool(jnp.all(jnp.isfinite(attention)))
    print("KERNEL_OK")
</pallas_src>

<mosaic_0001>
module attributes {stable_mosaic.version = 11 : i64} {
  func.func @_ffn_block_kernel(%arg0: i32, %arg1: memref<16x32xf32, #tpu.memory_space<vmem>>, %arg2: memref<32x64xbf16, #tpu.memory_space<vmem>>, %arg3: memref<1x64xf32, #tpu.memory_space<vmem>>, %arg4: memref<64x32xbf16, #tpu.memory_space<vmem>>, %arg5: memref<1x32xf32, #tpu.memory_space<vmem>>, %arg6: memref<1x32xf32, #tpu.memory_space<vmem>>, %arg7: memref<1x32xf32, #tpu.memory_space<vmem>>, %arg8: memref<16x32xf32, #tpu.memory_space<vmem>>) attributes {dimension_semantics = [#tpu.dimension_semantics<parallel>], iteration_bounds = array<i64: 1>, scalar_prefetch = 0 : i64, scratch_operands = 0 : i64, tpu.core_type = #tpu.core_type<tc>, window_params = [{transform_indices = @transform_0, window_bounds = array<i64: 16, 32>}, {pipeline_mode = #tpu.pipeline_mode<synchronous>, transform_indices = @transform_1, window_bounds = array<i64: 32, 64>}, {pipeline_mode = #tpu.pipeline_mode<synchronous>, transform_indices = @transform_2, window_bounds = array<i64: 1, 64>}, {pipeline_mode = #tpu.pipeline_mode<synchronous>, transform_indices = @transform_3, window_bounds = array<i64: 64, 32>}, {pipeline_mode = #tpu.pipeline_mode<synchronous>, transform_indices = @transform_4, window_bounds = array<i64: 1, 32>}, {pipeline_mode = #tpu.pipeline_mode<synchronous>, transform_indices = @transform_5, window_bounds = array<i64: 1, 32>}, {pipeline_mode = #tpu.pipeline_mode<synchronous>, transform_indices = @transform_6, window_bounds = array<i64: 1, 32>}, {transform_indices = @transform_7, window_bounds = array<i64: 16, 32>}]} {
    %c0 = arith.constant 0 : index
    %c0_0 = arith.constant 0 : index
    %0 = vector.load %arg1[%c0, %c0_0] : memref<16x32xf32, #tpu.memory_space<vmem>>, vector<16x32xf32>
    %1 = arith.truncf %0 : vector<16x32xf32> to vector<16x32xbf16>
    %c0_1 = arith.constant 0 : index
    %c0_2 = arith.constant 0 : index
    %2 = vector.load %arg2[%c0_1, %c0_2] : memref<32x64xbf16, #tpu.memory_space<vmem>>, vector<32x64xbf16>
    %cst = arith.constant dense<0.000000e+00> : vector<16x64xf32>
    %3 = tpu.matmul %1, %2, %cst {dimension_numbers = #tpu.dot_dimension_numbers<[1], [0], [0], [1], [0, 0, 1, 1], [], []>} : vector<16x32xbf16>, vector<32x64xbf16>, vector<16x64xf32> -> vector<16x64xf32>
    %c0_3 = arith.constant 0 : index
    %c0_4 = arith.constant 0 : index
    %4 = vector.load %arg3[%c0_3, %c0_4] : memref<1x64xf32, #tpu.memory_space<vmem>>, vector<1x64xf32>
    %5 = vector.broadcast %4 : vector<1x64xf32> to vector<16x64xf32>
    %6 = arith.addf %3, %5 : vector<16x64xf32>
    %cst_5 = arith.constant 0.000000e+00 : f32
    %7 = vector.broadcast %cst_5 : f32 to vector<16x64xf32>
    %8 = arith.maximumf %6, %7 : vector<16x64xf32>
    %9 = arith.truncf %8 : vector<16x64xf32> to vector<16x64xbf16>
    %c0_6 = arith.constant 0 : index
    %c0_7 = arith.constant 0 : index
    %10 = vector.load %arg4[%c0_6, %c0_7] : memref<64x32xbf16, #tpu.memory_space<vmem>>, vector<64x32xbf16>
    %cst_8 = arith.constant dense<0.000000e+00> : vector<16x32xf32>
    %11 = tpu.matmul %9, %10, %cst_8 {dimension_numbers = #tpu.dot_dimension_numbers<[1], [0], [0], [1], [0, 0, 1, 1], [], []>} : vector<16x64xbf16>, vector<64x32xbf16>, vector<16x32xf32> -> vector<16x32xf32>
    %c0_9 = arith.constant 0 : index
    %c0_10 = arith.constant 0 : index
    %12 = vector.load %arg5[%c0_9, %c0_10] : memref<1x32xf32, #tpu.memory_space<vmem>>, vector<1x32xf32>
    %13 = vector.broadcast %12 : vector<1x32xf32> to vector<16x32xf32>
    %14 = arith.addf %11, %13 : vector<16x32xf32>
    %15 = arith.addf %14, %0 : vector<16x32xf32>
    %cst_11 = arith.constant dense<0.000000e+00> : vector<16xf32>
    %16 = vector.multi_reduction <add>, %15, %cst_11 [1] : vector<16x32xf32> to vector<16xf32>
    %17 = vector.shape_cast %16 : vector<16xf32> to vector<16x1xf32>
    %cst_12 = arith.constant 3.200000e+01 : f32
    %18 = vector.broadcast %cst_12 : f32 to vector<16x1xf32>
    %19 = arith.divf %17, %18 : vector<16x1xf32>
    %20 = vector.broadcast %19 : vector<16x1xf32> to vector<16x32xf32>
    %21 = arith.subf %15, %20 : vector<16x32xf32>
    %22 = arith.mulf %21, %21 : vector<16x32xf32>
    %cst_13 = arith.constant dense<0.000000e+00> : vector<16xf32>
    %23 = vector.multi_reduction <add>, %22, %cst_13 [1] : vector<16x32xf32> to vector<16xf32>
    %24 = vector.shape_cast %23 : vector<16xf32> to vector<16x1xf32>
    %cst_14 = arith.constant 3.200000e+01 : f32
    %25 = vector.broadcast %cst_14 : f32 to vector<16x1xf32>
    %26 = arith.divf %24, %25 : vector<16x1xf32>
    %27 = vector.broadcast %19 : vector<16x1xf32> to vector<16x32xf32>
    %28 = arith.subf %15, %27 : vector<16x32xf32>
    %cst_15 = arith.constant 9.99999974E-6 : f32
    %29 = vector.broadcast %cst_15 : f32 to vector<16x1xf32>
    %30 = arith.addf %26, %29 : vector<16x1xf32>
    %31 = math.rsqrt %30 : vector<16x1xf32>
    %32 = vector.broadcast %31 : vector<16x1xf32> to vector<16x32xf32>
    %33 = arith.mulf %28, %32 : vector<16x32xf32>
    %c0_16 = arith.constant 0 : index
    %c0_17 = arith.constant 0 : index
    %34 = vector.load %arg6[%c0_16, %c0_17] : memref<1x32xf32, #tpu.memory_space<vmem>>, vector<1x32xf32>
    %35 = vector.broadcast %34 : vector<1x32xf32> to vector<16x32xf32>
    %36 = arith.mulf %33, %35 : vector<16x32xf32>
    %c0_18 = arith.constant 0 : index
    %c0_19 = arith.constant 0 : index
    %37 = vector.load %arg7[%c0_18, %c0_19] : memref<1x32xf32, #tpu.memory_space<vmem>>, vector<1x32xf32>
    %38 = vector.broadcast %37 : vector<1x32xf32> to vector<16x32xf32>
    %39 = arith.addf %36, %38 : vector<16x32xf32>
    %c0_20 = arith.constant 0 : index
    %c0_21 = arith.constant 0 : index
    %40 = vector.load %arg8[%c0_20, %c0_21] : memref<16x32xf32, #tpu.memory_space<vmem>>, vector<16x32xf32>
    tpu.vector_store %arg8[%c0_20, %c0_21], %39 {strides = array<i32>} : memref<16x32xf32, #tpu.memory_space<vmem>>, vector<16x32xf32>,
    return
  }
  func.func @transform_0(%arg0: i32) -> (i32, i32) {
    %c0_i32 = arith.constant 0 : i32
    %c0_i32_0 = arith.constant 0 : i32
    return %arg0, %c0_i32 : i32, i32
  }
  func.func @transform_1(%arg0: i32) -> (i32, i32) {
    %c0_i32 = arith.constant 0 : i32
    %c0_i32_0 = arith.constant 0 : i32
    %c0_i32_1 = arith.constant 0 : i32
    return %c0_i32, %c0_i32_0 : i32, i32
  }
  func.func @transform_2(%arg0: i32) -> (i32, i32) {
    %c0_i32 = arith.constant 0 : i32
    %c0_i32_0 = arith.constant 0 : i32
    %c0_i32_1 = arith.constant 0 : i32
    return %c0_i32, %c0_i32_0 : i32, i32
  }
  func.func @transform_3(%arg0: i32) -> (i32, i32) {
    %c0_i32 = arith.constant 0 : i32
    %c0_i32_0 = arith.constant 0 : i32
    %c0_i32_1 = arith.constant 0 : i32
    return %c0_i32, %c0_i32_0 : i32, i32
  }
  func.func @transform_4(%arg0: i32) -> (i32, i32) {
    %c0_i32 = arith.constant 0 : i32
    %c0_i32_0 = arith.constant 0 : i32
    %c0_i32_1 = arith.constant 0 : i32
    return %c0_i32, %c0_i32_0 : i32, i32
  }
  func.func @transform_5(%arg0: i32) -> (i32, i32) {
    %c0_i32 = arith.constant 0 : i32
    %c0_i32_0 = arith.constant 0 : i32
    %c0_i32_1 = arith.constant 0 : i32
    return %c0_i32, %c0_i32_0 : i32, i32
  }
  func.func @transform_6(%arg0: i32) -> (i32, i32) {
    %c0_i32 = arith.constant 0 : i32
    %c0_i32_0 = arith.constant 0 : i32
    %c0_i32_1 = arith.constant 0 : i32
    return %c0_i32, %c0_i32_0 : i32, i32
  }
  func.func @transform_7(%arg0: i32) -> (i32, i32) {
    %c0_i32 = arith.constant 0 : i32
    %c0_i32_0 = arith.constant 0 : i32
    return %arg0, %c0_i32 : i32, i32
  }
}

module attributes {stable_mosaic.version = 11 : i64} {
  func.func @_attn_block_kernel(%arg0: i32, %arg1: memref<1x8x32xf32, #tpu.memory_space<vmem>>, %arg2: memref<1x8x32xf32, #tpu.memory_space<vmem>>, %arg3: memref<1x8x8xf32, #tpu.memory_space<vmem>>, %arg4: memref<4x32x8xbf16, #tpu.memory_space<vmem>>, %arg5: memref<4x1x8xf32, #tpu.memory_space<vmem>>, %arg6: memref<4x32x8xbf16, #tpu.memory_space<vmem>>, %arg7: memref<4x1x8xf32, #tpu.memory_space<vmem>>, %arg8: memref<4x32x8xbf16, #tpu.memory_space<vmem>>, %arg9: memref<4x1x8xf32, #tpu.memory_space<vmem>>, %arg10: memref<4x8x32xbf16, #tpu.memory_space<vmem>>, %arg11: memref<1x32xf32, #tpu.memory_space<vmem>>, %arg12: memref<1x32xf32, #tpu.memory_space<vmem>>, %arg13: memref<1x32xf32, #tpu.memory_space<vmem>>, %arg14: memref<1x8x32xf32, #tpu.memory_space<vmem>>) attributes {dimension_semantics = [#tpu.dimension_semantics<parallel>], iteration_bounds = array<i64: 2>, scalar_prefetch = 0 : i64, scratch_operands = 0 : i64, tpu.core_type = #tpu.core_type<tc>, window_params = [{transform_indices = @transform_0, window_bounds = array<i64: 1, 8, 32>}, {transform_indices = @transform_1, window_bounds = array<i64: 1, 8, 32>}, {transform_indices = @transform_2, window_bounds = array<i64: 1, 8, 8>}, {pipeline_mode = #tpu.pipeline_mode<synchronous>, transform_indices = @transform_3, window_bounds = array<i64: 4, 32, 8>}, {pipeline_mode = #tpu.pipeline_mode<synchronous>, transform_indices = @transform_4, window_bounds = array<i64: 4, 1, 8>}, {pipeline_mode = #tpu.pipeline_mode<synchronous>, transform_indices = @transform_5, window_bounds = array<i64: 4, 32, 8>}, {pipeline_mode = #tpu.pipeline_mode<synchronous>, transform_indices = @transform_6, window_bounds = array<i64: 4, 1, 8>}, {pipeline_mode = #tpu.pipeline_mode<synchronous>, transform_indices = @transform_7, window_bounds = array<i64: 4, 32, 8>}, {pipeline_mode = #tpu.pipeline_mode<synchronous>, transform_indices = @transform_8, window_bounds = array<i64: 4, 1, 8>}, {pipeline_mode = #tpu.pipeline_mode<synchronous>, transform_indices = @transform_9, window_bounds = array<i64: 4, 8, 32>}, {pipeline_mode = #tpu.pipeline_mode<synchronous>, transform_indices = @transform_10, window_bounds = array<i64: 1, 32>}, {pipeline_mode = #tpu.pipeline_mode<synchronous>, transform_indices = @transform_11, window_bounds = array<i64: 1, 32>}, {pipeline_mode = #tpu.pipeline_mode<synchronous>, transform_indices = @transform_12, window_bounds = array<i64: 1, 32>}, {transform_indices = @transform_13, window_bounds = array<i64: 1, 8, 32>}]} {
    %c0 = arith.constant 0 : index
    %c0_0 = arith.constant 0 : index
    %c0_1 = arith.constant 0 : index
    %0 = vector.load %arg1[%c0, %c0_0, %c0_1] : memref<1x8x32xf32, #tpu.memory_space<vmem>>, vector<1x8x32xf32>
    %1 = vector.shape_cast %0 : vector<1x8x32xf32> to vector<8x32xf32>
    %c0_2 = arith.constant 0 : index
    %c0_3 = arith.constant 0 : index
    %c0_4 = arith.constant 0 : index
    %2 = vector.load %arg2[%c0_2, %c0_3, %c0_4] : memref<1x8x32xf32, #tpu.memory_space<vmem>>, vector<1x8x32xf32>
    %3 = vector.shape_cast %2 : vector<1x8x32xf32> to vector<8x32xf32>
    %c0_5 = arith.constant 0 : index
    %c0_6 = arith.constant 0 : index
    %c0_7 = arith.constant 0 : index
    %4 = vector.load %arg3[%c0_5, %c0_6, %c0_7] : memref<1x8x8xf32, #tpu.memory_space<vmem>>, vector<1x8x8xf32>
    %5 = vector.shape_cast %4 : vector<1x8x8xf32> to vector<8x8xf32>
    %6 = arith.truncf %1 : vector<8x32xf32> to vector<8x32xbf16>
    %7 = arith.truncf %3 : vector<8x32xf32> to vector<8x32xbf16>
    %cst = arith.constant 0.000000e+00 : f32
    %8 = vector.broadcast %cst : f32 to vector<8x32xf32>
    %c0_8 = arith.constant 0 : index
    %c0_9 = arith.constant 0 : index
    %c0_10 = arith.constant 0 : index
    %9 = vector.load %arg4[%c0_8, %c0_9, %c0_10] : memref<4x32x8xbf16, #tpu.memory_space<vmem>>, vector<1x32x8xbf16>
    %10 = vector.shape_cast %9 : vector<1x32x8xbf16> to vector<32x8xbf16>
    %cst_11 = arith.constant dense<0.000000e+00> : vector<8x8xf32>
    %11 = tpu.matmul %6, %10, %cst_11 {dimension_numbers = #tpu.dot_dimension_numbers<[1], [0], [0], [1], [0, 0, 1, 1], [], []>} : vector<8x32xbf16>, vector<32x8xbf16>, vector<8x8xf32> -> vector<8x8xf32>
    %c0_12 = arith.constant 0 : index
    %c0_13 = arith.constant 0 : index
    %c0_14 = arith.constant 0 : index
    %12 = vector.load %arg5[%c0_12, %c0_13, %c0_14] : memref<4x1x8xf32, #tpu.memory_space<vmem>>, vector<1x1x8xf32>
    %13 = vector.shape_cast %12 : vector<1x1x8xf32> to vector<1x8xf32>
    %14 = vector.broadcast %13 : vector<1x8xf32> to vector<8x8xf32>
    %15 = arith.addf %11, %14 : vector<8x8xf32>
    %cst_15 = arith.constant 0.353553385 : f32
    %16 = vector.broadcast %cst_15 : f32 to vector<8x8xf32>
    %17 = arith.mulf %15, %16 : vector<8x8xf32>
    %c0_16 = arith.constant 0 : index
    %c0_17 = arith.constant 0 : index
    %c0_18 = arith.constant 0 : index
    %18 = vector.load %arg6[%c0_16, %c0_17, %c0_18] : memref<4x32x8xbf16, #tpu.memory_space<vmem>>, vector<1x32x8xbf16>
    %19 = vector.shape_cast %18 : vector<1x32x8xbf16> to vector<32x8xbf16>
    %cst_19 = arith.constant dense<0.000000e+00> : vector<8x8xf32>
    %20 = tpu.matmul %7, %19, %cst_19 {dimension_numbers = #tpu.dot_dimension_numbers<[1], [0], [0], [1], [0, 0, 1, 1], [], []>} : vector<8x32xbf16>, vector<32x8xbf16>, vector<8x8xf32> -> vector<8x8xf32>
    %c0_20 = arith.constant 0 : index
    %c0_21 = arith.constant 0 : index
    %c0_22 = arith.constant 0 : index
    %21 = vector.load %arg7[%c0_20, %c0_21, %c0_22] : memref<4x1x8xf32, #tpu.memory_space<vmem>>, vector<1x1x8xf32>
    %22 = vector.shape_cast %21 : vector<1x1x8xf32> to vector<1x8xf32>
    %23 = vector.broadcast %22 : vector<1x8xf32> to vector<8x8xf32>
    %24 = arith.addf %20, %23 : vector<8x8xf32>
    %c0_23 = arith.constant 0 : index
    %c0_24 = arith.constant 0 : index
    %c0_25 = arith.constant 0 : index
    %25 = vector.load %arg8[%c0_23, %c0_24, %c0_25] : memref<4x32x8xbf16, #tpu.memory_space<vmem>>, vector<1x32x8xbf16>
    %26 = vector.shape_cast %25 : vector<1x32x8xbf16> to vector<32x8xbf16>
    %cst_26 = arith.constant dense<0.000000e+00> : vector<8x8xf32>
    %27 = tpu.matmul %7, %26, %cst_26 {dimension_numbers = #tpu.dot_dimension_numbers<[1], [0], [0], [1], [0, 0, 1, 1], [], []>} : vector<8x32xbf16>, vector<32x8xbf16>, vector<8x8xf32> -> vector<8x8xf32>
    %c0_27 = arith.constant 0 : index
    %c0_28 = arith.constant 0 : index
    %c0_29 = arith.constant 0 : index
    %28 = vector.load %arg9[%c0_27, %c0_28, %c0_29] : memref<4x1x8xf32, #tpu.memory_space<vmem>>, vector<1x1x8xf32>
    %29 = vector.shape_cast %28 : vector<1x1x8xf32> to vector<1x8xf32>
    %30 = vector.broadcast %29 : vector<1x8xf32> to vector<8x8xf32>
    %31 = arith.addf %27, %30 : vector<8x8xf32>
    %32 = arith.truncf %17 : vector<8x8xf32> to vector<8x8xbf16>
    %33 = arith.truncf %24 : vector<8x8xf32> to vector<8x8xbf16>
    %cst_30 = arith.constant dense<0.000000e+00> : vector<8x8xf32>
    %34 = tpu.matmul %32, %33, %cst_30 {dimension_numbers = #tpu.dot_dimension_numbers<[1], [1], [0], [0], [0, 0, 1, 0], [], []>} : vector<8x8xbf16>, vector<8x8xbf16>, vector<8x8xf32> -> vector<8x8xf32>
    %cst_31 = arith.constant 0.000000e+00 : f32
    %35 = vector.broadcast %cst_31 : f32 to vector<8x8xf32>
    %36 = arith.cmpf ogt, %5, %35 : vector<8x8xf32>
    %cst_32 = arith.constant -1.000000e+10 : f32
    %37 = vector.broadcast %cst_32 : f32 to vector<8x8xf32>
    %38 = arith.select %36, %34, %37 : vector<8x8xi1>, vector<8x8xf32>
    %cst_33 = arith.constant dense<0xFF800000> : vector<8xf32>
    %39 = vector.multi_reduction <maximumf>, %38, %cst_33 [1] : vector<8x8xf32> to vector<8xf32>
    %40 = vector.shape_cast %39 : vector<8xf32> to vector<8x1xf32>
    %41 = vector.broadcast %40 : vector<8x1xf32> to vector<8x8xf32>
    %42 = arith.subf %38, %41 : vector<8x8xf32>
    %43 = math.exp %42 : vector<8x8xf32>
    %cst_34 = arith.constant dense<0.000000e+00> : vector<8xf32>
    %44 = vector.multi_reduction <add>, %43, %cst_34 [1] : vector<8x8xf32> to vector<8xf32>
    %45 = vector.shape_cast %44 : vector<8xf32> to vector<8x1xf32>
    %46 = tpu.reciprocal %45 {approx = true} : vector<8x1xf32> -> vector<8x1xf32>
    %47 = vector.broadcast %46 : vector<8x1xf32> to vector<8x8xf32>
    %48 = arith.mulf %43, %47 : vector<8x8xf32>
    %49 = arith.truncf %48 : vector<8x8xf32> to vector<8x8xbf16>
    %50 = arith.truncf %31 : vector<8x8xf32> to vector<8x8xbf16>
    %cst_35 = arith.constant dense<0.000000e+00> : vector<8x8xf32>
    %51 = tpu.matmul %49, %50, %cst_35 {dimension_numbers = #tpu.dot_dimension_numbers<[1], [0], [0], [1], [0, 0, 1, 1], [], []>} : vector<8x8xbf16>, vector<8x8xbf16>, vector<8x8xf32> -> vector<8x8xf32>
    %52 = arith.truncf %51 : vector<8x8xf32> to vector<8x8xbf16>
    %c0_36 = arith.constant 0 : index
    %c0_37 = arith.constant 0 : index
    %c0_38 = arith.constant 0 : index
    %53 = vector.load %arg10[%c0_36, %c0_37, %c0_38] : memref<4x8x32xbf16, #tpu.memory_space<vmem>>, vector<1x8x32xbf16>
    %54 = vector.shape_cast %53 : vector<1x8x32xbf16> to vector<8x32xbf16>
    %cst_39 = arith.constant dense<0.000000e+00> : vector<8x32xf32>
    %55 = tpu.matmul %52, %54, %cst_39 {dimension_numbers = #tpu.dot_dimension_numbers<[1], [0], [0], [1], [0, 0, 1, 1], [], []>} : vector<8x8xbf16>, vector<8x32xbf16>, vector<8x32xf32> -> vector<8x32xf32>
    %56 = arith.addf %8, %55 : vector<8x32xf32>
    %c1 = arith.constant 1 : index
    %c0_40 = arith.constant 0 : index
    %c0_41 = arith.constant 0 : index
    %57 = vector.load %arg4[%c1, %c0_40, %c0_41] : memref<4x32x8xbf16, #tpu.memory_space<vmem>>, vector<1x32x8xbf16>
    %58 = vector.shape_cast %57 : vector<1x32x8xbf16> to vector<32x8xbf16>
    %cst_42 = arith.constant dense<0.000000e+00> : vector<8x8xf32>
    %59 = tpu.matmul %6, %58, %cst_42 {dimension_numbers = #tpu.dot_dimension_numbers<[1], [0], [0], [1], [0, 0, 1, 1], [], []>} : vector<8x32xbf16>, vector<32x8xbf16>, vector<8x8xf32> -> vector<8x8xf32>
    %c1_43 = arith.constant 1 : index
    %c0_44 = arith.constant 0 : index
    %c0_45 = arith.constant 0 : index
    %60 = vector.load %arg5[%c1_43, %c0_44, %c0_45] : memref<4x1x8xf32, #tpu.memory_space<vmem>>, vector<1x1x8xf32>
    %61 = vector.shape_cast %60 : vector<1x1x8xf32> to vector<1x8xf32>
    %62 = vector.broadcast %61 : vector<1x8xf32> to vector<8x8xf32>
    %63 = arith.addf %59, %62 : vector<8x8xf32>
    %cst_46 = arith.constant 0.353553385 : f32
    %64 = vector.broadcast %cst_46 : f32 to vector<8x8xf32>
    %65 = arith.mulf %63, %64 : vector<8x8xf32>
    %c1_47 = arith.constant 1 : index
    %c0_48 = arith.constant 0 : index
    %c0_49 = arith.constant 0 : index
    %66 = vector.load %arg6[%c1_47, %c0_48, %c0_49] : memref<4x32x8xbf16, #tpu.memory_space<vmem>>, vector<1x32x8xbf16>
    %67 = vector.shape_cast %66 : vector<1x32x8xbf16> to vector<32x8xbf16>
    %cst_50 = arith.constant dense<0.000000e+00> : vector<8x8xf32>
    %68 = tpu.matmul %7, %67, %cst_50 {dimension_numbers = #tpu.dot_dimension_numbers<[1], [0], [0], [1], [0, 0, 1, 1], [], []>} : vector<8x32xbf16>, vector<32x8xbf16>, vector<8x8xf32> -> vector<8x8xf32>
    %c1_51 = arith.constant 1 : index
    %c0_52 = arith.constant 0 : index
    %c0_53 = arith.constant 0 : index
    %69 = vector.load %arg7[%c1_51, %c0_52, %c0_53] : memref<4x1x8xf32, #tpu.memory_space<vmem>>, vector<1x1x8xf32>
    %70 = vector.shape_cast %69 : vector<1x1x8xf32> to vector<1x8xf32>
    %71 = vector.broadcast %70 : vector<1x8xf32> to vector<8x8xf32>
    %72 = arith.addf %68, %71 : vector<8x8xf32>
    %c1_54 = arith.constant 1 : index
    %c0_55 = arith.constant 0 : index
    %c0_56 = arith.constant 0 : index
    %73 = vector.load %arg8[%c1_54, %c0_55, %c0_56] : memref<4x32x8xbf16, #tpu.memory_space<vmem>>, vector<1x32x8xbf16>
    %74 = vector.shape_cast %73 : vector<1x32x8xbf16> to vector<32x8xbf16>
    %cst_57 = arith.constant dense<0.000000e+00> : vector<8x8xf32>
    %75 = tpu.matmul %7, %74, %cst_57 {dimension_numbers = #tpu.dot_dimension_numbers<[1], [0], [0], [1], [0, 0, 1, 1], [], []>} : vector<8x32xbf16>, vector<32x8xbf16>, vector<8x8xf32> -> vector<8x8xf32>
    %c1_58 = arith.constant 1 : index
    %c0_59 = arith.constant 0 : index
    %c0_60 = arith.constant 0 : index
    %76 = vector.load %arg9[%c1_58, %c0_59, %c0_60] : memref<4x1x8xf32, #tpu.memory_space<vmem>>, vector<1x1x8xf32>
    %77 = vector.shape_cast %76 : vector<1x1x8xf32> to vector<1x8xf32>
    %78 = vector.broadcast %77 : vector<1x8xf32> to vector<8x8xf32>
    %79 = arith.addf %75, %78 : vector<8x8xf32>
    %80 = arith.truncf %65 : vector<8x8xf32> to vector<8x8xbf16>
    %81 = arith.truncf %72 : vector<8x8xf32> to vector<8x8xbf16>
    %cst_61 = arith.constant dense<0.000000e+00> : vector<8x8xf32>
    %82 = tpu.matmul %80, %81, %cst_61 {dimension_numbers = #tpu.dot_dimension_numbers<[1], [1], [0], [0], [0, 0, 1, 0], [], []>} : vector<8x8xbf16>, vector<8x8xbf16>, vector<8x8xf32> -> vector<8x8xf32>
    %cst_62 = arith.constant 0.000000e+00 : f32
    %83 = vector.broadcast %cst_62 : f32 to vector<8x8xf32>
    %84 = arith.cmpf ogt, %5, %83 : vector<8x8xf32>
    %cst_63 = arith.constant -1.000000e+10 : f32
    %85 = vector.broadcast %cst_63 : f32 to vector<8x8xf32>
    %86 = arith.select %84, %82, %85 : vector<8x8xi1>, vector<8x8xf32>
    %cst_64 = arith.constant dense<0xFF800000> : vector<8xf32>
    %87 = vector.multi_reduction <maximumf>, %86, %cst_64 [1] : vector<8x8xf32> to vector<8xf32>
    %88 = vector.shape_cast %87 : vector<8xf32> to vector<8x1xf32>
    %89 = vector.broadcast %88 : vector<8x1xf32> to vector<8x8xf32>
    %90 = arith.subf %86, %89 : vector<8x8xf32>
    %91 = math.exp %90 : vector<8x8xf32>
    %cst_65 = arith.constant dense<0.000000e+00> : vector<8xf32>
    %92 = vector.multi_reduction <add>, %91, %cst_65 [1] : vector<8x8xf32> to vector<8xf32>
    %93 = vector.shape_cast %92 : vector<8xf32> to vector<8x1xf32>
    %94 = tpu.reciprocal %93 {approx = true} : vector<8x1xf32> -> vector<8x1xf32>
    %95 = vector.broadcast %94 : vector<8x1xf32> to vector<8x8xf32>
    %96 = arith.mulf %91, %95 : vector<8x8xf32>
    %97 = arith.truncf %96 : vector<8x8xf32> to vector<8x8xbf16>
    %98 = arith.truncf %79 : vector<8x8xf32> to vector<8x8xbf16>
    %cst_66 = arith.constant dense<0.000000e+00> : vector<8x8xf32>
    %99 = tpu.matmul %97, %98, %cst_66 {dimension_numbers = #tpu.dot_dimension_numbers<[1], [0], [0], [1], [0, 0, 1, 1], [], []>} : vector<8x8xbf16>, vector<8x8xbf16>, vector<8x8xf32> -> vector<8x8xf32>
    %100 = arith.truncf %99 : vector<8x8xf32> to vector<8x8xbf16>
    %c1_67 = arith.constant 1 : index
    %c0_68 = arith.constant 0 : index
    %c0_69 = arith.constant 0 : index
    %101 = vector.load %arg10[%c1_67, %c0_68, %c0_69] : memref<4x8x32xbf16, #tpu.memory_space<vmem>>, vector<1x8x32xbf16>
    %102 = vector.shape_cast %101 : vector<1x8x32xbf16> to vector<8x32xbf16>
    %cst_70 = arith.constant dense<0.000000e+00> : vector<8x32xf32>
    %103 = tpu.matmul %100, %102, %cst_70 {dimension_numbers = #tpu.dot_dimension_numbers<[1], [0], [0], [1], [0, 0, 1, 1], [], []>} : vector<8x8xbf16>, vector<8x32xbf16>, vector<8x32xf32> -> vector<8x32xf32>
    %104 = arith.addf %56, %103 : vector<8x32xf32>
    %c2 = arith.constant 2 : index
    %c0_71 = arith.constant 0 : index
    %c0_72 = arith.constant 0 : index
    %105 = vector.load %arg4[%c2, %c0_71, %c0_72] : memref<4x32x8xbf16, #tpu.memory_space<vmem>>, vector<1x32x8xbf16>
    %106 = vector.shape_cast %105 : vector<1x32x8xbf16> to vector<32x8xbf16>
    %cst_73 = arith.constant dense<0.000000e+00> : vector<8x8xf32>
    %107 = tpu.matmul %6, %106, %cst_73 {dimension_numbers = #tpu.dot_dimension_numbers<[1], [0], [0], [1], [0, 0, 1, 1], [], []>} : vector<8x32xbf16>, vector<32x8xbf16>, vector<8x8xf32> -> vector<8x8xf32>
    %c2_74 = arith.constant 2 : index
    %c0_75 = arith.constant 0 : index
    %c0_76 = arith.constant 0 : index
    %108 = vector.load %arg5[%c2_74, %c0_75, %c0_76] : memref<4x1x8xf32, #tpu.memory_space<vmem>>, vector<1x1x8xf32>
    %109 = vector.shape_cast %108 : vector<1x1x8xf32> to vector<1x8xf32>
    %110 = vector.broadcast %109 : vector<1x8xf32> to vector<8x8xf32>
    %111 = arith.addf %107, %110 : vector<8x8xf32>
    %cst_77 = arith.constant 0.353553385 : f32
    %112 = vector.broadcast %cst_77 : f32 to vector<8x8xf32>
    %113 = arith.mulf %111, %112 : vector<8x8xf32>
    %c2_78 = arith.constant 2 : index
    %c0_79 = arith.constant 0 : index
    %c0_80 = arith.constant 0 : index
    %114 = vector.load %arg6[%c2_78, %c0_79, %c0_80] : memref<4x32x8xbf16, #tpu.memory_space<vmem>>, vector<1x32x8xbf16>
    %115 = vector.shape_cast %114 : vector<1x32x8xbf16> to vector<32x8xbf16>
    %cst_81 = arith.constant dense<0.000000e+00> : vector<8x8xf32>
    %116 = tpu.matmul %7, %115, %cst_81 {dimension_numbers = #tpu.dot_dimension_numbers<[1], [0], [0], [1], [0, 0, 1, 1], [], []>} : vector<8x32xbf16>, vector<32x8xbf16>, vector<8x8xf32> -> vector<8x8xf32>
    %c2_82 = arith.constant 2 : index
    %c0_83 = arith.constant 0 : index
    %c0_84 = arith.constant 0 : index
    %117 = vector.load %arg7[%c2_82, %c0_83, %c0_84] : memref<4x1x8xf32, #tpu.memory_space<vmem>>, vector<1x1x8xf32>
    %118 = vector.shape_cast %117 : vector<1x1x8xf32> to vector<1x8xf32>
    %119 = vector.broadcast %118 : vector<1x8xf32> to vector<8x8xf32>
    %120 = arith.addf %116, %119 : vector<8x8xf32>
    %c2_85 = arith.constant 2 : index
    %c0_86 = arith.constant 0 : index
    %c0_87 = arith.constant 0 : index
    %121 = vector.load %arg8[%c2_85, %c0_86, %c0_87] : memref<4x32x8xbf16, #tpu.memory_space<vmem>>, vector<1x32x8xbf16>
    %122 = vector.shape_cast %121 : vector<1x32x8xbf16> to vector<32x8xbf16>
    %cst_88 = arith.constant dense<0.000000e+00> : vector<8x8xf32>
    %123 = tpu.matmul %7, %122, %cst_88 {dimension_numbers = #tpu.dot_dimension_numbers<[1], [0], [0], [1], [0, 0, 1, 1], [], []>} : vector<8x32xbf16>, vector<32x8xbf16>, vector<8x8xf32> -> vector<8x8xf32>
    %c2_89 = arith.constant 2 : index
    %c0_90 = arith.constant 0 : index
    %c0_91 = arith.constant 0 : index
    %124 = vector.load %arg9[%c2_89, %c0_90, %c0_91] : memref<4x1x8xf32, #tpu.memory_space<vmem>>, vector<1x1x8xf32>
    %125 = vector.shape_cast %124 : vector<1x1x8xf32> to vector<1x8xf32>
    %126 = vector.broadcast %125 : vector<1x8xf32> to vector<8x8xf32>
    %127 = arith.addf %123, %126 : vector<8x8xf32>
    %128 = arith.truncf %113 : vector<8x8xf32> to vector<8x8xbf16>
    %129 = arith.truncf %120 : vector<8x8xf32> to vector<8x8xbf16>
    %cst_92 = arith.constant dense<0.000000e+00> : vector<8x8xf32>
    %130 = tpu.matmul %128, %129, %cst_92 {dimension_numbers = #tpu.dot_dimension_numbers<[1], [1], [0], [0], [0, 0, 1, 0], [], []>} : vector<8x8xbf16>, vector<8x8xbf16>, vector<8x8xf32> -> vector<8x8xf32>
    %cst_93 = arith.constant 0.000000e+00 : f32
    %131 = vector.broadcast %cst_93 : f32 to vector<8x8xf32>
    %132 = arith.cmpf ogt, %5, %131 : vector<8x8xf32>
    %cst_94 = arith.constant -1.000000e+10 : f32
    %133 = vector.broadcast %cst_94 : f32 to vector<8x8xf32>
    %134 = arith.select %132, %130, %133 : vector<8x8xi1>, vector<8x8xf32>
    %cst_95 = arith.constant dense<0xFF800000> : vector<8xf32>
    %135 = vector.multi_reduction <maximumf>, %134, %cst_95 [1] : vector<8x8xf32> to vector<8xf32>
    %136 = vector.shape_cast %135 : vector<8xf32> to vector<8x1xf32>
    %137 = vector.broadcast %136 : vector<8x1xf32> to vector<8x8xf32>
    %138 = arith.subf %134, %137 : vector<8x8xf32>
    %139 = math.exp %138 : vector<8x8xf32>
    %cst_96 = arith.constant dense<0.000000e+00> : vector<8xf32>
    %140 = vector.multi_reduction <add>, %139, %cst_96 [1] : vector<8x8xf32> to vector<8xf32>
    %141 = vector.shape_cast %140 : vector<8xf32> to vector<8x1xf32>
    %142 = tpu.reciprocal %141 {approx = true} : vector<8x1xf32> -> vector<8x1xf32>
    %143 = vector.broadcast %142 : vector<8x1xf32> to vector<8x8xf32>
    %144 = arith.mulf %139, %143 : vector<8x8xf32>
    %145 = arith.truncf %144 : vector<8x8xf32> to vector<8x8xbf16>
    %146 = arith.truncf %127 : vector<8x8xf32> to vector<8x8xbf16>
    %cst_97 = arith.constant dense<0.000000e+00> : vector<8x8xf32>
    %147 = tpu.matmul %145, %146, %cst_97 {dimension_numbers = #tpu.dot_dimension_numbers<[1], [0], [0], [1], [0, 0, 1, 1], [], []>} : vector<8x8xbf16>, vector<8x8xbf16>, vector<8x8xf32> -> vector<8x8xf32>
    %148 = arith.truncf %147 : vector<8x8xf32> to vector<8x8xbf16>
    %c2_98 = arith.constant 2 : index
    %c0_99 = arith.constant 0 : index
    %c0_100 = arith.constant 0 : index
    %149 = vector.load %arg10[%c2_98, %c0_99, %c0_100] : memref<4x8x32xbf16, #tpu.memory_space<vmem>>, vector<1x8x32xbf16>
    %150 = vector.shape_cast %149 : vector<1x8x32xbf16> to vector<8x32xbf16>
    %cst_101 = arith.constant dense<0.000000e+00> : vector<8x32xf32>
    %151 = tpu.matmul %148, %150, %cst_101 {dimension_numbers = #tpu.dot_dimension_numbers<[1], [0], [0], [1], [0, 0, 1, 1], [], []>} : vector<8x8xbf16>, vector<8x32xbf16>, vector<8x32xf32> -> vector<8x32xf32>
    %152 = arith.addf %104, %151 : vector<8x32xf32>
    %c3 = arith.constant 3 : index
    %c0_102 = arith.constant 0 : index
    %c0_103 = arith.constant 0 : index
    %153 = vector.load %arg4[%c3, %c0_102, %c0_103] : memref<4x32x8xbf16, #tpu.memory_space<vmem>>, vector<1x32x8xbf16>
    %154 = vector.shape_cast %153 : vector<1x32x8xbf16> to vector<32x8xbf16>
    %cst_104 = arith.constant dense<0.000000e+00> : vector<8x8xf32>
    %155 = tpu.matmul %6, %154, %cst_104 {dimension_numbers = #tpu.dot_dimension_numbers<[1], [0], [0], [1], [0, 0, 1, 1], [], []>} : vector<8x32xbf16>, vector<32x8xbf16>, vector<8x8xf32> -> vector<8x8xf32>
    %c3_105 = arith.constant 3 : index
    %c0_106 = arith.constant 0 : index
    %c0_107 = arith.constant 0 : index
    %156 = vector.load %arg5[%c3_105, %c0_106, %c0_107] : memref<4x1x8xf32, #tpu.memory_space<vmem>>, vector<1x1x8xf32>
    %157 = vector.shape_cast %156 : vector<1x1x8xf32> to vector<1x8xf32>
    %158 = vector.broadcast %157 : vector<1x8xf32> to vector<8x8xf32>
    %159 = arith.addf %155, %158 : vector<8x8xf32>
    %cst_108 = arith.constant 0.353553385 : f32
    %160 = vector.broadcast %cst_108 : f32 to vector<8x8xf32>
    %161 = arith.mulf %159, %160 : vector<8x8xf32>
    %c3_109 = arith.constant 3 : index
    %c0_110 = arith.constant 0 : index
    %c0_111 = arith.constant 0 : index
    %162 = vector.load %arg6[%c3_109, %c0_110, %c0_111] : memref<4x32x8xbf16, #tpu.memory_space<vmem>>, vector<1x32x8xbf16>
    %163 = vector.shape_cast %162 : vector<1x32x8xbf16> to vector<32x8xbf16>
    %cst_112 = arith.constant dense<0.000000e+00> : vector<8x8xf32>
    %164 = tpu.matmul %7, %163, %cst_112 {dimension_numbers = #tpu.dot_dimension_numbers<[1], [0], [0], [1], [0, 0, 1, 1], [], []>} : vector<8x32xbf16>, vector<32x8xbf16>, vector<8x8xf32> -> vector<8x8xf32>
    %c3_113 = arith.constant 3 : index
    %c0_114 = arith.constant 0 : index
    %c0_115 = arith.constant 0 : index
    %165 = vector.load %arg7[%c3_113, %c0_114, %c0_115] : memref<4x1x8xf32, #tpu.memory_space<vmem>>, vector<1x1x8xf32>
    %166 = vector.shape_cast %165 : vector<1x1x8xf32> to vector<1x8xf32>
    %167 = vector.broadcast %166 : vector<1x8xf32> to vector<8x8xf32>
    %168 = arith.addf %164, %167 : vector<8x8xf32>
    %c3_116 = arith.constant 3 : index
    %c0_117 = arith.constant 0 : index
    %c0_118 = arith.constant 0 : index
    %169 = vector.load %arg8[%c3_116, %c0_117, %c0_118] : memref<4x32x8xbf16, #tpu.memory_space<vmem>>, vector<1x32x8xbf16>
    %170 = vector.shape_cast %169 : vector<1x32x8xbf16> to vector<32x8xbf16>
    %cst_119 = arith.constant dense<0.000000e+00> : vector<8x8xf32>
    %171 = tpu.matmul %7, %170, %cst_119 {dimension_numbers = #tpu.dot_dimension_numbers<[1], [0], [0], [1], [0, 0, 1, 1], [], []>} : vector<8x32xbf16>, vector<32x8xbf16>, vector<8x8xf32> -> vector<8x8xf32>
    %c3_120 = arith.constant 3 : index
    %c0_121 = arith.constant 0 : index
    %c0_122 = arith.constant 0 : index
    %172 = vector.load %arg9[%c3_120, %c0_121, %c0_122] : memref<4x1x8xf32, #tpu.memory_space<vmem>>, vector<1x1x8xf32>
    %173 = vector.shape_cast %172 : vector<1x1x8xf32> to vector<1x8xf32>
    %174 = vector.broadcast %173 : vector<1x8xf32> to vector<8x8xf32>
    %175 = arith.addf %171, %174 : vector<8x8xf32>
    %176 = arith.truncf %161 : vector<8x8xf32> to vector<8x8xbf16>
    %177 = arith.truncf %168 : vector<8x8xf32> to vector<8x8xbf16>
    %cst_123 = arith.constant dense<0.000000e+00> : vector<8x8xf32>
    %178 = tpu.matmul %176, %177, %cst_123 {dimension_numbers = #tpu.dot_dimension_numbers<[1], [1], [0], [0], [0, 0, 1, 0], [], []>} : vector<8x8xbf16>, vector<8x8xbf16>, vector<8x8xf32> -> vector<8x8xf32>
    %cst_124 = arith.constant 0.000000e+00 : f32
    %179 = vector.broadcast %cst_124 : f32 to vector<8x8xf32>
    %180 = arith.cmpf ogt, %5, %179 : vector<8x8xf32>
    %cst_125 = arith.constant -1.000000e+10 : f32
    %181 = vector.broadcast %cst_125 : f32 to vector<8x8xf32>
    %182 = arith.select %180, %178, %181 : vector<8x8xi1>, vector<8x8xf32>
    %cst_126 = arith.constant dense<0xFF800000> : vector<8xf32>
    %183 = vector.multi_reduction <maximumf>, %182, %cst_126 [1] : vector<8x8xf32> to vector<8xf32>
    %184 = vector.shape_cast %183 : vector<8xf32> to vector<8x1xf32>
    %185 = vector.broadcast %184 : vector<8x1xf32> to vector<8x8xf32>
    %186 = arith.subf %182, %185 : vector<8x8xf32>
    %187 = math.exp %186 : vector<8x8xf32>
    %cst_127 = arith.constant dense<0.000000e+00> : vector<8xf32>
    %188 = vector.multi_reduction <add>, %187, %cst_127 [1] : vector<8x8xf32> to vector<8xf32>
    %189 = vector.shape_cast %188 : vector<8xf32> to vector<8x1xf32>
    %190 = tpu.reciprocal %189 {approx = true} : vector<8x1xf32> -> vector<8x1xf32>
    %191 = vector.broadcast %190 : vector<8x1xf32> to vector<8x8xf32>
    %192 = arith.mulf %187, %191 : vector<8x8xf32>
    %193 = arith.truncf %192 : vector<8x8xf32> to vector<8x8xbf16>
    %194 = arith.truncf %175 : vector<8x8xf32> to vector<8x8xbf16>
    %cst_128 = arith.constant dense<0.000000e+00> : vector<8x8xf32>
    %195 = tpu.matmul %193, %194, %cst_128 {dimension_numbers = #tpu.dot_dimension_numbers<[1], [0], [0], [1], [0, 0, 1, 1], [], []>} : vector<8x8xbf16>, vector<8x8xbf16>, vector<8x8xf32> -> vector<8x8xf32>
    %196 = arith.truncf %195 : vector<8x8xf32> to vector<8x8xbf16>
    %c3_129 = arith.constant 3 : index
    %c0_130 = arith.constant 0 : index
    %c0_131 = arith.constant 0 : index
    %197 = vector.load %arg10[%c3_129, %c0_130, %c0_131] : memref<4x8x32xbf16, #tpu.memory_space<vmem>>, vector<1x8x32xbf16>
    %198 = vector.shape_cast %197 : vector<1x8x32xbf16> to vector<8x32xbf16>
    %cst_132 = arith.constant dense<0.000000e+00> : vector<8x32xf32>
    %199 = tpu.matmul %196, %198, %cst_132 {dimension_numbers = #tpu.dot_dimension_numbers<[1], [0], [0], [1], [0, 0, 1, 1], [], []>} : vector<8x8xbf16>, vector<8x32xbf16>, vector<8x32xf32> -> vector<8x32xf32>
    %200 = arith.addf %152, %199 : vector<8x32xf32>
    %c0_133 = arith.constant 0 : index
    %c0_134 = arith.constant 0 : index
    %201 = vector.load %arg11[%c0_133, %c0_134] : memref<1x32xf32, #tpu.memory_space<vmem>>, vector<1x32xf32>
    %202 = vector.broadcast %201 : vector<1x32xf32> to vector<8x32xf32>
    %203 = arith.addf %200, %202 : vector<8x32xf32>
    %204 = arith.addf %203, %1 : vector<8x32xf32>
    %cst_135 = arith.constant dense<0.000000e+00> : vector<8xf32>
    %205 = vector.multi_reduction <add>, %204, %cst_135 [1] : vector<8x32xf32> to vector<8xf32>
    %206 = vector.shape_cast %205 : vector<8xf32> to vector<8x1xf32>
    %cst_136 = arith.constant 3.200000e+01 : f32
    %207 = vector.broadcast %cst_136 : f32 to vector<8x1xf32>
    %208 = arith.divf %206, %207 : vector<8x1xf32>
    %209 = vector.broadcast %208 : vector<8x1xf32> to vector<8x32xf32>
    %210 = arith.subf %204, %209 : vector<8x32xf32>
    %211 = arith.mulf %210, %210 : vector<8x32xf32>
    %cst_137 = arith.constant dense<0.000000e+00> : vector<8xf32>
    %212 = vector.multi_reduction <add>, %211, %cst_137 [1] : vector<8x32xf32> to vector<8xf32>
    %213 = vector.shape_cast %212 : vector<8xf32> to vector<8x1xf32>
    %cst_138 = arith.constant 3.200000e+01 : f32
    %214 = vector.broadcast %cst_138 : f32 to vector<8x1xf32>
    %215 = arith.divf %213, %214 : vector<8x1xf32>
    %216 = vector.broadcast %208 : vector<8x1xf32> to vector<8x32xf32>
    %217 = arith.subf %204, %216 : vector<8x32xf32>
    %cst_139 = arith.constant 9.99999974E-6 : f32
    %218 = vector.broadcast %cst_139 : f32 to vector<8x1xf32>
    %219 = arith.addf %215, %218 : vector<8x1xf32>
    %220 = math.rsqrt %219 : vector<8x1xf32>
    %221 = vector.broadcast %220 : vector<8x1xf32> to vector<8x32xf32>
    %222 = arith.mulf %217, %221 : vector<8x32xf32>
    %c0_140 = arith.constant 0 : index
    %c0_141 = arith.constant 0 : index
    %223 = vector.load %arg12[%c0_140, %c0_141] : memref<1x32xf32, #tpu.memory_space<vmem>>, vector<1x32xf32>
    %224 = vector.broadcast %223 : vector<1x32xf32> to vector<8x32xf32>
    %225 = arith.mulf %222, %224 : vector<8x32xf32>
    %c0_142 = arith.constant 0 : index
    %c0_143 = arith.constant 0 : index
    %226 = vector.load %arg13[%c0_142, %c0_143] : memref<1x32xf32, #tpu.memory_space<vmem>>, vector<1x32xf32>
    %227 = vector.broadcast %226 : vector<1x32xf32> to vector<8x32xf32>
    %228 = arith.addf %225, %227 : vector<8x32xf32>
    %c0_144 = arith.constant 0 : index
    %c0_145 = arith.constant 0 : index
    %c0_146 = arith.constant 0 : index
    %229 = vector.load %arg14[%c0_144, %c0_145, %c0_146] : memref<1x8x32xf32, #tpu.memory_space<vmem>>, vector<1x8x32xf32>
    %230 = vector.shape_cast %229 : vector<1x8x32xf32> to vector<8x32xf32>
    %231 = vector.shape_cast %228 : vector<8x32xf32> to vector<1x8x32xf32>
    tpu.vector_store %arg14[%c0_144, %c0_145, %c0_146], %231 {strides = array<i32>} : memref<1x8x32xf32, #tpu.memory_space<vmem>>, vector<1x8x32xf32>,
    return
  }
  func.func @transform_0(%arg0: i32) -> (i32, i32, i32) {
    %c0_i32 = arith.constant 0 : i32
    %c0_i32_0 = arith.constant 0 : i32
    %c0_i32_1 = arith.constant 0 : i32
    return %arg0, %c0_i32, %c0_i32_0 : i32, i32, i32
  }
  func.func @transform_1(%arg0: i32) -> (i32, i32, i32) {
    %c0_i32 = arith.constant 0 : i32
    %c0_i32_0 = arith.constant 0 : i32
    %c0_i32_1 = arith.constant 0 : i32
    return %arg0, %c0_i32, %c0_i32_0 : i32, i32, i32
  }
  func.func @transform_2(%arg0: i32) -> (i32, i32, i32) {
    %c0_i32 = arith.constant 0 : i32
    %c0_i32_0 = arith.constant 0 : i32
    %c0_i32_1 = arith.constant 0 : i32
    return %arg0, %c0_i32, %c0_i32_0 : i32, i32, i32
  }
  func.func @transform_3(%arg0: i32) -> (i32, i32, i32) {
    %c0_i32 = arith.constant 0 : i32
    %c0_i32_0 = arith.constant 0 : i32
    %c0_i32_1 = arith.constant 0 : i32
    %c0_i32_2 = arith.constant 0 : i32
    return %c0_i32, %c0_i32_0, %c0_i32_1 : i32, i32, i32
  }
  func.func @transform_4(%arg0: i32) -> (i32, i32, i32) {
    %c0_i32 = arith.constant 0 : i32
    %c0_i32_0 = arith.constant 0 : i32
    %c0_i32_1 = arith.constant 0 : i32
    %c0_i32_2 = arith.constant 0 : i32
    return %c0_i32, %c0_i32_0, %c0_i32_1 : i32, i32, i32
  }
  func.func @transform_5(%arg0: i32) -> (i32, i32, i32) {
    %c0_i32 = arith.constant 0 : i32
    %c0_i32_0 = arith.constant 0 : i32
    %c0_i32_1 = arith.constant 0 : i32
    %c0_i32_2 = arith.constant 0 : i32
    return %c0_i32, %c0_i32_0, %c0_i32_1 : i32, i32, i32
  }
  func.func @transform_6(%arg0: i32) -> (i32, i32, i32) {
    %c0_i32 = arith.constant 0 : i32
    %c0_i32_0 = arith.constant 0 : i32
    %c0_i32_1 = arith.constant 0 : i32
    %c0_i32_2 = arith.constant 0 : i32
    return %c0_i32, %c0_i32_0, %c0_i32_1 : i32, i32, i32
  }
  func.func @transform_7(%arg0: i32) -> (i32, i32, i32) {
    %c0_i32 = arith.constant 0 : i32
    %c0_i32_0 = arith.constant 0 : i32
    %c0_i32_1 = arith.constant 0 : i32
    %c0_i32_2 = arith.constant 0 : i32
    return %c0_i32, %c0_i32_0, %c0_i32_1 : i32, i32, i32
  }
  func.func @transform_8(%arg0: i32) -> (i32, i32, i32) {
    %c0_i32 = arith.constant 0 : i32
    %c0_i32_0 = arith.constant 0 : i32
    %c0_i32_1 = arith.constant 0 : i32
    %c0_i32_2 = arith.constant 0 : i32
    return %c0_i32, %c0_i32_0, %c0_i32_1 : i32, i32, i32
  }
  func.func @transform_9(%arg0: i32) -> (i32, i32, i32) {
    %c0_i32 = arith.constant 0 : i32
    %c0_i32_0 = arith.constant 0 : i32
    %c0_i32_1 = arith.constant 0 : i32
    %c0_i32_2 = arith.constant 0 : i32
    return %c0_i32, %c0_i32_0, %c0_i32_1 : i32, i32, i32
  }
  func.func @transform_10(%arg0: i32) -> (i32, i32) {
    %c0_i32 = arith.constant 0 : i32
    %c0_i32_0 = arith.constant 0 : i32
    %c0_i32_1 = arith.constant 0 : i32
    return %c0_i32, %c0_i32_0 : i32, i32
  }
  func.func @transform_11(%arg0: i32) -> (i32, i32) {
    %c0_i32 = arith.constant 0 : i32
    %c0_i32_0 = arith.constant 0 : i32
    %c0_i32_1 = arith.constant 0 : i32
    return %c0_i32, %c0_i32_0 : i32, i32
  }
  func.func @transform_12(%arg0: i32) -> (i32, i32) {
    %c0_i32 = arith.constant 0 : i32
    %c0_i32_0 = arith.constant 0 : i32
    %c0_i32_1 = arith.constant 0 : i32
    return %c0_i32, %c0_i32_0 : i32, i32
  }
  func.func @transform_13(%arg0: i32) -> (i32, i32, i32) {
    %c0_i32 = arith.constant 0 : i32
    %c0_i32_0 = arith.constant 0 : i32
    %c0_i32_1 = arith.constant 0 : i32
    return %arg0, %c0_i32, %c0_i32_0 : i32, i32, i32
  }
}

module attributes {stable_mosaic.version = 11 : i64} {
  func.func @_attn_block_kernel(%arg0: i32, %arg1: memref<1x6x32xf32, #tpu.memory_space<vmem>>, %arg2: memref<1x6x32xf32, #tpu.memory_space<vmem>>, %arg3: memref<1x6x6xf32, #tpu.memory_space<vmem>>, %arg4: memref<4x32x8xbf16, #tpu.memory_space<vmem>>, %arg5: memref<4x1x8xf32, #tpu.memory_space<vmem>>, %arg6: memref<4x32x8xbf16, #tpu.memory_space<vmem>>, %arg7: memref<4x1x8xf32, #tpu.memory_space<vmem>>, %arg8: memref<4x32x8xbf16, #tpu.memory_space<vmem>>, %arg9: memref<4x1x8xf32, #tpu.memory_space<vmem>>, %arg10: memref<4x8x32xbf16, #tpu.memory_space<vmem>>, %arg11: memref<1x32xf32, #tpu.memory_space<vmem>>, %arg12: memref<1x32xf32, #tpu.memory_space<vmem>>, %arg13: memref<1x32xf32, #tpu.memory_space<vmem>>, %arg14: memref<1x6x32xf32, #tpu.memory_space<vmem>>) attributes {dimension_semantics = [#tpu.dimension_semantics<parallel>], iteration_bounds = array<i64: 2>, scalar_prefetch = 0 : i64, scratch_operands = 0 : i64, tpu.core_type = #tpu.core_type<tc>, window_params = [{transform_indices = @transform_0, window_bounds = array<i64: 1, 6, 32>}, {transform_indices = @transform_1, window_bounds = array<i64: 1, 6, 32>}, {transform_indices = @transform_2, window_bounds = array<i64: 1, 6, 6>}, {pipeline_mode = #tpu.pipeline_mode<synchronous>, transform_indices = @transform_3, window_bounds = array<i64: 4, 32, 8>}, {pipeline_mode = #tpu.pipeline_mode<synchronous>, transform_indices = @transform_4, window_bounds = array<i64: 4, 1, 8>}, {pipeline_mode = #tpu.pipeline_mode<synchronous>, transform_indices = @transform_5, window_bounds = array<i64: 4, 32, 8>}, {pipeline_mode = #tpu.pipeline_mode<synchronous>, transform_indices = @transform_6, window_bounds = array<i64: 4, 1, 8>}, {pipeline_mode = #tpu.pipeline_mode<synchronous>, transform_indices = @transform_7, window_bounds = array<i64: 4, 32, 8>}, {pipeline_mode = #tpu.pipeline_mode<synchronous>, transform_indices = @transform_8, window_bounds = array<i64: 4, 1, 8>}, {pipeline_mode = #tpu.pipeline_mode<synchronous>, transform_indices = @transform_9, window_bounds = array<i64: 4, 8, 32>}, {pipeline_mode = #tpu.pipeline_mode<synchronous>, transform_indices = @transform_10, window_bounds = array<i64: 1, 32>}, {pipeline_mode = #tpu.pipeline_mode<synchronous>, transform_indices = @transform_11, window_bounds = array<i64: 1, 32>}, {pipeline_mode = #tpu.pipeline_mode<synchronous>, transform_indices = @transform_12, window_bounds = array<i64: 1, 32>}, {transform_indices = @transform_13, window_bounds = array<i64: 1, 6, 32>}]} {
    %c0 = arith.constant 0 : index
    %c0_0 = arith.constant 0 : index
    %c0_1 = arith.constant 0 : index
    %0 = vector.load %arg1[%c0, %c0_0, %c0_1] : memref<1x6x32xf32, #tpu.memory_space<vmem>>, vector<1x6x32xf32>
    %1 = vector.shape_cast %0 : vector<1x6x32xf32> to vector<6x32xf32>
    %c0_2 = arith.constant 0 : index
    %c0_3 = arith.constant 0 : index
    %c0_4 = arith.constant 0 : index
    %2 = vector.load %arg2[%c0_2, %c0_3, %c0_4] : memref<1x6x32xf32, #tpu.memory_space<vmem>>, vector<1x6x32xf32>
    %3 = vector.shape_cast %2 : vector<1x6x32xf32> to vector<6x32xf32>
    %c0_5 = arith.constant 0 : index
    %c0_6 = arith.constant 0 : index
    %c0_7 = arith.constant 0 : index
    %4 = vector.load %arg3[%c0_5, %c0_6, %c0_7] : memref<1x6x6xf32, #tpu.memory_space<vmem>>, vector<1x6x6xf32>
    %5 = vector.shape_cast %4 : vector<1x6x6xf32> to vector<6x6xf32>
    %6 = arith.truncf %1 : vector<6x32xf32> to vector<6x32xbf16>
    %7 = arith.truncf %3 : vector<6x32xf32> to vector<6x32xbf16>
    %cst = arith.constant 0.000000e+00 : f32
    %8 = vector.broadcast %cst : f32 to vector<6x32xf32>
    %c0_8 = arith.constant 0 : index
    %c0_9 = arith.constant 0 : index
    %c0_10 = arith.constant 0 : index
    %9 = vector.load %arg4[%c0_8, %c0_9, %c0_10] : memref<4x32x8xbf16, #tpu.memory_space<vmem>>, vector<1x32x8xbf16>
    %10 = vector.shape_cast %9 : vector<1x32x8xbf16> to vector<32x8xbf16>
    %cst_11 = arith.constant dense<0.000000e+00> : vector<6x8xf32>
    %11 = tpu.matmul %6, %10, %cst_11 {dimension_numbers = #tpu.dot_dimension_numbers<[1], [0], [0], [1], [0, 0, 1, 1], [], []>} : vector<6x32xbf16>, vector<32x8xbf16>, vector<6x8xf32> -> vector<6x8xf32>
    %c0_12 = arith.constant 0 : index
    %c0_13 = arith.constant 0 : index
    %c0_14 = arith.constant 0 : index
    %12 = vector.load %arg5[%c0_12, %c0_13, %c0_14] : memref<4x1x8xf32, #tpu.memory_space<vmem>>, vector<1x1x8xf32>
    %13 = vector.shape_cast %12 : vector<1x1x8xf32> to vector<1x8xf32>
    %14 = vector.broadcast %13 : vector<1x8xf32> to vector<6x8xf32>
    %15 = arith.addf %11, %14 : vector<6x8xf32>
    %cst_15 = arith.constant 0.353553385 : f32
    %16 = vector.broadcast %cst_15 : f32 to vector<6x8xf32>
    %17 = arith.mulf %15, %16 : vector<6x8xf32>
    %c0_16 = arith.constant 0 : index
    %c0_17 = arith.constant 0 : index
    %c0_18 = arith.constant 0 : index
    %18 = vector.load %arg6[%c0_16, %c0_17, %c0_18] : memref<4x32x8xbf16, #tpu.memory_space<vmem>>, vector<1x32x8xbf16>
    %19 = vector.shape_cast %18 : vector<1x32x8xbf16> to vector<32x8xbf16>
    %cst_19 = arith.constant dense<0.000000e+00> : vector<6x8xf32>
    %20 = tpu.matmul %7, %19, %cst_19 {dimension_numbers = #tpu.dot_dimension_numbers<[1], [0], [0], [1], [0, 0, 1, 1], [], []>} : vector<6x32xbf16>, vector<32x8xbf16>, vector<6x8xf32> -> vector<6x8xf32>
    %c0_20 = arith.constant 0 : index
    %c0_21 = arith.constant 0 : index
    %c0_22 = arith.constant 0 : index
    %21 = vector.load %arg7[%c0_20, %c0_21, %c0_22] : memref<4x1x8xf32, #tpu.memory_space<vmem>>, vector<1x1x8xf32>
    %22 = vector.shape_cast %21 : vector<1x1x8xf32> to vector<1x8xf32>
    %23 = vector.broadcast %22 : vector<1x8xf32> to vector<6x8xf32>
    %24 = arith.addf %20, %23 : vector<6x8xf32>
    %c0_23 = arith.constant 0 : index
    %c0_24 = arith.constant 0 : index
    %c0_25 = arith.constant 0 : index
    %25 = vector.load %arg8[%c0_23, %c0_24, %c0_25] : memref<4x32x8xbf16, #tpu.memory_space<vmem>>, vector<1x32x8xbf16>
    %26 = vector.shape_cast %25 : vector<1x32x8xbf16> to vector<32x8xbf16>
    %cst_26 = arith.constant dense<0.000000e+00> : vector<6x8xf32>
    %27 = tpu.matmul %7, %26, %cst_26 {dimension_numbers = #tpu.dot_dimension_numbers<[1], [0], [0], [1], [0, 0, 1, 1], [], []>} : vector<6x32xbf16>, vector<32x8xbf16>, vector<6x8xf32> -> vector<6x8xf32>
    %c0_27 = arith.constant 0 : index
    %c0_28 = arith.constant 0 : index
    %c0_29 = arith.constant 0 : index
    %28 = vector.load %arg9[%c0_27, %c0_28, %c0_29] : memref<4x1x8xf32, #tpu.memory_space<vmem>>, vector<1x1x8xf32>
    %29 = vector.shape_cast %28 : vector<1x1x8xf32> to vector<1x8xf32>
    %30 = vector.broadcast %29 : vector<1x8xf32> to vector<6x8xf32>
    %31 = arith.addf %27, %30 : vector<6x8xf32>
    %32 = arith.truncf %17 : vector<6x8xf32> to vector<6x8xbf16>
    %33 = arith.truncf %24 : vector<6x8xf32> to vector<6x8xbf16>
    %cst_30 = arith.constant dense<0.000000e+00> : vector<6x6xf32>
    %34 = tpu.matmul %32, %33, %cst_30 {dimension_numbers = #tpu.dot_dimension_numbers<[1], [1], [0], [0], [0, 0, 1, 0], [], []>} : vector<6x8xbf16>, vector<6x8xbf16>, vector<6x6xf32> -> vector<6x6xf32>
    %cst_31 = arith.constant 0.000000e+00 : f32
    %35 = vector.broadcast %cst_31 : f32 to vector<6x6xf32>
    %36 = arith.cmpf ogt, %5, %35 : vector<6x6xf32>
    %cst_32 = arith.constant -1.000000e+10 : f32
    %37 = vector.broadcast %cst_32 : f32 to vector<6x6xf32>
    %38 = arith.select %36, %34, %37 : vector<6x6xi1>, vector<6x6xf32>
    %cst_33 = arith.constant dense<0xFF800000> : vector<6xf32>
    %39 = vector.multi_reduction <maximumf>, %38, %cst_33 [1] : vector<6x6xf32> to vector<6xf32>
    %40 = vector.shape_cast %39 : vector<6xf32> to vector<6x1xf32>
    %41 = vector.broadcast %40 : vector<6x1xf32> to vector<6x6xf32>
    %42 = arith.subf %38, %41 : vector<6x6xf32>
    %43 = math.exp %42 : vector<6x6xf32>
    %cst_34 = arith.constant dense<0.000000e+00> : vector<6xf32>
    %44 = vector.multi_reduction <add>, %43, %cst_34 [1] : vector<6x6xf32> to vector<6xf32>
    %45 = vector.shape_cast %44 : vector<6xf32> to vector<6x1xf32>
    %46 = tpu.reciprocal %45 {approx = true} : vector<6x1xf32> -> vector<6x1xf32>
    %47 = vector.broadcast %46 : vector<6x1xf32> to vector<6x6xf32>
    %48 = arith.mulf %43, %47 : vector<6x6xf32>
    %49 = arith.truncf %48 : vector<6x6xf32> to vector<6x6xbf16>
    %50 = arith.truncf %31 : vector<6x8xf32> to vector<6x8xbf16>
    %cst_35 = arith.constant dense<0.000000e+00> : vector<6x8xf32>
    %51 = tpu.matmul %49, %50, %cst_35 {dimension_numbers = #tpu.dot_dimension_numbers<[1], [0], [0], [1], [0, 0, 1, 1], [], []>} : vector<6x6xbf16>, vector<6x8xbf16>, vector<6x8xf32> -> vector<6x8xf32>
    %52 = arith.truncf %51 : vector<6x8xf32> to vector<6x8xbf16>
    %c0_36 = arith.constant 0 : index
    %c0_37 = arith.constant 0 : index
    %c0_38 = arith.constant 0 : index
    %53 = vector.load %arg10[%c0_36, %c0_37, %c0_38] : memref<4x8x32xbf16, #tpu.memory_space<vmem>>, vector<1x8x32xbf16>
    %54 = vector.shape_cast %53 : vector<1x8x32xbf16> to vector<8x32xbf16>
    %cst_39 = arith.constant dense<0.000000e+00> : vector<6x32xf32>
    %55 = tpu.matmul %52, %54, %cst_39 {dimension_numbers = #tpu.dot_dimension_numbers<[1], [0], [0], [1], [0, 0, 1, 1], [], []>} : vector<6x8xbf16>, vector<8x32xbf16>, vector<6x32xf32> -> vector<6x32xf32>
    %56 = arith.addf %8, %55 : vector<6x32xf32>
    %c1 = arith.constant 1 : index
    %c0_40 = arith.constant 0 : index
    %c0_41 = arith.constant 0 : index
    %57 = vector.load %arg4[%c1, %c0_40, %c0_41] : memref<4x32x8xbf16, #tpu.memory_space<vmem>>, vector<1x32x8xbf16>
    %58 = vector.shape_cast %57 : vector<1x32x8xbf16> to vector<32x8xbf16>
    %cst_42 = arith.constant dense<0.000000e+00> : vector<6x8xf32>
    %59 = tpu.matmul %6, %58, %cst_42 {dimension_numbers = #tpu.dot_dimension_numbers<[1], [0], [0], [1], [0, 0, 1, 1], [], []>} : vector<6x32xbf16>, vector<32x8xbf16>, vector<6x8xf32> -> vector<6x8xf32>
    %c1_43 = arith.constant 1 : index
    %c0_44 = arith.constant 0 : index
    %c0_45 = arith.constant 0 : index
    %60 = vector.load %arg5[%c1_43, %c0_44, %c0_45] : memref<4x1x8xf32, #tpu.memory_space<vmem>>, vector<1x1x8xf32>
    %61 = vector.shape_cast %60 : vector<1x1x8xf32> to vector<1x8xf32>
    %62 = vector.broadcast %61 : vector<1x8xf32> to vector<6x8xf32>
    %63 = arith.addf %59, %62 : vector<6x8xf32>
    %cst_46 = arith.constant 0.353553385 : f32
    %64 = vector.broadcast %cst_46 : f32 to vector<6x8xf32>
    %65 = arith.mulf %63, %64 : vector<6x8xf32>
    %c1_47 = arith.constant 1 : index
    %c0_48 = arith.constant 0 : index
    %c0_49 = arith.constant 0 : index
    %66 = vector.load %arg6[%c1_47, %c0_48, %c0_49] : memref<4x32x8xbf16, #tpu.memory_space<vmem>>, vector<1x32x8xbf16>
    %67 = vector.shape_cast %66 : vector<1x32x8xbf16> to vector<32x8xbf16>
    %cst_50 = arith.constant dense<0.000000e+00> : vector<6x8xf32>
    %68 = tpu.matmul %7, %67, %cst_50 {dimension_numbers = #tpu.dot_dimension_numbers<[1], [0], [0], [1], [0, 0, 1, 1], [], []>} : vector<6x32xbf16>, vector<32x8xbf16>, vector<6x8xf32> -> vector<6x8xf32>
    %c1_51 = arith.constant 1 : index
    %c0_52 = arith.constant 0 : index
    %c0_53 = arith.constant 0 : index
    %69 = vector.load %arg7[%c1_51, %c0_52, %c0_53] : memref<4x1x8xf32, #tpu.memory_space<vmem>>, vector<1x1x8xf32>
    %70 = vector.shape_cast %69 : vector<1x1x8xf32> to vector<1x8xf32>
    %71 = vector.broadcast %70 : vector<1x8xf32> to vector<6x8xf32>
    %72 = arith.addf %68, %71 : vector<6x8xf32>
    %c1_54 = arith.constant 1 : index
    %c0_55 = arith.constant 0 : index
    %c0_56 = arith.constant 0 : index
    %73 = vector.load %arg8[%c1_54, %c0_55, %c0_56] : memref<4x32x8xbf16, #tpu.memory_space<vmem>>, vector<1x32x8xbf16>
    %74 = vector.shape_cast %73 : vector<1x32x8xbf16> to vector<32x8xbf16>
    %cst_57 = arith.constant dense<0.000000e+00> : vector<6x8xf32>
    %75 = tpu.matmul %7, %74, %cst_57 {dimension_numbers = #tpu.dot_dimension_numbers<[1], [0], [0], [1], [0, 0, 1, 1], [], []>} : vector<6x32xbf16>, vector<32x8xbf16>, vector<6x8xf32> -> vector<6x8xf32>
    %c1_58 = arith.constant 1 : index
    %c0_59 = arith.constant 0 : index
    %c0_60 = arith.constant 0 : index
    %76 = vector.load %arg9[%c1_58, %c0_59, %c0_60] : memref<4x1x8xf32, #tpu.memory_space<vmem>>, vector<1x1x8xf32>
    %77 = vector.shape_cast %76 : vector<1x1x8xf32> to vector<1x8xf32>
    %78 = vector.broadcast %77 : vector<1x8xf32> to vector<6x8xf32>
    %79 = arith.addf %75, %78 : vector<6x8xf32>
    %80 = arith.truncf %65 : vector<6x8xf32> to vector<6x8xbf16>
    %81 = arith.truncf %72 : vector<6x8xf32> to vector<6x8xbf16>
    %cst_61 = arith.constant dense<0.000000e+00> : vector<6x6xf32>
    %82 = tpu.matmul %80, %81, %cst_61 {dimension_numbers = #tpu.dot_dimension_numbers<[1], [1], [0], [0], [0, 0, 1, 0], [], []>} : vector<6x8xbf16>, vector<6x8xbf16>, vector<6x6xf32> -> vector<6x6xf32>
    %cst_62 = arith.constant 0.000000e+00 : f32
    %83 = vector.broadcast %cst_62 : f32 to vector<6x6xf32>
    %84 = arith.cmpf ogt, %5, %83 : vector<6x6xf32>
    %cst_63 = arith.constant -1.000000e+10 : f32
    %85 = vector.broadcast %cst_63 : f32 to vector<6x6xf32>
    %86 = arith.select %84, %82, %85 : vector<6x6xi1>, vector<6x6xf32>
    %cst_64 = arith.constant dense<0xFF800000> : vector<6xf32>
    %87 = vector.multi_reduction <maximumf>, %86, %cst_64 [1] : vector<6x6xf32> to vector<6xf32>
    %88 = vector.shape_cast %87 : vector<6xf32> to vector<6x1xf32>
    %89 = vector.broadcast %88 : vector<6x1xf32> to vector<6x6xf32>
    %90 = arith.subf %86, %89 : vector<6x6xf32>
    %91 = math.exp %90 : vector<6x6xf32>
    %cst_65 = arith.constant dense<0.000000e+00> : vector<6xf32>
    %92 = vector.multi_reduction <add>, %91, %cst_65 [1] : vector<6x6xf32> to vector<6xf32>
    %93 = vector.shape_cast %92 : vector<6xf32> to vector<6x1xf32>
    %94 = tpu.reciprocal %93 {approx = true} : vector<6x1xf32> -> vector<6x1xf32>
    %95 = vector.broadcast %94 : vector<6x1xf32> to vector<6x6xf32>
    %96 = arith.mulf %91, %95 : vector<6x6xf32>
    %97 = arith.truncf %96 : vector<6x6xf32> to vector<6x6xbf16>
    %98 = arith.truncf %79 : vector<6x8xf32> to vector<6x8xbf16>
    %cst_66 = arith.constant dense<0.000000e+00> : vector<6x8xf32>
    %99 = tpu.matmul %97, %98, %cst_66 {dimension_numbers = #tpu.dot_dimension_numbers<[1], [0], [0], [1], [0, 0, 1, 1], [], []>} : vector<6x6xbf16>, vector<6x8xbf16>, vector<6x8xf32> -> vector<6x8xf32>
    %100 = arith.truncf %99 : vector<6x8xf32> to vector<6x8xbf16>
    %c1_67 = arith.constant 1 : index
    %c0_68 = arith.constant 0 : index
    %c0_69 = arith.constant 0 : index
    %101 = vector.load %arg10[%c1_67, %c0_68, %c0_69] : memref<4x8x32xbf16, #tpu.memory_space<vmem>>, vector<1x8x32xbf16>
    %102 = vector.shape_cast %101 : vector<1x8x32xbf16> to vector<8x32xbf16>
    %cst_70 = arith.constant dense<0.000000e+00> : vector<6x32xf32>
    %103 = tpu.matmul %100, %102, %cst_70 {dimension_numbers = #tpu.dot_dimension_numbers<[1], [0], [0], [1], [0, 0, 1, 1], [], []>} : vector<6x8xbf16>, vector<8x32xbf16>, vector<6x32xf32> -> vector<6x32xf32>
    %104 = arith.addf %56, %103 : vector<6x32xf32>
    %c2 = arith.constant 2 : index
    %c0_71 = arith.constant 0 : index
    %c0_72 = arith.constant 0 : index
    %105 = vector.load %arg4[%c2, %c0_71, %c0_72] : memref<4x32x8xbf16, #tpu.memory_space<vmem>>, vector<1x32x8xbf16>
    %106 = vector.shape_cast %105 : vector<1x32x8xbf16> to vector<32x8xbf16>
    %cst_73 = arith.constant dense<0.000000e+00> : vector<6x8xf32>
    %107 = tpu.matmul %6, %106, %cst_73 {dimension_numbers = #tpu.dot_dimension_numbers<[1], [0], [0], [1], [0, 0, 1, 1], [], []>} : vector<6x32xbf16>, vector<32x8xbf16>, vector<6x8xf32> -> vector<6x8xf32>
    %c2_74 = arith.constant 2 : index
    %c0_75 = arith.constant 0 : index
    %c0_76 = arith.constant 0 : index
    %108 = vector.load %arg5[%c2_74, %c0_75, %c0_76] : memref<4x1x8xf32, #tpu.memory_space<vmem>>, vector<1x1x8xf32>
    %109 = vector.shape_cast %108 : vector<1x1x8xf32> to vector<1x8xf32>
    %110 = vector.broadcast %109 : vector<1x8xf32> to vector<6x8xf32>
    %111 = arith.addf %107, %110 : vector<6x8xf32>
    %cst_77 = arith.constant 0.353553385 : f32
    %112 = vector.broadcast %cst_77 : f32 to vector<6x8xf32>
    %113 = arith.mulf %111, %112 : vector<6x8xf32>
    %c2_78 = arith.constant 2 : index
    %c0_79 = arith.constant 0 : index
    %c0_80 = arith.constant 0 : index
    %114 = vector.load %arg6[%c2_78, %c0_79, %c0_80] : memref<4x32x8xbf16, #tpu.memory_space<vmem>>, vector<1x32x8xbf16>
    %115 = vector.shape_cast %114 : vector<1x32x8xbf16> to vector<32x8xbf16>
    %cst_81 = arith.constant dense<0.000000e+00> : vector<6x8xf32>
    %116 = tpu.matmul %7, %115, %cst_81 {dimension_numbers = #tpu.dot_dimension_numbers<[1], [0], [0], [1], [0, 0, 1, 1], [], []>} : vector<6x32xbf16>, vector<32x8xbf16>, vector<6x8xf32> -> vector<6x8xf32>
    %c2_82 = arith.constant 2 : index
    %c0_83 = arith.constant 0 : index
    %c0_84 = arith.constant 0 : index
    %117 = vector.load %arg7[%c2_82, %c0_83, %c0_84] : memref<4x1x8xf32, #tpu.memory_space<vmem>>, vector<1x1x8xf32>
    %118 = vector.shape_cast %117 : vector<1x1x8xf32> to vector<1x8xf32>
    %119 = vector.broadcast %118 : vector<1x8xf32> to vector<6x8xf32>
    %120 = arith.addf %116, %119 : vector<6x8xf32>
    %c2_85 = arith.constant 2 : index
    %c0_86 = arith.constant 0 : index
    %c0_87 = arith.constant 0 : index
    %121 = vector.load %arg8[%c2_85, %c0_86, %c0_87] : memref<4x32x8xbf16, #tpu.memory_space<vmem>>, vector<1x32x8xbf16>
    %122 = vector.shape_cast %121 : vector<1x32x8xbf16> to vector<32x8xbf16>
    %cst_88 = arith.constant dense<0.000000e+00> : vector<6x8xf32>
    %123 = tpu.matmul %7, %122, %cst_88 {dimension_numbers = #tpu.dot_dimension_numbers<[1], [0], [0], [1], [0, 0, 1, 1], [], []>} : vector<6x32xbf16>, vector<32x8xbf16>, vector<6x8xf32> -> vector<6x8xf32>
    %c2_89 = arith.constant 2 : index
    %c0_90 = arith.constant 0 : index
    %c0_91 = arith.constant 0 : index
    %124 = vector.load %arg9[%c2_89, %c0_90, %c0_91] : memref<4x1x8xf32, #tpu.memory_space<vmem>>, vector<1x1x8xf32>
    %125 = vector.shape_cast %124 : vector<1x1x8xf32> to vector<1x8xf32>
    %126 = vector.broadcast %125 : vector<1x8xf32> to vector<6x8xf32>
    %127 = arith.addf %123, %126 : vector<6x8xf32>
    %128 = arith.truncf %113 : vector<6x8xf32> to vector<6x8xbf16>
    %129 = arith.truncf %120 : vector<6x8xf32> to vector<6x8xbf16>
    %cst_92 = arith.constant dense<0.000000e+00> : vector<6x6xf32>
    %130 = tpu.matmul %128, %129, %cst_92 {dimension_numbers = #tpu.dot_dimension_numbers<[1], [1], [0], [0], [0, 0, 1, 0], [], []>} : vector<6x8xbf16>, vector<6x8xbf16>, vector<6x6xf32> -> vector<6x6xf32>
    %cst_93 = arith.constant 0.000000e+00 : f32
    %131 = vector.broadcast %cst_93 : f32 to vector<6x6xf32>
    %132 = arith.cmpf ogt, %5, %131 : vector<6x6xf32>
    %cst_94 = arith.constant -1.000000e+10 : f32
    %133 = vector.broadcast %cst_94 : f32 to vector<6x6xf32>
    %134 = arith.select %132, %130, %133 : vector<6x6xi1>, vector<6x6xf32>
    %cst_95 = arith.constant dense<0xFF800000> : vector<6xf32>
    %135 = vector.multi_reduction <maximumf>, %134, %cst_95 [1] : vector<6x6xf32> to vector<6xf32>
    %136 = vector.shape_cast %135 : vector<6xf32> to vector<6x1xf32>
    %137 = vector.broadcast %136 : vector<6x1xf32> to vector<6x6xf32>
    %138 = arith.subf %134, %137 : vector<6x6xf32>
    %139 = math.exp %138 : vector<6x6xf32>
    %cst_96 = arith.constant dense<0.000000e+00> : vector<6xf32>
    %140 = vector.multi_reduction <add>, %139, %cst_96 [1] : vector<6x6xf32> to vector<6xf32>
    %141 = vector.shape_cast %140 : vector<6xf32> to vector<6x1xf32>
    %142 = tpu.reciprocal %141 {approx = true} : vector<6x1xf32> -> vector<6x1xf32>
    %143 = vector.broadcast %142 : vector<6x1xf32> to vector<6x6xf32>
    %144 = arith.mulf %139, %143 : vector<6x6xf32>
    %145 = arith.truncf %144 : vector<6x6xf32> to vector<6x6xbf16>
    %146 = arith.truncf %127 : vector<6x8xf32> to vector<6x8xbf16>
    %cst_97 = arith.constant dense<0.000000e+00> : vector<6x8xf32>
    %147 = tpu.matmul %145, %146, %cst_97 {dimension_numbers = #tpu.dot_dimension_numbers<[1], [0], [0], [1], [0, 0, 1, 1], [], []>} : vector<6x6xbf16>, vector<6x8xbf16>, vector<6x8xf32> -> vector<6x8xf32>
    %148 = arith.truncf %147 : vector<6x8xf32> to vector<6x8xbf16>
    %c2_98 = arith.constant 2 : index
    %c0_99 = arith.constant 0 : index
    %c0_100 = arith.constant 0 : index
    %149 = vector.load %arg10[%c2_98, %c0_99, %c0_100] : memref<4x8x32xbf16, #tpu.memory_space<vmem>>, vector<1x8x32xbf16>
    %150 = vector.shape_cast %149 : vector<1x8x32xbf16> to vector<8x32xbf16>
    %cst_101 = arith.constant dense<0.000000e+00> : vector<6x32xf32>
    %151 = tpu.matmul %148, %150, %cst_101 {dimension_numbers = #tpu.dot_dimension_numbers<[1], [0], [0], [1], [0, 0, 1, 1], [], []>} : vector<6x8xbf16>, vector<8x32xbf16>, vector<6x32xf32> -> vector<6x32xf32>
    %152 = arith.addf %104, %151 : vector<6x32xf32>
    %c3 = arith.constant 3 : index
    %c0_102 = arith.constant 0 : index
    %c0_103 = arith.constant 0 : index
    %153 = vector.load %arg4[%c3, %c0_102, %c0_103] : memref<4x32x8xbf16, #tpu.memory_space<vmem>>, vector<1x32x8xbf16>
    %154 = vector.shape_cast %153 : vector<1x32x8xbf16> to vector<32x8xbf16>
    %cst_104 = arith.constant dense<0.000000e+00> : vector<6x8xf32>
    %155 = tpu.matmul %6, %154, %cst_104 {dimension_numbers = #tpu.dot_dimension_numbers<[1], [0], [0], [1], [0, 0, 1, 1], [], []>} : vector<6x32xbf16>, vector<32x8xbf16>, vector<6x8xf32> -> vector<6x8xf32>
    %c3_105 = arith.constant 3 : index
    %c0_106 = arith.constant 0 : index
    %c0_107 = arith.constant 0 : index
    %156 = vector.load %arg5[%c3_105, %c0_106, %c0_107] : memref<4x1x8xf32, #tpu.memory_space<vmem>>, vector<1x1x8xf32>
    %157 = vector.shape_cast %156 : vector<1x1x8xf32> to vector<1x8xf32>
    %158 = vector.broadcast %157 : vector<1x8xf32> to vector<6x8xf32>
    %159 = arith.addf %155, %158 : vector<6x8xf32>
    %cst_108 = arith.constant 0.353553385 : f32
    %160 = vector.broadcast %cst_108 : f32 to vector<6x8xf32>
    %161 = arith.mulf %159, %160 : vector<6x8xf32>
    %c3_109 = arith.constant 3 : index
    %c0_110 = arith.constant 0 : index
    %c0_111 = arith.constant 0 : index
    %162 = vector.load %arg6[%c3_109, %c0_110, %c0_111] : memref<4x32x8xbf16, #tpu.memory_space<vmem>>, vector<1x32x8xbf16>
    %163 = vector.shape_cast %162 : vector<1x32x8xbf16> to vector<32x8xbf16>
    %cst_112 = arith.constant dense<0.000000e+00> : vector<6x8xf32>
    %164 = tpu.matmul %7, %163, %cst_112 {dimension_numbers = #tpu.dot_dimension_numbers<[1], [0], [0], [1], [0, 0, 1, 1], [], []>} : vector<6x32xbf16>, vector<32x8xbf16>, vector<6x8xf32> -> vector<6x8xf32>
    %c3_113 = arith.constant 3 : index
    %c0_114 = arith.constant 0 : index
    %c0_115 = arith.constant 0 : index
    %165 = vector.load %arg7[%c3_113, %c0_114, %c0_115] : memref<4x1x8xf32, #tpu.memory_space<vmem>>, vector<1x1x8xf32>
    %166 = vector.shape_cast %165 : vector<1x1x8xf32> to vector<1x8xf32>
    %167 = vector.broadcast %166 : vector<1x8xf32> to vector<6x8xf32>
    %168 = arith.addf %164, %167 : vector<6x8xf32>
    %c3_116 = arith.constant 3 : index
    %c0_117 = arith.constant 0 : index
    %c0_118 = arith.constant 0 : index
    %169 = vector.load %arg8[%c3_116, %c0_117, %c0_118] : memref<4x32x8xbf16, #tpu.memory_space<vmem>>, vector<1x32x8xbf16>
    %170 = vector.shape_cast %169 : vector<1x32x8xbf16> to vector<32x8xbf16>
    %cst_119 = arith.constant dense<0.000000e+00> : vector<6x8xf32>
    %171 = tpu.matmul %7, %170, %cst_119 {dimension_numbers = #tpu.dot_dimension_numbers<[1], [0], [0], [1], [0, 0, 1, 1], [], []>} : vector<6x32xbf16>, vector<32x8xbf16>, vector<6x8xf32> -> vector<6x8xf32>
    %c3_120 = arith.constant 3 : index
    %c0_121 = arith.constant 0 : index
    %c0_122 = arith.constant 0 : index
    %172 = vector.load %arg9[%c3_120, %c0_121, %c0_122] : memref<4x1x8xf32, #tpu.memory_space<vmem>>, vector<1x1x8xf32>
    %173 = vector.shape_cast %172 : vector<1x1x8xf32> to vector<1x8xf32>
    %174 = vector.broadcast %173 : vector<1x8xf32> to vector<6x8xf32>
    %175 = arith.addf %171, %174 : vector<6x8xf32>
    %176 = arith.truncf %161 : vector<6x8xf32> to vector<6x8xbf16>
    %177 = arith.truncf %168 : vector<6x8xf32> to vector<6x8xbf16>
    %cst_123 = arith.constant dense<0.000000e+00> : vector<6x6xf32>
    %178 = tpu.matmul %176, %177, %cst_123 {dimension_numbers = #tpu.dot_dimension_numbers<[1], [1], [0], [0], [0, 0, 1, 0], [], []>} : vector<6x8xbf16>, vector<6x8xbf16>, vector<6x6xf32> -> vector<6x6xf32>
    %cst_124 = arith.constant 0.000000e+00 : f32
    %179 = vector.broadcast %cst_124 : f32 to vector<6x6xf32>
    %180 = arith.cmpf ogt, %5, %179 : vector<6x6xf32>
    %cst_125 = arith.constant -1.000000e+10 : f32
    %181 = vector.broadcast %cst_125 : f32 to vector<6x6xf32>
    %182 = arith.select %180, %178, %181 : vector<6x6xi1>, vector<6x6xf32>
    %cst_126 = arith.constant dense<0xFF800000> : vector<6xf32>
    %183 = vector.multi_reduction <maximumf>, %182, %cst_126 [1] : vector<6x6xf32> to vector<6xf32>
    %184 = vector.shape_cast %183 : vector<6xf32> to vector<6x1xf32>
    %185 = vector.broadcast %184 : vector<6x1xf32> to vector<6x6xf32>
    %186 = arith.subf %182, %185 : vector<6x6xf32>
    %187 = math.exp %186 : vector<6x6xf32>
    %cst_127 = arith.constant dense<0.000000e+00> : vector<6xf32>
    %188 = vector.multi_reduction <add>, %187, %cst_127 [1] : vector<6x6xf32> to vector<6xf32>
    %189 = vector.shape_cast %188 : vector<6xf32> to vector<6x1xf32>
    %190 = tpu.reciprocal %189 {approx = true} : vector<6x1xf32> -> vector<6x1xf32>
    %191 = vector.broadcast %190 : vector<6x1xf32> to vector<6x6xf32>
    %192 = arith.mulf %187, %191 : vector<6x6xf32>
    %193 = arith.truncf %192 : vector<6x6xf32> to vector<6x6xbf16>
    %194 = arith.truncf %175 : vector<6x8xf32> to vector<6x8xbf16>
    %cst_128 = arith.constant dense<0.000000e+00> : vector<6x8xf32>
    %195 = tpu.matmul %193, %194, %cst_128 {dimension_numbers = #tpu.dot_dimension_numbers<[1], [0], [0], [1], [0, 0, 1, 1], [], []>} : vector<6x6xbf16>, vector<6x8xbf16>, vector<6x8xf32> -> vector<6x8xf32>
    %196 = arith.truncf %195 : vector<6x8xf32> to vector<6x8xbf16>
    %c3_129 = arith.constant 3 : index
    %c0_130 = arith.constant 0 : index
    %c0_131 = arith.constant 0 : index
    %197 = vector.load %arg10[%c3_129, %c0_130, %c0_131] : memref<4x8x32xbf16, #tpu.memory_space<vmem>>, vector<1x8x32xbf16>
    %198 = vector.shape_cast %197 : vector<1x8x32xbf16> to vector<8x32xbf16>
    %cst_132 = arith.constant dense<0.000000e+00> : vector<6x32xf32>
    %199 = tpu.matmul %196, %198, %cst_132 {dimension_numbers = #tpu.dot_dimension_numbers<[1], [0], [0], [1], [0, 0, 1, 1], [], []>} : vector<6x8xbf16>, vector<8x32xbf16>, vector<6x32xf32> -> vector<6x32xf32>
    %200 = arith.addf %152, %199 : vector<6x32xf32>
    %c0_133 = arith.constant 0 : index
    %c0_134 = arith.constant 0 : index
    %201 = vector.load %arg11[%c0_133, %c0_134] : memref<1x32xf32, #tpu.memory_space<vmem>>, vector<1x32xf32>
    %202 = vector.broadcast %201 : vector<1x32xf32> to vector<6x32xf32>
    %203 = arith.addf %200, %202 : vector<6x32xf32>
    %204 = arith.addf %203, %1 : vector<6x32xf32>
    %cst_135 = arith.constant dense<0.000000e+00> : vector<6xf32>
    %205 = vector.multi_reduction <add>, %204, %cst_135 [1] : vector<6x32xf32> to vector<6xf32>
    %206 = vector.shape_cast %205 : vector<6xf32> to vector<6x1xf32>
    %cst_136 = arith.constant 3.200000e+01 : f32
    %207 = vector.broadcast %cst_136 : f32 to vector<6x1xf32>
    %208 = arith.divf %206, %207 : vector<6x1xf32>
    %209 = vector.broadcast %208 : vector<6x1xf32> to vector<6x32xf32>
    %210 = arith.subf %204, %209 : vector<6x32xf32>
    %211 = arith.mulf %210, %210 : vector<6x32xf32>
    %cst_137 = arith.constant dense<0.000000e+00> : vector<6xf32>
    %212 = vector.multi_reduction <add>, %211, %cst_137 [1] : vector<6x32xf32> to vector<6xf32>
    %213 = vector.shape_cast %212 : vector<6xf32> to vector<6x1xf32>
    %cst_138 = arith.constant 3.200000e+01 : f32
    %214 = vector.broadcast %cst_138 : f32 to vector<6x1xf32>
    %215 = arith.divf %213, %214 : vector<6x1xf32>
    %216 = vector.broadcast %208 : vector<6x1xf32> to vector<6x32xf32>
    %217 = arith.subf %204, %216 : vector<6x32xf32>
    %cst_139 = arith.constant 9.99999974E-6 : f32
    %218 = vector.broadcast %cst_139 : f32 to vector<6x1xf32>
    %219 = arith.addf %215, %218 : vector<6x1xf32>
    %220 = math.rsqrt %219 : vector<6x1xf32>
    %221 = vector.broadcast %220 : vector<6x1xf32> to vector<6x32xf32>
    %222 = arith.mulf %217, %221 : vector<6x32xf32>
    %c0_140 = arith.constant 0 : index
    %c0_141 = arith.constant 0 : index
    %223 = vector.load %arg12[%c0_140, %c0_141] : memref<1x32xf32, #tpu.memory_space<vmem>>, vector<1x32xf32>
    %224 = vector.broadcast %223 : vector<1x32xf32> to vector<6x32xf32>
    %225 = arith.mulf %222, %224 : vector<6x32xf32>
    %c0_142 = arith.constant 0 : index
    %c0_143 = arith.constant 0 : index
    %226 = vector.load %arg13[%c0_142, %c0_143] : memref<1x32xf32, #tpu.memory_space<vmem>>, vector<1x32xf32>
    %227 = vector.broadcast %226 : vector<1x32xf32> to vector<6x32xf32>
    %228 = arith.addf %225, %227 : vector<6x32xf32>
    %c0_144 = arith.constant 0 : index
    %c0_145 = arith.constant 0 : index
    %c0_146 = arith.constant 0 : index
    %229 = vector.load %arg14[%c0_144, %c0_145, %c0_146] : memref<1x6x32xf32, #tpu.memory_space<vmem>>, vector<1x6x32xf32>
    %230 = vector.shape_cast %229 : vector<1x6x32xf32> to vector<6x32xf32>
    %231 = vector.shape_cast %228 : vector<6x32xf32> to vector<1x6x32xf32>
    tpu.vector_store %arg14[%c0_144, %c0_145, %c0_146], %231 {strides = array<i32>} : memref<1x6x32xf32, #tpu.memory_space<vmem>>, vector<1x6x32xf32>,
    return
  }
  func.func @transform_0(%arg0: i32) -> (i32, i32, i32) {
    %c0_i32 = arith.constant 0 : i32
    %c0_i32_0 = arith.constant 0 : i32
    %c0_i32_1 = arith.constant 0 : i32
    return %arg0, %c0_i32, %c0_i32_0 : i32, i32, i32
  }
  func.func @transform_1(%arg0: i32) -> (i32, i32, i32) {
    %c0_i32 = arith.constant 0 : i32
    %c0_i32_0 = arith.constant 0 : i32
    %c0_i32_1 = arith.constant 0 : i32
    return %arg0, %c0_i32, %c0_i32_0 : i32, i32, i32
  }
  func.func @transform_2(%arg0: i32) -> (i32, i32, i32) {
    %c0_i32 = arith.constant 0 : i32
    %c0_i32_0 = arith.constant 0 : i32
    %c0_i32_1 = arith.constant 0 : i32
    return %arg0, %c0_i32, %c0_i32_0 : i32, i32, i32
  }
  func.func @transform_3(%arg0: i32) -> (i32, i32, i32) {
    %c0_i32 = arith.constant 0 : i32
    %c0_i32_0 = arith.constant 0 : i32
    %c0_i32_1 = arith.constant 0 : i32
    %c0_i32_2 = arith.constant 0 : i32
    return %c0_i32, %c0_i32_0, %c0_i32_1 : i32, i32, i32
  }
  func.func @transform_4(%arg0: i32) -> (i32, i32, i32) {
    %c0_i32 = arith.constant 0 : i32
    %c0_i32_0 = arith.constant 0 : i32
    %c0_i32_1 = arith.constant 0 : i32
    %c0_i32_2 = arith.constant 0 : i32
    return %c0_i32, %c0_i32_0, %c0_i32_1 : i32, i32, i32
  }
  func.func @transform_5(%arg0: i32) -> (i32, i32, i32) {
    %c0_i32 = arith.constant 0 : i32
    %c0_i32_0 = arith.constant 0 : i32
    %c0_i32_1 = arith.constant 0 : i32
    %c0_i32_2 = arith.constant 0 : i32
    return %c0_i32, %c0_i32_0, %c0_i32_1 : i32, i32, i32
  }
  func.func @transform_6(%arg0: i32) -> (i32, i32, i32) {
    %c0_i32 = arith.constant 0 : i32
    %c0_i32_0 = arith.constant 0 : i32
    %c0_i32_1 = arith.constant 0 : i32
    %c0_i32_2 = arith.constant 0 : i32
    return %c0_i32, %c0_i32_0, %c0_i32_1 : i32, i32, i32
  }
  func.func @transform_7(%arg0: i32) -> (i32, i32, i32) {
    %c0_i32 = arith.constant 0 : i32
    %c0_i32_0 = arith.constant 0 : i32
    %c0_i32_1 = arith.constant 0 : i32
    %c0_i32_2 = arith.constant 0 : i32
    return %c0_i32, %c0_i32_0, %c0_i32_1 : i32, i32, i32
  }
  func.func @transform_8(%arg0: i32) -> (i32, i32, i32) {
    %c0_i32 = arith.constant 0 : i32
    %c0_i32_0 = arith.constant 0 : i32
    %c0_i32_1 = arith.constant 0 : i32
    %c0_i32_2 = arith.constant 0 : i32
    return %c0_i32, %c0_i32_0, %c0_i32_1 : i32, i32, i32
  }
  func.func @transform_9(%arg0: i32) -> (i32, i32, i32) {
    %c0_i32 = arith.constant 0 : i32
    %c0_i32_0 = arith.constant 0 : i32
    %c0_i32_1 = arith.constant 0 : i32
    %c0_i32_2 = arith.constant 0 : i32
    return %c0_i32, %c0_i32_0, %c0_i32_1 : i32, i32, i32
  }
  func.func @transform_10(%arg0: i32) -> (i32, i32) {
    %c0_i32 = arith.constant 0 : i32
    %c0_i32_0 = arith.constant 0 : i32
    %c0_i32_1 = arith.constant 0 : i32
    return %c0_i32, %c0_i32_0 : i32, i32
  }
  func.func @transform_11(%arg0: i32) -> (i32, i32) {
    %c0_i32 = arith.constant 0 : i32
    %c0_i32_0 = arith.constant 0 : i32
    %c0_i32_1 = arith.constant 0 : i32
    return %c0_i32, %c0_i32_0 : i32, i32
  }
  func.func @transform_12(%arg0: i32) -> (i32, i32) {
    %c0_i32 = arith.constant 0 : i32
    %c0_i32_0 = arith.constant 0 : i32
    %c0_i32_1 = arith.constant 0 : i32
    return %c0_i32, %c0_i32_0 : i32, i32
  }
  func.func @transform_13(%arg0: i32) -> (i32, i32, i32) {
    %c0_i32 = arith.constant 0 : i32
    %c0_i32_0 = arith.constant 0 : i32
    %c0_i32_1 = arith.constant 0 : i32
    return %arg0, %c0_i32, %c0_i32_0 : i32, i32, i32
  }
}

module attributes {stable_mosaic.version = 11 : i64} {
  func.func @_attn_block_kernel(%arg0: i32, %arg1: memref<1x6x32xf32, #tpu.memory_space<vmem>>, %arg2: memref<1x8x32xf32, #tpu.memory_space<vmem>>, %arg3: memref<1x6x8xf32, #tpu.memory_space<vmem>>, %arg4: memref<4x32x8xbf16, #tpu.memory_space<vmem>>, %arg5: memref<4x1x8xf32, #tpu.memory_space<vmem>>, %arg6: memref<4x32x8xbf16, #tpu.memory_space<vmem>>, %arg7: memref<4x1x8xf32, #tpu.memory_space<vmem>>, %arg8: memref<4x32x8xbf16, #tpu.memory_space<vmem>>, %arg9: memref<4x1x8xf32, #tpu.memory_space<vmem>>, %arg10: memref<4x8x32xbf16, #tpu.memory_space<vmem>>, %arg11: memref<1x32xf32, #tpu.memory_space<vmem>>, %arg12: memref<1x32xf32, #tpu.memory_space<vmem>>, %arg13: memref<1x32xf32, #tpu.memory_space<vmem>>, %arg14: memref<1x6x32xf32, #tpu.memory_space<vmem>>) attributes {dimension_semantics = [#tpu.dimension_semantics<parallel>], iteration_bounds = array<i64: 2>, scalar_prefetch = 0 : i64, scratch_operands = 0 : i64, tpu.core_type = #tpu.core_type<tc>, window_params = [{transform_indices = @transform_0, window_bounds = array<i64: 1, 6, 32>}, {transform_indices = @transform_1, window_bounds = array<i64: 1, 8, 32>}, {transform_indices = @transform_2, window_bounds = array<i64: 1, 6, 8>}, {pipeline_mode = #tpu.pipeline_mode<synchronous>, transform_indices = @transform_3, window_bounds = array<i64: 4, 32, 8>}, {pipeline_mode = #tpu.pipeline_mode<synchronous>, transform_indices = @transform_4, window_bounds = array<i64: 4, 1, 8>}, {pipeline_mode = #tpu.pipeline_mode<synchronous>, transform_indices = @transform_5, window_bounds = array<i64: 4, 32, 8>}, {pipeline_mode = #tpu.pipeline_mode<synchronous>, transform_indices = @transform_6, window_bounds = array<i64: 4, 1, 8>}, {pipeline_mode = #tpu.pipeline_mode<synchronous>, transform_indices = @transform_7, window_bounds = array<i64: 4, 32, 8>}, {pipeline_mode = #tpu.pipeline_mode<synchronous>, transform_indices = @transform_8, window_bounds = array<i64: 4, 1, 8>}, {pipeline_mode = #tpu.pipeline_mode<synchronous>, transform_indices = @transform_9, window_bounds = array<i64: 4, 8, 32>}, {pipeline_mode = #tpu.pipeline_mode<synchronous>, transform_indices = @transform_10, window_bounds = array<i64: 1, 32>}, {pipeline_mode = #tpu.pipeline_mode<synchronous>, transform_indices = @transform_11, window_bounds = array<i64: 1, 32>}, {pipeline_mode = #tpu.pipeline_mode<synchronous>, transform_indices = @transform_12, window_bounds = array<i64: 1, 32>}, {transform_indices = @transform_13, window_bounds = array<i64: 1, 6, 32>}]} {
    %c0 = arith.constant 0 : index
    %c0_0 = arith.constant 0 : index
    %c0_1 = arith.constant 0 : index
    %0 = vector.load %arg1[%c0, %c0_0, %c0_1] : memref<1x6x32xf32, #tpu.memory_space<vmem>>, vector<1x6x32xf32>
    %1 = vector.shape_cast %0 : vector<1x6x32xf32> to vector<6x32xf32>
    %c0_2 = arith.constant 0 : index
    %c0_3 = arith.constant 0 : index
    %c0_4 = arith.constant 0 : index
    %2 = vector.load %arg2[%c0_2, %c0_3, %c0_4] : memref<1x8x32xf32, #tpu.memory_space<vmem>>, vector<1x8x32xf32>
    %3 = vector.shape_cast %2 : vector<1x8x32xf32> to vector<8x32xf32>
    %c0_5 = arith.constant 0 : index
    %c0_6 = arith.constant 0 : index
    %c0_7 = arith.constant 0 : index
    %4 = vector.load %arg3[%c0_5, %c0_6, %c0_7] : memref<1x6x8xf32, #tpu.memory_space<vmem>>, vector<1x6x8xf32>
    %5 = vector.shape_cast %4 : vector<1x6x8xf32> to vector<6x8xf32>
    %6 = arith.truncf %1 : vector<6x32xf32> to vector<6x32xbf16>
    %7 = arith.truncf %3 : vector<8x32xf32> to vector<8x32xbf16>
    %cst = arith.constant 0.000000e+00 : f32
    %8 = vector.broadcast %cst : f32 to vector<6x32xf32>
    %c0_8 = arith.constant 0 : index
    %c0_9 = arith.constant 0 : index
    %c0_10 = arith.constant 0 : index
    %9 = vector.load %arg4[%c0_8, %c0_9, %c0_10] : memref<4x32x8xbf16, #tpu.memory_space<vmem>>, vector<1x32x8xbf16>
    %10 = vector.shape_cast %9 : vector<1x32x8xbf16> to vector<32x8xbf16>
    %cst_11 = arith.constant dense<0.000000e+00> : vector<6x8xf32>
    %11 = tpu.matmul %6, %10, %cst_11 {dimension_numbers = #tpu.dot_dimension_numbers<[1], [0], [0], [1], [0, 0, 1, 1], [], []>} : vector<6x32xbf16>, vector<32x8xbf16>, vector<6x8xf32> -> vector<6x8xf32>
    %c0_12 = arith.constant 0 : index
    %c0_13 = arith.constant 0 : index
    %c0_14 = arith.constant 0 : index
    %12 = vector.load %arg5[%c0_12, %c0_13, %c0_14] : memref<4x1x8xf32, #tpu.memory_space<vmem>>, vector<1x1x8xf32>
    %13 = vector.shape_cast %12 : vector<1x1x8xf32> to vector<1x8xf32>
    %14 = vector.broadcast %13 : vector<1x8xf32> to vector<6x8xf32>
    %15 = arith.addf %11, %14 : vector<6x8xf32>
    %cst_15 = arith.constant 0.353553385 : f32
    %16 = vector.broadcast %cst_15 : f32 to vector<6x8xf32>
    %17 = arith.mulf %15, %16 : vector<6x8xf32>
    %c0_16 = arith.constant 0 : index
    %c0_17 = arith.constant 0 : index
    %c0_18 = arith.constant 0 : index
    %18 = vector.load %arg6[%c0_16, %c0_17, %c0_18] : memref<4x32x8xbf16, #tpu.memory_space<vmem>>, vector<1x32x8xbf16>
    %19 = vector.shape_cast %18 : vector<1x32x8xbf16> to vector<32x8xbf16>
    %cst_19 = arith.constant dense<0.000000e+00> : vector<8x8xf32>
    %20 = tpu.matmul %7, %19, %cst_19 {dimension_numbers = #tpu.dot_dimension_numbers<[1], [0], [0], [1], [0, 0, 1, 1], [], []>} : vector<8x32xbf16>, vector<32x8xbf16>, vector<8x8xf32> -> vector<8x8xf32>
    %c0_20 = arith.constant 0 : index
    %c0_21 = arith.constant 0 : index
    %c0_22 = arith.constant 0 : index
    %21 = vector.load %arg7[%c0_20, %c0_21, %c0_22] : memref<4x1x8xf32, #tpu.memory_space<vmem>>, vector<1x1x8xf32>
    %22 = vector.shape_cast %21 : vector<1x1x8xf32> to vector<1x8xf32>
    %23 = vector.broadcast %22 : vector<1x8xf32> to vector<8x8xf32>
    %24 = arith.addf %20, %23 : vector<8x8xf32>
    %c0_23 = arith.constant 0 : index
    %c0_24 = arith.constant 0 : index
    %c0_25 = arith.constant 0 : index
    %25 = vector.load %arg8[%c0_23, %c0_24, %c0_25] : memref<4x32x8xbf16, #tpu.memory_space<vmem>>, vector<1x32x8xbf16>
    %26 = vector.shape_cast %25 : vector<1x32x8xbf16> to vector<32x8xbf16>
    %cst_26 = arith.constant dense<0.000000e+00> : vector<8x8xf32>
    %27 = tpu.matmul %7, %26, %cst_26 {dimension_numbers = #tpu.dot_dimension_numbers<[1], [0], [0], [1], [0, 0, 1, 1], [], []>} : vector<8x32xbf16>, vector<32x8xbf16>, vector<8x8xf32> -> vector<8x8xf32>
    %c0_27 = arith.constant 0 : index
    %c0_28 = arith.constant 0 : index
    %c0_29 = arith.constant 0 : index
    %28 = vector.load %arg9[%c0_27, %c0_28, %c0_29] : memref<4x1x8xf32, #tpu.memory_space<vmem>>, vector<1x1x8xf32>
    %29 = vector.shape_cast %28 : vector<1x1x8xf32> to vector<1x8xf32>
    %30 = vector.broadcast %29 : vector<1x8xf32> to vector<8x8xf32>
    %31 = arith.addf %27, %30 : vector<8x8xf32>
    %32 = arith.truncf %17 : vector<6x8xf32> to vector<6x8xbf16>
    %33 = arith.truncf %24 : vector<8x8xf32> to vector<8x8xbf16>
    %cst_30 = arith.constant dense<0.000000e+00> : vector<6x8xf32>
    %34 = tpu.matmul %32, %33, %cst_30 {dimension_numbers = #tpu.dot_dimension_numbers<[1], [1], [0], [0], [0, 0, 1, 0], [], []>} : vector<6x8xbf16>, vector<8x8xbf16>, vector<6x8xf32> -> vector<6x8xf32>
    %cst_31 = arith.constant 0.000000e+00 : f32
    %35 = vector.broadcast %cst_31 : f32 to vector<6x8xf32>
    %36 = arith.cmpf ogt, %5, %35 : vector<6x8xf32>
    %cst_32 = arith.constant -1.000000e+10 : f32
    %37 = vector.broadcast %cst_32 : f32 to vector<6x8xf32>
    %38 = arith.select %36, %34, %37 : vector<6x8xi1>, vector<6x8xf32>
    %cst_33 = arith.constant dense<0xFF800000> : vector<6xf32>
    %39 = vector.multi_reduction <maximumf>, %38, %cst_33 [1] : vector<6x8xf32> to vector<6xf32>
    %40 = vector.shape_cast %39 : vector<6xf32> to vector<6x1xf32>
    %41 = vector.broadcast %40 : vector<6x1xf32> to vector<6x8xf32>
    %42 = arith.subf %38, %41 : vector<6x8xf32>
    %43 = math.exp %42 : vector<6x8xf32>
    %cst_34 = arith.constant dense<0.000000e+00> : vector<6xf32>
    %44 = vector.multi_reduction <add>, %43, %cst_34 [1] : vector<6x8xf32> to vector<6xf32>
    %45 = vector.shape_cast %44 : vector<6xf32> to vector<6x1xf32>
    %46 = tpu.reciprocal %45 {approx = true} : vector<6x1xf32> -> vector<6x1xf32>
    %47 = vector.broadcast %46 : vector<6x1xf32> to vector<6x8xf32>
    %48 = arith.mulf %43, %47 : vector<6x8xf32>
    %49 = arith.truncf %48 : vector<6x8xf32> to vector<6x8xbf16>
    %50 = arith.truncf %31 : vector<8x8xf32> to vector<8x8xbf16>
    %cst_35 = arith.constant dense<0.000000e+00> : vector<6x8xf32>
    %51 = tpu.matmul %49, %50, %cst_35 {dimension_numbers = #tpu.dot_dimension_numbers<[1], [0], [0], [1], [0, 0, 1, 1], [], []>} : vector<6x8xbf16>, vector<8x8xbf16>, vector<6x8xf32> -> vector<6x8xf32>
    %52 = arith.truncf %51 : vector<6x8xf32> to vector<6x8xbf16>
    %c0_36 = arith.constant 0 : index
    %c0_37 = arith.constant 0 : index
    %c0_38 = arith.constant 0 : index
    %53 = vector.load %arg10[%c0_36, %c0_37, %c0_38] : memref<4x8x32xbf16, #tpu.memory_space<vmem>>, vector<1x8x32xbf16>
    %54 = vector.shape_cast %53 : vector<1x8x32xbf16> to vector<8x32xbf16>
    %cst_39 = arith.constant dense<0.000000e+00> : vector<6x32xf32>
    %55 = tpu.matmul %52, %54, %cst_39 {dimension_numbers = #tpu.dot_dimension_numbers<[1], [0], [0], [1], [0, 0, 1, 1], [], []>} : vector<6x8xbf16>, vector<8x32xbf16>, vector<6x32xf32> -> vector<6x32xf32>
    %56 = arith.addf %8, %55 : vector<6x32xf32>
    %c1 = arith.constant 1 : index
    %c0_40 = arith.constant 0 : index
    %c0_41 = arith.constant 0 : index
    %57 = vector.load %arg4[%c1, %c0_40, %c0_41] : memref<4x32x8xbf16, #tpu.memory_space<vmem>>, vector<1x32x8xbf16>
    %58 = vector.shape_cast %57 : vector<1x32x8xbf16> to vector<32x8xbf16>
    %cst_42 = arith.constant dense<0.000000e+00> : vector<6x8xf32>
    %59 = tpu.matmul %6, %58, %cst_42 {dimension_numbers = #tpu.dot_dimension_numbers<[1], [0], [0], [1], [0, 0, 1, 1], [], []>} : vector<6x32xbf16>, vector<32x8xbf16>, vector<6x8xf32> -> vector<6x8xf32>
    %c1_43 = arith.constant 1 : index
    %c0_44 = arith.constant 0 : index
    %c0_45 = arith.constant 0 : index
    %60 = vector.load %arg5[%c1_43, %c0_44, %c0_45] : memref<4x1x8xf32, #tpu.memory_space<vmem>>, vector<1x1x8xf32>
    %61 = vector.shape_cast %60 : vector<1x1x8xf32> to vector<1x8xf32>
    %62 = vector.broadcast %61 : vector<1x8xf32> to vector<6x8xf32>
    %63 = arith.addf %59, %62 : vector<6x8xf32>
    %cst_46 = arith.constant 0.353553385 : f32
    %64 = vector.broadcast %cst_46 : f32 to vector<6x8xf32>
    %65 = arith.mulf %63, %64 : vector<6x8xf32>
    %c1_47 = arith.constant 1 : index
    %c0_48 = arith.constant 0 : index
    %c0_49 = arith.constant 0 : index
    %66 = vector.load %arg6[%c1_47, %c0_48, %c0_49] : memref<4x32x8xbf16, #tpu.memory_space<vmem>>, vector<1x32x8xbf16>
    %67 = vector.shape_cast %66 : vector<1x32x8xbf16> to vector<32x8xbf16>
    %cst_50 = arith.constant dense<0.000000e+00> : vector<8x8xf32>
    %68 = tpu.matmul %7, %67, %cst_50 {dimension_numbers = #tpu.dot_dimension_numbers<[1], [0], [0], [1], [0, 0, 1, 1], [], []>} : vector<8x32xbf16>, vector<32x8xbf16>, vector<8x8xf32> -> vector<8x8xf32>
    %c1_51 = arith.constant 1 : index
    %c0_52 = arith.constant 0 : index
    %c0_53 = arith.constant 0 : index
    %69 = vector.load %arg7[%c1_51, %c0_52, %c0_53] : memref<4x1x8xf32, #tpu.memory_space<vmem>>, vector<1x1x8xf32>
    %70 = vector.shape_cast %69 : vector<1x1x8xf32> to vector<1x8xf32>
    %71 = vector.broadcast %70 : vector<1x8xf32> to vector<8x8xf32>
    %72 = arith.addf %68, %71 : vector<8x8xf32>
    %c1_54 = arith.constant 1 : index
    %c0_55 = arith.constant 0 : index
    %c0_56 = arith.constant 0 : index
    %73 = vector.load %arg8[%c1_54, %c0_55, %c0_56] : memref<4x32x8xbf16, #tpu.memory_space<vmem>>, vector<1x32x8xbf16>
    %74 = vector.shape_cast %73 : vector<1x32x8xbf16> to vector<32x8xbf16>
    %cst_57 = arith.constant dense<0.000000e+00> : vector<8x8xf32>
    %75 = tpu.matmul %7, %74, %cst_57 {dimension_numbers = #tpu.dot_dimension_numbers<[1], [0], [0], [1], [0, 0, 1, 1], [], []>} : vector<8x32xbf16>, vector<32x8xbf16>, vector<8x8xf32> -> vector<8x8xf32>
    %c1_58 = arith.constant 1 : index
    %c0_59 = arith.constant 0 : index
    %c0_60 = arith.constant 0 : index
    %76 = vector.load %arg9[%c1_58, %c0_59, %c0_60] : memref<4x1x8xf32, #tpu.memory_space<vmem>>, vector<1x1x8xf32>
    %77 = vector.shape_cast %76 : vector<1x1x8xf32> to vector<1x8xf32>
    %78 = vector.broadcast %77 : vector<1x8xf32> to vector<8x8xf32>
    %79 = arith.addf %75, %78 : vector<8x8xf32>
    %80 = arith.truncf %65 : vector<6x8xf32> to vector<6x8xbf16>
    %81 = arith.truncf %72 : vector<8x8xf32> to vector<8x8xbf16>
    %cst_61 = arith.constant dense<0.000000e+00> : vector<6x8xf32>
    %82 = tpu.matmul %80, %81, %cst_61 {dimension_numbers = #tpu.dot_dimension_numbers<[1], [1], [0], [0], [0, 0, 1, 0], [], []>} : vector<6x8xbf16>, vector<8x8xbf16>, vector<6x8xf32> -> vector<6x8xf32>
    %cst_62 = arith.constant 0.000000e+00 : f32
    %83 = vector.broadcast %cst_62 : f32 to vector<6x8xf32>
    %84 = arith.cmpf ogt, %5, %83 : vector<6x8xf32>
    %cst_63 = arith.constant -1.000000e+10 : f32
    %85 = vector.broadcast %cst_63 : f32 to vector<6x8xf32>
    %86 = arith.select %84, %82, %85 : vector<6x8xi1>, vector<6x8xf32>
    %cst_64 = arith.constant dense<0xFF800000> : vector<6xf32>
    %87 = vector.multi_reduction <maximumf>, %86, %cst_64 [1] : vector<6x8xf32> to vector<6xf32>
    %88 = vector.shape_cast %87 : vector<6xf32> to vector<6x1xf32>
    %89 = vector.broadcast %88 : vector<6x1xf32> to vector<6x8xf32>
    %90 = arith.subf %86, %89 : vector<6x8xf32>
    %91 = math.exp %90 : vector<6x8xf32>
    %cst_65 = arith.constant dense<0.000000e+00> : vector<6xf32>
    %92 = vector.multi_reduction <add>, %91, %cst_65 [1] : vector<6x8xf32> to vector<6xf32>
    %93 = vector.shape_cast %92 : vector<6xf32> to vector<6x1xf32>
    %94 = tpu.reciprocal %93 {approx = true} : vector<6x1xf32> -> vector<6x1xf32>
    %95 = vector.broadcast %94 : vector<6x1xf32> to vector<6x8xf32>
    %96 = arith.mulf %91, %95 : vector<6x8xf32>
    %97 = arith.truncf %96 : vector<6x8xf32> to vector<6x8xbf16>
    %98 = arith.truncf %79 : vector<8x8xf32> to vector<8x8xbf16>
    %cst_66 = arith.constant dense<0.000000e+00> : vector<6x8xf32>
    %99 = tpu.matmul %97, %98, %cst_66 {dimension_numbers = #tpu.dot_dimension_numbers<[1], [0], [0], [1], [0, 0, 1, 1], [], []>} : vector<6x8xbf16>, vector<8x8xbf16>, vector<6x8xf32> -> vector<6x8xf32>
    %100 = arith.truncf %99 : vector<6x8xf32> to vector<6x8xbf16>
    %c1_67 = arith.constant 1 : index
    %c0_68 = arith.constant 0 : index
    %c0_69 = arith.constant 0 : index
    %101 = vector.load %arg10[%c1_67, %c0_68, %c0_69] : memref<4x8x32xbf16, #tpu.memory_space<vmem>>, vector<1x8x32xbf16>
    %102 = vector.shape_cast %101 : vector<1x8x32xbf16> to vector<8x32xbf16>
    %cst_70 = arith.constant dense<0.000000e+00> : vector<6x32xf32>
    %103 = tpu.matmul %100, %102, %cst_70 {dimension_numbers = #tpu.dot_dimension_numbers<[1], [0], [0], [1], [0, 0, 1, 1], [], []>} : vector<6x8xbf16>, vector<8x32xbf16>, vector<6x32xf32> -> vector<6x32xf32>
    %104 = arith.addf %56, %103 : vector<6x32xf32>
    %c2 = arith.constant 2 : index
    %c0_71 = arith.constant 0 : index
    %c0_72 = arith.constant 0 : index
    %105 = vector.load %arg4[%c2, %c0_71, %c0_72] : memref<4x32x8xbf16, #tpu.memory_space<vmem>>, vector<1x32x8xbf16>
    %106 = vector.shape_cast %105 : vector<1x32x8xbf16> to vector<32x8xbf16>
    %cst_73 = arith.constant dense<0.000000e+00> : vector<6x8xf32>
    %107 = tpu.matmul %6, %106, %cst_73 {dimension_numbers = #tpu.dot_dimension_numbers<[1], [0], [0], [1], [0, 0, 1, 1], [], []>} : vector<6x32xbf16>, vector<32x8xbf16>, vector<6x8xf32> -> vector<6x8xf32>
    %c2_74 = arith.constant 2 : index
    %c0_75 = arith.constant 0 : index
    %c0_76 = arith.constant 0 : index
    %108 = vector.load %arg5[%c2_74, %c0_75, %c0_76] : memref<4x1x8xf32, #tpu.memory_space<vmem>>, vector<1x1x8xf32>
    %109 = vector.shape_cast %108 : vector<1x1x8xf32> to vector<1x8xf32>
    %110 = vector.broadcast %109 : vector<1x8xf32> to vector<6x8xf32>
    %111 = arith.addf %107, %110 : vector<6x8xf32>
    %cst_77 = arith.constant 0.353553385 : f32
    %112 = vector.broadcast %cst_77 : f32 to vector<6x8xf32>
    %113 = arith.mulf %111, %112 : vector<6x8xf32>
    %c2_78 = arith.constant 2 : index
    %c0_79 = arith.constant 0 : index
    %c0_80 = arith.constant 0 : index
    %114 = vector.load %arg6[%c2_78, %c0_79, %c0_80] : memref<4x32x8xbf16, #tpu.memory_space<vmem>>, vector<1x32x8xbf16>
    %115 = vector.shape_cast %114 : vector<1x32x8xbf16> to vector<32x8xbf16>
    %cst_81 = arith.constant dense<0.000000e+00> : vector<8x8xf32>
    %116 = tpu.matmul %7, %115, %cst_81 {dimension_numbers = #tpu.dot_dimension_numbers<[1], [0], [0], [1], [0, 0, 1, 1], [], []>} : vector<8x32xbf16>, vector<32x8xbf16>, vector<8x8xf32> -> vector<8x8xf32>
    %c2_82 = arith.constant 2 : index
    %c0_83 = arith.constant 0 : index
    %c0_84 = arith.constant 0 : index
    %117 = vector.load %arg7[%c2_82, %c0_83, %c0_84] : memref<4x1x8xf32, #tpu.memory_space<vmem>>, vector<1x1x8xf32>
    %118 = vector.shape_cast %117 : vector<1x1x8xf32> to vector<1x8xf32>
    %119 = vector.broadcast %118 : vector<1x8xf32> to vector<8x8xf32>
    %120 = arith.addf %116, %119 : vector<8x8xf32>
    %c2_85 = arith.constant 2 : index
    %c0_86 = arith.constant 0 : index
    %c0_87 = arith.constant 0 : index
    %121 = vector.load %arg8[%c2_85, %c0_86, %c0_87] : memref<4x32x8xbf16, #tpu.memory_space<vmem>>, vector<1x32x8xbf16>
    %122 = vector.shape_cast %121 : vector<1x32x8xbf16> to vector<32x8xbf16>
    %cst_88 = arith.constant dense<0.000000e+00> : vector<8x8xf32>
    %123 = tpu.matmul %7, %122, %cst_88 {dimension_numbers = #tpu.dot_dimension_numbers<[1], [0], [0], [1], [0, 0, 1, 1], [], []>} : vector<8x32xbf16>, vector<32x8xbf16>, vector<8x8xf32> -> vector<8x8xf32>
    %c2_89 = arith.constant 2 : index
    %c0_90 = arith.constant 0 : index
    %c0_91 = arith.constant 0 : index
    %124 = vector.load %arg9[%c2_89, %c0_90, %c0_91] : memref<4x1x8xf32, #tpu.memory_space<vmem>>, vector<1x1x8xf32>
    %125 = vector.shape_cast %124 : vector<1x1x8xf32> to vector<1x8xf32>
    %126 = vector.broadcast %125 : vector<1x8xf32> to vector<8x8xf32>
    %127 = arith.addf %123, %126 : vector<8x8xf32>
    %128 = arith.truncf %113 : vector<6x8xf32> to vector<6x8xbf16>
    %129 = arith.truncf %120 : vector<8x8xf32> to vector<8x8xbf16>
    %cst_92 = arith.constant dense<0.000000e+00> : vector<6x8xf32>
    %130 = tpu.matmul %128, %129, %cst_92 {dimension_numbers = #tpu.dot_dimension_numbers<[1], [1], [0], [0], [0, 0, 1, 0], [], []>} : vector<6x8xbf16>, vector<8x8xbf16>, vector<6x8xf32> -> vector<6x8xf32>
    %cst_93 = arith.constant 0.000000e+00 : f32
    %131 = vector.broadcast %cst_93 : f32 to vector<6x8xf32>
    %132 = arith.cmpf ogt, %5, %131 : vector<6x8xf32>
    %cst_94 = arith.constant -1.000000e+10 : f32
    %133 = vector.broadcast %cst_94 : f32 to vector<6x8xf32>
    %134 = arith.select %132, %130, %133 : vector<6x8xi1>, vector<6x8xf32>
    %cst_95 = arith.constant dense<0xFF800000> : vector<6xf32>
    %135 = vector.multi_reduction <maximumf>, %134, %cst_95 [1] : vector<6x8xf32> to vector<6xf32>
    %136 = vector.shape_cast %135 : vector<6xf32> to vector<6x1xf32>
    %137 = vector.broadcast %136 : vector<6x1xf32> to vector<6x8xf32>
    %138 = arith.subf %134, %137 : vector<6x8xf32>
    %139 = math.exp %138 : vector<6x8xf32>
    %cst_96 = arith.constant dense<0.000000e+00> : vector<6xf32>
    %140 = vector.multi_reduction <add>, %139, %cst_96 [1] : vector<6x8xf32> to vector<6xf32>
    %141 = vector.shape_cast %140 : vector<6xf32> to vector<6x1xf32>
    %142 = tpu.reciprocal %141 {approx = true} : vector<6x1xf32> -> vector<6x1xf32>
    %143 = vector.broadcast %142 : vector<6x1xf32> to vector<6x8xf32>
    %144 = arith.mulf %139, %143 : vector<6x8xf32>
    %145 = arith.truncf %144 : vector<6x8xf32> to vector<6x8xbf16>
    %146 = arith.truncf %127 : vector<8x8xf32> to vector<8x8xbf16>
    %cst_97 = arith.constant dense<0.000000e+00> : vector<6x8xf32>
    %147 = tpu.matmul %145, %146, %cst_97 {dimension_numbers = #tpu.dot_dimension_numbers<[1], [0], [0], [1], [0, 0, 1, 1], [], []>} : vector<6x8xbf16>, vector<8x8xbf16>, vector<6x8xf32> -> vector<6x8xf32>
    %148 = arith.truncf %147 : vector<6x8xf32> to vector<6x8xbf16>
    %c2_98 = arith.constant 2 : index
    %c0_99 = arith.constant 0 : index
    %c0_100 = arith.constant 0 : index
    %149 = vector.load %arg10[%c2_98, %c0_99, %c0_100] : memref<4x8x32xbf16, #tpu.memory_space<vmem>>, vector<1x8x32xbf16>
    %150 = vector.shape_cast %149 : vector<1x8x32xbf16> to vector<8x32xbf16>
    %cst_101 = arith.constant dense<0.000000e+00> : vector<6x32xf32>
    %151 = tpu.matmul %148, %150, %cst_101 {dimension_numbers = #tpu.dot_dimension_numbers<[1], [0], [0], [1], [0, 0, 1, 1], [], []>} : vector<6x8xbf16>, vector<8x32xbf16>, vector<6x32xf32> -> vector<6x32xf32>
    %152 = arith.addf %104, %151 : vector<6x32xf32>
    %c3 = arith.constant 3 : index
    %c0_102 = arith.constant 0 : index
    %c0_103 = arith.constant 0 : index
    %153 = vector.load %arg4[%c3, %c0_102, %c0_103] : memref<4x32x8xbf16, #tpu.memory_space<vmem>>, vector<1x32x8xbf16>
    %154 = vector.shape_cast %153 : vector<1x32x8xbf16> to vector<32x8xbf16>
    %cst_104 = arith.constant dense<0.000000e+00> : vector<6x8xf32>
    %155 = tpu.matmul %6, %154, %cst_104 {dimension_numbers = #tpu.dot_dimension_numbers<[1], [0], [0], [1], [0, 0, 1, 1], [], []>} : vector<6x32xbf16>, vector<32x8xbf16>, vector<6x8xf32> -> vector<6x8xf32>
    %c3_105 = arith.constant 3 : index
    %c0_106 = arith.constant 0 : index
    %c0_107 = arith.constant 0 : index
    %156 = vector.load %arg5[%c3_105, %c0_106, %c0_107] : memref<4x1x8xf32, #tpu.memory_space<vmem>>, vector<1x1x8xf32>
    %157 = vector.shape_cast %156 : vector<1x1x8xf32> to vector<1x8xf32>
    %158 = vector.broadcast %157 : vector<1x8xf32> to vector<6x8xf32>
    %159 = arith.addf %155, %158 : vector<6x8xf32>
    %cst_108 = arith.constant 0.353553385 : f32
    %160 = vector.broadcast %cst_108 : f32 to vector<6x8xf32>
    %161 = arith.mulf %159, %160 : vector<6x8xf32>
    %c3_109 = arith.constant 3 : index
    %c0_110 = arith.constant 0 : index
    %c0_111 = arith.constant 0 : index
    %162 = vector.load %arg6[%c3_109, %c0_110, %c0_111] : memref<4x32x8xbf16, #tpu.memory_space<vmem>>, vector<1x32x8xbf16>
    %163 = vector.shape_cast %162 : vector<1x32x8xbf16> to vector<32x8xbf16>
    %cst_112 = arith.constant dense<0.000000e+00> : vector<8x8xf32>
    %164 = tpu.matmul %7, %163, %cst_112 {dimension_numbers = #tpu.dot_dimension_numbers<[1], [0], [0], [1], [0, 0, 1, 1], [], []>} : vector<8x32xbf16>, vector<32x8xbf16>, vector<8x8xf32> -> vector<8x8xf32>
    %c3_113 = arith.constant 3 : index
    %c0_114 = arith.constant 0 : index
    %c0_115 = arith.constant 0 : index
    %165 = vector.load %arg7[%c3_113, %c0_114, %c0_115] : memref<4x1x8xf32, #tpu.memory_space<vmem>>, vector<1x1x8xf32>
    %166 = vector.shape_cast %165 : vector<1x1x8xf32> to vector<1x8xf32>
    %167 = vector.broadcast %166 : vector<1x8xf32> to vector<8x8xf32>
    %168 = arith.addf %164, %167 : vector<8x8xf32>
    %c3_116 = arith.constant 3 : index
    %c0_117 = arith.constant 0 : index
    %c0_118 = arith.constant 0 : index
    %169 = vector.load %arg8[%c3_116, %c0_117, %c0_118] : memref<4x32x8xbf16, #tpu.memory_space<vmem>>, vector<1x32x8xbf16>
    %170 = vector.shape_cast %169 : vector<1x32x8xbf16> to vector<32x8xbf16>
    %cst_119 = arith.constant dense<0.000000e+00> : vector<8x8xf32>
    %171 = tpu.matmul %7, %170, %cst_119 {dimension_numbers = #tpu.dot_dimension_numbers<[1], [0], [0], [1], [0, 0, 1, 1], [], []>} : vector<8x32xbf16>, vector<32x8xbf16>, vector<8x8xf32> -> vector<8x8xf32>
    %c3_120 = arith.constant 3 : index
    %c0_121 = arith.constant 0 : index
    %c0_122 = arith.constant 0 : index
    %172 = vector.load %arg9[%c3_120, %c0_121, %c0_122] : memref<4x1x8xf32, #tpu.memory_space<vmem>>, vector<1x1x8xf32>
    %173 = vector.shape_cast %172 : vector<1x1x8xf32> to vector<1x8xf32>
    %174 = vector.broadcast %173 : vector<1x8xf32> to vector<8x8xf32>
    %175 = arith.addf %171, %174 : vector<8x8xf32>
    %176 = arith.truncf %161 : vector<6x8xf32> to vector<6x8xbf16>
    %177 = arith.truncf %168 : vector<8x8xf32> to vector<8x8xbf16>
    %cst_123 = arith.constant dense<0.000000e+00> : vector<6x8xf32>
    %178 = tpu.matmul %176, %177, %cst_123 {dimension_numbers = #tpu.dot_dimension_numbers<[1], [1], [0], [0], [0, 0, 1, 0], [], []>} : vector<6x8xbf16>, vector<8x8xbf16>, vector<6x8xf32> -> vector<6x8xf32>
    %cst_124 = arith.constant 0.000000e+00 : f32
    %179 = vector.broadcast %cst_124 : f32 to vector<6x8xf32>
    %180 = arith.cmpf ogt, %5, %179 : vector<6x8xf32>
    %cst_125 = arith.constant -1.000000e+10 : f32
    %181 = vector.broadcast %cst_125 : f32 to vector<6x8xf32>
    %182 = arith.select %180, %178, %181 : vector<6x8xi1>, vector<6x8xf32>
    %cst_126 = arith.constant dense<0xFF800000> : vector<6xf32>
    %183 = vector.multi_reduction <maximumf>, %182, %cst_126 [1] : vector<6x8xf32> to vector<6xf32>
    %184 = vector.shape_cast %183 : vector<6xf32> to vector<6x1xf32>
    %185 = vector.broadcast %184 : vector<6x1xf32> to vector<6x8xf32>
    %186 = arith.subf %182, %185 : vector<6x8xf32>
    %187 = math.exp %186 : vector<6x8xf32>
    %cst_127 = arith.constant dense<0.000000e+00> : vector<6xf32>
    %188 = vector.multi_reduction <add>, %187, %cst_127 [1] : vector<6x8xf32> to vector<6xf32>
    %189 = vector.shape_cast %188 : vector<6xf32> to vector<6x1xf32>
    %190 = tpu.reciprocal %189 {approx = true} : vector<6x1xf32> -> vector<6x1xf32>
    %191 = vector.broadcast %190 : vector<6x1xf32> to vector<6x8xf32>
    %192 = arith.mulf %187, %191 : vector<6x8xf32>
    %193 = arith.truncf %192 : vector<6x8xf32> to vector<6x8xbf16>
    %194 = arith.truncf %175 : vector<8x8xf32> to vector<8x8xbf16>
    %cst_128 = arith.constant dense<0.000000e+00> : vector<6x8xf32>
    %195 = tpu.matmul %193, %194, %cst_128 {dimension_numbers = #tpu.dot_dimension_numbers<[1], [0], [0], [1], [0, 0, 1, 1], [], []>} : vector<6x8xbf16>, vector<8x8xbf16>, vector<6x8xf32> -> vector<6x8xf32>
    %196 = arith.truncf %195 : vector<6x8xf32> to vector<6x8xbf16>
    %c3_129 = arith.constant 3 : index
    %c0_130 = arith.constant 0 : index
    %c0_131 = arith.constant 0 : index
    %197 = vector.load %arg10[%c3_129, %c0_130, %c0_131] : memref<4x8x32xbf16, #tpu.memory_space<vmem>>, vector<1x8x32xbf16>
    %198 = vector.shape_cast %197 : vector<1x8x32xbf16> to vector<8x32xbf16>
    %cst_132 = arith.constant dense<0.000000e+00> : vector<6x32xf32>
    %199 = tpu.matmul %196, %198, %cst_132 {dimension_numbers = #tpu.dot_dimension_numbers<[1], [0], [0], [1], [0, 0, 1, 1], [], []>} : vector<6x8xbf16>, vector<8x32xbf16>, vector<6x32xf32> -> vector<6x32xf32>
    %200 = arith.addf %152, %199 : vector<6x32xf32>
    %c0_133 = arith.constant 0 : index
    %c0_134 = arith.constant 0 : index
    %201 = vector.load %arg11[%c0_133, %c0_134] : memref<1x32xf32, #tpu.memory_space<vmem>>, vector<1x32xf32>
    %202 = vector.broadcast %201 : vector<1x32xf32> to vector<6x32xf32>
    %203 = arith.addf %200, %202 : vector<6x32xf32>
    %204 = arith.addf %203, %1 : vector<6x32xf32>
    %cst_135 = arith.constant dense<0.000000e+00> : vector<6xf32>
    %205 = vector.multi_reduction <add>, %204, %cst_135 [1] : vector<6x32xf32> to vector<6xf32>
    %206 = vector.shape_cast %205 : vector<6xf32> to vector<6x1xf32>
    %cst_136 = arith.constant 3.200000e+01 : f32
    %207 = vector.broadcast %cst_136 : f32 to vector<6x1xf32>
    %208 = arith.divf %206, %207 : vector<6x1xf32>
    %209 = vector.broadcast %208 : vector<6x1xf32> to vector<6x32xf32>
    %210 = arith.subf %204, %209 : vector<6x32xf32>
    %211 = arith.mulf %210, %210 : vector<6x32xf32>
    %cst_137 = arith.constant dense<0.000000e+00> : vector<6xf32>
    %212 = vector.multi_reduction <add>, %211, %cst_137 [1] : vector<6x32xf32> to vector<6xf32>
    %213 = vector.shape_cast %212 : vector<6xf32> to vector<6x1xf32>
    %cst_138 = arith.constant 3.200000e+01 : f32
    %214 = vector.broadcast %cst_138 : f32 to vector<6x1xf32>
    %215 = arith.divf %213, %214 : vector<6x1xf32>
    %216 = vector.broadcast %208 : vector<6x1xf32> to vector<6x32xf32>
    %217 = arith.subf %204, %216 : vector<6x32xf32>
    %cst_139 = arith.constant 9.99999974E-6 : f32
    %218 = vector.broadcast %cst_139 : f32 to vector<6x1xf32>
    %219 = arith.addf %215, %218 : vector<6x1xf32>
    %220 = math.rsqrt %219 : vector<6x1xf32>
    %221 = vector.broadcast %220 : vector<6x1xf32> to vector<6x32xf32>
    %222 = arith.mulf %217, %221 : vector<6x32xf32>
    %c0_140 = arith.constant 0 : index
    %c0_141 = arith.constant 0 : index
    %223 = vector.load %arg12[%c0_140, %c0_141] : memref<1x32xf32, #tpu.memory_space<vmem>>, vector<1x32xf32>
    %224 = vector.broadcast %223 : vector<1x32xf32> to vector<6x32xf32>
    %225 = arith.mulf %222, %224 : vector<6x32xf32>
    %c0_142 = arith.constant 0 : index
    %c0_143 = arith.constant 0 : index
    %226 = vector.load %arg13[%c0_142, %c0_143] : memref<1x32xf32, #tpu.memory_space<vmem>>, vector<1x32xf32>
    %227 = vector.broadcast %226 : vector<1x32xf32> to vector<6x32xf32>
    %228 = arith.addf %225, %227 : vector<6x32xf32>
    %c0_144 = arith.constant 0 : index
    %c0_145 = arith.constant 0 : index
    %c0_146 = arith.constant 0 : index
    %229 = vector.load %arg14[%c0_144, %c0_145, %c0_146] : memref<1x6x32xf32, #tpu.memory_space<vmem>>, vector<1x6x32xf32>
    %230 = vector.shape_cast %229 : vector<1x6x32xf32> to vector<6x32xf32>
    %231 = vector.shape_cast %228 : vector<6x32xf32> to vector<1x6x32xf32>
    tpu.vector_store %arg14[%c0_144, %c0_145, %c0_146], %231 {strides = array<i32>} : memref<1x6x32xf32, #tpu.memory_space<vmem>>, vector<1x6x32xf32>,
    return
  }
  func.func @transform_0(%arg0: i32) -> (i32, i32, i32) {
    %c0_i32 = arith.constant 0 : i32
    %c0_i32_0 = arith.constant 0 : i32
    %c0_i32_1 = arith.constant 0 : i32
    return %arg0, %c0_i32, %c0_i32_0 : i32, i32, i32
  }
  func.func @transform_1(%arg0: i32) -> (i32, i32, i32) {
    %c0_i32 = arith.constant 0 : i32
    %c0_i32_0 = arith.constant 0 : i32
    %c0_i32_1 = arith.constant 0 : i32
    return %arg0, %c0_i32, %c0_i32_0 : i32, i32, i32
  }
  func.func @transform_2(%arg0: i32) -> (i32, i32, i32) {
    %c0_i32 = arith.constant 0 : i32
    %c0_i32_0 = arith.constant 0 : i32
    %c0_i32_1 = arith.constant 0 : i32
    return %arg0, %c0_i32, %c0_i32_0 : i32, i32, i32
  }
  func.func @transform_3(%arg0: i32) -> (i32, i32, i32) {
    %c0_i32 = arith.constant 0 : i32
    %c0_i32_0 = arith.constant 0 : i32
    %c0_i32_1 = arith.constant 0 : i32
    %c0_i32_2 = arith.constant 0 : i32
    return %c0_i32, %c0_i32_0, %c0_i32_1 : i32, i32, i32
  }
  func.func @transform_4(%arg0: i32) -> (i32, i32, i32) {
    %c0_i32 = arith.constant 0 : i32
    %c0_i32_0 = arith.constant 0 : i32
    %c0_i32_1 = arith.constant 0 : i32
    %c0_i32_2 = arith.constant 0 : i32
    return %c0_i32, %c0_i32_0, %c0_i32_1 : i32, i32, i32
  }
  func.func @transform_5(%arg0: i32) -> (i32, i32, i32) {
    %c0_i32 = arith.constant 0 : i32
    %c0_i32_0 = arith.constant 0 : i32
    %c0_i32_1 = arith.constant 0 : i32
    %c0_i32_2 = arith.constant 0 : i32
    return %c0_i32, %c0_i32_0, %c0_i32_1 : i32, i32, i32
  }
  func.func @transform_6(%arg0: i32) -> (i32, i32, i32) {
    %c0_i32 = arith.constant 0 : i32
    %c0_i32_0 = arith.constant 0 : i32
    %c0_i32_1 = arith.constant 0 : i32
    %c0_i32_2 = arith.constant 0 : i32
    return %c0_i32, %c0_i32_0, %c0_i32_1 : i32, i32, i32
  }
  func.func @transform_7(%arg0: i32) -> (i32, i32, i32) {
    %c0_i32 = arith.constant 0 : i32
    %c0_i32_0 = arith.constant 0 : i32
    %c0_i32_1 = arith.constant 0 : i32
    %c0_i32_2 = arith.constant 0 : i32
    return %c0_i32, %c0_i32_0, %c0_i32_1 : i32, i32, i32
  }
  func.func @transform_8(%arg0: i32) -> (i32, i32, i32) {
    %c0_i32 = arith.constant 0 : i32
    %c0_i32_0 = arith.constant 0 : i32
    %c0_i32_1 = arith.constant 0 : i32
    %c0_i32_2 = arith.constant 0 : i32
    return %c0_i32, %c0_i32_0, %c0_i32_1 : i32, i32, i32
  }
  func.func @transform_9(%arg0: i32) -> (i32, i32, i32) {
    %c0_i32 = arith.constant 0 : i32
    %c0_i32_0 = arith.constant 0 : i32
    %c0_i32_1 = arith.constant 0 : i32
    %c0_i32_2 = arith.constant 0 : i32
    return %c0_i32, %c0_i32_0, %c0_i32_1 : i32, i32, i32
  }
  func.func @transform_10(%arg0: i32) -> (i32, i32) {
    %c0_i32 = arith.constant 0 : i32
    %c0_i32_0 = arith.constant 0 : i32
    %c0_i32_1 = arith.constant 0 : i32
    return %c0_i32, %c0_i32_0 : i32, i32
  }
  func.func @transform_11(%arg0: i32) -> (i32, i32) {
    %c0_i32 = arith.constant 0 : i32
    %c0_i32_0 = arith.constant 0 : i32
    %c0_i32_1 = arith.constant 0 : i32
    return %c0_i32, %c0_i32_0 : i32, i32
  }
  func.func @transform_12(%arg0: i32) -> (i32, i32) {
    %c0_i32 = arith.constant 0 : i32
    %c0_i32_0 = arith.constant 0 : i32
    %c0_i32_1 = arith.constant 0 : i32
    return %c0_i32, %c0_i32_0 : i32, i32
  }
  func.func @transform_13(%arg0: i32) -> (i32, i32, i32) {
    %c0_i32 = arith.constant 0 : i32
    %c0_i32_0 = arith.constant 0 : i32
    %c0_i32_1 = arith.constant 0 : i32
    return %arg0, %c0_i32, %c0_i32_0 : i32, i32, i32
  }
}

module attributes {stable_mosaic.version = 11 : i64} {
  func.func @_ffn_block_kernel(%arg0: i32, %arg1: memref<12x32xf32, #tpu.memory_space<vmem>>, %arg2: memref<32x64xbf16, #tpu.memory_space<vmem>>, %arg3: memref<1x64xf32, #tpu.memory_space<vmem>>, %arg4: memref<64x32xbf16, #tpu.memory_space<vmem>>, %arg5: memref<1x32xf32, #tpu.memory_space<vmem>>, %arg6: memref<1x32xf32, #tpu.memory_space<vmem>>, %arg7: memref<1x32xf32, #tpu.memory_space<vmem>>, %arg8: memref<12x32xf32, #tpu.memory_space<vmem>>) attributes {dimension_semantics = [#tpu.dimension_semantics<parallel>], iteration_bounds = array<i64: 1>, scalar_prefetch = 0 : i64, scratch_operands = 0 : i64, tpu.core_type = #tpu.core_type<tc>, window_params = [{transform_indices = @transform_0, window_bounds = array<i64: 12, 32>}, {pipeline_mode = #tpu.pipeline_mode<synchronous>, transform_indices = @transform_1, window_bounds = array<i64: 32, 64>}, {pipeline_mode = #tpu.pipeline_mode<synchronous>, transform_indices = @transform_2, window_bounds = array<i64: 1, 64>}, {pipeline_mode = #tpu.pipeline_mode<synchronous>, transform_indices = @transform_3, window_bounds = array<i64: 64, 32>}, {pipeline_mode = #tpu.pipeline_mode<synchronous>, transform_indices = @transform_4, window_bounds = array<i64: 1, 32>}, {pipeline_mode = #tpu.pipeline_mode<synchronous>, transform_indices = @transform_5, window_bounds = array<i64: 1, 32>}, {pipeline_mode = #tpu.pipeline_mode<synchronous>, transform_indices = @transform_6, window_bounds = array<i64: 1, 32>}, {transform_indices = @transform_7, window_bounds = array<i64: 12, 32>}]} {
    %c0 = arith.constant 0 : index
    %c0_0 = arith.constant 0 : index
    %0 = vector.load %arg1[%c0, %c0_0] : memref<12x32xf32, #tpu.memory_space<vmem>>, vector<12x32xf32>
    %1 = arith.truncf %0 : vector<12x32xf32> to vector<12x32xbf16>
    %c0_1 = arith.constant 0 : index
    %c0_2 = arith.constant 0 : index
    %2 = vector.load %arg2[%c0_1, %c0_2] : memref<32x64xbf16, #tpu.memory_space<vmem>>, vector<32x64xbf16>
    %cst = arith.constant dense<0.000000e+00> : vector<12x64xf32>
    %3 = tpu.matmul %1, %2, %cst {dimension_numbers = #tpu.dot_dimension_numbers<[1], [0], [0], [1], [0, 0, 1, 1], [], []>} : vector<12x32xbf16>, vector<32x64xbf16>, vector<12x64xf32> -> vector<12x64xf32>
    %c0_3 = arith.constant 0 : index
    %c0_4 = arith.constant 0 : index
    %4 = vector.load %arg3[%c0_3, %c0_4] : memref<1x64xf32, #tpu.memory_space<vmem>>, vector<1x64xf32>
    %5 = vector.broadcast %4 : vector<1x64xf32> to vector<12x64xf32>
    %6 = arith.addf %3, %5 : vector<12x64xf32>
    %cst_5 = arith.constant 0.000000e+00 : f32
    %7 = vector.broadcast %cst_5 : f32 to vector<12x64xf32>
    %8 = arith.maximumf %6, %7 : vector<12x64xf32>
    %9 = arith.truncf %8 : vector<12x64xf32> to vector<12x64xbf16>
    %c0_6 = arith.constant 0 : index
    %c0_7 = arith.constant 0 : index
    %10 = vector.load %arg4[%c0_6, %c0_7] : memref<64x32xbf16, #tpu.memory_space<vmem>>, vector<64x32xbf16>
    %cst_8 = arith.constant dense<0.000000e+00> : vector<12x32xf32>
    %11 = tpu.matmul %9, %10, %cst_8 {dimension_numbers = #tpu.dot_dimension_numbers<[1], [0], [0], [1], [0, 0, 1, 1], [], []>} : vector<12x64xbf16>, vector<64x32xbf16>, vector<12x32xf32> -> vector<12x32xf32>
    %c0_9 = arith.constant 0 : index
    %c0_10 = arith.constant 0 : index
    %12 = vector.load %arg5[%c0_9, %c0_10] : memref<1x32xf32, #tpu.memory_space<vmem>>, vector<1x32xf32>
    %13 = vector.broadcast %12 : vector<1x32xf32> to vector<12x32xf32>
    %14 = arith.addf %11, %13 : vector<12x32xf32>
    %15 = arith.addf %14, %0 : vector<12x32xf32>
    %cst_11 = arith.constant dense<0.000000e+00> : vector<12xf32>
    %16 = vector.multi_reduction <add>, %15, %cst_11 [1] : vector<12x32xf32> to vector<12xf32>
    %17 = vector.shape_cast %16 : vector<12xf32> to vector<12x1xf32>
    %cst_12 = arith.constant 3.200000e+01 : f32
    %18 = vector.broadcast %cst_12 : f32 to vector<12x1xf32>
    %19 = arith.divf %17, %18 : vector<12x1xf32>
    %20 = vector.broadcast %19 : vector<12x1xf32> to vector<12x32xf32>
    %21 = arith.subf %15, %20 : vector<12x32xf32>
    %22 = arith.mulf %21, %21 : vector<12x32xf32>
    %cst_13 = arith.constant dense<0.000000e+00> : vector<12xf32>
    %23 = vector.multi_reduction <add>, %22, %cst_13 [1] : vector<12x32xf32> to vector<12xf32>
    %24 = vector.shape_cast %23 : vector<12xf32> to vector<12x1xf32>
    %cst_14 = arith.constant 3.200000e+01 : f32
    %25 = vector.broadcast %cst_14 : f32 to vector<12x1xf32>
    %26 = arith.divf %24, %25 : vector<12x1xf32>
    %27 = vector.broadcast %19 : vector<12x1xf32> to vector<12x32xf32>
    %28 = arith.subf %15, %27 : vector<12x32xf32>
    %cst_15 = arith.constant 9.99999974E-6 : f32
    %29 = vector.broadcast %cst_15 : f32 to vector<12x1xf32>
    %30 = arith.addf %26, %29 : vector<12x1xf32>
    %31 = math.rsqrt %30 : vector<12x1xf32>
    %32 = vector.broadcast %31 : vector<12x1xf32> to vector<12x32xf32>
    %33 = arith.mulf %28, %32 : vector<12x32xf32>
    %c0_16 = arith.constant 0 : index
    %c0_17 = arith.constant 0 : index
    %34 = vector.load %arg6[%c0_16, %c0_17] : memref<1x32xf32, #tpu.memory_space<vmem>>, vector<1x32xf32>
    %35 = vector.broadcast %34 : vector<1x32xf32> to vector<12x32xf32>
    %36 = arith.mulf %33, %35 : vector<12x32xf32>
    %c0_18 = arith.constant 0 : index
    %c0_19 = arith.constant 0 : index
    %37 = vector.load %arg7[%c0_18, %c0_19] : memref<1x32xf32, #tpu.memory_space<vmem>>, vector<1x32xf32>
    %38 = vector.broadcast %37 : vector<1x32xf32> to vector<12x32xf32>
    %39 = arith.addf %36, %38 : vector<12x32xf32>
    %c0_20 = arith.constant 0 : index
    %c0_21 = arith.constant 0 : index
    %40 = vector.load %arg8[%c0_20, %c0_21] : memref<12x32xf32, #tpu.memory_space<vmem>>, vector<12x32xf32>
    tpu.vector_store %arg8[%c0_20, %c0_21], %39 {strides = array<i32>} : memref<12x32xf32, #tpu.memory_space<vmem>>, vector<12x32xf32>,
    return
  }
  func.func @transform_0(%arg0: i32) -> (i32, i32) {
    %c0_i32 = arith.constant 0 : i32
    %c0_i32_0 = arith.constant 0 : i32
    return %arg0, %c0_i32 : i32, i32
  }
  func.func @transform_1(%arg0: i32) -> (i32, i32) {
    %c0_i32 = arith.constant 0 : i32
    %c0_i32_0 = arith.constant 0 : i32
    %c0_i32_1 = arith.constant 0 : i32
    return %c0_i32, %c0_i32_0 : i32, i32
  }
  func.func @transform_2(%arg0: i32) -> (i32, i32) {
    %c0_i32 = arith.constant 0 : i32
    %c0_i32_0 = arith.constant 0 : i32
    %c0_i32_1 = arith.constant 0 : i32
    return %c0_i32, %c0_i32_0 : i32, i32
  }
  func.func @transform_3(%arg0: i32) -> (i32, i32) {
    %c0_i32 = arith.constant 0 : i32
    %c0_i32_0 = arith.constant 0 : i32
    %c0_i32_1 = arith.constant 0 : i32
    return %c0_i32, %c0_i32_0 : i32, i32
  }
  func.func @transform_4(%arg0: i32) -> (i32, i32) {
    %c0_i32 = arith.constant 0 : i32
    %c0_i32_0 = arith.constant 0 : i32
    %c0_i32_1 = arith.constant 0 : i32
    return %c0_i32, %c0_i32_0 : i32, i32
  }
  func.func @transform_5(%arg0: i32) -> (i32, i32) {
    %c0_i32 = arith.constant 0 : i32
    %c0_i32_0 = arith.constant 0 : i32
    %c0_i32_1 = arith.constant 0 : i32
    return %c0_i32, %c0_i32_0 : i32, i32
  }
  func.func @transform_6(%arg0: i32) -> (i32, i32) {
    %c0_i32 = arith.constant 0 : i32
    %c0_i32_0 = arith.constant 0 : i32
    %c0_i32_1 = arith.constant 0 : i32
    return %c0_i32, %c0_i32_0 : i32, i32
  }
  func.func @transform_7(%arg0: i32) -> (i32, i32) {
    %c0_i32 = arith.constant 0 : i32
    %c0_i32_0 = arith.constant 0 : i32
    return %arg0, %c0_i32 : i32, i32
  }
}

module attributes {stable_mosaic.version = 11 : i64} {
  func.func @_linear_kernel(%arg0: i32, %arg1: i32, %arg2: i32, %arg3: memref<12x32xf32, #tpu.memory_space<vmem>>, %arg4: memref<32x18xbf16, #tpu.memory_space<vmem>>, %arg5: memref<1x18xf32, #tpu.memory_space<vmem>>, %arg6: memref<12x18xf32, #tpu.memory_space<vmem>>, %arg7: memref<12x18xf32, #tpu.memory_space<vmem>>) attributes {dimension_semantics = [#tpu.dimension_semantics<parallel>, #tpu.dimension_semantics<parallel>, #tpu.dimension_semantics<arbitrary>], iteration_bounds = array<i64: 1, 1, 1>, scalar_prefetch = 0 : i64, scratch_operands = 1 : i64, tpu.core_type = #tpu.core_type<tc>, window_params = [{transform_indices = @transform_0, window_bounds = array<i64: 12, 32>}, {transform_indices = @transform_1, window_bounds = array<i64: 32, 18>}, {transform_indices = @transform_2, window_bounds = array<i64: 1, 18>}, {transform_indices = @transform_3, window_bounds = array<i64: 12, 18>}]} {
    %c0_i32 = arith.constant 0 : i32
    %0 = arith.cmpi eq, %arg2, %c0_i32 : i32
    %1 = arith.extui %0 : i1 to i32
    %c0_i32_0 = arith.constant 0 : i32
    %2 = arith.cmpi ne, %1, %c0_i32_0 : i32
    scf.if %2 {
      %cst_10 = arith.constant 0.000000e+00 : f32
      %13 = vector.broadcast %cst_10 : f32 to vector<12x18xf32>
      %c0_11 = arith.constant 0 : index
      %c0_12 = arith.constant 0 : index
      %14 = vector.load %arg7[%c0_11, %c0_12] : memref<12x18xf32, #tpu.memory_space<vmem>>, vector<12x18xf32>
      tpu.vector_store %arg7[%c0_11, %c0_12], %13 {strides = array<i32>} : memref<12x18xf32, #tpu.memory_space<vmem>>, vector<12x18xf32>,
    } else {
    }
    %c0 = arith.constant 0 : index
    %c0_1 = arith.constant 0 : index
    %3 = vector.load %arg7[%c0, %c0_1] : memref<12x18xf32, #tpu.memory_space<vmem>>, vector<12x18xf32>
    %c0_2 = arith.constant 0 : index
    %c0_3 = arith.constant 0 : index
    %4 = vector.load %arg3[%c0_2, %c0_3] : memref<12x32xf32, #tpu.memory_space<vmem>>, vector<12x32xf32>
    %5 = arith.truncf %4 : vector<12x32xf32> to vector<12x32xbf16>
    %c0_4 = arith.constant 0 : index
    %c0_5 = arith.constant 0 : index
    %6 = vector.load %arg4[%c0_4, %c0_5] : memref<32x18xbf16, #tpu.memory_space<vmem>>, vector<32x18xbf16>
    %cst = arith.constant dense<0.000000e+00> : vector<12x18xf32>
    %7 = tpu.matmul %5, %6, %cst {dimension_numbers = #tpu.dot_dimension_numbers<[1], [0], [0], [1], [0, 0, 1, 1], [], []>} : vector<12x32xbf16>, vector<32x18xbf16>, vector<12x18xf32> -> vector<12x18xf32>
    %8 = arith.addf %3, %7 : vector<12x18xf32>
    %c0_6 = arith.constant 0 : index
    %c0_7 = arith.constant 0 : index
    %9 = vector.load %arg7[%c0_6, %c0_7] : memref<12x18xf32, #tpu.memory_space<vmem>>, vector<12x18xf32>
    tpu.vector_store %arg7[%c0_6, %c0_7], %8 {strides = array<i32>} : memref<12x18xf32, #tpu.memory_space<vmem>>, vector<12x18xf32>,
    %c0_i32_8 = arith.constant 0 : i32
    %10 = arith.cmpi eq, %arg2, %c0_i32_8 : i32
    %11 = arith.extui %10 : i1 to i32
    %c0_i32_9 = arith.constant 0 : i32
    %12 = arith.cmpi ne, %11, %c0_i32_9 : i32
    scf.if %12 {
      %c0_10 = arith.constant 0 : index
      %c0_11 = arith.constant 0 : index
      %13 = vector.load %arg7[%c0_10, %c0_11] : memref<12x18xf32, #tpu.memory_space<vmem>>, vector<12x18xf32>
      %c0_12 = arith.constant 0 : index
      %c0_13 = arith.constant 0 : index
      %14 = vector.load %arg5[%c0_12, %c0_13] : memref<1x18xf32, #tpu.memory_space<vmem>>, vector<1x18xf32>
      %15 = vector.broadcast %14 : vector<1x18xf32> to vector<12x18xf32>
      %16 = arith.addf %13, %15 : vector<12x18xf32>
      %c0_14 = arith.constant 0 : index
      %c0_15 = arith.constant 0 : index
      %17 = vector.load %arg6[%c0_14, %c0_15] : memref<12x18xf32, #tpu.memory_space<vmem>>, vector<12x18xf32>
      tpu.vector_store %arg6[%c0_14, %c0_15], %16 {strides = array<i32>} : memref<12x18xf32, #tpu.memory_space<vmem>>, vector<12x18xf32>,
    } else {
    }
    return
  }
  func.func @transform_0(%arg0: i32, %arg1: i32, %arg2: i32) -> (i32, i32) {
    %c0_i32 = arith.constant 0 : i32
    return %arg0, %arg2 : i32, i32
  }
  func.func @transform_1(%arg0: i32, %arg1: i32, %arg2: i32) -> (i32, i32) {
    %c0_i32 = arith.constant 0 : i32
    return %arg2, %arg1 : i32, i32
  }
  func.func @transform_2(%arg0: i32, %arg1: i32, %arg2: i32) -> (i32, i32) {
    %c0_i32 = arith.constant 0 : i32
    %c0_i32_0 = arith.constant 0 : i32
    return %c0_i32, %arg1 : i32, i32
  }
  func.func @transform_3(%arg0: i32, %arg1: i32, %arg2: i32) -> (i32, i32) {
    %c0_i32 = arith.constant 0 : i32
    return %arg0, %arg1 : i32, i32
  }
}

module attributes {stable_mosaic.version = 11 : i64} {
  func.func @_attn_block_kernel(%arg0: i32, %arg1: memref<1x6x32xf32, #tpu.memory_space<vmem>>, %arg2: memref<1x8x32xf32, #tpu.memory_space<vmem>>, %arg3: memref<1x6x8xf32, #tpu.memory_space<vmem>>, %arg4: memref<4x32x8xbf16, #tpu.memory_space<vmem>>, %arg5: memref<4x1x8xf32, #tpu.memory_space<vmem>>, %arg6: memref<4x32x8xbf16, #tpu.memory_space<vmem>>, %arg7: memref<4x1x8xf32, #tpu.memory_space<vmem>>, %arg8: memref<4x32x8xbf16, #tpu.memory_space<vmem>>, %arg9: memref<4x1x8xf32, #tpu.memory_space<vmem>>, %arg10: memref<4x8x32xbf16, #tpu.memory_space<vmem>>, %arg11: memref<1x32xf32, #tpu.memory_space<vmem>>, %arg12: memref<1x32xf32, #tpu.memory_space<vmem>>, %arg13: memref<1x32xf32, #tpu.memory_space<vmem>>, %arg14: memref<1x6x32xf32, #tpu.memory_space<vmem>>, %arg15: memref<1x4x6x8xf32, #tpu.memory_space<vmem>>) attributes {dimension_semantics = [#tpu.dimension_semantics<parallel>], iteration_bounds = array<i64: 2>, scalar_prefetch = 0 : i64, scratch_operands = 0 : i64, tpu.core_type = #tpu.core_type<tc>, window_params = [{transform_indices = @transform_0, window_bounds = array<i64: 1, 6, 32>}, {transform_indices = @transform_1, window_bounds = array<i64: 1, 8, 32>}, {transform_indices = @transform_2, window_bounds = array<i64: 1, 6, 8>}, {pipeline_mode = #tpu.pipeline_mode<synchronous>, transform_indices = @transform_3, window_bounds = array<i64: 4, 32, 8>}, {pipeline_mode = #tpu.pipeline_mode<synchronous>, transform_indices = @transform_4, window_bounds = array<i64: 4, 1, 8>}, {pipeline_mode = #tpu.pipeline_mode<synchronous>, transform_indices = @transform_5, window_bounds = array<i64: 4, 32, 8>}, {pipeline_mode = #tpu.pipeline_mode<synchronous>, transform_indices = @transform_6, window_bounds = array<i64: 4, 1, 8>}, {pipeline_mode = #tpu.pipeline_mode<synchronous>, transform_indices = @transform_7, window_bounds = array<i64: 4, 32, 8>}, {pipeline_mode = #tpu.pipeline_mode<synchronous>, transform_indices = @transform_8, window_bounds = array<i64: 4, 1, 8>}, {pipeline_mode = #tpu.pipeline_mode<synchronous>, transform_indices = @transform_9, window_bounds = array<i64: 4, 8, 32>}, {pipeline_mode = #tpu.pipeline_mode<synchronous>, transform_indices = @transform_10, window_bounds = array<i64: 1, 32>}, {pipeline_mode = #tpu.pipeline_mode<synchronous>, transform_indices = @transform_11, window_bounds = array<i64: 1, 32>}, {pipeline_mode = #tpu.pipeline_mode<synchronous>, transform_indices = @transform_12, window_bounds = array<i64: 1, 32>}, {transform_indices = @transform_13, window_bounds = array<i64: 1, 6, 32>}, {transform_indices = @transform_14, window_bounds = array<i64: 1, 4, 6, 8>}]} {
    %c0 = arith.constant 0 : index
    %c0_0 = arith.constant 0 : index
    %c0_1 = arith.constant 0 : index
    %0 = vector.load %arg1[%c0, %c0_0, %c0_1] : memref<1x6x32xf32, #tpu.memory_space<vmem>>, vector<1x6x32xf32>
    %1 = vector.shape_cast %0 : vector<1x6x32xf32> to vector<6x32xf32>
    %c0_2 = arith.constant 0 : index
    %c0_3 = arith.constant 0 : index
    %c0_4 = arith.constant 0 : index
    %2 = vector.load %arg2[%c0_2, %c0_3, %c0_4] : memref<1x8x32xf32, #tpu.memory_space<vmem>>, vector<1x8x32xf32>
    %3 = vector.shape_cast %2 : vector<1x8x32xf32> to vector<8x32xf32>
    %c0_5 = arith.constant 0 : index
    %c0_6 = arith.constant 0 : index
    %c0_7 = arith.constant 0 : index
    %4 = vector.load %arg3[%c0_5, %c0_6, %c0_7] : memref<1x6x8xf32, #tpu.memory_space<vmem>>, vector<1x6x8xf32>
    %5 = vector.shape_cast %4 : vector<1x6x8xf32> to vector<6x8xf32>
    %6 = arith.truncf %1 : vector<6x32xf32> to vector<6x32xbf16>
    %7 = arith.truncf %3 : vector<8x32xf32> to vector<8x32xbf16>
    %cst = arith.constant 0.000000e+00 : f32
    %8 = vector.broadcast %cst : f32 to vector<6x32xf32>
    %c0_8 = arith.constant 0 : index
    %c0_9 = arith.constant 0 : index
    %c0_10 = arith.constant 0 : index
    %9 = vector.load %arg4[%c0_8, %c0_9, %c0_10] : memref<4x32x8xbf16, #tpu.memory_space<vmem>>, vector<1x32x8xbf16>
    %10 = vector.shape_cast %9 : vector<1x32x8xbf16> to vector<32x8xbf16>
    %cst_11 = arith.constant dense<0.000000e+00> : vector<6x8xf32>
    %11 = tpu.matmul %6, %10, %cst_11 {dimension_numbers = #tpu.dot_dimension_numbers<[1], [0], [0], [1], [0, 0, 1, 1], [], []>} : vector<6x32xbf16>, vector<32x8xbf16>, vector<6x8xf32> -> vector<6x8xf32>
    %c0_12 = arith.constant 0 : index
    %c0_13 = arith.constant 0 : index
    %c0_14 = arith.constant 0 : index
    %12 = vector.load %arg5[%c0_12, %c0_13, %c0_14] : memref<4x1x8xf32, #tpu.memory_space<vmem>>, vector<1x1x8xf32>
    %13 = vector.shape_cast %12 : vector<1x1x8xf32> to vector<1x8xf32>
    %14 = vector.broadcast %13 : vector<1x8xf32> to vector<6x8xf32>
    %15 = arith.addf %11, %14 : vector<6x8xf32>
    %cst_15 = arith.constant 0.353553385 : f32
    %16 = vector.broadcast %cst_15 : f32 to vector<6x8xf32>
    %17 = arith.mulf %15, %16 : vector<6x8xf32>
    %c0_16 = arith.constant 0 : index
    %c0_17 = arith.constant 0 : index
    %c0_18 = arith.constant 0 : index
    %18 = vector.load %arg6[%c0_16, %c0_17, %c0_18] : memref<4x32x8xbf16, #tpu.memory_space<vmem>>, vector<1x32x8xbf16>
    %19 = vector.shape_cast %18 : vector<1x32x8xbf16> to vector<32x8xbf16>
    %cst_19 = arith.constant dense<0.000000e+00> : vector<8x8xf32>
    %20 = tpu.matmul %7, %19, %cst_19 {dimension_numbers = #tpu.dot_dimension_numbers<[1], [0], [0], [1], [0, 0, 1, 1], [], []>} : vector<8x32xbf16>, vector<32x8xbf16>, vector<8x8xf32> -> vector<8x8xf32>
    %c0_20 = arith.constant 0 : index
    %c0_21 = arith.constant 0 : index
    %c0_22 = arith.constant 0 : index
    %21 = vector.load %arg7[%c0_20, %c0_21, %c0_22] : memref<4x1x8xf32, #tpu.memory_space<vmem>>, vector<1x1x8xf32>
    %22 = vector.shape_cast %21 : vector<1x1x8xf32> to vector<1x8xf32>
    %23 = vector.broadcast %22 : vector<1x8xf32> to vector<8x8xf32>
    %24 = arith.addf %20, %23 : vector<8x8xf32>
    %c0_23 = arith.constant 0 : index
    %c0_24 = arith.constant 0 : index
    %c0_25 = arith.constant 0 : index
    %25 = vector.load %arg8[%c0_23, %c0_24, %c0_25] : memref<4x32x8xbf16, #tpu.memory_space<vmem>>, vector<1x32x8xbf16>
    %26 = vector.shape_cast %25 : vector<1x32x8xbf16> to vector<32x8xbf16>
    %cst_26 = arith.constant dense<0.000000e+00> : vector<8x8xf32>
    %27 = tpu.matmul %7, %26, %cst_26 {dimension_numbers = #tpu.dot_dimension_numbers<[1], [0], [0], [1], [0, 0, 1, 1], [], []>} : vector<8x32xbf16>, vector<32x8xbf16>, vector<8x8xf32> -> vector<8x8xf32>
    %c0_27 = arith.constant 0 : index
    %c0_28 = arith.constant 0 : index
    %c0_29 = arith.constant 0 : index
    %28 = vector.load %arg9[%c0_27, %c0_28, %c0_29] : memref<4x1x8xf32, #tpu.memory_space<vmem>>, vector<1x1x8xf32>
    %29 = vector.shape_cast %28 : vector<1x1x8xf32> to vector<1x8xf32>
    %30 = vector.broadcast %29 : vector<1x8xf32> to vector<8x8xf32>
    %31 = arith.addf %27, %30 : vector<8x8xf32>
    %32 = arith.truncf %17 : vector<6x8xf32> to vector<6x8xbf16>
    %33 = arith.truncf %24 : vector<8x8xf32> to vector<8x8xbf16>
    %cst_30 = arith.constant dense<0.000000e+00> : vector<6x8xf32>
    %34 = tpu.matmul %32, %33, %cst_30 {dimension_numbers = #tpu.dot_dimension_numbers<[1], [1], [0], [0], [0, 0, 1, 0], [], []>} : vector<6x8xbf16>, vector<8x8xbf16>, vector<6x8xf32> -> vector<6x8xf32>
    %cst_31 = arith.constant 0.000000e+00 : f32
    %35 = vector.broadcast %cst_31 : f32 to vector<6x8xf32>
    %36 = arith.cmpf ogt, %5, %35 : vector<6x8xf32>
    %cst_32 = arith.constant -1.000000e+10 : f32
    %37 = vector.broadcast %cst_32 : f32 to vector<6x8xf32>
    %38 = arith.select %36, %34, %37 : vector<6x8xi1>, vector<6x8xf32>
    %cst_33 = arith.constant dense<0xFF800000> : vector<6xf32>
    %39 = vector.multi_reduction <maximumf>, %38, %cst_33 [1] : vector<6x8xf32> to vector<6xf32>
    %40 = vector.shape_cast %39 : vector<6xf32> to vector<6x1xf32>
    %41 = vector.broadcast %40 : vector<6x1xf32> to vector<6x8xf32>
    %42 = arith.subf %38, %41 : vector<6x8xf32>
    %43 = math.exp %42 : vector<6x8xf32>
    %cst_34 = arith.constant dense<0.000000e+00> : vector<6xf32>
    %44 = vector.multi_reduction <add>, %43, %cst_34 [1] : vector<6x8xf32> to vector<6xf32>
    %45 = vector.shape_cast %44 : vector<6xf32> to vector<6x1xf32>
    %46 = tpu.reciprocal %45 {approx = true} : vector<6x1xf32> -> vector<6x1xf32>
    %47 = vector.broadcast %46 : vector<6x1xf32> to vector<6x8xf32>
    %48 = arith.mulf %43, %47 : vector<6x8xf32>
    %c0_35 = arith.constant 0 : index
    %c0_36 = arith.constant 0 : index
    %c0_37 = arith.constant 0 : index
    %c0_38 = arith.constant 0 : index
    %49 = vector.load %arg15[%c0_35, %c0_36, %c0_37, %c0_38] : memref<1x4x6x8xf32, #tpu.memory_space<vmem>>, vector<1x1x6x8xf32>
    %50 = vector.shape_cast %49 : vector<1x1x6x8xf32> to vector<6x8xf32>
    %51 = vector.shape_cast %48 : vector<6x8xf32> to vector<1x1x6x8xf32>
    tpu.vector_store %arg15[%c0_35, %c0_36, %c0_37, %c0_38], %51 {strides = array<i32>} : memref<1x4x6x8xf32, #tpu.memory_space<vmem>>, vector<1x1x6x8xf32>,
    %52 = arith.truncf %48 : vector<6x8xf32> to vector<6x8xbf16>
    %53 = arith.truncf %31 : vector<8x8xf32> to vector<8x8xbf16>
    %cst_39 = arith.constant dense<0.000000e+00> : vector<6x8xf32>
    %54 = tpu.matmul %52, %53, %cst_39 {dimension_numbers = #tpu.dot_dimension_numbers<[1], [0], [0], [1], [0, 0, 1, 1], [], []>} : vector<6x8xbf16>, vector<8x8xbf16>, vector<6x8xf32> -> vector<6x8xf32>
    %55 = arith.truncf %54 : vector<6x8xf32> to vector<6x8xbf16>
    %c0_40 = arith.constant 0 : index
    %c0_41 = arith.constant 0 : index
    %c0_42 = arith.constant 0 : index
    %56 = vector.load %arg10[%c0_40, %c0_41, %c0_42] : memref<4x8x32xbf16, #tpu.memory_space<vmem>>, vector<1x8x32xbf16>
    %57 = vector.shape_cast %56 : vector<1x8x32xbf16> to vector<8x32xbf16>
    %cst_43 = arith.constant dense<0.000000e+00> : vector<6x32xf32>
    %58 = tpu.matmul %55, %57, %cst_43 {dimension_numbers = #tpu.dot_dimension_numbers<[1], [0], [0], [1], [0, 0, 1, 1], [], []>} : vector<6x8xbf16>, vector<8x32xbf16>, vector<6x32xf32> -> vector<6x32xf32>
    %59 = arith.addf %8, %58 : vector<6x32xf32>
    %c1 = arith.constant 1 : index
    %c0_44 = arith.constant 0 : index
    %c0_45 = arith.constant 0 : index
    %60 = vector.load %arg4[%c1, %c0_44, %c0_45] : memref<4x32x8xbf16, #tpu.memory_space<vmem>>, vector<1x32x8xbf16>
    %61 = vector.shape_cast %60 : vector<1x32x8xbf16> to vector<32x8xbf16>
    %cst_46 = arith.constant dense<0.000000e+00> : vector<6x8xf32>
    %62 = tpu.matmul %6, %61, %cst_46 {dimension_numbers = #tpu.dot_dimension_numbers<[1], [0], [0], [1], [0, 0, 1, 1], [], []>} : vector<6x32xbf16>, vector<32x8xbf16>, vector<6x8xf32> -> vector<6x8xf32>
    %c1_47 = arith.constant 1 : index
    %c0_48 = arith.constant 0 : index
    %c0_49 = arith.constant 0 : index
    %63 = vector.load %arg5[%c1_47, %c0_48, %c0_49] : memref<4x1x8xf32, #tpu.memory_space<vmem>>, vector<1x1x8xf32>
    %64 = vector.shape_cast %63 : vector<1x1x8xf32> to vector<1x8xf32>
    %65 = vector.broadcast %64 : vector<1x8xf32> to vector<6x8xf32>
    %66 = arith.addf %62, %65 : vector<6x8xf32>
    %cst_50 = arith.constant 0.353553385 : f32
    %67 = vector.broadcast %cst_50 : f32 to vector<6x8xf32>
    %68 = arith.mulf %66, %67 : vector<6x8xf32>
    %c1_51 = arith.constant 1 : index
    %c0_52 = arith.constant 0 : index
    %c0_53 = arith.constant 0 : index
    %69 = vector.load %arg6[%c1_51, %c0_52, %c0_53] : memref<4x32x8xbf16, #tpu.memory_space<vmem>>, vector<1x32x8xbf16>
    %70 = vector.shape_cast %69 : vector<1x32x8xbf16> to vector<32x8xbf16>
    %cst_54 = arith.constant dense<0.000000e+00> : vector<8x8xf32>
    %71 = tpu.matmul %7, %70, %cst_54 {dimension_numbers = #tpu.dot_dimension_numbers<[1], [0], [0], [1], [0, 0, 1, 1], [], []>} : vector<8x32xbf16>, vector<32x8xbf16>, vector<8x8xf32> -> vector<8x8xf32>
    %c1_55 = arith.constant 1 : index
    %c0_56 = arith.constant 0 : index
    %c0_57 = arith.constant 0 : index
    %72 = vector.load %arg7[%c1_55, %c0_56, %c0_57] : memref<4x1x8xf32, #tpu.memory_space<vmem>>, vector<1x1x8xf32>
    %73 = vector.shape_cast %72 : vector<1x1x8xf32> to vector<1x8xf32>
    %74 = vector.broadcast %73 : vector<1x8xf32> to vector<8x8xf32>
    %75 = arith.addf %71, %74 : vector<8x8xf32>
    %c1_58 = arith.constant 1 : index
    %c0_59 = arith.constant 0 : index
    %c0_60 = arith.constant 0 : index
    %76 = vector.load %arg8[%c1_58, %c0_59, %c0_60] : memref<4x32x8xbf16, #tpu.memory_space<vmem>>, vector<1x32x8xbf16>
    %77 = vector.shape_cast %76 : vector<1x32x8xbf16> to vector<32x8xbf16>
    %cst_61 = arith.constant dense<0.000000e+00> : vector<8x8xf32>
    %78 = tpu.matmul %7, %77, %cst_61 {dimension_numbers = #tpu.dot_dimension_numbers<[1], [0], [0], [1], [0, 0, 1, 1], [], []>} : vector<8x32xbf16>, vector<32x8xbf16>, vector<8x8xf32> -> vector<8x8xf32>
    %c1_62 = arith.constant 1 : index
    %c0_63 = arith.constant 0 : index
    %c0_64 = arith.constant 0 : index
    %79 = vector.load %arg9[%c1_62, %c0_63, %c0_64] : memref<4x1x8xf32, #tpu.memory_space<vmem>>, vector<1x1x8xf32>
    %80 = vector.shape_cast %79 : vector<1x1x8xf32> to vector<1x8xf32>
    %81 = vector.broadcast %80 : vector<1x8xf32> to vector<8x8xf32>
    %82 = arith.addf %78, %81 : vector<8x8xf32>
    %83 = arith.truncf %68 : vector<6x8xf32> to vector<6x8xbf16>
    %84 = arith.truncf %75 : vector<8x8xf32> to vector<8x8xbf16>
    %cst_65 = arith.constant dense<0.000000e+00> : vector<6x8xf32>
    %85 = tpu.matmul %83, %84, %cst_65 {dimension_numbers = #tpu.dot_dimension_numbers<[1], [1], [0], [0], [0, 0, 1, 0], [], []>} : vector<6x8xbf16>, vector<8x8xbf16>, vector<6x8xf32> -> vector<6x8xf32>
    %cst_66 = arith.constant 0.000000e+00 : f32
    %86 = vector.broadcast %cst_66 : f32 to vector<6x8xf32>
    %87 = arith.cmpf ogt, %5, %86 : vector<6x8xf32>
    %cst_67 = arith.constant -1.000000e+10 : f32
    %88 = vector.broadcast %cst_67 : f32 to vector<6x8xf32>
    %89 = arith.select %87, %85, %88 : vector<6x8xi1>, vector<6x8xf32>
    %cst_68 = arith.constant dense<0xFF800000> : vector<6xf32>
    %90 = vector.multi_reduction <maximumf>, %89, %cst_68 [1] : vector<6x8xf32> to vector<6xf32>
    %91 = vector.shape_cast %90 : vector<6xf32> to vector<6x1xf32>
    %92 = vector.broadcast %91 : vector<6x1xf32> to vector<6x8xf32>
    %93 = arith.subf %89, %92 : vector<6x8xf32>
    %94 = math.exp %93 : vector<6x8xf32>
    %cst_69 = arith.constant dense<0.000000e+00> : vector<6xf32>
    %95 = vector.multi_reduction <add>, %94, %cst_69 [1] : vector<6x8xf32> to vector<6xf32>
    %96 = vector.shape_cast %95 : vector<6xf32> to vector<6x1xf32>
    %97 = tpu.reciprocal %96 {approx = true} : vector<6x1xf32> -> vector<6x1xf32>
    %98 = vector.broadcast %97 : vector<6x1xf32> to vector<6x8xf32>
    %99 = arith.mulf %94, %98 : vector<6x8xf32>
    %c0_70 = arith.constant 0 : index
    %c1_71 = arith.constant 1 : index
    %c0_72 = arith.constant 0 : index
    %c0_73 = arith.constant 0 : index
    %100 = vector.load %arg15[%c0_70, %c1_71, %c0_72, %c0_73] : memref<1x4x6x8xf32, #tpu.memory_space<vmem>>, vector<1x1x6x8xf32>
    %101 = vector.shape_cast %100 : vector<1x1x6x8xf32> to vector<6x8xf32>
    %102 = vector.shape_cast %99 : vector<6x8xf32> to vector<1x1x6x8xf32>
    tpu.vector_store %arg15[%c0_70, %c1_71, %c0_72, %c0_73], %102 {strides = array<i32>} : memref<1x4x6x8xf32, #tpu.memory_space<vmem>>, vector<1x1x6x8xf32>,
    %103 = arith.truncf %99 : vector<6x8xf32> to vector<6x8xbf16>
    %104 = arith.truncf %82 : vector<8x8xf32> to vector<8x8xbf16>
    %cst_74 = arith.constant dense<0.000000e+00> : vector<6x8xf32>
    %105 = tpu.matmul %103, %104, %cst_74 {dimension_numbers = #tpu.dot_dimension_numbers<[1], [0], [0], [1], [0, 0, 1, 1], [], []>} : vector<6x8xbf16>, vector<8x8xbf16>, vector<6x8xf32> -> vector<6x8xf32>
    %106 = arith.truncf %105 : vector<6x8xf32> to vector<6x8xbf16>
    %c1_75 = arith.constant 1 : index
    %c0_76 = arith.constant 0 : index
    %c0_77 = arith.constant 0 : index
    %107 = vector.load %arg10[%c1_75, %c0_76, %c0_77] : memref<4x8x32xbf16, #tpu.memory_space<vmem>>, vector<1x8x32xbf16>
    %108 = vector.shape_cast %107 : vector<1x8x32xbf16> to vector<8x32xbf16>
    %cst_78 = arith.constant dense<0.000000e+00> : vector<6x32xf32>
    %109 = tpu.matmul %106, %108, %cst_78 {dimension_numbers = #tpu.dot_dimension_numbers<[1], [0], [0], [1], [0, 0, 1, 1], [], []>} : vector<6x8xbf16>, vector<8x32xbf16>, vector<6x32xf32> -> vector<6x32xf32>
    %110 = arith.addf %59, %109 : vector<6x32xf32>
    %c2 = arith.constant 2 : index
    %c0_79 = arith.constant 0 : index
    %c0_80 = arith.constant 0 : index
    %111 = vector.load %arg4[%c2, %c0_79, %c0_80] : memref<4x32x8xbf16, #tpu.memory_space<vmem>>, vector<1x32x8xbf16>
    %112 = vector.shape_cast %111 : vector<1x32x8xbf16> to vector<32x8xbf16>
    %cst_81 = arith.constant dense<0.000000e+00> : vector<6x8xf32>
    %113 = tpu.matmul %6, %112, %cst_81 {dimension_numbers = #tpu.dot_dimension_numbers<[1], [0], [0], [1], [0, 0, 1, 1], [], []>} : vector<6x32xbf16>, vector<32x8xbf16>, vector<6x8xf32> -> vector<6x8xf32>
    %c2_82 = arith.constant 2 : index
    %c0_83 = arith.constant 0 : index
    %c0_84 = arith.constant 0 : index
    %114 = vector.load %arg5[%c2_82, %c0_83, %c0_84] : memref<4x1x8xf32, #tpu.memory_space<vmem>>, vector<1x1x8xf32>
    %115 = vector.shape_cast %114 : vector<1x1x8xf32> to vector<1x8xf32>
    %116 = vector.broadcast %115 : vector<1x8xf32> to vector<6x8xf32>
    %117 = arith.addf %113, %116 : vector<6x8xf32>
    %cst_85 = arith.constant 0.353553385 : f32
    %118 = vector.broadcast %cst_85 : f32 to vector<6x8xf32>
    %119 = arith.mulf %117, %118 : vector<6x8xf32>
    %c2_86 = arith.constant 2 : index
    %c0_87 = arith.constant 0 : index
    %c0_88 = arith.constant 0 : index
    %120 = vector.load %arg6[%c2_86, %c0_87, %c0_88] : memref<4x32x8xbf16, #tpu.memory_space<vmem>>, vector<1x32x8xbf16>
    %121 = vector.shape_cast %120 : vector<1x32x8xbf16> to vector<32x8xbf16>
    %cst_89 = arith.constant dense<0.000000e+00> : vector<8x8xf32>
    %122 = tpu.matmul %7, %121, %cst_89 {dimension_numbers = #tpu.dot_dimension_numbers<[1], [0], [0], [1], [0, 0, 1, 1], [], []>} : vector<8x32xbf16>, vector<32x8xbf16>, vector<8x8xf32> -> vector<8x8xf32>
    %c2_90 = arith.constant 2 : index
    %c0_91 = arith.constant 0 : index
    %c0_92 = arith.constant 0 : index
    %123 = vector.load %arg7[%c2_90, %c0_91, %c0_92] : memref<4x1x8xf32, #tpu.memory_space<vmem>>, vector<1x1x8xf32>
    %124 = vector.shape_cast %123 : vector<1x1x8xf32> to vector<1x8xf32>
    %125 = vector.broadcast %124 : vector<1x8xf32> to vector<8x8xf32>
    %126 = arith.addf %122, %125 : vector<8x8xf32>
    %c2_93 = arith.constant 2 : index
    %c0_94 = arith.constant 0 : index
    %c0_95 = arith.constant 0 : index
    %127 = vector.load %arg8[%c2_93, %c0_94, %c0_95] : memref<4x32x8xbf16, #tpu.memory_space<vmem>>, vector<1x32x8xbf16>
    %128 = vector.shape_cast %127 : vector<1x32x8xbf16> to vector<32x8xbf16>
    %cst_96 = arith.constant dense<0.000000e+00> : vector<8x8xf32>
    %129 = tpu.matmul %7, %128, %cst_96 {dimension_numbers = #tpu.dot_dimension_numbers<[1], [0], [0], [1], [0, 0, 1, 1], [], []>} : vector<8x32xbf16>, vector<32x8xbf16>, vector<8x8xf32> -> vector<8x8xf32>
    %c2_97 = arith.constant 2 : index
    %c0_98 = arith.constant 0 : index
    %c0_99 = arith.constant 0 : index
    %130 = vector.load %arg9[%c2_97, %c0_98, %c0_99] : memref<4x1x8xf32, #tpu.memory_space<vmem>>, vector<1x1x8xf32>
    %131 = vector.shape_cast %130 : vector<1x1x8xf32> to vector<1x8xf32>
    %132 = vector.broadcast %131 : vector<1x8xf32> to vector<8x8xf32>
    %133 = arith.addf %129, %132 : vector<8x8xf32>
    %134 = arith.truncf %119 : vector<6x8xf32> to vector<6x8xbf16>
    %135 = arith.truncf %126 : vector<8x8xf32> to vector<8x8xbf16>
    %cst_100 = arith.constant dense<0.000000e+00> : vector<6x8xf32>
    %136 = tpu.matmul %134, %135, %cst_100 {dimension_numbers = #tpu.dot_dimension_numbers<[1], [1], [0], [0], [0, 0, 1, 0], [], []>} : vector<6x8xbf16>, vector<8x8xbf16>, vector<6x8xf32> -> vector<6x8xf32>
    %cst_101 = arith.constant 0.000000e+00 : f32
    %137 = vector.broadcast %cst_101 : f32 to vector<6x8xf32>
    %138 = arith.cmpf ogt, %5, %137 : vector<6x8xf32>
    %cst_102 = arith.constant -1.000000e+10 : f32
    %139 = vector.broadcast %cst_102 : f32 to vector<6x8xf32>
    %140 = arith.select %138, %136, %139 : vector<6x8xi1>, vector<6x8xf32>
    %cst_103 = arith.constant dense<0xFF800000> : vector<6xf32>
    %141 = vector.multi_reduction <maximumf>, %140, %cst_103 [1] : vector<6x8xf32> to vector<6xf32>
    %142 = vector.shape_cast %141 : vector<6xf32> to vector<6x1xf32>
    %143 = vector.broadcast %142 : vector<6x1xf32> to vector<6x8xf32>
    %144 = arith.subf %140, %143 : vector<6x8xf32>
    %145 = math.exp %144 : vector<6x8xf32>
    %cst_104 = arith.constant dense<0.000000e+00> : vector<6xf32>
    %146 = vector.multi_reduction <add>, %145, %cst_104 [1] : vector<6x8xf32> to vector<6xf32>
    %147 = vector.shape_cast %146 : vector<6xf32> to vector<6x1xf32>
    %148 = tpu.reciprocal %147 {approx = true} : vector<6x1xf32> -> vector<6x1xf32>
    %149 = vector.broadcast %148 : vector<6x1xf32> to vector<6x8xf32>
    %150 = arith.mulf %145, %149 : vector<6x8xf32>
    %c0_105 = arith.constant 0 : index
    %c2_106 = arith.constant 2 : index
    %c0_107 = arith.constant 0 : index
    %c0_108 = arith.constant 0 : index
    %151 = vector.load %arg15[%c0_105, %c2_106, %c0_107, %c0_108] : memref<1x4x6x8xf32, #tpu.memory_space<vmem>>, vector<1x1x6x8xf32>
    %152 = vector.shape_cast %151 : vector<1x1x6x8xf32> to vector<6x8xf32>
    %153 = vector.shape_cast %150 : vector<6x8xf32> to vector<1x1x6x8xf32>
    tpu.vector_store %arg15[%c0_105, %c2_106, %c0_107, %c0_108], %153 {strides = array<i32>} : memref<1x4x6x8xf32, #tpu.memory_space<vmem>>, vector<1x1x6x8xf32>,
    %154 = arith.truncf %150 : vector<6x8xf32> to vector<6x8xbf16>
    %155 = arith.truncf %133 : vector<8x8xf32> to vector<8x8xbf16>
    %cst_109 = arith.constant dense<0.000000e+00> : vector<6x8xf32>
    %156 = tpu.matmul %154, %155, %cst_109 {dimension_numbers = #tpu.dot_dimension_numbers<[1], [0], [0], [1], [0, 0, 1, 1], [], []>} : vector<6x8xbf16>, vector<8x8xbf16>, vector<6x8xf32> -> vector<6x8xf32>
    %157 = arith.truncf %156 : vector<6x8xf32> to vector<6x8xbf16>
    %c2_110 = arith.constant 2 : index
    %c0_111 = arith.constant 0 : index
    %c0_112 = arith.constant 0 : index
    %158 = vector.load %arg10[%c2_110, %c0_111, %c0_112] : memref<4x8x32xbf16, #tpu.memory_space<vmem>>, vector<1x8x32xbf16>
    %159 = vector.shape_cast %158 : vector<1x8x32xbf16> to vector<8x32xbf16>
    %cst_113 = arith.constant dense<0.000000e+00> : vector<6x32xf32>
    %160 = tpu.matmul %157, %159, %cst_113 {dimension_numbers = #tpu.dot_dimension_numbers<[1], [0], [0], [1], [0, 0, 1, 1], [], []>} : vector<6x8xbf16>, vector<8x32xbf16>, vector<6x32xf32> -> vector<6x32xf32>
    %161 = arith.addf %110, %160 : vector<6x32xf32>
    %c3 = arith.constant 3 : index
    %c0_114 = arith.constant 0 : index
    %c0_115 = arith.constant 0 : index
    %162 = vector.load %arg4[%c3, %c0_114, %c0_115] : memref<4x32x8xbf16, #tpu.memory_space<vmem>>, vector<1x32x8xbf16>
    %163 = vector.shape_cast %162 : vector<1x32x8xbf16> to vector<32x8xbf16>
    %cst_116 = arith.constant dense<0.000000e+00> : vector<6x8xf32>
    %164 = tpu.matmul %6, %163, %cst_116 {dimension_numbers = #tpu.dot_dimension_numbers<[1], [0], [0], [1], [0, 0, 1, 1], [], []>} : vector<6x32xbf16>, vector<32x8xbf16>, vector<6x8xf32> -> vector<6x8xf32>
    %c3_117 = arith.constant 3 : index
    %c0_118 = arith.constant 0 : index
    %c0_119 = arith.constant 0 : index
    %165 = vector.load %arg5[%c3_117, %c0_118, %c0_119] : memref<4x1x8xf32, #tpu.memory_space<vmem>>, vector<1x1x8xf32>
    %166 = vector.shape_cast %165 : vector<1x1x8xf32> to vector<1x8xf32>
    %167 = vector.broadcast %166 : vector<1x8xf32> to vector<6x8xf32>
    %168 = arith.addf %164, %167 : vector<6x8xf32>
    %cst_120 = arith.constant 0.353553385 : f32
    %169 = vector.broadcast %cst_120 : f32 to vector<6x8xf32>
    %170 = arith.mulf %168, %169 : vector<6x8xf32>
    %c3_121 = arith.constant 3 : index
    %c0_122 = arith.constant 0 : index
    %c0_123 = arith.constant 0 : index
    %171 = vector.load %arg6[%c3_121, %c0_122, %c0_123] : memref<4x32x8xbf16, #tpu.memory_space<vmem>>, vector<1x32x8xbf16>
    %172 = vector.shape_cast %171 : vector<1x32x8xbf16> to vector<32x8xbf16>
    %cst_124 = arith.constant dense<0.000000e+00> : vector<8x8xf32>
    %173 = tpu.matmul %7, %172, %cst_124 {dimension_numbers = #tpu.dot_dimension_numbers<[1], [0], [0], [1], [0, 0, 1, 1], [], []>} : vector<8x32xbf16>, vector<32x8xbf16>, vector<8x8xf32> -> vector<8x8xf32>
    %c3_125 = arith.constant 3 : index
    %c0_126 = arith.constant 0 : index
    %c0_127 = arith.constant 0 : index
    %174 = vector.load %arg7[%c3_125, %c0_126, %c0_127] : memref<4x1x8xf32, #tpu.memory_space<vmem>>, vector<1x1x8xf32>
    %175 = vector.shape_cast %174 : vector<1x1x8xf32> to vector<1x8xf32>
    %176 = vector.broadcast %175 : vector<1x8xf32> to vector<8x8xf32>
    %177 = arith.addf %173, %176 : vector<8x8xf32>
    %c3_128 = arith.constant 3 : index
    %c0_129 = arith.constant 0 : index
    %c0_130 = arith.constant 0 : index
    %178 = vector.load %arg8[%c3_128, %c0_129, %c0_130] : memref<4x32x8xbf16, #tpu.memory_space<vmem>>, vector<1x32x8xbf16>
    %179 = vector.shape_cast %178 : vector<1x32x8xbf16> to vector<32x8xbf16>
    %cst_131 = arith.constant dense<0.000000e+00> : vector<8x8xf32>
    %180 = tpu.matmul %7, %179, %cst_131 {dimension_numbers = #tpu.dot_dimension_numbers<[1], [0], [0], [1], [0, 0, 1, 1], [], []>} : vector<8x32xbf16>, vector<32x8xbf16>, vector<8x8xf32> -> vector<8x8xf32>
    %c3_132 = arith.constant 3 : index
    %c0_133 = arith.constant 0 : index
    %c0_134 = arith.constant 0 : index
    %181 = vector.load %arg9[%c3_132, %c0_133, %c0_134] : memref<4x1x8xf32, #tpu.memory_space<vmem>>, vector<1x1x8xf32>
    %182 = vector.shape_cast %181 : vector<1x1x8xf32> to vector<1x8xf32>
    %183 = vector.broadcast %182 : vector<1x8xf32> to vector<8x8xf32>
    %184 = arith.addf %180, %183 : vector<8x8xf32>
    %185 = arith.truncf %170 : vector<6x8xf32> to vector<6x8xbf16>
    %186 = arith.truncf %177 : vector<8x8xf32> to vector<8x8xbf16>
    %cst_135 = arith.constant dense<0.000000e+00> : vector<6x8xf32>
    %187 = tpu.matmul %185, %186, %cst_135 {dimension_numbers = #tpu.dot_dimension_numbers<[1], [1], [0], [0], [0, 0, 1, 0], [], []>} : vector<6x8xbf16>, vector<8x8xbf16>, vector<6x8xf32> -> vector<6x8xf32>
    %cst_136 = arith.constant 0.000000e+00 : f32
    %188 = vector.broadcast %cst_136 : f32 to vector<6x8xf32>
    %189 = arith.cmpf ogt, %5, %188 : vector<6x8xf32>
    %cst_137 = arith.constant -1.000000e+10 : f32
    %190 = vector.broadcast %cst_137 : f32 to vector<6x8xf32>
    %191 = arith.select %189, %187, %190 : vector<6x8xi1>, vector<6x8xf32>
    %cst_138 = arith.constant dense<0xFF800000> : vector<6xf32>
    %192 = vector.multi_reduction <maximumf>, %191, %cst_138 [1] : vector<6x8xf32> to vector<6xf32>
    %193 = vector.shape_cast %192 : vector<6xf32> to vector<6x1xf32>
    %194 = vector.broadcast %193 : vector<6x1xf32> to vector<6x8xf32>
    %195 = arith.subf %191, %194 : vector<6x8xf32>
    %196 = math.exp %195 : vector<6x8xf32>
    %cst_139 = arith.constant dense<0.000000e+00> : vector<6xf32>
    %197 = vector.multi_reduction <add>, %196, %cst_139 [1] : vector<6x8xf32> to vector<6xf32>
    %198 = vector.shape_cast %197 : vector<6xf32> to vector<6x1xf32>
    %199 = tpu.reciprocal %198 {approx = true} : vector<6x1xf32> -> vector<6x1xf32>
    %200 = vector.broadcast %199 : vector<6x1xf32> to vector<6x8xf32>
    %201 = arith.mulf %196, %200 : vector<6x8xf32>
    %c0_140 = arith.constant 0 : index
    %c3_141 = arith.constant 3 : index
    %c0_142 = arith.constant 0 : index
    %c0_143 = arith.constant 0 : index
    %202 = vector.load %arg15[%c0_140, %c3_141, %c0_142, %c0_143] : memref<1x4x6x8xf32, #tpu.memory_space<vmem>>, vector<1x1x6x8xf32>
    %203 = vector.shape_cast %202 : vector<1x1x6x8xf32> to vector<6x8xf32>
    %204 = vector.shape_cast %201 : vector<6x8xf32> to vector<1x1x6x8xf32>
    tpu.vector_store %arg15[%c0_140, %c3_141, %c0_142, %c0_143], %204 {strides = array<i32>} : memref<1x4x6x8xf32, #tpu.memory_space<vmem>>, vector<1x1x6x8xf32>,
    %205 = arith.truncf %201 : vector<6x8xf32> to vector<6x8xbf16>
    %206 = arith.truncf %184 : vector<8x8xf32> to vector<8x8xbf16>
    %cst_144 = arith.constant dense<0.000000e+00> : vector<6x8xf32>
    %207 = tpu.matmul %205, %206, %cst_144 {dimension_numbers = #tpu.dot_dimension_numbers<[1], [0], [0], [1], [0, 0, 1, 1], [], []>} : vector<6x8xbf16>, vector<8x8xbf16>, vector<6x8xf32> -> vector<6x8xf32>
    %208 = arith.truncf %207 : vector<6x8xf32> to vector<6x8xbf16>
    %c3_145 = arith.constant 3 : index
    %c0_146 = arith.constant 0 : index
    %c0_147 = arith.constant 0 : index
    %209 = vector.load %arg10[%c3_145, %c0_146, %c0_147] : memref<4x8x32xbf16, #tpu.memory_space<vmem>>, vector<1x8x32xbf16>
    %210 = vector.shape_cast %209 : vector<1x8x32xbf16> to vector<8x32xbf16>
    %cst_148 = arith.constant dense<0.000000e+00> : vector<6x32xf32>
    %211 = tpu.matmul %208, %210, %cst_148 {dimension_numbers = #tpu.dot_dimension_numbers<[1], [0], [0], [1], [0, 0, 1, 1], [], []>} : vector<6x8xbf16>, vector<8x32xbf16>, vector<6x32xf32> -> vector<6x32xf32>
    %212 = arith.addf %161, %211 : vector<6x32xf32>
    %c0_149 = arith.constant 0 : index
    %c0_150 = arith.constant 0 : index
    %213 = vector.load %arg11[%c0_149, %c0_150] : memref<1x32xf32, #tpu.memory_space<vmem>>, vector<1x32xf32>
    %214 = vector.broadcast %213 : vector<1x32xf32> to vector<6x32xf32>
    %215 = arith.addf %212, %214 : vector<6x32xf32>
    %216 = arith.addf %215, %1 : vector<6x32xf32>
    %cst_151 = arith.constant dense<0.000000e+00> : vector<6xf32>
    %217 = vector.multi_reduction <add>, %216, %cst_151 [1] : vector<6x32xf32> to vector<6xf32>
    %218 = vector.shape_cast %217 : vector<6xf32> to vector<6x1xf32>
    %cst_152 = arith.constant 3.200000e+01 : f32
    %219 = vector.broadcast %cst_152 : f32 to vector<6x1xf32>
    %220 = arith.divf %218, %219 : vector<6x1xf32>
    %221 = vector.broadcast %220 : vector<6x1xf32> to vector<6x32xf32>
    %222 = arith.subf %216, %221 : vector<6x32xf32>
    %223 = arith.mulf %222, %222 : vector<6x32xf32>
    %cst_153 = arith.constant dense<0.000000e+00> : vector<6xf32>
    %224 = vector.multi_reduction <add>, %223, %cst_153 [1] : vector<6x32xf32> to vector<6xf32>
    %225 = vector.shape_cast %224 : vector<6xf32> to vector<6x1xf32>
    %cst_154 = arith.constant 3.200000e+01 : f32
    %226 = vector.broadcast %cst_154 : f32 to vector<6x1xf32>
    %227 = arith.divf %225, %226 : vector<6x1xf32>
    %228 = vector.broadcast %220 : vector<6x1xf32> to vector<6x32xf32>
    %229 = arith.subf %216, %228 : vector<6x32xf32>
    %cst_155 = arith.constant 9.99999974E-6 : f32
    %230 = vector.broadcast %cst_155 : f32 to vector<6x1xf32>
    %231 = arith.addf %227, %230 : vector<6x1xf32>
    %232 = math.rsqrt %231 : vector<6x1xf32>
    %233 = vector.broadcast %232 : vector<6x1xf32> to vector<6x32xf32>
    %234 = arith.mulf %229, %233 : vector<6x32xf32>
    %c0_156 = arith.constant 0 : index
    %c0_157 = arith.constant 0 : index
    %235 = vector.load %arg12[%c0_156, %c0_157] : memref<1x32xf32, #tpu.memory_space<vmem>>, vector<1x32xf32>
    %236 = vector.broadcast %235 : vector<1x32xf32> to vector<6x32xf32>
    %237 = arith.mulf %234, %236 : vector<6x32xf32>
    %c0_158 = arith.constant 0 : index
    %c0_159 = arith.constant 0 : index
    %238 = vector.load %arg13[%c0_158, %c0_159] : memref<1x32xf32, #tpu.memory_space<vmem>>, vector<1x32xf32>
    %239 = vector.broadcast %238 : vector<1x32xf32> to vector<6x32xf32>
    %240 = arith.addf %237, %239 : vector<6x32xf32>
    %c0_160 = arith.constant 0 : index
    %c0_161 = arith.constant 0 : index
    %c0_162 = arith.constant 0 : index
    %241 = vector.load %arg14[%c0_160, %c0_161, %c0_162] : memref<1x6x32xf32, #tpu.memory_space<vmem>>, vector<1x6x32xf32>
    %242 = vector.shape_cast %241 : vector<1x6x32xf32> to vector<6x32xf32>
    %243 = vector.shape_cast %240 : vector<6x32xf32> to vector<1x6x32xf32>
    tpu.vector_store %arg14[%c0_160, %c0_161, %c0_162], %243 {strides = array<i32>} : memref<1x6x32xf32, #tpu.memory_space<vmem>>, vector<1x6x32xf32>,
    return
  }
  func.func @transform_0(%arg0: i32) -> (i32, i32, i32) {
    %c0_i32 = arith.constant 0 : i32
    %c0_i32_0 = arith.constant 0 : i32
    %c0_i32_1 = arith.constant 0 : i32
    return %arg0, %c0_i32, %c0_i32_0 : i32, i32, i32
  }
  func.func @transform_1(%arg0: i32) -> (i32, i32, i32) {
    %c0_i32 = arith.constant 0 : i32
    %c0_i32_0 = arith.constant 0 : i32
    %c0_i32_1 = arith.constant 0 : i32
    return %arg0, %c0_i32, %c0_i32_0 : i32, i32, i32
  }
  func.func @transform_2(%arg0: i32) -> (i32, i32, i32) {
    %c0_i32 = arith.constant 0 : i32
    %c0_i32_0 = arith.constant 0 : i32
    %c0_i32_1 = arith.constant 0 : i32
    return %arg0, %c0_i32, %c0_i32_0 : i32, i32, i32
  }
  func.func @transform_3(%arg0: i32) -> (i32, i32, i32) {
    %c0_i32 = arith.constant 0 : i32
    %c0_i32_0 = arith.constant 0 : i32
    %c0_i32_1 = arith.constant 0 : i32
    %c0_i32_2 = arith.constant 0 : i32
    return %c0_i32, %c0_i32_0, %c0_i32_1 : i32, i32, i32
  }
  func.func @transform_4(%arg0: i32) -> (i32, i32, i32) {
    %c0_i32 = arith.constant 0 : i32
    %c0_i32_0 = arith.constant 0 : i32
    %c0_i32_1 = arith.constant 0 : i32
    %c0_i32_2 = arith.constant 0 : i32
    return %c0_i32, %c0_i32_0, %c0_i32_1 : i32, i32, i32
  }
  func.func @transform_5(%arg0: i32) -> (i32, i32, i32) {
    %c0_i32 = arith.constant 0 : i32
    %c0_i32_0 = arith.constant 0 : i32
    %c0_i32_1 = arith.constant 0 : i32
    %c0_i32_2 = arith.constant 0 : i32
    return %c0_i32, %c0_i32_0, %c0_i32_1 : i32, i32, i32
  }
  func.func @transform_6(%arg0: i32) -> (i32, i32, i32) {
    %c0_i32 = arith.constant 0 : i32
    %c0_i32_0 = arith.constant 0 : i32
    %c0_i32_1 = arith.constant 0 : i32
    %c0_i32_2 = arith.constant 0 : i32
    return %c0_i32, %c0_i32_0, %c0_i32_1 : i32, i32, i32
  }
  func.func @transform_7(%arg0: i32) -> (i32, i32, i32) {
    %c0_i32 = arith.constant 0 : i32
    %c0_i32_0 = arith.constant 0 : i32
    %c0_i32_1 = arith.constant 0 : i32
    %c0_i32_2 = arith.constant 0 : i32
    return %c0_i32, %c0_i32_0, %c0_i32_1 : i32, i32, i32
  }
  func.func @transform_8(%arg0: i32) -> (i32, i32, i32) {
    %c0_i32 = arith.constant 0 : i32
    %c0_i32_0 = arith.constant 0 : i32
    %c0_i32_1 = arith.constant 0 : i32
    %c0_i32_2 = arith.constant 0 : i32
    return %c0_i32, %c0_i32_0, %c0_i32_1 : i32, i32, i32
  }
  func.func @transform_9(%arg0: i32) -> (i32, i32, i32) {
    %c0_i32 = arith.constant 0 : i32
    %c0_i32_0 = arith.constant 0 : i32
    %c0_i32_1 = arith.constant 0 : i32
    %c0_i32_2 = arith.constant 0 : i32
    return %c0_i32, %c0_i32_0, %c0_i32_1 : i32, i32, i32
  }
  func.func @transform_10(%arg0: i32) -> (i32, i32) {
    %c0_i32 = arith.constant 0 : i32
    %c0_i32_0 = arith.constant 0 : i32
    %c0_i32_1 = arith.constant 0 : i32
    return %c0_i32, %c0_i32_0 : i32, i32
  }
  func.func @transform_11(%arg0: i32) -> (i32, i32) {
    %c0_i32 = arith.constant 0 : i32
    %c0_i32_0 = arith.constant 0 : i32
    %c0_i32_1 = arith.constant 0 : i32
    return %c0_i32, %c0_i32_0 : i32, i32
  }
  func.func @transform_12(%arg0: i32) -> (i32, i32) {
    %c0_i32 = arith.constant 0 : i32
    %c0_i32_0 = arith.constant 0 : i32
    %c0_i32_1 = arith.constant 0 : i32
    return %c0_i32, %c0_i32_0 : i32, i32
  }
  func.func @transform_13(%arg0: i32) -> (i32, i32, i32) {
    %c0_i32 = arith.constant 0 : i32
    %c0_i32_0 = arith.constant 0 : i32
    %c0_i32_1 = arith.constant 0 : i32
    return %arg0, %c0_i32, %c0_i32_0 : i32, i32, i32
  }
  func.func @transform_14(%arg0: i32) -> (i32, i32, i32, i32) {
    %c0_i32 = arith.constant 0 : i32
    %c0_i32_0 = arith.constant 0 : i32
    %c0_i32_1 = arith.constant 0 : i32
    %c0_i32_2 = arith.constant 0 : i32
    return %arg0, %c0_i32, %c0_i32_0, %c0_i32_1 : i32, i32, i32, i32
  }
}

</mosaic_0001>

<bundles_post_ra>
// kernel: transformer_forward.12
= control target key start
LH: loop header
LB: loop body
LE: loop exit
PB: predicated region body
PF: predicated region fallthrough
CT: control target
= control target key end

     0   :  { %v290_v0 = vmov 0.0   ;;  %vm291_vm0 = vmmov 0   ;;  %vm53_vm1 = vcmask 261120   ;;  %vm140_vm2 = vcmask 523264   ;;  %s381_s1 = inlined_call_operand.vmem [shape: bf16[32,64], index: 1, kind: input, shape index: {}]   ;;  %s382_s0 = inlined_call_operand.vmem [shape: f32[16,32], index: 0, kind: input, shape index: {}]   ;;  %s383_s3 = inlined_call_operand.vmem [shape: bf16[64,32], index: 3, kind: input, shape index: {}]   ;;  %s384_s2 = inlined_call_operand.vmem [shape: f32[1,64], index: 2, kind: input, shape index: {}]   ;;  %s385_s4 = inlined_call_operand.vmem [shape: f32[1,32], index: 4, kind: input, shape index: {}]   ;;  %s386_s5 = inlined_call_operand.vmem [shape: f32[1,32], index: 5, kind: input, shape index: {}]   ;;  %s387_s6 = inlined_call_operand.vmem [shape: f32[1,32], index: 6, kind: input, shape index: {}]   ;;  %s388_s7 = inlined_call_operand.vmem [shape: f32[16,32], index: 7, kind: output, shape index: {}]  }
   0x1   :  { %258 = vmatprep.subr.bf16.mxu0 %v290_v0  ;;  %v280_v1 = vld [vmem:[%s381_s1 + $0x8] sm:$0xff]   ;;  %262 = vmatprep.mubr.msk.bf16.mxu0 %vm291_vm0, %v290_v0  ;;  %v281_v2 = vld [vmem:[%s381_s1] sm:$0xff]   ;;  %v282_v5 = vld [vmem:[%s383_s3 + $0x18] sm:$0xff]  }
   0x2   :  { %266 = vmatprep.subr.bf16.mxu1 %v290_v0  ;;  %274 = vmatprep.mubr.msk.bf16.mxu1 %vm291_vm0, %v290_v0  ;;  %v27_v3 = vld [vmem:[%s382_s0] sm:$0xff]  ;;  %v28_v4 = vld [vmem:[%s382_s0 + $0x8] sm:$0xff]  ;;  %v283_v7 = vld [vmem:[%s383_s3 + $0x10] sm:$0xff]  }
   0x3   :  { %259 = vmatpush3.bf16.msra.mxu0 %v280_v1  ;;  %v29_v6 = vpack.c.bf16 %v28_v4, %v27_v3  ;;  %267 = vmatpush3.bf16.msra.mxu1 %v282_v5  ;;  %v284_v8 = vld [vmem:[%s383_s3 + $0x8] sm:$0xff]   ;;  %v285_v9 = vld [vmem:[%s383_s3] sm:$0xff]  }
   0x4   :  { %260 = vmatprep.subr.bf16.mxu0 %v290_v0  ;;  %268 = vmatprep.subr.bf16.mxu1 %v290_v0  ;;  %v238_v10 = vld [vmem:[%s384_s2] ss:$0 sm:$0xff] }
   0x5   :  { %v242_v20 = vld [vmem:[%s385_s4] ss:$0 sm:$0xff] }
   0x6   :  { %v248_v48 = vld [vmem:[%s386_s5] ss:$0 sm:$0xff] }
   0x7   :  { %261 = vmatpush3.bf16.msra.mxu0 %v281_v2  ;;  %269 = vmatpush3.bf16.msra.mxu1 %v283_v7  ;;  %v249_v50 = vld [vmem:[%s387_s6] ss:$0 sm:$0xff] }
   0x8   :  { %270 = vmatprep.subr.bf16.mxu1 %v290_v0 }
   0xa   :  { %263 = vmatmul.mubr.msk.bf16.vlgmr.msra.gmra.mxu0 %vm53_vm1, %v29_v6 }
   0xb   :  { %271 = vmatpush3.bf16.msra.mxu1 %v284_v8 }
   0xc   :  { %272 = vmatprep.subr.bf16.mxu1 %v290_v0 }
   0xf   :  { %273 = vmatpush3.bf16.msra.mxu1 %v285_v9 }
  0xca   :  { %v91_v11 = vpop.f32.mrf.mxu0 }
  0xcb   :  { %v92_v13 = vadd.f32 %v238_v10, %v91_v11 }
  0xcc   :  { %v264_v12 = vpop.f32.mrf.mxu0 }
  0xcd   :  { %v98_v17 = vmax.f32 %v92_v13, 0.0 }
  0xce   :  { %v94_v14 = vpop.f32.mrf.mxu0 }
  0xcf   :  { %v95_v15 = vadd.f32 %v238_v10, %v94_v14 }
  0xd0   :  { %v265_v16 = vpop.f32.mrf.mxu0 }
  0xd1   :  { %v99_v18 = vmax.f32 %v95_v15, 0.0 }
  0xd3   :  { %v100_v19 = vpack.c.bf16 %v99_v18, %v98_v17 }
  0xd5   :  { %275 = vmatmul.mubr.msk.bf16.vlgmr.msra.gmra.mxu1 %vm140_vm2, %v100_v19 }
 0x195   :  { %v178_v21 = vpop.f32.mrf.mxu1 }
 0x196   :  { %v179_v22 = vadd.f32 %v242_v20, %v178_v21 }
 0x197   :  { %v276_v23 = vpop.f32.mrf.mxu1 }
 0x198   :  { %v185_v24 = vadd.f32 %v179_v22, %v27_v3 }
 0x199   :  { %v181_v25 = vpop.f32.mrf.mxu1 }
 0x19a   :  { %v182_v26 = vadd.f32 %v242_v20, %v181_v25  ;;  %v187_v27 = vsel %vm53_vm1, %v185_v24, 0.0 }
 0x19b   :  { %188 = vadd.xlane.f32.xlu0 %v187_v27  ;;  %v277_v28 = vpop.f32.mrf.mxu1 }
 0x19c   :  { %v186_v29 = vadd.f32 %v182_v26, %v28_v4 }
 0x19e   :  { %v190_v30 = vsel %vm53_vm1, %v186_v29, 0.0 }
 0x19f   :  { %191 = vadd.xlane.f32.xlu0 %v190_v30 }
 0x224   :  { %v189_v31 = vpop.xlane.xlu0 %188 }
 0x225   :  { %v194_v32 = vmul.f32 0.03125, %v189_v31 }
 0x227   :  { %v196_v33 = vsub.f32 %v185_v24, %v194_v32 }
 0x228   :  { %v192_v34 = vpop.xlane.xlu0 %191 }
 0x229   :  { %v195_v35 = vmul.f32 0.03125, %v192_v34  ;;  %v198_v36 = vmul.f32 %v196_v33, %v196_v33 }
 0x22b   :  { %v197_v37 = vsub.f32 %v186_v29, %v195_v35  ;;  %v200_v38 = vsel %vm53_vm1, %v198_v36, 0.0 }
 0x22c   :  { %201 = vadd.xlane.f32.xlu1 %v200_v38 }
 0x22d   :  { %v199_v39 = vmul.f32 %v197_v37, %v197_v37 }
 0x22f   :  { %v203_v40 = vsel %vm53_vm1, %v199_v39, 0.0 }
 0x230   :  { %204 = vadd.xlane.f32.xlu1 %v203_v40 }
 0x2b5   :  { %v202_v41 = vpop.xlane.xlu1 %201 }
 0x2b6   :  { %v206_v42 = vmul.f32 0.03125, %v202_v41 }
 0x2b8   :  { %v208_v43 = vadd.f32 1e-05, %v206_v42 }
 0x2b9   :  { %v205_v44 = vpop.xlane.xlu1 %204 }
 0x2ba   :  { %286 = vrsqrt.f32 %v208_v43  ;;  %v207_v45 = vmul.f32 0.03125, %v205_v44 }
 0x2bc   :  { %v209_v46 = vadd.f32 1e-05, %v207_v45 }
 0x2be   :  { %288 = vrsqrt.f32 %v209_v46 }
 0x2c7   :  { %v287_v47 = vpop.eup %286 }
 0x2c8   :  { %v212_v49 = vmul.f32 %v287_v47, %v196_v33 }
 0x2ca   :  { %v221_v51 = vmul.f32 %v248_v48, %v212_v49 }
 0x2cb   :  { %v289_v52 = vpop.eup %288 }
 0x2cc   :  { %v230_v53 = vadd.f32 %v249_v50, %v221_v51  ;;  %v213_v54 = vmul.f32 %v289_v52, %v197_v37 }
 0x2ce   :  { %232 = vst.msk [vmem:[%s388_s7] sm:$0xff] %vm53_vm1, %v230_v53  ;;  %v222_v55 = vmul.f32 %v248_v48, %v213_v54 }
 0x2d0   :  { %v231_v56 = vadd.f32 %v249_v50, %v222_v55 }
 0x2d2   :  { %233 = vst.msk [vmem:[%s388_s7 + $0x8] sm:$0xff] %vm53_vm1, %v231_v56 }

// kernel: transformer_forward.11
= control target key start
LH: loop header
LB: loop body
LE: loop exit
PB: predicated region body
PF: predicated region fallthrough
CT: control target
= control target key end

     0   :  { %s2492_s25 = smov 0   ;;  %s2826_s0 = inlined_call_operand.vmem [shape: f32[2,8,32], index: 0, kind: input, shape index: {}, may-alias: {0,1}]   ;;  %s2827_s1 = inlined_call_operand.vmem [shape: f32[2,8,32], index: 1, kind: input, shape index: {}, may-alias: {0,1}]   ;;  %s2828_s2 = inlined_call_operand.vmem [shape: f32[2,8,8], index: 2, kind: input, shape index: {}]   ;;  %s2829_s3 = inlined_call_operand.vmem [shape: bf16[4,32,8], index: 3, kind: input, shape index: {}]   ;;  %s2830_s4 = inlined_call_operand.vmem [shape: f32[4,1,8], index: 4, kind: input, shape index: {}]   ;;  %s2831_s5 = inlined_call_operand.vmem [shape: bf16[4,32,8], index: 5, kind: input, shape index: {}]   ;;  %s2832_s6 = inlined_call_operand.vmem [shape: f32[4,1,8], index: 6, kind: input, shape index: {}]   ;;  %s2833_s7 = inlined_call_operand.vmem [shape: bf16[4,32,8], index: 7, kind: input, shape index: {}]   ;;  %s2834_s8 = inlined_call_operand.vmem [shape: f32[4,1,8], index: 8, kind: input, shape index: {}]   ;;  %s2835_s9 = inlined_call_operand.vmem [shape: bf16[4,8,32], index: 9, kind: input, shape index: {}]   ;;  %s2836_s10 = inlined_call_operand.vmem [shape: f32[1,32], index: 10, kind: input, shape index: {}]   ;;  %s2837_s11 = inlined_call_operand.vmem [shape: f32[1,32], index: 11, kind: input, shape index: {}]   ;;  %s2838_s12 = inlined_call_operand.vmem [shape: f32[1,32], index: 12, kind: input, shape index: {}]   ;;  %s2839_s13 = inlined_call_operand.vmem [shape: f32[2,8,32], index: 13, kind: output, shape index: {}]  }
   0x1 LB: > { %s2010_s26 = sadd.s32 4294967295, %s2418_s25   ;;  %p2014_p0 = scmp.ge.s32.totalorder %s2418_s25, 1  ;;  %s2418_s25 = sphi %s2492_s25, %s23_s25  }
   0x2   : > { %p404_p1 = scmp.lt.s32.totalorder %s2418_s25, 3 }
   0x4   : > { %p405_p2 = pnand %p2014_p0, %p404_p1 }
   0x5   : > { %p454_p3 = scmp.lt.s32.totalorder (!%p405_p2), %s2010_s26, 1 }
   0x6   : > { %408 = sbr.rel (%p405_p2) target bundleno = 3984 (0xf90), region = 72 }
   0xb   : > { %v2370_v0 = vld [vmem:[%s2829_s3 + $0x8] sm:$0xff]   ;;  %v2420_v1 = vmov 0.0   ;;  %v2372_v3 = vld [vmem:[%s2829_s3] sm:$0xff]   ;;  %vm2421_vm0 = vmmov 0   ;;  %s2841_s26 = smov (!%p454_p3, %s2010_s26), 1  ;;  %vm499_vm1 = vcmask 261120  }
   0xc   : > { %2192 = vmatprep.subr.bf16.mxu0 %v2420_v1  ;;  %2200 = vmatprep.subr.bf16.mxu1 %v2420_v1  ;;  %v2371_v2 = vld [vmem:[%s2831_s5 + $0x8] sm:$0xff]   ;;  %v2373_v4 = vld [vmem:[%s2831_s5] sm:$0xff]   ;;  %s2520_s18 = sshll.u32 %s2841_s26, 3  ;;  %vm675_vm2 = vcmask 64512   ;;  %vm740_vm4 = vcmask 1043456   ;;  %v2376_v47 = vld [vmem:[%s2829_s3 + $0x18] sm:$0xff]  }
   0xd   : > { %2193 = vmatpush3.bf16.msra.mxu0 %v2370_v0  ;;  %2196 = vmatprep.mubr.msk.bf16.mxu0 %vm2421_vm0, %v2420_v1  ;;  %s457_s21 = scalar_lea.vmem %s2826_s0, %s2520_s18  ;;  %s461_s24 = scalar_lea.vmem %s2827_s1, %s2520_s18  ;;  %v2019_v9 = vld [vmem:[%s2830_s4] ss:$0 sm:$0xff]  ;;  %v2374_v25 = vld [vmem:[%s2833_s7 + $0x8] sm:$0xff]   ;;  %v2378_v48 = vld [vmem:[%s2829_s3 + $0x10] sm:$0xff]  }
   0xe   : > { %2201 = vmatpush3.bf16.msra.mxu1 %v2371_v2  ;;  %2194 = vmatprep.subr.bf16.mxu0 %v2420_v1  ;;  %v2531_v5 = vld [vmem:[%s457_s21] sm:$0xff]  ;;  %s465_s20 = scalar_lea.vmem %s2828_s2, %s2520_s18  ;;  %v2377_v52 = vld [vmem:[%s2831_s5 + $0x18] sm:$0xff]   ;;  %v2379_v54 = vld [vmem:[%s2831_s5 + $0x10] sm:$0xff]   ;;  %s469_s17 = scalar_lea.vmem %s2839_s13, %s2520_s18 }
   0xf   : > { %2202 = vmatprep.subr.bf16.mxu1 %v2420_v1  ;;  %2204 = vmatprep.mubr.msk.bf16.mxu1 %vm2421_vm0, %v2420_v1  ;;  %v472_v6 = vld [vmem:[%s461_s24] sm:$0xff]  ;;  %v2536_v7 = vpack.c.bf16 %v2531_v5, %v2531_v5 }
  0x10   : > { %v2538_v8 = vpack.c.bf16 %v472_v6, %v472_v6  ;;  %v2023_v10 = vld [vmem:[%s2832_s6] ss:$0 sm:$0xff]  ;;  %v2038_v63 = vld [vmem:[%s2830_s4 + $0x1] ss:$0 sm:$0xff] }
  0x11   : > { %2195 = vmatpush3.bf16.msra.mxu0 %v2372_v3  ;;  %v2375_v26 = vld [vmem:[%s2833_s7] sm:$0xff]  }
  0x12   : > { %2203 = vmatpush3.bf16.msra.mxu1 %v2373_v4  ;;  %2208 = vmatprep.subr.bf16.mxu0 %v2420_v1  ;;  %v2575_v27 = vld [vmem:[%s465_s20] sm:$0xff] }
  0x13   : > { %2216 = vmatprep.subr.bf16.mxu1 %v2420_v1  ;;  %vm722_vm3 = vcmp.gt.f32.partialorder %v2575_v27, 0.0  ;;  %v2027_v39 = vld [vmem:[%s2834_s8] ss:$0 sm:$0xff]  ;;  %v2047_v0 = vld [vmem:[%s2832_s6 + $0x1] ss:$0 sm:$0xff] }
  0x14   : > { %2197 = vmatmul.mubr.msk.bf16.vlgmr.msra.gmra.mxu0 %vm499_vm1, %v2536_v7 }
  0x15   : > { %2205 = vmatmul.mubr.msk.bf16.vlgmr.msra.gmra.mxu1 %vm499_vm1, %v2538_v8  ;;  %2212 = vmatprep.mubr.msk.bf16.mxu0 %vm2421_vm0, %v2420_v1 }
  0x16   : > { %2218 = vmatprep.mubr.msk.bf16.mxu1 %vm2421_vm0, %v2420_v1  ;;  %2209 = vmatpush3.bf16.msra.mxu0 %v2374_v25 }
  0x17   : > { %2210 = vmatprep.subr.bf16.mxu0 %v2420_v1 }
  0x1a   : > { %2211 = vmatpush3.bf16.msra.mxu0 %v2375_v26 }
  0x1b   : > { %2222 = vmatprep.subr.bf16.mxu0 %v2420_v1 }
  0x1d   : > { %2213 = vmatmul.mubr.msk.bf16.vlgmr.msra.gmra.mxu0 %vm499_vm1, %v2538_v8 }
  0x1e   : > { %2224 = vmatprep.mubr.msk.bf16.mxu0 %vm2421_vm0, %v2420_v1 }
  0xd4   : > { %v537_v11 = vpop.f32.mrf.mxu0 }
  0xd5   : > { %v604_v12 = vpop.f32.mrf.mxu1  ;;  %v538_v13 = vadd.f32 %v2019_v9, %v537_v11 }
  0xd6   : > { %v605_v14 = vadd.f32 %v2023_v10, %v604_v12  ;;  %v2198_v15 = vpop.f32.mrf.mxu0 }
  0xd7   : > { %v2206_v16 = vpop.f32.mrf.mxu1  ;;  %v543_v20 = vmul.f32 0.35355338, %v538_v13  ;;  %v2380_v15 = vld [vmem:[%s2833_s7 + $0x18] sm:$0xff]  }
  0xd8   : > { %v674_v17 = vpack.c.bf16 %v605_v14, %v605_v14  ;;  %v540_v18 = vpop.f32.mrf.mxu0  ;;  %v2381_v16 = vld [vmem:[%s2833_s7 + $0x10] sm:$0xff]  }
  0xd9   : > { %v607_v19 = vpop.f32.mrf.mxu1  ;;  %v673_v24 = vpack.c.bf16 %v543_v20, %v543_v20 }
  0xda   : > { %v680_v21 = vsel %vm675_vm2, %v674_v17, 0  ;;  %v2199_v22 = vpop.f32.mrf.mxu0 }
  0xdb   : > { %v2207_v23 = vpop.f32.mrf.mxu1  ;;  %2217 = vmatpush3.bf16.xpose.msra.mxu1 %v680_v21 }
  0xdc   : > { %2228 = vmatprep.subr.bf16.mxu1 %v2420_v1  ;;  %v2056_v23 = vld [vmem:[%s2834_s8 + $0x1] ss:$0 sm:$0xff] }
  0xdd   : > { %v667_v40 = vpop.f32.mrf.mxu0 }
  0xde   : > { %v668_v41 = vadd.f32 %v2027_v39, %v667_v40 }
  0xdf   : > { %v2214_v42 = vpop.f32.mrf.mxu0 }
  0xe0   : > { %v736_v43 = vpack.c.bf16 %v668_v41, %v668_v41  ;;  %v785_v41 = vld [vmem:[%s2835_s9] sm:$0xf] }
  0xe1   : > { %v670_v44 = vpop.f32.mrf.mxu0 }
  0xe2   : > { %2219 = vmatmul.mubr.msk.bf16.vlgmr.msra.gmra.mxu1 %vm675_vm2, %v673_v24  ;;  %v742_v45 = vsel %vm740_vm4, %v736_v43, 0  ;;  %v1143_v44 = vsel %vm740_vm4, %v785_v41, 0  ;;  %v2094_v41 = vld [vmem:[%s2835_s9 + $0x8] sm:$0xf] }
  0xe3   : > { %2232 = vmatprep.mubr.msk.bf16.mxu1 %vm2421_vm0, %v2420_v1  ;;  %v2215_v46 = vpop.f32.mrf.mxu0  ;;  %2223 = vmatpush3.bf16.msra.mxu0 %v742_v45  ;;  %v2382_v45 = vld [vmem:[%s2831_s5 + $0x28] sm:$0xff]  }
  0xe4   : > { %2236 = vmatprep.subr.bf16.mxu0 %v2420_v1  ;;  %2229 = vmatpush3.bf16.msra.mxu1 %v2376_v47  ;;  %v2383_v47 = vld [vmem:[%s2831_s5 + $0x20] sm:$0xff]  }
  0xe5   : > { %2230 = vmatprep.subr.bf16.mxu1 %v2420_v1 }
  0xe8   : > { %2231 = vmatpush3.bf16.msra.mxu1 %v2378_v48 }
  0xe9   : > { %2244 = vmatprep.subr.bf16.mxu1 %v2420_v1 }
  0xeb   : > { %2233 = vmatmul.mubr.msk.bf16.vlgmr.msra.gmra.mxu1 %vm499_vm1, %v2536_v7 }
  0xec   : > { %2248 = vmatprep.mubr.msk.bf16.mxu1 %vm2421_vm0, %v2420_v1  ;;  %2245 = vmatpush3.bf16.msra.mxu1 %v2380_v15 }
  0xed   : > { %2246 = vmatprep.subr.bf16.mxu1 %v2420_v1 }
  0xf0   : > { %2247 = vmatpush3.bf16.msra.mxu1 %v2381_v16 }
  0xf1   : > { %2258 = vmatprep.subr.bf16.mxu1 %v2420_v1 }
  0xf3   : > { %2249 = vmatmul.mubr.msk.bf16.vlgmr.msra.gmra.mxu1 %vm499_vm1, %v2538_v8 }
  0xf4   : > { %2260 = vmatprep.mubr.msk.bf16.mxu1 %vm2421_vm0, %v2420_v1 }
 0x1a2   : > { %v716_v28 = vpop.f32.mrf.mxu1 }
 0x1a3   : > { %v723_v29 = vsel %vm722_vm3, %v716_v28, -1e+10 }
 0x1a4   : > { %v2220_v30 = vpop.f32.mrf.mxu1  ;;  %v724_v31 = vsel %vm675_vm2, %v723_v29, -inf }
 0x1a5   : > { %725 = vmax.xlane.f32.xlu0 %v724_v31 }
 0x1a6   : > { %v719_v32 = vpop.f32.mrf.mxu1 }
 0x1a8   : > { %v2221_v33 = vpop.f32.mrf.mxu1 }
 0x1ab   : > { %v845_v55 = vpop.f32.mrf.mxu1 }
 0x1ac   : > { %v846_v3 = vadd.f32 %v2038_v63, %v845_v55 }
 0x1ad   : > { %v2234_v56 = vpop.f32.mrf.mxu1 }
 0x1ae   : > { %v851_v11 = vmul.f32 0.35355338, %v846_v3 }
 0x1af   : > { %v848_v57 = vpop.f32.mrf.mxu1 }
 0x1b0   : > { %v982_v14 = vpack.c.bf16 %v851_v11, %v851_v11  ;;  %v2070_v11 = vld [vmem:[%s2830_s4 + $0x2] ss:$0 sm:$0xff] }
 0x1b1   : > { %v2235_v58 = vpop.f32.mrf.mxu1 }
 0x1b3   : > { %v976_v24 = vpop.f32.mrf.mxu1 }
 0x1b4   : > { %v977_v25 = vadd.f32 %v2056_v23, %v976_v24 }
 0x1b5   : > { %v2250_v26 = vpop.f32.mrf.mxu1 }
 0x1b6   : > { %v1043_v28 = vpack.c.bf16 %v977_v25, %v977_v25 }
 0x1b8   : > { %v1048_v30 = vsel %vm740_vm4, %v1043_v28, 0 }
 0x1b9   : > { %2259 = vmatpush3.bf16.msra.mxu1 %v1048_v30 }
 0x1ba   : > { %2270 = vmatprep.subr.bf16.mxu1 %v2420_v1 }
 0x22e   : > { %v726_v34 = vpop.xlane.xlu0 %725 }
 0x22f   : > { %v727_v35 = vsub.f32 %v723_v29, %v726_v34  ;;  %v979_v29 = vpop.f32.mrf.mxu1 }
 0x231   : > { %v728_v36 = vmul.f32 1.442695, %v727_v35  ;;  %v2251_v31 = vpop.f32.mrf.mxu1 }
 0x233   : > { %2394 = vpow2.f32 %v728_v36 }
 0x240   : > { %v2395_v37 = vpop.eup %2394 }
 0x241   : > { %v730_v38 = vsel %vm675_vm2, %v2395_v37, 0.0 }
 0x242   : > { %731 = vadd.xlane.f32.xlu0 %v730_v38 }
 0x2cb   : > { %v732_v49 = vpop.xlane.xlu0 %731 }
 0x2cc   : > { %2396 = vrcp.f32 %v732_v49  ;;  %v2384_v49 = vld [vmem:[%s2829_s3 + $0x28] sm:$0xff]  }
 0x2d9   : > { %v2397_v50 = vpop.eup %2396 }
 0x2da   : > { %v734_v51 = vmul.f32 %v2397_v50, %v2395_v37  ;;  %v2062_v37 = vld [vmem:[%s2835_s9 + $0x4] sm:$0xf] }
 0x2db   : > { %v1097_v38 = vsel %vm740_vm4, %v2062_v37, 0 }
 0x2dc   : > { %v735_v53 = vpack.c.bf16 %v734_v51, %v734_v51 }
 0x2de   : > { %2225 = vmatmul.mubr.msk.bf16.vlgmr.msra.gmra.mxu0 %vm675_vm2, %v735_v53  ;;  %v2385_v53 = vld [vmem:[%s2829_s3 + $0x20] sm:$0xff]  }
 0x2df   : > { %2237 = vmatpush3.bf16.msra.mxu0 %v2377_v52  ;;  %2240 = vmatprep.mubr.msk.bf16.mxu0 %vm2421_vm0, %v2420_v1 }
 0x2e0   : > { %2238 = vmatprep.subr.bf16.mxu0 %v2420_v1 }
 0x2e3   : > { %2239 = vmatpush3.bf16.msra.mxu0 %v2379_v54 }
 0x2e4   : > { %2252 = vmatprep.subr.bf16.mxu0 %v2420_v1 }
 0x2e6   : > { %2241 = vmatmul.mubr.msk.bf16.vlgmr.msra.gmra.mxu0 %vm499_vm1, %v2538_v8 }
 0x2e7   : > { %2254 = vmatprep.mubr.msk.bf16.mxu0 %vm2421_vm0, %v2420_v1 }
 0x39e   : > { %v2614_v59 = vpop.f32.mrf.mxu0 }
 0x39f   : > { %v784_v46 = vpack.c.bf16 %v2614_v59, %v2614_v59  ;;  %v2079_v59 = vld [vmem:[%s2832_s6 + $0x2] ss:$0 sm:$0xff] }
 0x3a0   : > { %v2226_v60 = vpop.f32.mrf.mxu0 }
 0x3a2   : > { %v781_v61 = vpop.f32.mrf.mxu0 }
 0x3a4   : > { %v2227_v62 = vpop.f32.mrf.mxu0 }
 0x3a6   : > { %v911_v2 = vpop.f32.mrf.mxu0 }
 0x3a7   : > { %v912_v4 = vadd.f32 %v2047_v0, %v911_v2 }
 0x3a8   : > { %v2242_v6 = vpop.f32.mrf.mxu0 }
 0x3a9   : > { %v983_v9 = vpack.c.bf16 %v912_v4, %v912_v4 }
 0x3aa   : > { %v914_v10 = vpop.f32.mrf.mxu0 }
 0x3ab   : > { %v988_v12 = vsel %vm675_vm2, %v983_v9, 0 }
 0x3ac   : > { %v2243_v13 = vpop.f32.mrf.mxu0  ;;  %2253 = vmatpush3.bf16.xpose.msra.mxu0 %v988_v12 }
 0x3ad   : > { %2264 = vmatprep.subr.bf16.mxu0 %v2420_v1 }
 0x3b3   : > { %2255 = vmatmul.mubr.msk.bf16.vlgmr.msra.gmra.mxu0 %vm675_vm2, %v982_v14 }
 0x3b4   : > { %2266 = vmatprep.mubr.msk.bf16.mxu0 %vm2421_vm0, %v2420_v1  ;;  %2265 = vmatpush3.bf16.msra.mxu0 %v1097_v38 }
 0x3b5   : > { %2276 = vmatprep.subr.bf16.mxu0 %v2420_v1 }
 0x473   : > { %v1024_v17 = vpop.f32.mrf.mxu0 }
 0x474   : > { %v1030_v18 = vsel %vm722_vm3, %v1024_v17, -1e+10 }
 0x475   : > { %v2256_v19 = vpop.f32.mrf.mxu0  ;;  %v1031_v20 = vsel %vm675_vm2, %v1030_v18, -inf }
 0x476   : > { %1032 = vmax.xlane.f32.xlu1 %v1031_v20  ;;  %v2386_v19 = vld [vmem:[%s2833_s7 + $0x28] sm:$0xff]   ;;  %v2387_v20 = vld [vmem:[%s2833_s7 + $0x20] sm:$0xff]  }
 0x477   : > { %v1027_v21 = vpop.f32.mrf.mxu0 }
 0x479   : > { %v2257_v22 = vpop.f32.mrf.mxu0 }
 0x4ff   : > { %v1033_v32 = vpop.xlane.xlu1 %1032 }
 0x500   : > { %v1034_v33 = vsub.f32 %v1030_v18, %v1033_v32 }
 0x502   : > { %v1035_v34 = vmul.f32 1.442695, %v1034_v33  ;;  %v2088_v33 = vld [vmem:[%s2834_s8 + $0x2] ss:$0 sm:$0xff] }
 0x504   : > { %2398 = vpow2.f32 %v1035_v34 }
 0x511   : > { %v2399_v35 = vpop.eup %2398 }
 0x512   : > { %v1037_v36 = vsel %vm675_vm2, %v2399_v35, 0.0 }
 0x513   : > { %1038 = vadd.xlane.f32.xlu1 %v1037_v36 }
 0x59c   : > { %v1039_v39 = vpop.xlane.xlu1 %1038 }
 0x59d   : > { %2400 = vrcp.f32 %v1039_v39 }
 0x5aa   : > { %v2401_v40 = vpop.eup %2400 }
 0x5ab   : > { %v1041_v42 = vmul.f32 %v2401_v40, %v2399_v35 }
 0x5ad   : > { %v1042_v43 = vpack.c.bf16 %v1041_v42, %v1041_v42  ;;  %v1496_v42 = vsel %vm740_vm4, %v2094_v41, 0 }
 0x5af   : > { %2261 = vmatmul.mubr.msk.bf16.vlgmr.msra.gmra.mxu1 %vm675_vm2, %v1042_v43 }
 0x5b0   : > { %2271 = vmatpush3.bf16.msra.mxu1 %v1143_v44  ;;  %2272 = vmatprep.mubr.msk.bf16.mxu1 %vm2421_vm0, %v2420_v1 }
 0x5b1   : > { %2284 = vmatprep.subr.bf16.mxu1 %v2420_v1 }
 0x5b7   : > { %2273 = vmatmul.mubr.msk.bf16.vlgmr.msra.gmra.mxu1 %vm675_vm2, %v784_v46 }
 0x5b8   : > { %2285 = vmatpush3.bf16.msra.mxu1 %v2382_v45  ;;  %2288 = vmatprep.mubr.msk.bf16.mxu1 %vm2421_vm0, %v2420_v1 }
 0x5b9   : > { %2286 = vmatprep.subr.bf16.mxu1 %v2420_v1 }
 0x5bc   : > { %2287 = vmatpush3.bf16.msra.mxu1 %v2383_v47  ;;  %v2389_v47 = vld [vmem:[%s2829_s3 + $0x38] sm:$0xff]  }
 0x5bd   : > { %2300 = vmatprep.subr.bf16.mxu1 %v2420_v1 }
 0x5bf   : > { %2289 = vmatmul.mubr.msk.bf16.vlgmr.msra.gmra.mxu1 %vm499_vm1, %v2538_v8 }
 0x5c0   : > { %2302 = vmatprep.mubr.msk.bf16.mxu1 %vm2421_vm0, %v2420_v1 }
 0x66f   : > { %v1084_v48 = vpop.f32.mrf.mxu1 }
 0x670   : > { %v1090_v50 = vpack.c.bf16 %v1084_v48, %v1084_v48  ;;  %v2391_v48 = vld [vmem:[%s2829_s3 + $0x30] sm:$0xff]  }
 0x671   : > { %v2262_v51 = vpop.f32.mrf.mxu1 }
 0x672   : > { %2267 = vmatmul.mubr.msk.bf16.vlgmr.msra.gmra.mxu0 %vm675_vm2, %v1090_v50  ;;  %v2388_v50 = vld [vmem:[%s2831_s5 + $0x38] sm:$0xff]  }
 0x673   : > { %v1087_v52 = vpop.f32.mrf.mxu1  ;;  %2277 = vmatpush3.bf16.msra.mxu0 %v2384_v49  ;;  %2280 = vmatprep.mubr.msk.bf16.mxu0 %vm2421_vm0, %v2420_v1 }
 0x674   : > { %2278 = vmatprep.subr.bf16.mxu0 %v2420_v1 }
 0x675   : > { %v2263_v54 = vpop.f32.mrf.mxu1 }
 0x676   : > { %v2390_v54 = vld [vmem:[%s2831_s5 + $0x30] sm:$0xff]  }
 0x677   : > { %v2688_v55 = vpop.f32.mrf.mxu1  ;;  %2279 = vmatpush3.bf16.msra.mxu0 %v2385_v53 }
 0x678   : > { %2292 = vmatprep.subr.bf16.mxu0 %v2420_v1 }
 0x679   : > { %v2274_v56 = vpop.f32.mrf.mxu1 }
 0x67a   : > { %2281 = vmatmul.mubr.msk.bf16.vlgmr.msra.gmra.mxu0 %vm499_vm1, %v2536_v7 }
 0x67b   : > { %v1182_v57 = vpop.f32.mrf.mxu1  ;;  %2296 = vmatprep.mubr.msk.bf16.mxu0 %vm2421_vm0, %v2420_v1  ;;  %2293 = vmatpush3.bf16.msra.mxu0 %v2386_v19 }
 0x67c   : > { %2294 = vmatprep.subr.bf16.mxu0 %v2420_v1 }
 0x67d   : > { %v2275_v58 = vpop.f32.mrf.mxu1 }
 0x67f   : > { %v1310_v60 = vpop.f32.mrf.mxu1  ;;  %2295 = vmatpush3.bf16.msra.mxu0 %v2387_v20 }
 0x680   : > { %v1311_v61 = vadd.f32 %v2079_v59, %v1310_v60  ;;  %2306 = vmatprep.subr.bf16.mxu0 %v2420_v1 }
 0x681   : > { %v2290_v62 = vpop.f32.mrf.mxu1 }
 0x682   : > { %v1382_v63 = vpack.c.bf16 %v1311_v61, %v1311_v61  ;;  %2297 = vmatmul.mubr.msk.bf16.vlgmr.msra.gmra.mxu0 %vm499_vm1, %v2538_v8 }
 0x683   : > { %v1313_v0 = vpop.f32.mrf.mxu1  ;;  %2308 = vmatprep.mubr.msk.bf16.mxu0 %vm2421_vm0, %v2420_v1 }
 0x684   : > { %v1387_v2 = vsel %vm675_vm2, %v1382_v63, 0 }
 0x685   : > { %v2291_v3 = vpop.f32.mrf.mxu1  ;;  %2301 = vmatpush3.bf16.xpose.msra.mxu1 %v1387_v2 }
 0x686   : > { %2312 = vmatprep.subr.bf16.mxu1 %v2420_v1  ;;  %v2110_v3 = vld [vmem:[%s2832_s6 + $0x3] ss:$0 sm:$0xff] }
 0x732   : > { %v2700_v4 = vpop.f32.mrf.mxu0 }
 0x733   : > { %v1180_v60 = vadd.f32 %v2688_v55, %v2700_v4 }
 0x734   : > { %v2268_v6 = vpop.f32.mrf.mxu0 }
 0x735   : > { %v2101_v6 = vld [vmem:[%s2830_s4 + $0x3] ss:$0 sm:$0xff] }
 0x736   : > { %v1136_v9 = vpop.f32.mrf.mxu0 }
 0x738   : > { %v2269_v10 = vpop.f32.mrf.mxu0 }
 0x73a   : > { %v1244_v12 = vpop.f32.mrf.mxu0 }
 0x73b   : > { %v1245_v13 = vadd.f32 %v2070_v11, %v1244_v12 }
 0x73c   : > { %v2282_v14 = vpop.f32.mrf.mxu0 }
 0x73d   : > { %v1250_v15 = vmul.f32 0.35355338, %v1245_v13 }
 0x73e   : > { %v1247_v16 = vpop.f32.mrf.mxu0 }
 0x73f   : > { %v1381_v17 = vpack.c.bf16 %v1250_v15, %v1250_v15 }
 0x740   : > { %v2283_v18 = vpop.f32.mrf.mxu0 }
 0x741   : > { %2303 = vmatmul.mubr.msk.bf16.vlgmr.msra.gmra.mxu1 %vm675_vm2, %v1381_v17  ;;  %v2392_v17 = vld [vmem:[%s2833_s7 + $0x38] sm:$0xff]   ;;  %v2393_v18 = vld [vmem:[%s2833_s7 + $0x30] sm:$0xff]  }
 0x742   : > { %2314 = vmatprep.mubr.msk.bf16.mxu1 %vm2421_vm0, %v2420_v1  ;;  %v1375_v34 = vpop.f32.mrf.mxu0  ;;  %2313 = vmatpush3.bf16.msra.mxu1 %v1496_v42 }
 0x743   : > { %v1376_v35 = vadd.f32 %v2088_v33, %v1375_v34  ;;  %2326 = vmatprep.subr.bf16.mxu1 %v2420_v1 }
 0x744   : > { %v2298_v36 = vpop.f32.mrf.mxu0 }
 0x745   : > { %v1442_v37 = vpack.c.bf16 %v1376_v35, %v1376_v35  ;;  %v2125_v36 = vld [vmem:[%s2835_s9 + $0xc] sm:$0xf] }
 0x746   : > { %v1378_v38 = vpop.f32.mrf.mxu0 }
 0x747   : > { %v1447_v39 = vsel %vm740_vm4, %v1442_v37, 0  ;;  %v1850_v37 = vsel %vm740_vm4, %v2125_v36, 0 }
 0x748   : > { %v2299_v40 = vpop.f32.mrf.mxu0  ;;  %2307 = vmatpush3.bf16.msra.mxu0 %v1447_v39 }
 0x749   : > { %2318 = vmatprep.subr.bf16.mxu0 %v2420_v1 }
 0x801   : > { %v1423_v21 = vpop.f32.mrf.mxu1 }
 0x802   : > { %v1429_v22 = vsel %vm722_vm3, %v1423_v21, -1e+10 }
 0x803   : > { %v2304_v23 = vpop.f32.mrf.mxu1  ;;  %v1430_v24 = vsel %vm675_vm2, %v1429_v22, -inf }
 0x804   : > { %1431 = vmax.xlane.f32.xlu0 %v1430_v24 }
 0x805   : > { %v1426_v25 = vpop.f32.mrf.mxu1 }
 0x807   : > { %v2305_v26 = vpop.f32.mrf.mxu1 }
 0x88d   : > { %v1432_v28 = vpop.xlane.xlu0 %1431 }
 0x88e   : > { %v1433_v29 = vsub.f32 %v1429_v22, %v1432_v28 }
 0x890   : > { %v1434_v30 = vmul.f32 1.442695, %v1433_v29 }
 0x892   : > { %2402 = vpow2.f32 %v1434_v30 }
 0x89f   : > { %v2403_v31 = vpop.eup %2402 }
 0x8a0   : > { %v1436_v32 = vsel %vm675_vm2, %v2403_v31, 0.0 }
 0x8a1   : > { %1437 = vadd.xlane.f32.xlu1 %v1436_v32 }
 0x92a   : > { %v1438_v43 = vpop.xlane.xlu1 %1437 }
 0x92b   : > { %2404 = vrcp.f32 %v1438_v43 }
 0x938   : > { %v2405_v44 = vpop.eup %2404 }
 0x939   : > { %v1440_v45 = vmul.f32 %v2405_v44, %v2403_v31 }
 0x93b   : > { %v1441_v46 = vpack.c.bf16 %v1440_v45, %v1440_v45 }
 0x93d   : > { %2309 = vmatmul.mubr.msk.bf16.vlgmr.msra.gmra.mxu0 %vm675_vm2, %v1441_v46 }
 0x93e   : > { %2322 = vmatprep.mubr.msk.bf16.mxu0 %vm2421_vm0, %v2420_v1  ;;  %2319 = vmatpush3.bf16.msra.mxu0 %v2389_v47 }
 0x93f   : > { %2320 = vmatprep.subr.bf16.mxu0 %v2420_v1 }
 0x942   : > { %2321 = vmatpush3.bf16.msra.mxu0 %v2391_v48  ;;  %v2127_v48 = vld [vmem:[%s2836_s10] ss:$0 sm:$0xff] }
 0x943   : > { %2334 = vmatprep.subr.bf16.mxu0 %v2420_v1 }
 0x945   : > { %2323 = vmatmul.mubr.msk.bf16.vlgmr.msra.gmra.mxu0 %vm499_vm1, %v2536_v7 }
 0x946   : > { %2338 = vmatprep.mubr.msk.bf16.mxu0 %vm2421_vm0, %v2420_v1  ;;  %2335 = vmatpush3.bf16.msra.mxu0 %v2392_v17 }
 0x947   : > { %2336 = vmatprep.subr.bf16.mxu0 %v2420_v1 }
 0x94a   : > { %2337 = vmatpush3.bf16.msra.mxu0 %v2393_v18 }
 0x94b   : > { %2348 = vmatprep.subr.bf16.mxu0 %v2420_v1 }
 0x94d   : > { %2339 = vmatmul.mubr.msk.bf16.vlgmr.msra.gmra.mxu0 %vm499_vm1, %v2538_v8 }
 0x94e   : > { %2350 = vmatprep.mubr.msk.bf16.mxu0 %vm2421_vm0, %v2420_v1 }
 0x9fd   : > { %v1483_v49 = vpop.f32.mrf.mxu0 }
 0x9fe   : > { %v1489_v51 = vpack.c.bf16 %v1483_v49, %v1483_v49 }
 0x9ff   : > { %v2310_v52 = vpop.f32.mrf.mxu0 }
 0xa00   : > { %2315 = vmatmul.mubr.msk.bf16.vlgmr.msra.gmra.mxu1 %vm675_vm2, %v1489_v51 }
 0xa01   : > { %v1486_v53 = vpop.f32.mrf.mxu0  ;;  %2327 = vmatpush3.bf16.msra.mxu1 %v2388_v50  ;;  %2330 = vmatprep.mubr.msk.bf16.mxu1 %vm2421_vm0, %v2420_v1 }
 0xa02   : > { %2328 = vmatprep.subr.bf16.mxu1 %v2420_v1 }
 0xa03   : > { %v2311_v7 = vpop.f32.mrf.mxu0 }
 0xa05   : > { %2329 = vmatpush3.bf16.msra.mxu1 %v2390_v54  ;;  %v1598_v56 = vpop.f32.mrf.mxu0 }
 0xa06   : > { %2342 = vmatprep.subr.bf16.mxu1 %v2420_v1  ;;  %v1599_v11 = vadd.f32 %v2101_v6, %v1598_v56 }
 0xa07   : > { %v2324_v57 = vpop.f32.mrf.mxu0 }
 0xa08   : > { %2331 = vmatmul.mubr.msk.bf16.vlgmr.msra.gmra.mxu1 %vm499_vm1, %v2538_v8  ;;  %v1604_v14 = vmul.f32 0.35355338, %v1599_v11 }
 0xa09   : > { %2344 = vmatprep.mubr.msk.bf16.mxu1 %vm2421_vm0, %v2420_v1  ;;  %v1601_v58 = vpop.f32.mrf.mxu0 }
 0xa0a   : > { %v1735_v16 = vpack.c.bf16 %v1604_v14, %v1604_v14 }
 0xa0b   : > { %v2325_v59 = vpop.f32.mrf.mxu0 }
 0xa0d   : > { %v1729_v27 = vpop.f32.mrf.mxu0 }
 0xa0f   : > { %v2340_v31 = vpop.f32.mrf.mxu0 }
 0xa11   : > { %v1732_v33 = vpop.f32.mrf.mxu0 }
 0xa13   : > { %v2341_v35 = vpop.f32.mrf.mxu0 }
 0xac0   : > { %v1532_v61 = vpop.f32.mrf.mxu1 }
 0xac1   : > { %v2766_v62 = vadd.f32 %v1532_v61, %v1180_v60 }
 0xac2   : > { %v2316_v63 = vpop.f32.mrf.mxu1 }
 0xac4   : > { %v1535_v0 = vpop.f32.mrf.mxu1 }
 0xac6   : > { %v2317_v2 = vpop.f32.mrf.mxu1 }
 0xac8   : > { %v1664_v9 = vpop.f32.mrf.mxu1 }
 0xac9   : > { %v1665_v10 = vadd.f32 %v2110_v3, %v1664_v9  ;;  %v2129_v3 = vld [vmem:[%s2838_s12] ss:$0 sm:$0xff] }
 0xaca   : > { %v2332_v12 = vpop.f32.mrf.mxu1 }
 0xacb   : > { %v1736_v13 = vpack.c.bf16 %v1665_v10, %v1665_v10 }
 0xacc   : > { %v1667_v55 = vpop.f32.mrf.mxu1 }
 0xacd   : > { %v1741_v4 = vsel %vm675_vm2, %v1736_v13, 0 }
 0xace   : > { %v2333_v15 = vpop.f32.mrf.mxu1  ;;  %2343 = vmatpush3.bf16.xpose.msra.mxu1 %v1741_v4 }
 0xacf   : > { %2354 = vmatprep.subr.bf16.mxu1 %v2420_v1 }
 0xad5   : > { %2345 = vmatmul.mubr.msk.bf16.vlgmr.msra.gmra.mxu1 %vm675_vm2, %v1735_v16 }
 0xad6   : > { %2356 = vmatprep.mubr.msk.bf16.mxu1 %vm2421_vm0, %v2420_v1  ;;  %v2119_v1 = vld [vmem:[%s2834_s8 + $0x3] ss:$0 sm:$0xff]  ;;  %2355 = vmatpush3.bf16.msra.mxu1 %v1850_v37 }
 0xad7   : > { %v1730_v30 = vadd.f32 %v2119_v1, %v1729_v27 }
 0xad9   : > { %v1796_v32 = vpack.c.bf16 %v1730_v30, %v1730_v30 }
 0xadb   : > { %v1801_v34 = vsel %vm740_vm4, %v1796_v32, 0 }
 0xadc   : > { %2349 = vmatpush3.bf16.msra.mxu0 %v1801_v34 }
 0xb95   : > { %v1777_v19 = vpop.f32.mrf.mxu1 }
 0xb96   : > { %v1783_v20 = vsel %vm722_vm3, %v1777_v19, -1e+10 }
 0xb97   : > { %v2346_v21 = vpop.f32.mrf.mxu1  ;;  %v1784_v22 = vsel %vm675_vm2, %v1783_v20, -inf }
 0xb98   : > { %1785 = vmax.xlane.f32.xlu0 %v1784_v22 }
 0xb99   : > { %v1780_v23 = vpop.f32.mrf.mxu1 }
 0xb9b   : > { %v2347_v24 = vpop.f32.mrf.mxu1 }
 0xc21   : > { %v1786_v25 = vpop.xlane.xlu0 %1785 }
 0xc22   : > { %v1787_v26 = vsub.f32 %v1783_v20, %v1786_v25 }
 0xc24   : > { %v1788_v28 = vmul.f32 1.442695, %v1787_v26 }
 0xc26   : > { %2406 = vpow2.f32 %v1788_v28 }
 0xc33   : > { %v2407_v29 = vpop.eup %2406 }
 0xc34   : > { %v1790_v8 = vsel %vm675_vm2, %v2407_v29, 0.0 }
 0xc35   : > { %1791 = vadd.xlane.f32.xlu1 %v1790_v8 }
 0xcbe   : > { %v1792_v38 = vpop.xlane.xlu1 %1791 }
 0xcbf   : > { %2408 = vrcp.f32 %v1792_v38 }
 0xccc   : > { %v2409_v39 = vpop.eup %2408 }
 0xccd   : > { %v1794_v40 = vmul.f32 %v2409_v39, %v2407_v29 }
 0xccf   : > { %v1795_v41 = vpack.c.bf16 %v1794_v40, %v1794_v40 }
 0xcd1   : > { %2351 = vmatmul.mubr.msk.bf16.vlgmr.msra.gmra.mxu0 %vm675_vm2, %v1795_v41 }
 0xd91   : > { %v1837_v42 = vpop.f32.mrf.mxu0 }
 0xd92   : > { %v1843_v43 = vpack.c.bf16 %v1837_v42, %v1837_v42 }
 0xd93   : > { %v2352_v44 = vpop.f32.mrf.mxu0 }
 0xd94   : > { %2357 = vmatmul.mubr.msk.bf16.vlgmr.msra.gmra.mxu1 %vm675_vm2, %v1843_v43 }
 0xd95   : > { %v1840_v45 = vpop.f32.mrf.mxu0 }
 0xd97   : > { %v2353_v46 = vpop.f32.mrf.mxu0 }
 0xe54   : > { %v1886_v47 = vpop.f32.mrf.mxu1 }
 0xe55   : > { %v1892_v49 = vadd.f32 %v1886_v47, %v2766_v62 }
 0xe56   : > { %v2358_v50 = vpop.f32.mrf.mxu1 }
 0xe57   : > { %v1900_v51 = vadd.f32 %v2127_v48, %v1892_v49 }
 0xe58   : > { %v1889_v52 = vpop.f32.mrf.mxu1 }
 0xe59   : > { %v1901_v53 = vadd.f32 %v1900_v51, %v2531_v5  ;;  %v2128_v5 = vld [vmem:[%s2837_s11] ss:$0 sm:$0xff] }
 0xe5a   : > { %v2359_v54 = vpop.f32.mrf.mxu1 }
 0xe5b   : > { %v1902_v7 = vsel %vm499_vm1, %v1901_v53, 0.0 }
 0xe5c   : > { %1903 = vadd.xlane.f32.xlu0 %v1902_v7 }
 0xee5   : > { %v1904_v56 = vpop.xlane.xlu0 %1903 }
 0xee6   : > { %v1906_v57 = vmul.f32 0.03125, %v1904_v56 }
 0xee8   : > { %v1907_v58 = vsub.f32 %v1901_v53, %v1906_v57 }
 0xeea   : > { %v1908_v59 = vmul.f32 %v1907_v58, %v1907_v58 }
 0xeec   : > { %v1909_v60 = vsel %vm499_vm1, %v1908_v59, 0.0 }
 0xeed   : > { %1910 = vadd.xlane.f32.xlu1 %v1909_v60 }
 0xf76   : > { %v1911_v61 = vpop.xlane.xlu1 %1910 }
 0xf77   : > { %v1912_v63 = vmul.f32 0.03125, %v1911_v61 }
 0xf79   : > { %v1913_v62 = vadd.f32 1e-05, %v1912_v63 }
 0xf7b   : > { %2410 = vrsqrt.f32 %v1913_v62 }
 0xf88   : > { %v2411_v0 = vpop.eup %2410 }
 0xf89   : > { %v1915_v2 = vmul.f32 %v2411_v0, %v1907_v58 }
 0xf8b   : > { %v1923_v6 = vmul.f32 %v2128_v5, %v1915_v2 }
 0xf8d   : > { %v1931_v9 = vadd.f32 %v2129_v3, %v1923_v6 }
 0xf8f   : > { %1932 = vst.msk [vmem:[%s469_s17] sm:$0xff] %vm499_vm1, %v1931_v9 }
 0xf90 PF: > { %s23_s25 = sadd.s32 1, %s2418_s25  }
 0xf91   : > { %p20_p4 = scmp.ge.s32.totalorder %s23_s25, 4  }
 0xf93   :  { %22 = sbr.rel (!%p20_p4) target bundleno = 1 (0x1), region = 129 }

// kernel: transformer_forward.17
= control target key start
LH: loop header
LB: loop body
LE: loop exit
PB: predicated region body
PF: predicated region fallthrough
CT: control target
= control target key end

     0   :  { %v291_v0 = vmov 0.0   ;;  %vm292_vm0 = vmmov 0   ;;  %vm53_vm1 = vcmask 261120   ;;  %vm140_vm2 = vcmask 523264   ;;  %s382_s1 = inlined_call_operand.vmem [shape: bf16[32,64], index: 1, kind: input, shape index: {}]   ;;  %s383_s0 = inlined_call_operand.vmem [shape: f32[12,32], index: 0, kind: input, shape index: {}]   ;;  %s384_s3 = inlined_call_operand.vmem [shape: bf16[64,32], index: 3, kind: input, shape index: {}]   ;;  %s385_s2 = inlined_call_operand.vmem [shape: f32[1,64], index: 2, kind: input, shape index: {}]   ;;  %s386_s4 = inlined_call_operand.vmem [shape: f32[1,32], index: 4, kind: input, shape index: {}]   ;;  %s387_s5 = inlined_call_operand.vmem [shape: f32[1,32], index: 5, kind: input, shape index: {}]   ;;  %s388_s6 = inlined_call_operand.vmem [shape: f32[1,32], index: 6, kind: input, shape index: {}]   ;;  %s389_s7 = inlined_call_operand.vmem [shape: f32[12,32], index: 7, kind: output, shape index: {}]  }
   0x1   :  { %259 = vmatprep.subr.bf16.mxu0 %v291_v0  ;;  %v281_v1 = vld [vmem:[%s382_s1 + $0x8] sm:$0xff]   ;;  %263 = vmatprep.mubr.msk.bf16.mxu0 %vm292_vm0, %v291_v0  ;;  %v282_v2 = vld [vmem:[%s382_s1] sm:$0xff]   ;;  %v283_v5 = vld [vmem:[%s384_s3 + $0x18] sm:$0xff]   ;;  %vm190_vm3 = vcmask 257024  }
   0x2   :  { %267 = vmatprep.subr.bf16.mxu1 %v291_v0  ;;  %275 = vmatprep.mubr.msk.bf16.mxu1 %vm292_vm0, %v291_v0  ;;  %v27_v3 = vld [vmem:[%s383_s0] sm:$0xff]  ;;  %v28_v4 = vld [vmem:[%s383_s0 + $0x8] sm:$0xf]  ;;  %v284_v7 = vld [vmem:[%s384_s3 + $0x10] sm:$0xff]  }
   0x3   :  { %260 = vmatpush3.bf16.msra.mxu0 %v281_v1  ;;  %v29_v6 = vpack.c.bf16 %v28_v4, %v27_v3  ;;  %268 = vmatpush3.bf16.msra.mxu1 %v283_v5  ;;  %v285_v8 = vld [vmem:[%s384_s3 + $0x8] sm:$0xff]   ;;  %v286_v9 = vld [vmem:[%s384_s3] sm:$0xff]  }
   0x4   :  { %261 = vmatprep.subr.bf16.mxu0 %v291_v0  ;;  %269 = vmatprep.subr.bf16.mxu1 %v291_v0  ;;  %v239_v10 = vld [vmem:[%s385_s2] ss:$0 sm:$0xff] }
   0x5   :  { %v243_v20 = vld [vmem:[%s386_s4] ss:$0 sm:$0xff] }
   0x6   :  { %v249_v48 = vld [vmem:[%s387_s5] ss:$0 sm:$0xff] }
   0x7   :  { %262 = vmatpush3.bf16.msra.mxu0 %v282_v2  ;;  %270 = vmatpush3.bf16.msra.mxu1 %v284_v7  ;;  %v250_v50 = vld [vmem:[%s388_s6] ss:$0 sm:$0xff] }
   0x8   :  { %271 = vmatprep.subr.bf16.mxu1 %v291_v0 }
   0xa   :  { %264 = vmatmul.mubr.msk.bf16.vlgmr.msra.gmra.mxu0 %vm53_vm1, %v29_v6 }
   0xb   :  { %272 = vmatpush3.bf16.msra.mxu1 %v285_v8 }
   0xc   :  { %273 = vmatprep.subr.bf16.mxu1 %v291_v0 }
   0xf   :  { %274 = vmatpush3.bf16.msra.mxu1 %v286_v9 }
  0xca   :  { %v91_v11 = vpop.f32.mrf.mxu0 }
  0xcb   :  { %v92_v13 = vadd.f32 %v239_v10, %v91_v11 }
  0xcc   :  { %v265_v12 = vpop.f32.mrf.mxu0 }
  0xcd   :  { %v98_v17 = vmax.f32 %v92_v13, 0.0 }
  0xce   :  { %v94_v14 = vpop.f32.mrf.mxu0 }
  0xcf   :  { %v95_v15 = vadd.f32 %v239_v10, %v94_v14 }
  0xd0   :  { %v266_v16 = vpop.f32.mrf.mxu0 }
  0xd1   :  { %v99_v18 = vmax.f32 %v95_v15, 0.0 }
  0xd3   :  { %v100_v19 = vpack.c.bf16 %v99_v18, %v98_v17 }
  0xd5   :  { %276 = vmatmul.mubr.msk.bf16.vlgmr.msra.gmra.mxu1 %vm140_vm2, %v100_v19 }
 0x195   :  { %v178_v21 = vpop.f32.mrf.mxu1 }
 0x196   :  { %v179_v22 = vadd.f32 %v243_v20, %v178_v21 }
 0x197   :  { %v277_v23 = vpop.f32.mrf.mxu1 }
 0x198   :  { %v185_v24 = vadd.f32 %v179_v22, %v27_v3 }
 0x199   :  { %v181_v25 = vpop.f32.mrf.mxu1 }
 0x19a   :  { %v182_v26 = vadd.f32 %v243_v20, %v181_v25  ;;  %v187_v27 = vsel %vm53_vm1, %v185_v24, 0.0 }
 0x19b   :  { %188 = vadd.xlane.f32.xlu0 %v187_v27  ;;  %v278_v28 = vpop.f32.mrf.mxu1 }
 0x19c   :  { %v186_v29 = vadd.f32 %v182_v26, %v28_v4 }
 0x19e   :  { %v191_v30 = vsel %vm190_vm3, %v186_v29, 0.0 }
 0x19f   :  { %192 = vadd.xlane.f32.xlu0 %v191_v30 }
 0x224   :  { %v189_v31 = vpop.xlane.xlu0 %188 }
 0x225   :  { %v195_v32 = vmul.f32 0.03125, %v189_v31 }
 0x227   :  { %v197_v33 = vsub.f32 %v185_v24, %v195_v32 }
 0x228   :  { %v193_v34 = vpop.xlane.xlu0 %192 }
 0x229   :  { %v196_v35 = vmul.f32 0.03125, %v193_v34  ;;  %v199_v36 = vmul.f32 %v197_v33, %v197_v33 }
 0x22b   :  { %v198_v37 = vsub.f32 %v186_v29, %v196_v35  ;;  %v201_v38 = vsel %vm53_vm1, %v199_v36, 0.0 }
 0x22c   :  { %202 = vadd.xlane.f32.xlu1 %v201_v38 }
 0x22d   :  { %v200_v39 = vmul.f32 %v198_v37, %v198_v37 }
 0x22f   :  { %v204_v40 = vsel %vm190_vm3, %v200_v39, 0.0 }
 0x230   :  { %205 = vadd.xlane.f32.xlu1 %v204_v40 }
 0x2b5   :  { %v203_v41 = vpop.xlane.xlu1 %202 }
 0x2b6   :  { %v207_v42 = vmul.f32 0.03125, %v203_v41 }
 0x2b8   :  { %v209_v43 = vadd.f32 1e-05, %v207_v42 }
 0x2b9   :  { %v206_v44 = vpop.xlane.xlu1 %205 }
 0x2ba   :  { %287 = vrsqrt.f32 %v209_v43  ;;  %v208_v45 = vmul.f32 0.03125, %v206_v44 }
 0x2bc   :  { %v210_v46 = vadd.f32 1e-05, %v208_v45 }
 0x2be   :  { %289 = vrsqrt.f32 %v210_v46 }
 0x2c7   :  { %v288_v47 = vpop.eup %287 }
 0x2c8   :  { %v213_v49 = vmul.f32 %v288_v47, %v197_v33 }
 0x2ca   :  { %v222_v51 = vmul.f32 %v249_v48, %v213_v49 }
 0x2cb   :  { %v290_v52 = vpop.eup %289 }
 0x2cc   :  { %v231_v53 = vadd.f32 %v250_v50, %v222_v51  ;;  %v214_v54 = vmul.f32 %v290_v52, %v198_v37 }
 0x2ce   :  { %233 = vst.msk [vmem:[%s389_s7] sm:$0xff] %vm53_vm1, %v231_v53  ;;  %v223_v55 = vmul.f32 %v249_v48, %v214_v54 }
 0x2d0   :  { %v232_v56 = vadd.f32 %v250_v50, %v223_v55 }
 0x2d2   :  { %234 = vst.msk [vmem:[%s389_s7 + $0x8] sm:$0xf] %vm190_vm3, %v232_v56 }

// kernel: transformer_forward.15
= control target key start
LH: loop header
LB: loop body
LE: loop exit
PB: predicated region body
PF: predicated region fallthrough
CT: control target
= control target key end

     0   :  { %s2496_s25 = smov 0   ;;  %s2830_s0 = inlined_call_operand.vmem [shape: f32[2,6,32], index: 0, kind: input, shape index: {}, may-alias: {0,1}]   ;;  %s2831_s1 = inlined_call_operand.vmem [shape: f32[2,6,32], index: 1, kind: input, shape index: {}, may-alias: {0,1}]   ;;  %s2832_s2 = inlined_call_operand.vmem [shape: f32[2,6,6], index: 2, kind: input, shape index: {}]   ;;  %s2833_s3 = inlined_call_operand.vmem [shape: bf16[4,32,8], index: 3, kind: input, shape index: {}]   ;;  %s2834_s4 = inlined_call_operand.vmem [shape: f32[4,1,8], index: 4, kind: input, shape index: {}]   ;;  %s2835_s5 = inlined_call_operand.vmem [shape: bf16[4,32,8], index: 5, kind: input, shape index: {}]   ;;  %s2836_s6 = inlined_call_operand.vmem [shape: f32[4,1,8], index: 6, kind: input, shape index: {}]   ;;  %s2837_s7 = inlined_call_operand.vmem [shape: bf16[4,32,8], index: 7, kind: input, shape index: {}]   ;;  %s2838_s8 = inlined_call_operand.vmem [shape: f32[4,1,8], index: 8, kind: input, shape index: {}]   ;;  %s2839_s9 = inlined_call_operand.vmem [shape: bf16[4,8,32], index: 9, kind: input, shape index: {}]   ;;  %s2840_s10 = inlined_call_operand.vmem [shape: f32[1,32], index: 10, kind: input, shape index: {}]   ;;  %s2841_s11 = inlined_call_operand.vmem [shape: f32[1,32], index: 11, kind: input, shape index: {}]   ;;  %s2842_s12 = inlined_call_operand.vmem [shape: f32[1,32], index: 12, kind: input, shape index: {}]   ;;  %s2843_s13 = inlined_call_operand.vmem [shape: f32[2,6,32], index: 13, kind: output, shape index: {}]  }
   0x1 LB: > { %s2014_s26 = sadd.s32 4294967295, %s2422_s25   ;;  %p2018_p0 = scmp.ge.s32.totalorder %s2422_s25, 1  ;;  %s2422_s25 = sphi %s2496_s25, %s23_s25  }
   0x2   : > { %p404_p1 = scmp.lt.s32.totalorder %s2422_s25, 3 }
   0x4   : > { %p405_p2 = pnand %p2018_p0, %p404_p1 }
   0x5   : > { %p454_p3 = scmp.lt.s32.totalorder (!%p405_p2), %s2014_s26, 1 }
   0x6   : > { %408 = sbr.rel (%p405_p2) target bundleno = 3984 (0xf90), region = 72 }
   0xb   : > { %v2374_v0 = vld [vmem:[%s2833_s3 + $0x8] sm:$0xff]   ;;  %v2424_v1 = vmov 0.0   ;;  %v2376_v3 = vld [vmem:[%s2833_s3] sm:$0xff]   ;;  %vm2425_vm0 = vmmov 0   ;;  %s2845_s26 = smov (!%p454_p3, %s2014_s26), 1  ;;  %vm499_vm1 = vcmask 261120  }
   0xc   : > { %2196 = vmatprep.subr.bf16.mxu0 %v2424_v1  ;;  %2204 = vmatprep.subr.bf16.mxu1 %v2424_v1  ;;  %v2375_v2 = vld [vmem:[%s2835_s5 + $0x8] sm:$0xff]   ;;  %v2377_v4 = vld [vmem:[%s2835_s5] sm:$0xff]   ;;  %s2524_s18 = sshll.u32 %s2845_s26, 3  ;;  %vm675_vm2 = vcmask 64512   ;;  %vm724_vm4 = vcmask 46080   ;;  %vm742_vm5 = vcmask 1042432  }
   0xd   : > { %2197 = vmatpush3.bf16.msra.mxu0 %v2374_v0  ;;  %2200 = vmatprep.mubr.msk.bf16.mxu0 %vm2425_vm0, %v2424_v1  ;;  %s457_s21 = scalar_lea.vmem %s2830_s0, %s2524_s18  ;;  %s461_s24 = scalar_lea.vmem %s2831_s1, %s2524_s18  ;;  %v2023_v9 = vld [vmem:[%s2834_s4] ss:$0 sm:$0xff]  ;;  %v2378_v25 = vld [vmem:[%s2837_s7 + $0x8] sm:$0xff]   ;;  %v2380_v47 = vld [vmem:[%s2833_s3 + $0x18] sm:$0xff]   ;;  %vm738_vm6 = vcmask 48128   ;;  %vm1098_vm7 = vcmask 1043456  }
   0xe   : > { %2205 = vmatpush3.bf16.msra.mxu1 %v2375_v2  ;;  %2198 = vmatprep.subr.bf16.mxu0 %v2424_v1  ;;  %v2535_v5 = vld [vmem:[%s457_s21] sm:$0x3f]  ;;  %s465_s20 = scalar_lea.vmem %s2832_s2, %s2524_s18  ;;  %v2382_v48 = vld [vmem:[%s2833_s3 + $0x10] sm:$0xff]   ;;  %v2381_v52 = vld [vmem:[%s2835_s5 + $0x18] sm:$0xff]   ;;  %vm1905_vm8 = vcmask 259072   ;;  %s469_s17 = scalar_lea.vmem %s2843_s13, %s2524_s18 }
   0xf   : > { %2206 = vmatprep.subr.bf16.mxu1 %v2424_v1  ;;  %2208 = vmatprep.mubr.msk.bf16.mxu1 %vm2425_vm0, %v2424_v1  ;;  %v472_v6 = vld [vmem:[%s461_s24] sm:$0x3f]  ;;  %v2540_v7 = vpack.c.bf16 %v2535_v5, %v2535_v5  ;;  %v2383_v54 = vld [vmem:[%s2835_s5 + $0x10] sm:$0xff]  }
  0x10   : > { %v2542_v8 = vpack.c.bf16 %v472_v6, %v472_v6  ;;  %v2027_v10 = vld [vmem:[%s2836_s6] ss:$0 sm:$0xff]  ;;  %v2042_v63 = vld [vmem:[%s2834_s4 + $0x1] ss:$0 sm:$0xff] }
  0x11   : > { %2199 = vmatpush3.bf16.msra.mxu0 %v2376_v3  ;;  %v2379_v26 = vld [vmem:[%s2837_s7] sm:$0xff]  }
  0x12   : > { %2207 = vmatpush3.bf16.msra.mxu1 %v2377_v4  ;;  %2212 = vmatprep.subr.bf16.mxu0 %v2424_v1  ;;  %v2579_v27 = vld [vmem:[%s465_s20] sm:$0x3f] }
  0x13   : > { %2220 = vmatprep.subr.bf16.mxu1 %v2424_v1  ;;  %vm722_vm3 = vcmp.gt.f32.partialorder %v2579_v27, 0.0  ;;  %v2031_v39 = vld [vmem:[%s2838_s8] ss:$0 sm:$0xff]  ;;  %v2051_v0 = vld [vmem:[%s2836_s6 + $0x1] ss:$0 sm:$0xff] }
  0x14   : > { %2201 = vmatmul.mubr.msk.bf16.vlgmr.msra.gmra.mxu0 %vm499_vm1, %v2540_v7 }
  0x15   : > { %2209 = vmatmul.mubr.msk.bf16.vlgmr.msra.gmra.mxu1 %vm499_vm1, %v2542_v8  ;;  %2216 = vmatprep.mubr.msk.bf16.mxu0 %vm2425_vm0, %v2424_v1 }
  0x16   : > { %2222 = vmatprep.mubr.msk.bf16.mxu1 %vm2425_vm0, %v2424_v1  ;;  %2213 = vmatpush3.bf16.msra.mxu0 %v2378_v25 }
  0x17   : > { %2214 = vmatprep.subr.bf16.mxu0 %v2424_v1 }
  0x1a   : > { %2215 = vmatpush3.bf16.msra.mxu0 %v2379_v26 }
  0x1b   : > { %2226 = vmatprep.subr.bf16.mxu0 %v2424_v1 }
  0x1d   : > { %2217 = vmatmul.mubr.msk.bf16.vlgmr.msra.gmra.mxu0 %vm499_vm1, %v2542_v8 }
  0x1e   : > { %2228 = vmatprep.mubr.msk.bf16.mxu0 %vm2425_vm0, %v2424_v1 }
  0xd4   : > { %v537_v11 = vpop.f32.mrf.mxu0 }
  0xd5   : > { %v604_v12 = vpop.f32.mrf.mxu1  ;;  %v538_v13 = vadd.f32 %v2023_v9, %v537_v11 }
  0xd6   : > { %v605_v14 = vadd.f32 %v2027_v10, %v604_v12  ;;  %v2202_v15 = vpop.f32.mrf.mxu0 }
  0xd7   : > { %v2210_v16 = vpop.f32.mrf.mxu1  ;;  %v543_v20 = vmul.f32 0.35355338, %v538_v13  ;;  %v2384_v15 = vld [vmem:[%s2837_s7 + $0x18] sm:$0xff]  }
  0xd8   : > { %v674_v17 = vpack.c.bf16 %v605_v14, %v605_v14  ;;  %v540_v18 = vpop.f32.mrf.mxu0  ;;  %v2385_v16 = vld [vmem:[%s2837_s7 + $0x10] sm:$0xff]  }
  0xd9   : > { %v607_v19 = vpop.f32.mrf.mxu1  ;;  %v673_v24 = vpack.c.bf16 %v543_v20, %v543_v20 }
  0xda   : > { %v680_v21 = vsel %vm675_vm2, %v674_v17, 0  ;;  %v2203_v22 = vpop.f32.mrf.mxu0 }
  0xdb   : > { %v2211_v23 = vpop.f32.mrf.mxu1  ;;  %2221 = vmatpush3.bf16.xpose.msra.mxu1 %v680_v21 }
  0xdc   : > { %2232 = vmatprep.subr.bf16.mxu1 %v2424_v1  ;;  %v2060_v23 = vld [vmem:[%s2838_s8 + $0x1] ss:$0 sm:$0xff] }
  0xdd   : > { %v667_v40 = vpop.f32.mrf.mxu0 }
  0xde   : > { %v668_v41 = vadd.f32 %v2031_v39, %v667_v40 }
  0xdf   : > { %v2218_v42 = vpop.f32.mrf.mxu0 }
  0xe0   : > { %v737_v43 = vpack.c.bf16 %v668_v41, %v668_v41  ;;  %v787_v41 = vld [vmem:[%s2839_s9] sm:$0xf] }
  0xe1   : > { %v670_v44 = vpop.f32.mrf.mxu0 }
  0xe2   : > { %2223 = vmatmul.mubr.msk.bf16.vlgmr.msra.gmra.mxu1 %vm675_vm2, %v673_v24  ;;  %v744_v45 = vsel %vm742_vm5, %v737_v43, 0  ;;  %v1146_v44 = vsel %vm1098_vm7, %v787_v41, 0  ;;  %v2098_v41 = vld [vmem:[%s2839_s9 + $0x8] sm:$0xf] }
  0xe3   : > { %2236 = vmatprep.mubr.msk.bf16.mxu1 %vm2425_vm0, %v2424_v1  ;;  %v2219_v46 = vpop.f32.mrf.mxu0  ;;  %2227 = vmatpush3.bf16.msra.mxu0 %v744_v45  ;;  %v2386_v45 = vld [vmem:[%s2835_s5 + $0x28] sm:$0xff]  }
  0xe4   : > { %2240 = vmatprep.subr.bf16.mxu0 %v2424_v1  ;;  %2233 = vmatpush3.bf16.msra.mxu1 %v2380_v47  ;;  %v2387_v47 = vld [vmem:[%s2835_s5 + $0x20] sm:$0xff]  }
  0xe5   : > { %2234 = vmatprep.subr.bf16.mxu1 %v2424_v1 }
  0xe8   : > { %2235 = vmatpush3.bf16.msra.mxu1 %v2382_v48 }
  0xe9   : > { %2248 = vmatprep.subr.bf16.mxu1 %v2424_v1 }
  0xeb   : > { %2237 = vmatmul.mubr.msk.bf16.vlgmr.msra.gmra.mxu1 %vm499_vm1, %v2540_v7 }
  0xec   : > { %2252 = vmatprep.mubr.msk.bf16.mxu1 %vm2425_vm0, %v2424_v1  ;;  %2249 = vmatpush3.bf16.msra.mxu1 %v2384_v15 }
  0xed   : > { %2250 = vmatprep.subr.bf16.mxu1 %v2424_v1 }
  0xf0   : > { %2251 = vmatpush3.bf16.msra.mxu1 %v2385_v16 }
  0xf1   : > { %2262 = vmatprep.subr.bf16.mxu1 %v2424_v1 }
  0xf3   : > { %2253 = vmatmul.mubr.msk.bf16.vlgmr.msra.gmra.mxu1 %vm499_vm1, %v2542_v8 }
  0xf4   : > { %2264 = vmatprep.mubr.msk.bf16.mxu1 %vm2425_vm0, %v2424_v1 }
 0x1a2   : > { %v716_v28 = vpop.f32.mrf.mxu1 }
 0x1a3   : > { %v723_v29 = vsel %vm722_vm3, %v716_v28, -1e+10 }
 0x1a4   : > { %v2224_v30 = vpop.f32.mrf.mxu1  ;;  %v725_v31 = vsel %vm724_vm4, %v723_v29, -inf }
 0x1a5   : > { %726 = vmax.xlane.f32.xlu0 %v725_v31 }
 0x1a6   : > { %v719_v32 = vpop.f32.mrf.mxu1 }
 0x1a8   : > { %v2225_v33 = vpop.f32.mrf.mxu1 }
 0x1ab   : > { %v847_v55 = vpop.f32.mrf.mxu1 }
 0x1ac   : > { %v848_v3 = vadd.f32 %v2042_v63, %v847_v55 }
 0x1ad   : > { %v2238_v56 = vpop.f32.mrf.mxu1 }
 0x1ae   : > { %v853_v11 = vmul.f32 0.35355338, %v848_v3 }
 0x1af   : > { %v850_v57 = vpop.f32.mrf.mxu1 }
 0x1b0   : > { %v984_v14 = vpack.c.bf16 %v853_v11, %v853_v11  ;;  %v2074_v11 = vld [vmem:[%s2834_s4 + $0x2] ss:$0 sm:$0xff] }
 0x1b1   : > { %v2239_v58 = vpop.f32.mrf.mxu1 }
 0x1b3   : > { %v978_v24 = vpop.f32.mrf.mxu1 }
 0x1b4   : > { %v979_v25 = vadd.f32 %v2060_v23, %v978_v24 }
 0x1b5   : > { %v2254_v26 = vpop.f32.mrf.mxu1 }
 0x1b6   : > { %v1045_v28 = vpack.c.bf16 %v979_v25, %v979_v25 }
 0x1b8   : > { %v1050_v30 = vsel %vm742_vm5, %v1045_v28, 0 }
 0x1b9   : > { %2263 = vmatpush3.bf16.msra.mxu1 %v1050_v30 }
 0x1ba   : > { %2274 = vmatprep.subr.bf16.mxu1 %v2424_v1 }
 0x22e   : > { %v727_v34 = vpop.xlane.xlu0 %726 }
 0x22f   : > { %v728_v35 = vsub.f32 %v723_v29, %v727_v34  ;;  %v981_v29 = vpop.f32.mrf.mxu1 }
 0x231   : > { %v729_v36 = vmul.f32 1.442695, %v728_v35  ;;  %v2255_v31 = vpop.f32.mrf.mxu1 }
 0x233   : > { %2398 = vpow2.f32 %v729_v36 }
 0x240   : > { %v2399_v37 = vpop.eup %2398 }
 0x241   : > { %v731_v38 = vsel %vm724_vm4, %v2399_v37, 0.0 }
 0x242   : > { %732 = vadd.xlane.f32.xlu0 %v731_v38 }
 0x2cb   : > { %v733_v49 = vpop.xlane.xlu0 %732 }
 0x2cc   : > { %2400 = vrcp.f32 %v733_v49  ;;  %v2388_v49 = vld [vmem:[%s2833_s3 + $0x28] sm:$0xff]  }
 0x2d9   : > { %v2401_v50 = vpop.eup %2400 }
 0x2da   : > { %v735_v51 = vmul.f32 %v2401_v50, %v2399_v37  ;;  %v2066_v37 = vld [vmem:[%s2839_s9 + $0x4] sm:$0xf] }
 0x2db   : > { %v1100_v38 = vsel %vm1098_vm7, %v2066_v37, 0 }
 0x2dc   : > { %v736_v53 = vpack.c.bf16 %v735_v51, %v735_v51 }
 0x2de   : > { %2229 = vmatmul.mubr.msk.bf16.vlgmr.msra.gmra.mxu0 %vm738_vm6, %v736_v53  ;;  %v2389_v53 = vld [vmem:[%s2833_s3 + $0x20] sm:$0xff]  }
 0x2df   : > { %2241 = vmatpush3.bf16.msra.mxu0 %v2381_v52  ;;  %2244 = vmatprep.mubr.msk.bf16.mxu0 %vm2425_vm0, %v2424_v1 }
 0x2e0   : > { %2242 = vmatprep.subr.bf16.mxu0 %v2424_v1 }
 0x2e3   : > { %2243 = vmatpush3.bf16.msra.mxu0 %v2383_v54 }
 0x2e4   : > { %2256 = vmatprep.subr.bf16.mxu0 %v2424_v1 }
 0x2e6   : > { %2245 = vmatmul.mubr.msk.bf16.vlgmr.msra.gmra.mxu0 %vm499_vm1, %v2542_v8 }
 0x2e7   : > { %2258 = vmatprep.mubr.msk.bf16.mxu0 %vm2425_vm0, %v2424_v1 }
 0x39e   : > { %v2618_v59 = vpop.f32.mrf.mxu0 }
 0x39f   : > { %v786_v46 = vpack.c.bf16 %v2618_v59, %v2618_v59  ;;  %v2083_v59 = vld [vmem:[%s2836_s6 + $0x2] ss:$0 sm:$0xff] }
 0x3a0   : > { %v2230_v60 = vpop.f32.mrf.mxu0 }
 0x3a2   : > { %v783_v61 = vpop.f32.mrf.mxu0 }
 0x3a4   : > { %v2231_v62 = vpop.f32.mrf.mxu0 }
 0x3a6   : > { %v913_v2 = vpop.f32.mrf.mxu0 }
 0x3a7   : > { %v914_v4 = vadd.f32 %v2051_v0, %v913_v2 }
 0x3a8   : > { %v2246_v6 = vpop.f32.mrf.mxu0 }
 0x3a9   : > { %v985_v9 = vpack.c.bf16 %v914_v4, %v914_v4 }
 0x3aa   : > { %v916_v10 = vpop.f32.mrf.mxu0 }
 0x3ab   : > { %v990_v12 = vsel %vm675_vm2, %v985_v9, 0 }
 0x3ac   : > { %v2247_v13 = vpop.f32.mrf.mxu0  ;;  %2257 = vmatpush3.bf16.xpose.msra.mxu0 %v990_v12 }
 0x3ad   : > { %2268 = vmatprep.subr.bf16.mxu0 %v2424_v1 }
 0x3b3   : > { %2259 = vmatmul.mubr.msk.bf16.vlgmr.msra.gmra.mxu0 %vm675_vm2, %v984_v14 }
 0x3b4   : > { %2270 = vmatprep.mubr.msk.bf16.mxu0 %vm2425_vm0, %v2424_v1  ;;  %2269 = vmatpush3.bf16.msra.mxu0 %v1100_v38 }
 0x3b5   : > { %2280 = vmatprep.subr.bf16.mxu0 %v2424_v1 }
 0x473   : > { %v1026_v17 = vpop.f32.mrf.mxu0 }
 0x474   : > { %v1032_v18 = vsel %vm722_vm3, %v1026_v17, -1e+10 }
 0x475   : > { %v2260_v19 = vpop.f32.mrf.mxu0  ;;  %v1033_v20 = vsel %vm724_vm4, %v1032_v18, -inf }
 0x476   : > { %1034 = vmax.xlane.f32.xlu1 %v1033_v20  ;;  %v2390_v19 = vld [vmem:[%s2837_s7 + $0x28] sm:$0xff]   ;;  %v2391_v20 = vld [vmem:[%s2837_s7 + $0x20] sm:$0xff]  }
 0x477   : > { %v1029_v21 = vpop.f32.mrf.mxu0 }
 0x479   : > { %v2261_v22 = vpop.f32.mrf.mxu0 }
 0x4ff   : > { %v1035_v32 = vpop.xlane.xlu1 %1034 }
 0x500   : > { %v1036_v33 = vsub.f32 %v1032_v18, %v1035_v32 }
 0x502   : > { %v1037_v34 = vmul.f32 1.442695, %v1036_v33  ;;  %v2092_v33 = vld [vmem:[%s2838_s8 + $0x2] ss:$0 sm:$0xff] }
 0x504   : > { %2402 = vpow2.f32 %v1037_v34 }
 0x511   : > { %v2403_v35 = vpop.eup %2402 }
 0x512   : > { %v1039_v36 = vsel %vm724_vm4, %v2403_v35, 0.0 }
 0x513   : > { %1040 = vadd.xlane.f32.xlu1 %v1039_v36 }
 0x59c   : > { %v1041_v39 = vpop.xlane.xlu1 %1040 }
 0x59d   : > { %2404 = vrcp.f32 %v1041_v39 }
 0x5aa   : > { %v2405_v40 = vpop.eup %2404 }
 0x5ab   : > { %v1043_v42 = vmul.f32 %v2405_v40, %v2403_v35 }
 0x5ad   : > { %v1044_v43 = vpack.c.bf16 %v1043_v42, %v1043_v42  ;;  %v1499_v42 = vsel %vm1098_vm7, %v2098_v41, 0 }
 0x5af   : > { %2265 = vmatmul.mubr.msk.bf16.vlgmr.msra.gmra.mxu1 %vm738_vm6, %v1044_v43 }
 0x5b0   : > { %2275 = vmatpush3.bf16.msra.mxu1 %v1146_v44  ;;  %2276 = vmatprep.mubr.msk.bf16.mxu1 %vm2425_vm0, %v2424_v1 }
 0x5b1   : > { %2288 = vmatprep.subr.bf16.mxu1 %v2424_v1 }
 0x5b7   : > { %2277 = vmatmul.mubr.msk.bf16.vlgmr.msra.gmra.mxu1 %vm675_vm2, %v786_v46 }
 0x5b8   : > { %2289 = vmatpush3.bf16.msra.mxu1 %v2386_v45  ;;  %2292 = vmatprep.mubr.msk.bf16.mxu1 %vm2425_vm0, %v2424_v1 }
 0x5b9   : > { %2290 = vmatprep.subr.bf16.mxu1 %v2424_v1 }
 0x5bc   : > { %2291 = vmatpush3.bf16.msra.mxu1 %v2387_v47  ;;  %v2393_v47 = vld [vmem:[%s2833_s3 + $0x38] sm:$0xff]  }
 0x5bd   : > { %2304 = vmatprep.subr.bf16.mxu1 %v2424_v1 }
 0x5bf   : > { %2293 = vmatmul.mubr.msk.bf16.vlgmr.msra.gmra.mxu1 %vm499_vm1, %v2542_v8 }
 0x5c0   : > { %2306 = vmatprep.mubr.msk.bf16.mxu1 %vm2425_vm0, %v2424_v1 }
 0x66f   : > { %v1086_v48 = vpop.f32.mrf.mxu1 }
 0x670   : > { %v1092_v50 = vpack.c.bf16 %v1086_v48, %v1086_v48  ;;  %v2395_v48 = vld [vmem:[%s2833_s3 + $0x30] sm:$0xff]  }
 0x671   : > { %v2266_v51 = vpop.f32.mrf.mxu1 }
 0x672   : > { %2271 = vmatmul.mubr.msk.bf16.vlgmr.msra.gmra.mxu0 %vm675_vm2, %v1092_v50  ;;  %v2392_v50 = vld [vmem:[%s2835_s5 + $0x38] sm:$0xff]  }
 0x673   : > { %v1089_v52 = vpop.f32.mrf.mxu1  ;;  %2281 = vmatpush3.bf16.msra.mxu0 %v2388_v49  ;;  %2284 = vmatprep.mubr.msk.bf16.mxu0 %vm2425_vm0, %v2424_v1 }
 0x674   : > { %2282 = vmatprep.subr.bf16.mxu0 %v2424_v1 }
 0x675   : > { %v2267_v54 = vpop.f32.mrf.mxu1 }
 0x676   : > { %v2394_v54 = vld [vmem:[%s2835_s5 + $0x30] sm:$0xff]  }
 0x677   : > { %v2692_v55 = vpop.f32.mrf.mxu1  ;;  %2283 = vmatpush3.bf16.msra.mxu0 %v2389_v53 }
 0x678   : > { %2296 = vmatprep.subr.bf16.mxu0 %v2424_v1 }
 0x679   : > { %v2278_v56 = vpop.f32.mrf.mxu1 }
 0x67a   : > { %2285 = vmatmul.mubr.msk.bf16.vlgmr.msra.gmra.mxu0 %vm499_vm1, %v2540_v7 }
 0x67b   : > { %v1185_v57 = vpop.f32.mrf.mxu1  ;;  %2300 = vmatprep.mubr.msk.bf16.mxu0 %vm2425_vm0, %v2424_v1  ;;  %2297 = vmatpush3.bf16.msra.mxu0 %v2390_v19 }
 0x67c   : > { %2298 = vmatprep.subr.bf16.mxu0 %v2424_v1 }
 0x67d   : > { %v2279_v58 = vpop.f32.mrf.mxu1 }
 0x67f   : > { %v1313_v60 = vpop.f32.mrf.mxu1  ;;  %2299 = vmatpush3.bf16.msra.mxu0 %v2391_v20 }
 0x680   : > { %v1314_v61 = vadd.f32 %v2083_v59, %v1313_v60  ;;  %2310 = vmatprep.subr.bf16.mxu0 %v2424_v1 }
 0x681   : > { %v2294_v62 = vpop.f32.mrf.mxu1 }
 0x682   : > { %v1385_v63 = vpack.c.bf16 %v1314_v61, %v1314_v61  ;;  %2301 = vmatmul.mubr.msk.bf16.vlgmr.msra.gmra.mxu0 %vm499_vm1, %v2542_v8 }
 0x683   : > { %v1316_v0 = vpop.f32.mrf.mxu1  ;;  %2312 = vmatprep.mubr.msk.bf16.mxu0 %vm2425_vm0, %v2424_v1 }
 0x684   : > { %v1390_v2 = vsel %vm675_vm2, %v1385_v63, 0 }
 0x685   : > { %v2295_v3 = vpop.f32.mrf.mxu1  ;;  %2305 = vmatpush3.bf16.xpose.msra.mxu1 %v1390_v2 }
 0x686   : > { %2316 = vmatprep.subr.bf16.mxu1 %v2424_v1  ;;  %v2114_v3 = vld [vmem:[%s2836_s6 + $0x3] ss:$0 sm:$0xff] }
 0x732   : > { %v2704_v4 = vpop.f32.mrf.mxu0 }
 0x733   : > { %v1183_v60 = vadd.f32 %v2692_v55, %v2704_v4 }
 0x734   : > { %v2272_v6 = vpop.f32.mrf.mxu0 }
 0x735   : > { %v2105_v6 = vld [vmem:[%s2834_s4 + $0x3] ss:$0 sm:$0xff] }
 0x736   : > { %v1139_v9 = vpop.f32.mrf.mxu0 }
 0x738   : > { %v2273_v10 = vpop.f32.mrf.mxu0 }
 0x73a   : > { %v1247_v12 = vpop.f32.mrf.mxu0 }
 0x73b   : > { %v1248_v13 = vadd.f32 %v2074_v11, %v1247_v12 }
 0x73c   : > { %v2286_v14 = vpop.f32.mrf.mxu0 }
 0x73d   : > { %v1253_v15 = vmul.f32 0.35355338, %v1248_v13 }
 0x73e   : > { %v1250_v16 = vpop.f32.mrf.mxu0 }
 0x73f   : > { %v1384_v17 = vpack.c.bf16 %v1253_v15, %v1253_v15 }
 0x740   : > { %v2287_v18 = vpop.f32.mrf.mxu0 }
 0x741   : > { %2307 = vmatmul.mubr.msk.bf16.vlgmr.msra.gmra.mxu1 %vm675_vm2, %v1384_v17  ;;  %v2396_v17 = vld [vmem:[%s2837_s7 + $0x38] sm:$0xff]   ;;  %v2397_v18 = vld [vmem:[%s2837_s7 + $0x30] sm:$0xff]  }
 0x742   : > { %2318 = vmatprep.mubr.msk.bf16.mxu1 %vm2425_vm0, %v2424_v1  ;;  %v1378_v34 = vpop.f32.mrf.mxu0  ;;  %2317 = vmatpush3.bf16.msra.mxu1 %v1499_v42 }
 0x743   : > { %v1379_v35 = vadd.f32 %v2092_v33, %v1378_v34  ;;  %2330 = vmatprep.subr.bf16.mxu1 %v2424_v1 }
 0x744   : > { %v2302_v36 = vpop.f32.mrf.mxu0 }
 0x745   : > { %v1445_v37 = vpack.c.bf16 %v1379_v35, %v1379_v35  ;;  %v2129_v36 = vld [vmem:[%s2839_s9 + $0xc] sm:$0xf] }
 0x746   : > { %v1381_v38 = vpop.f32.mrf.mxu0 }
 0x747   : > { %v1450_v39 = vsel %vm742_vm5, %v1445_v37, 0  ;;  %v1853_v37 = vsel %vm1098_vm7, %v2129_v36, 0 }
 0x748   : > { %v2303_v40 = vpop.f32.mrf.mxu0  ;;  %2311 = vmatpush3.bf16.msra.mxu0 %v1450_v39 }
 0x749   : > { %2322 = vmatprep.subr.bf16.mxu0 %v2424_v1 }
 0x801   : > { %v1426_v21 = vpop.f32.mrf.mxu1 }
 0x802   : > { %v1432_v22 = vsel %vm722_vm3, %v1426_v21, -1e+10 }
 0x803   : > { %v2308_v23 = vpop.f32.mrf.mxu1  ;;  %v1433_v24 = vsel %vm724_vm4, %v1432_v22, -inf }
 0x804   : > { %1434 = vmax.xlane.f32.xlu0 %v1433_v24 }
 0x805   : > { %v1429_v25 = vpop.f32.mrf.mxu1 }
 0x807   : > { %v2309_v26 = vpop.f32.mrf.mxu1 }
 0x88d   : > { %v1435_v28 = vpop.xlane.xlu0 %1434 }
 0x88e   : > { %v1436_v29 = vsub.f32 %v1432_v22, %v1435_v28 }
 0x890   : > { %v1437_v30 = vmul.f32 1.442695, %v1436_v29 }
 0x892   : > { %2406 = vpow2.f32 %v1437_v30 }
 0x89f   : > { %v2407_v31 = vpop.eup %2406 }
 0x8a0   : > { %v1439_v32 = vsel %vm724_vm4, %v2407_v31, 0.0 }
 0x8a1   : > { %1440 = vadd.xlane.f32.xlu1 %v1439_v32 }
 0x92a   : > { %v1441_v43 = vpop.xlane.xlu1 %1440 }
 0x92b   : > { %2408 = vrcp.f32 %v1441_v43 }
 0x938   : > { %v2409_v44 = vpop.eup %2408 }
 0x939   : > { %v1443_v45 = vmul.f32 %v2409_v44, %v2407_v31 }
 0x93b   : > { %v1444_v46 = vpack.c.bf16 %v1443_v45, %v1443_v45 }
 0x93d   : > { %2313 = vmatmul.mubr.msk.bf16.vlgmr.msra.gmra.mxu0 %vm738_vm6, %v1444_v46 }
 0x93e   : > { %2326 = vmatprep.mubr.msk.bf16.mxu0 %vm2425_vm0, %v2424_v1  ;;  %2323 = vmatpush3.bf16.msra.mxu0 %v2393_v47 }
 0x93f   : > { %2324 = vmatprep.subr.bf16.mxu0 %v2424_v1 }
 0x942   : > { %2325 = vmatpush3.bf16.msra.mxu0 %v2395_v48  ;;  %v2131_v48 = vld [vmem:[%s2840_s10] ss:$0 sm:$0xff] }
 0x943   : > { %2338 = vmatprep.subr.bf16.mxu0 %v2424_v1 }
 0x945   : > { %2327 = vmatmul.mubr.msk.bf16.vlgmr.msra.gmra.mxu0 %vm499_vm1, %v2540_v7 }
 0x946   : > { %2342 = vmatprep.mubr.msk.bf16.mxu0 %vm2425_vm0, %v2424_v1  ;;  %2339 = vmatpush3.bf16.msra.mxu0 %v2396_v17 }
 0x947   : > { %2340 = vmatprep.subr.bf16.mxu0 %v2424_v1 }
 0x94a   : > { %2341 = vmatpush3.bf16.msra.mxu0 %v2397_v18 }
 0x94b   : > { %2352 = vmatprep.subr.bf16.mxu0 %v2424_v1 }
 0x94d   : > { %2343 = vmatmul.mubr.msk.bf16.vlgmr.msra.gmra.mxu0 %vm499_vm1, %v2542_v8 }
 0x94e   : > { %2354 = vmatprep.mubr.msk.bf16.mxu0 %vm2425_vm0, %v2424_v1 }
 0x9fd   : > { %v1486_v49 = vpop.f32.mrf.mxu0 }
 0x9fe   : > { %v1492_v51 = vpack.c.bf16 %v1486_v49, %v1486_v49 }
 0x9ff   : > { %v2314_v52 = vpop.f32.mrf.mxu0 }
 0xa00   : > { %2319 = vmatmul.mubr.msk.bf16.vlgmr.msra.gmra.mxu1 %vm675_vm2, %v1492_v51 }
 0xa01   : > { %v1489_v53 = vpop.f32.mrf.mxu0  ;;  %2331 = vmatpush3.bf16.msra.mxu1 %v2392_v50  ;;  %2334 = vmatprep.mubr.msk.bf16.mxu1 %vm2425_vm0, %v2424_v1 }
 0xa02   : > { %2332 = vmatprep.subr.bf16.mxu1 %v2424_v1 }
 0xa03   : > { %v2315_v7 = vpop.f32.mrf.mxu0 }
 0xa05   : > { %2333 = vmatpush3.bf16.msra.mxu1 %v2394_v54  ;;  %v1601_v56 = vpop.f32.mrf.mxu0 }
 0xa06   : > { %2346 = vmatprep.subr.bf16.mxu1 %v2424_v1  ;;  %v1602_v11 = vadd.f32 %v2105_v6, %v1601_v56 }
 0xa07   : > { %v2328_v57 = vpop.f32.mrf.mxu0 }
 0xa08   : > { %2335 = vmatmul.mubr.msk.bf16.vlgmr.msra.gmra.mxu1 %vm499_vm1, %v2542_v8  ;;  %v1607_v14 = vmul.f32 0.35355338, %v1602_v11 }
 0xa09   : > { %2348 = vmatprep.mubr.msk.bf16.mxu1 %vm2425_vm0, %v2424_v1  ;;  %v1604_v58 = vpop.f32.mrf.mxu0 }
 0xa0a   : > { %v1738_v16 = vpack.c.bf16 %v1607_v14, %v1607_v14 }
 0xa0b   : > { %v2329_v59 = vpop.f32.mrf.mxu0 }
 0xa0d   : > { %v1732_v27 = vpop.f32.mrf.mxu0 }
 0xa0f   : > { %v2344_v31 = vpop.f32.mrf.mxu0 }
 0xa11   : > { %v1735_v33 = vpop.f32.mrf.mxu0 }
 0xa13   : > { %v2345_v35 = vpop.f32.mrf.mxu0 }
 0xac0   : > { %v1535_v61 = vpop.f32.mrf.mxu1 }
 0xac1   : > { %v2770_v62 = vadd.f32 %v1535_v61, %v1183_v60 }
 0xac2   : > { %v2320_v63 = vpop.f32.mrf.mxu1 }
 0xac4   : > { %v1538_v0 = vpop.f32.mrf.mxu1 }
 0xac6   : > { %v2321_v2 = vpop.f32.mrf.mxu1 }
 0xac8   : > { %v1667_v9 = vpop.f32.mrf.mxu1 }
 0xac9   : > { %v1668_v10 = vadd.f32 %v2114_v3, %v1667_v9  ;;  %v2133_v3 = vld [vmem:[%s2842_s12] ss:$0 sm:$0xff] }
 0xaca   : > { %v2336_v12 = vpop.f32.mrf.mxu1 }
 0xacb   : > { %v1739_v13 = vpack.c.bf16 %v1668_v10, %v1668_v10 }
 0xacc   : > { %v1670_v55 = vpop.f32.mrf.mxu1 }
 0xacd   : > { %v1744_v4 = vsel %vm675_vm2, %v1739_v13, 0 }
 0xace   : > { %v2337_v15 = vpop.f32.mrf.mxu1  ;;  %2347 = vmatpush3.bf16.xpose.msra.mxu1 %v1744_v4 }
 0xacf   : > { %2358 = vmatprep.subr.bf16.mxu1 %v2424_v1 }
 0xad5   : > { %2349 = vmatmul.mubr.msk.bf16.vlgmr.msra.gmra.mxu1 %vm675_vm2, %v1738_v16 }
 0xad6   : > { %2360 = vmatprep.mubr.msk.bf16.mxu1 %vm2425_vm0, %v2424_v1  ;;  %v2123_v1 = vld [vmem:[%s2838_s8 + $0x3] ss:$0 sm:$0xff]  ;;  %2359 = vmatpush3.bf16.msra.mxu1 %v1853_v37 }
 0xad7   : > { %v1733_v30 = vadd.f32 %v2123_v1, %v1732_v27 }
 0xad9   : > { %v1799_v32 = vpack.c.bf16 %v1733_v30, %v1733_v30 }
 0xadb   : > { %v1804_v34 = vsel %vm742_vm5, %v1799_v32, 0 }
 0xadc   : > { %2353 = vmatpush3.bf16.msra.mxu0 %v1804_v34 }
 0xb95   : > { %v1780_v19 = vpop.f32.mrf.mxu1 }
 0xb96   : > { %v1786_v20 = vsel %vm722_vm3, %v1780_v19, -1e+10 }
 0xb97   : > { %v2350_v21 = vpop.f32.mrf.mxu1  ;;  %v1787_v22 = vsel %vm724_vm4, %v1786_v20, -inf }
 0xb98   : > { %1788 = vmax.xlane.f32.xlu0 %v1787_v22 }
 0xb99   : > { %v1783_v23 = vpop.f32.mrf.mxu1 }
 0xb9b   : > { %v2351_v24 = vpop.f32.mrf.mxu1 }
 0xc21   : > { %v1789_v25 = vpop.xlane.xlu0 %1788 }
 0xc22   : > { %v1790_v26 = vsub.f32 %v1786_v20, %v1789_v25 }
 0xc24   : > { %v1791_v28 = vmul.f32 1.442695, %v1790_v26 }
 0xc26   : > { %2410 = vpow2.f32 %v1791_v28 }
 0xc33   : > { %v2411_v29 = vpop.eup %2410 }
 0xc34   : > { %v1793_v8 = vsel %vm724_vm4, %v2411_v29, 0.0 }
 0xc35   : > { %1794 = vadd.xlane.f32.xlu1 %v1793_v8 }
 0xcbe   : > { %v1795_v38 = vpop.xlane.xlu1 %1794 }
 0xcbf   : > { %2412 = vrcp.f32 %v1795_v38 }
 0xccc   : > { %v2413_v39 = vpop.eup %2412 }
 0xccd   : > { %v1797_v40 = vmul.f32 %v2413_v39, %v2411_v29 }
 0xccf   : > { %v1798_v41 = vpack.c.bf16 %v1797_v40, %v1797_v40 }
 0xcd1   : > { %2355 = vmatmul.mubr.msk.bf16.vlgmr.msra.gmra.mxu0 %vm738_vm6, %v1798_v41 }
 0xd91   : > { %v1840_v42 = vpop.f32.mrf.mxu0 }
 0xd92   : > { %v1846_v43 = vpack.c.bf16 %v1840_v42, %v1840_v42 }
 0xd93   : > { %v2356_v44 = vpop.f32.mrf.mxu0 }
 0xd94   : > { %2361 = vmatmul.mubr.msk.bf16.vlgmr.msra.gmra.mxu1 %vm675_vm2, %v1846_v43 }
 0xd95   : > { %v1843_v45 = vpop.f32.mrf.mxu0 }
 0xd97   : > { %v2357_v46 = vpop.f32.mrf.mxu0 }
 0xe54   : > { %v1889_v47 = vpop.f32.mrf.mxu1 }
 0xe55   : > { %v1895_v49 = vadd.f32 %v1889_v47, %v2770_v62 }
 0xe56   : > { %v2362_v50 = vpop.f32.mrf.mxu1 }
 0xe57   : > { %v1903_v51 = vadd.f32 %v2131_v48, %v1895_v49 }
 0xe58   : > { %v1892_v52 = vpop.f32.mrf.mxu1 }
 0xe59   : > { %v1904_v53 = vadd.f32 %v1903_v51, %v2535_v5  ;;  %v2132_v5 = vld [vmem:[%s2841_s11] ss:$0 sm:$0xff] }
 0xe5a   : > { %v2363_v54 = vpop.f32.mrf.mxu1 }
 0xe5b   : > { %v1906_v7 = vsel %vm1905_vm8, %v1904_v53, 0.0 }
 0xe5c   : > { %1907 = vadd.xlane.f32.xlu0 %v1906_v7 }
 0xee5   : > { %v1908_v56 = vpop.xlane.xlu0 %1907 }
 0xee6   : > { %v1910_v57 = vmul.f32 0.03125, %v1908_v56 }
 0xee8   : > { %v1911_v58 = vsub.f32 %v1904_v53, %v1910_v57 }
 0xeea   : > { %v1912_v59 = vmul.f32 %v1911_v58, %v1911_v58 }
 0xeec   : > { %v1913_v60 = vsel %vm1905_vm8, %v1912_v59, 0.0 }
 0xeed   : > { %1914 = vadd.xlane.f32.xlu1 %v1913_v60 }
 0xf76   : > { %v1915_v61 = vpop.xlane.xlu1 %1914 }
 0xf77   : > { %v1916_v62 = vmul.f32 0.03125, %v1915_v61 }
 0xf79   : > { %v1917_v63 = vadd.f32 1e-05, %v1916_v62 }
 0xf7b   : > { %2414 = vrsqrt.f32 %v1917_v63 }
 0xf88   : > { %v2415_v0 = vpop.eup %2414 }
 0xf89   : > { %v1919_v2 = vmul.f32 %v2415_v0, %v1911_v58 }
 0xf8b   : > { %v1927_v6 = vmul.f32 %v2132_v5, %v1919_v2 }
 0xf8d   : > { %v1935_v9 = vadd.f32 %v2133_v3, %v1927_v6 }
 0xf8f   : > { %1936 = vst.msk [vmem:[%s469_s17] sm:$0x3f] %vm1905_vm8, %v1935_v9 }
 0xf90 PF: > { %s23_s25 = sadd.s32 1, %s2422_s25  }
 0xf91   : > { %p20_p4 = scmp.ge.s32.totalorder %s23_s25, 4  }
 0xf93   :  { %22 = sbr.rel (!%p20_p4) target bundleno = 1 (0x1), region = 129 }

// kernel: transformer_forward.16
= control target key start
LH: loop header
LB: loop body
LE: loop exit
PB: predicated region body
PF: predicated region fallthrough
CT: control target
= control target key end

     0   :  { %s2494_s25 = smov 0   ;;  %s2828_s0 = inlined_call_operand.vmem [shape: f32[2,6,32], index: 0, kind: input, shape index: {}]   ;;  %s2829_s1 = inlined_call_operand.vmem [shape: f32[2,8,32], index: 1, kind: input, shape index: {}]   ;;  %s2830_s2 = inlined_call_operand.vmem [shape: f32[2,6,8], index: 2, kind: input, shape index: {}]   ;;  %s2831_s3 = inlined_call_operand.vmem [shape: bf16[4,32,8], index: 3, kind: input, shape index: {}]   ;;  %s2832_s4 = inlined_call_operand.vmem [shape: f32[4,1,8], index: 4, kind: input, shape index: {}]   ;;  %s2833_s5 = inlined_call_operand.vmem [shape: bf16[4,32,8], index: 5, kind: input, shape index: {}]   ;;  %s2834_s6 = inlined_call_operand.vmem [shape: f32[4,1,8], index: 6, kind: input, shape index: {}]   ;;  %s2835_s7 = inlined_call_operand.vmem [shape: bf16[4,32,8], index: 7, kind: input, shape index: {}]   ;;  %s2836_s8 = inlined_call_operand.vmem [shape: f32[4,1,8], index: 8, kind: input, shape index: {}]   ;;  %s2837_s9 = inlined_call_operand.vmem [shape: bf16[4,8,32], index: 9, kind: input, shape index: {}]   ;;  %s2838_s10 = inlined_call_operand.vmem [shape: f32[1,32], index: 10, kind: input, shape index: {}]   ;;  %s2839_s11 = inlined_call_operand.vmem [shape: f32[1,32], index: 11, kind: input, shape index: {}]   ;;  %s2840_s12 = inlined_call_operand.vmem [shape: f32[1,32], index: 12, kind: input, shape index: {}]   ;;  %s2841_s13 = inlined_call_operand.vmem [shape: f32[2,6,32], index: 13, kind: output, shape index: {}]  }
   0x1 LB: > { %s2012_s26 = sadd.s32 4294967295, %s2420_s25   ;;  %p2016_p0 = scmp.ge.s32.totalorder %s2420_s25, 1  ;;  %s2420_s25 = sphi %s2494_s25, %s23_s25  }
   0x2   : > { %p404_p1 = scmp.lt.s32.totalorder %s2420_s25, 3 }
   0x4   : > { %p405_p2 = pnand %p2016_p0, %p404_p1 }
   0x5   : > { %p454_p3 = scmp.lt.s32.totalorder (!%p405_p2), %s2012_s26, 1 }
   0x6   : > { %408 = sbr.rel (%p405_p2) target bundleno = 3984 (0xf90), region = 72 }
   0xb   : > { %v2372_v0 = vld [vmem:[%s2831_s3 + $0x8] sm:$0xff]   ;;  %v2422_v1 = vmov 0.0   ;;  %v2374_v3 = vld [vmem:[%s2831_s3] sm:$0xff]   ;;  %vm2423_vm0 = vmmov 0   ;;  %s2843_s26 = smov (!%p454_p3, %s2012_s26), 1  ;;  %vm499_vm1 = vcmask 261120  }
   0xc   : > { %2194 = vmatprep.subr.bf16.mxu0 %v2422_v1  ;;  %2202 = vmatprep.subr.bf16.mxu1 %v2422_v1  ;;  %v2373_v2 = vld [vmem:[%s2833_s5 + $0x8] sm:$0xff]   ;;  %v2375_v4 = vld [vmem:[%s2833_s5] sm:$0xff]   ;;  %s2522_s18 = sshll.u32 %s2843_s26, 3  ;;  %vm675_vm2 = vcmask 64512   ;;  %vm724_vm4 = vcmask 62464   ;;  %vm741_vm5 = vcmask 1043456  }
   0xd   : > { %2195 = vmatpush3.bf16.msra.mxu0 %v2372_v0  ;;  %2198 = vmatprep.mubr.msk.bf16.mxu0 %vm2423_vm0, %v2422_v1  ;;  %s457_s21 = scalar_lea.vmem %s2828_s0, %s2522_s18  ;;  %s461_s24 = scalar_lea.vmem %s2829_s1, %s2522_s18  ;;  %v2021_v9 = vld [vmem:[%s2832_s4] ss:$0 sm:$0xff]  ;;  %v2376_v25 = vld [vmem:[%s2835_s7 + $0x8] sm:$0xff]   ;;  %v2378_v47 = vld [vmem:[%s2831_s3 + $0x18] sm:$0xff]   ;;  %vm1903_vm6 = vcmask 259072  }
   0xe   : > { %2203 = vmatpush3.bf16.msra.mxu1 %v2373_v2  ;;  %2196 = vmatprep.subr.bf16.mxu0 %v2422_v1  ;;  %v2533_v5 = vld [vmem:[%s457_s21] sm:$0x3f]  ;;  %s465_s20 = scalar_lea.vmem %s2830_s2, %s2522_s18  ;;  %v2380_v48 = vld [vmem:[%s2831_s3 + $0x10] sm:$0xff]   ;;  %v2379_v52 = vld [vmem:[%s2833_s5 + $0x18] sm:$0xff]   ;;  %s469_s17 = scalar_lea.vmem %s2841_s13, %s2522_s18 }
   0xf   : > { %2204 = vmatprep.subr.bf16.mxu1 %v2422_v1  ;;  %2206 = vmatprep.mubr.msk.bf16.mxu1 %vm2423_vm0, %v2422_v1  ;;  %v472_v6 = vld [vmem:[%s461_s24] sm:$0xff]  ;;  %v2538_v7 = vpack.c.bf16 %v2533_v5, %v2533_v5  ;;  %v2381_v54 = vld [vmem:[%s2833_s5 + $0x10] sm:$0xff]  }
  0x10   : > { %v2540_v8 = vpack.c.bf16 %v472_v6, %v472_v6  ;;  %v2025_v10 = vld [vmem:[%s2834_s6] ss:$0 sm:$0xff]  ;;  %v2040_v63 = vld [vmem:[%s2832_s4 + $0x1] ss:$0 sm:$0xff] }
  0x11   : > { %2197 = vmatpush3.bf16.msra.mxu0 %v2374_v3  ;;  %v2377_v26 = vld [vmem:[%s2835_s7] sm:$0xff]  }
  0x12   : > { %2205 = vmatpush3.bf16.msra.mxu1 %v2375_v4  ;;  %2210 = vmatprep.subr.bf16.mxu0 %v2422_v1  ;;  %v2577_v27 = vld [vmem:[%s465_s20] sm:$0x3f] }
  0x13   : > { %2218 = vmatprep.subr.bf16.mxu1 %v2422_v1  ;;  %vm722_vm3 = vcmp.gt.f32.partialorder %v2577_v27, 0.0  ;;  %v2029_v39 = vld [vmem:[%s2836_s8] ss:$0 sm:$0xff]  ;;  %v2049_v0 = vld [vmem:[%s2834_s6 + $0x1] ss:$0 sm:$0xff] }
  0x14   : > { %2199 = vmatmul.mubr.msk.bf16.vlgmr.msra.gmra.mxu0 %vm499_vm1, %v2538_v7 }
  0x15   : > { %2207 = vmatmul.mubr.msk.bf16.vlgmr.msra.gmra.mxu1 %vm499_vm1, %v2540_v8  ;;  %2214 = vmatprep.mubr.msk.bf16.mxu0 %vm2423_vm0, %v2422_v1 }
  0x16   : > { %2220 = vmatprep.mubr.msk.bf16.mxu1 %vm2423_vm0, %v2422_v1  ;;  %2211 = vmatpush3.bf16.msra.mxu0 %v2376_v25 }
  0x17   : > { %2212 = vmatprep.subr.bf16.mxu0 %v2422_v1 }
  0x1a   : > { %2213 = vmatpush3.bf16.msra.mxu0 %v2377_v26 }
  0x1b   : > { %2224 = vmatprep.subr.bf16.mxu0 %v2422_v1 }
  0x1d   : > { %2215 = vmatmul.mubr.msk.bf16.vlgmr.msra.gmra.mxu0 %vm499_vm1, %v2540_v8 }
  0x1e   : > { %2226 = vmatprep.mubr.msk.bf16.mxu0 %vm2423_vm0, %v2422_v1 }
  0xd4   : > { %v537_v11 = vpop.f32.mrf.mxu0 }
  0xd5   : > { %v604_v12 = vpop.f32.mrf.mxu1  ;;  %v538_v13 = vadd.f32 %v2021_v9, %v537_v11 }
  0xd6   : > { %v605_v14 = vadd.f32 %v2025_v10, %v604_v12  ;;  %v2200_v15 = vpop.f32.mrf.mxu0 }
  0xd7   : > { %v2208_v16 = vpop.f32.mrf.mxu1  ;;  %v543_v20 = vmul.f32 0.35355338, %v538_v13  ;;  %v2382_v15 = vld [vmem:[%s2835_s7 + $0x18] sm:$0xff]  }
  0xd8   : > { %v674_v17 = vpack.c.bf16 %v605_v14, %v605_v14  ;;  %v540_v18 = vpop.f32.mrf.mxu0  ;;  %v2383_v16 = vld [vmem:[%s2835_s7 + $0x10] sm:$0xff]  }
  0xd9   : > { %v607_v19 = vpop.f32.mrf.mxu1  ;;  %v673_v24 = vpack.c.bf16 %v543_v20, %v543_v20 }
  0xda   : > { %v680_v21 = vsel %vm675_vm2, %v674_v17, 0  ;;  %v2201_v22 = vpop.f32.mrf.mxu0 }
  0xdb   : > { %v2209_v23 = vpop.f32.mrf.mxu1  ;;  %2219 = vmatpush3.bf16.xpose.msra.mxu1 %v680_v21 }
  0xdc   : > { %2230 = vmatprep.subr.bf16.mxu1 %v2422_v1  ;;  %v2058_v23 = vld [vmem:[%s2836_s8 + $0x1] ss:$0 sm:$0xff] }
  0xdd   : > { %v667_v40 = vpop.f32.mrf.mxu0 }
  0xde   : > { %v668_v41 = vadd.f32 %v2029_v39, %v667_v40 }
  0xdf   : > { %v2216_v42 = vpop.f32.mrf.mxu0 }
  0xe0   : > { %v737_v43 = vpack.c.bf16 %v668_v41, %v668_v41  ;;  %v786_v41 = vld [vmem:[%s2837_s9] sm:$0xf] }
  0xe1   : > { %v670_v44 = vpop.f32.mrf.mxu0 }
  0xe2   : > { %2221 = vmatmul.mubr.msk.bf16.vlgmr.msra.gmra.mxu1 %vm675_vm2, %v673_v24  ;;  %v743_v45 = vsel %vm741_vm5, %v737_v43, 0  ;;  %v1144_v44 = vsel %vm741_vm5, %v786_v41, 0  ;;  %v2096_v41 = vld [vmem:[%s2837_s9 + $0x8] sm:$0xf] }
  0xe3   : > { %2234 = vmatprep.mubr.msk.bf16.mxu1 %vm2423_vm0, %v2422_v1  ;;  %v2217_v46 = vpop.f32.mrf.mxu0  ;;  %2225 = vmatpush3.bf16.msra.mxu0 %v743_v45  ;;  %v2384_v45 = vld [vmem:[%s2833_s5 + $0x28] sm:$0xff]  }
  0xe4   : > { %2238 = vmatprep.subr.bf16.mxu0 %v2422_v1  ;;  %2231 = vmatpush3.bf16.msra.mxu1 %v2378_v47  ;;  %v2385_v47 = vld [vmem:[%s2833_s5 + $0x20] sm:$0xff]  }
  0xe5   : > { %2232 = vmatprep.subr.bf16.mxu1 %v2422_v1 }
  0xe8   : > { %2233 = vmatpush3.bf16.msra.mxu1 %v2380_v48 }
  0xe9   : > { %2246 = vmatprep.subr.bf16.mxu1 %v2422_v1 }
  0xeb   : > { %2235 = vmatmul.mubr.msk.bf16.vlgmr.msra.gmra.mxu1 %vm499_vm1, %v2538_v7 }
  0xec   : > { %2250 = vmatprep.mubr.msk.bf16.mxu1 %vm2423_vm0, %v2422_v1  ;;  %2247 = vmatpush3.bf16.msra.mxu1 %v2382_v15 }
  0xed   : > { %2248 = vmatprep.subr.bf16.mxu1 %v2422_v1 }
  0xf0   : > { %2249 = vmatpush3.bf16.msra.mxu1 %v2383_v16 }
  0xf1   : > { %2260 = vmatprep.subr.bf16.mxu1 %v2422_v1 }
  0xf3   : > { %2251 = vmatmul.mubr.msk.bf16.vlgmr.msra.gmra.mxu1 %vm499_vm1, %v2540_v8 }
  0xf4   : > { %2262 = vmatprep.mubr.msk.bf16.mxu1 %vm2423_vm0, %v2422_v1 }
 0x1a2   : > { %v716_v28 = vpop.f32.mrf.mxu1 }
 0x1a3   : > { %v723_v29 = vsel %vm722_vm3, %v716_v28, -1e+10 }
 0x1a4   : > { %v2222_v30 = vpop.f32.mrf.mxu1  ;;  %v725_v31 = vsel %vm724_vm4, %v723_v29, -inf }
 0x1a5   : > { %726 = vmax.xlane.f32.xlu0 %v725_v31 }
 0x1a6   : > { %v719_v32 = vpop.f32.mrf.mxu1 }
 0x1a8   : > { %v2223_v33 = vpop.f32.mrf.mxu1 }
 0x1ab   : > { %v846_v55 = vpop.f32.mrf.mxu1 }
 0x1ac   : > { %v847_v3 = vadd.f32 %v2040_v63, %v846_v55 }
 0x1ad   : > { %v2236_v56 = vpop.f32.mrf.mxu1 }
 0x1ae   : > { %v852_v11 = vmul.f32 0.35355338, %v847_v3 }
 0x1af   : > { %v849_v57 = vpop.f32.mrf.mxu1 }
 0x1b0   : > { %v983_v14 = vpack.c.bf16 %v852_v11, %v852_v11  ;;  %v2072_v11 = vld [vmem:[%s2832_s4 + $0x2] ss:$0 sm:$0xff] }
 0x1b1   : > { %v2237_v58 = vpop.f32.mrf.mxu1 }
 0x1b3   : > { %v977_v24 = vpop.f32.mrf.mxu1 }
 0x1b4   : > { %v978_v25 = vadd.f32 %v2058_v23, %v977_v24 }
 0x1b5   : > { %v2252_v26 = vpop.f32.mrf.mxu1 }
 0x1b6   : > { %v1044_v28 = vpack.c.bf16 %v978_v25, %v978_v25 }
 0x1b8   : > { %v1049_v30 = vsel %vm741_vm5, %v1044_v28, 0 }
 0x1b9   : > { %2261 = vmatpush3.bf16.msra.mxu1 %v1049_v30 }
 0x1ba   : > { %2272 = vmatprep.subr.bf16.mxu1 %v2422_v1 }
 0x22e   : > { %v727_v34 = vpop.xlane.xlu0 %726 }
 0x22f   : > { %v728_v35 = vsub.f32 %v723_v29, %v727_v34  ;;  %v980_v29 = vpop.f32.mrf.mxu1 }
 0x231   : > { %v729_v36 = vmul.f32 1.442695, %v728_v35  ;;  %v2253_v31 = vpop.f32.mrf.mxu1 }
 0x233   : > { %2396 = vpow2.f32 %v729_v36 }
 0x240   : > { %v2397_v37 = vpop.eup %2396 }
 0x241   : > { %v731_v38 = vsel %vm724_vm4, %v2397_v37, 0.0 }
 0x242   : > { %732 = vadd.xlane.f32.xlu0 %v731_v38 }
 0x2cb   : > { %v733_v49 = vpop.xlane.xlu0 %732 }
 0x2cc   : > { %2398 = vrcp.f32 %v733_v49  ;;  %v2386_v49 = vld [vmem:[%s2831_s3 + $0x28] sm:$0xff]  }
 0x2d9   : > { %v2399_v50 = vpop.eup %2398 }
 0x2da   : > { %v735_v51 = vmul.f32 %v2399_v50, %v2397_v37  ;;  %v2064_v37 = vld [vmem:[%s2837_s9 + $0x4] sm:$0xf] }
 0x2db   : > { %v1098_v38 = vsel %vm741_vm5, %v2064_v37, 0 }
 0x2dc   : > { %v736_v53 = vpack.c.bf16 %v735_v51, %v735_v51 }
 0x2de   : > { %2227 = vmatmul.mubr.msk.bf16.vlgmr.msra.gmra.mxu0 %vm675_vm2, %v736_v53  ;;  %v2387_v53 = vld [vmem:[%s2831_s3 + $0x20] sm:$0xff]  }
 0x2df   : > { %2239 = vmatpush3.bf16.msra.mxu0 %v2379_v52  ;;  %2242 = vmatprep.mubr.msk.bf16.mxu0 %vm2423_vm0, %v2422_v1 }
 0x2e0   : > { %2240 = vmatprep.subr.bf16.mxu0 %v2422_v1 }
 0x2e3   : > { %2241 = vmatpush3.bf16.msra.mxu0 %v2381_v54 }
 0x2e4   : > { %2254 = vmatprep.subr.bf16.mxu0 %v2422_v1 }
 0x2e6   : > { %2243 = vmatmul.mubr.msk.bf16.vlgmr.msra.gmra.mxu0 %vm499_vm1, %v2540_v8 }
 0x2e7   : > { %2256 = vmatprep.mubr.msk.bf16.mxu0 %vm2423_vm0, %v2422_v1 }
 0x39e   : > { %v2616_v59 = vpop.f32.mrf.mxu0 }
 0x39f   : > { %v785_v46 = vpack.c.bf16 %v2616_v59, %v2616_v59  ;;  %v2081_v59 = vld [vmem:[%s2834_s6 + $0x2] ss:$0 sm:$0xff] }
 0x3a0   : > { %v2228_v60 = vpop.f32.mrf.mxu0 }
 0x3a2   : > { %v782_v61 = vpop.f32.mrf.mxu0 }
 0x3a4   : > { %v2229_v62 = vpop.f32.mrf.mxu0 }
 0x3a6   : > { %v912_v2 = vpop.f32.mrf.mxu0 }
 0x3a7   : > { %v913_v4 = vadd.f32 %v2049_v0, %v912_v2 }
 0x3a8   : > { %v2244_v6 = vpop.f32.mrf.mxu0 }
 0x3a9   : > { %v984_v9 = vpack.c.bf16 %v913_v4, %v913_v4 }
 0x3aa   : > { %v915_v10 = vpop.f32.mrf.mxu0 }
 0x3ab   : > { %v989_v12 = vsel %vm675_vm2, %v984_v9, 0 }
 0x3ac   : > { %v2245_v13 = vpop.f32.mrf.mxu0  ;;  %2255 = vmatpush3.bf16.xpose.msra.mxu0 %v989_v12 }
 0x3ad   : > { %2266 = vmatprep.subr.bf16.mxu0 %v2422_v1 }
 0x3b3   : > { %2257 = vmatmul.mubr.msk.bf16.vlgmr.msra.gmra.mxu0 %vm675_vm2, %v983_v14 }
 0x3b4   : > { %2268 = vmatprep.mubr.msk.bf16.mxu0 %vm2423_vm0, %v2422_v1  ;;  %2267 = vmatpush3.bf16.msra.mxu0 %v1098_v38 }
 0x3b5   : > { %2278 = vmatprep.subr.bf16.mxu0 %v2422_v1 }
 0x473   : > { %v1025_v17 = vpop.f32.mrf.mxu0 }
 0x474   : > { %v1031_v18 = vsel %vm722_vm3, %v1025_v17, -1e+10 }
 0x475   : > { %v2258_v19 = vpop.f32.mrf.mxu0  ;;  %v1032_v20 = vsel %vm724_vm4, %v1031_v18, -inf }
 0x476   : > { %1033 = vmax.xlane.f32.xlu1 %v1032_v20  ;;  %v2388_v19 = vld [vmem:[%s2835_s7 + $0x28] sm:$0xff]   ;;  %v2389_v20 = vld [vmem:[%s2835_s7 + $0x20] sm:$0xff]  }
 0x477   : > { %v1028_v21 = vpop.f32.mrf.mxu0 }
 0x479   : > { %v2259_v22 = vpop.f32.mrf.mxu0 }
 0x4ff   : > { %v1034_v32 = vpop.xlane.xlu1 %1033 }
 0x500   : > { %v1035_v33 = vsub.f32 %v1031_v18, %v1034_v32 }
 0x502   : > { %v1036_v34 = vmul.f32 1.442695, %v1035_v33  ;;  %v2090_v33 = vld [vmem:[%s2836_s8 + $0x2] ss:$0 sm:$0xff] }
 0x504   : > { %2400 = vpow2.f32 %v1036_v34 }
 0x511   : > { %v2401_v35 = vpop.eup %2400 }
 0x512   : > { %v1038_v36 = vsel %vm724_vm4, %v2401_v35, 0.0 }
 0x513   : > { %1039 = vadd.xlane.f32.xlu1 %v1038_v36 }
 0x59c   : > { %v1040_v39 = vpop.xlane.xlu1 %1039 }
 0x59d   : > { %2402 = vrcp.f32 %v1040_v39 }
 0x5aa   : > { %v2403_v40 = vpop.eup %2402 }
 0x5ab   : > { %v1042_v42 = vmul.f32 %v2403_v40, %v2401_v35 }
 0x5ad   : > { %v1043_v43 = vpack.c.bf16 %v1042_v42, %v1042_v42  ;;  %v1497_v42 = vsel %vm741_vm5, %v2096_v41, 0 }
 0x5af   : > { %2263 = vmatmul.mubr.msk.bf16.vlgmr.msra.gmra.mxu1 %vm675_vm2, %v1043_v43 }
 0x5b0   : > { %2273 = vmatpush3.bf16.msra.mxu1 %v1144_v44  ;;  %2274 = vmatprep.mubr.msk.bf16.mxu1 %vm2423_vm0, %v2422_v1 }
 0x5b1   : > { %2286 = vmatprep.subr.bf16.mxu1 %v2422_v1 }
 0x5b7   : > { %2275 = vmatmul.mubr.msk.bf16.vlgmr.msra.gmra.mxu1 %vm675_vm2, %v785_v46 }
 0x5b8   : > { %2287 = vmatpush3.bf16.msra.mxu1 %v2384_v45  ;;  %2290 = vmatprep.mubr.msk.bf16.mxu1 %vm2423_vm0, %v2422_v1 }
 0x5b9   : > { %2288 = vmatprep.subr.bf16.mxu1 %v2422_v1 }
 0x5bc   : > { %2289 = vmatpush3.bf16.msra.mxu1 %v2385_v47  ;;  %v2391_v47 = vld [vmem:[%s2831_s3 + $0x38] sm:$0xff]  }
 0x5bd   : > { %2302 = vmatprep.subr.bf16.mxu1 %v2422_v1 }
 0x5bf   : > { %2291 = vmatmul.mubr.msk.bf16.vlgmr.msra.gmra.mxu1 %vm499_vm1, %v2540_v8 }
 0x5c0   : > { %2304 = vmatprep.mubr.msk.bf16.mxu1 %vm2423_vm0, %v2422_v1 }
 0x66f   : > { %v1085_v48 = vpop.f32.mrf.mxu1 }
 0x670   : > { %v1091_v50 = vpack.c.bf16 %v1085_v48, %v1085_v48  ;;  %v2393_v48 = vld [vmem:[%s2831_s3 + $0x30] sm:$0xff]  }
 0x671   : > { %v2264_v51 = vpop.f32.mrf.mxu1 }
 0x672   : > { %2269 = vmatmul.mubr.msk.bf16.vlgmr.msra.gmra.mxu0 %vm675_vm2, %v1091_v50  ;;  %v2390_v50 = vld [vmem:[%s2833_s5 + $0x38] sm:$0xff]  }
 0x673   : > { %v1088_v52 = vpop.f32.mrf.mxu1  ;;  %2279 = vmatpush3.bf16.msra.mxu0 %v2386_v49  ;;  %2282 = vmatprep.mubr.msk.bf16.mxu0 %vm2423_vm0, %v2422_v1 }
 0x674   : > { %2280 = vmatprep.subr.bf16.mxu0 %v2422_v1 }
 0x675   : > { %v2265_v54 = vpop.f32.mrf.mxu1 }
 0x676   : > { %v2392_v54 = vld [vmem:[%s2833_s5 + $0x30] sm:$0xff]  }
 0x677   : > { %v2690_v55 = vpop.f32.mrf.mxu1  ;;  %2281 = vmatpush3.bf16.msra.mxu0 %v2387_v53 }
 0x678   : > { %2294 = vmatprep.subr.bf16.mxu0 %v2422_v1 }
 0x679   : > { %v2276_v56 = vpop.f32.mrf.mxu1 }
 0x67a   : > { %2283 = vmatmul.mubr.msk.bf16.vlgmr.msra.gmra.mxu0 %vm499_vm1, %v2538_v7 }
 0x67b   : > { %v1183_v57 = vpop.f32.mrf.mxu1  ;;  %2298 = vmatprep.mubr.msk.bf16.mxu0 %vm2423_vm0, %v2422_v1  ;;  %2295 = vmatpush3.bf16.msra.mxu0 %v2388_v19 }
 0x67c   : > { %2296 = vmatprep.subr.bf16.mxu0 %v2422_v1 }
 0x67d   : > { %v2277_v58 = vpop.f32.mrf.mxu1 }
 0x67f   : > { %v1311_v60 = vpop.f32.mrf.mxu1  ;;  %2297 = vmatpush3.bf16.msra.mxu0 %v2389_v20 }
 0x680   : > { %v1312_v61 = vadd.f32 %v2081_v59, %v1311_v60  ;;  %2308 = vmatprep.subr.bf16.mxu0 %v2422_v1 }
 0x681   : > { %v2292_v62 = vpop.f32.mrf.mxu1 }
 0x682   : > { %v1383_v63 = vpack.c.bf16 %v1312_v61, %v1312_v61  ;;  %2299 = vmatmul.mubr.msk.bf16.vlgmr.msra.gmra.mxu0 %vm499_vm1, %v2540_v8 }
 0x683   : > { %v1314_v0 = vpop.f32.mrf.mxu1  ;;  %2310 = vmatprep.mubr.msk.bf16.mxu0 %vm2423_vm0, %v2422_v1 }
 0x684   : > { %v1388_v2 = vsel %vm675_vm2, %v1383_v63, 0 }
 0x685   : > { %v2293_v3 = vpop.f32.mrf.mxu1  ;;  %2303 = vmatpush3.bf16.xpose.msra.mxu1 %v1388_v2 }
 0x686   : > { %2314 = vmatprep.subr.bf16.mxu1 %v2422_v1  ;;  %v2112_v3 = vld [vmem:[%s2834_s6 + $0x3] ss:$0 sm:$0xff] }
 0x732   : > { %v2702_v4 = vpop.f32.mrf.mxu0 }
 0x733   : > { %v1181_v60 = vadd.f32 %v2690_v55, %v2702_v4 }
 0x734   : > { %v2270_v6 = vpop.f32.mrf.mxu0 }
 0x735   : > { %v2103_v6 = vld [vmem:[%s2832_s4 + $0x3] ss:$0 sm:$0xff] }
 0x736   : > { %v1137_v9 = vpop.f32.mrf.mxu0 }
 0x738   : > { %v2271_v10 = vpop.f32.mrf.mxu0 }
 0x73a   : > { %v1245_v12 = vpop.f32.mrf.mxu0 }
 0x73b   : > { %v1246_v13 = vadd.f32 %v2072_v11, %v1245_v12 }
 0x73c   : > { %v2284_v14 = vpop.f32.mrf.mxu0 }
 0x73d   : > { %v1251_v15 = vmul.f32 0.35355338, %v1246_v13 }
 0x73e   : > { %v1248_v16 = vpop.f32.mrf.mxu0 }
 0x73f   : > { %v1382_v17 = vpack.c.bf16 %v1251_v15, %v1251_v15 }
 0x740   : > { %v2285_v18 = vpop.f32.mrf.mxu0 }
 0x741   : > { %2305 = vmatmul.mubr.msk.bf16.vlgmr.msra.gmra.mxu1 %vm675_vm2, %v1382_v17  ;;  %v2394_v17 = vld [vmem:[%s2835_s7 + $0x38] sm:$0xff]   ;;  %v2395_v18 = vld [vmem:[%s2835_s7 + $0x30] sm:$0xff]  }
 0x742   : > { %2316 = vmatprep.mubr.msk.bf16.mxu1 %vm2423_vm0, %v2422_v1  ;;  %v1376_v34 = vpop.f32.mrf.mxu0  ;;  %2315 = vmatpush3.bf16.msra.mxu1 %v1497_v42 }
 0x743   : > { %v1377_v35 = vadd.f32 %v2090_v33, %v1376_v34  ;;  %2328 = vmatprep.subr.bf16.mxu1 %v2422_v1 }
 0x744   : > { %v2300_v36 = vpop.f32.mrf.mxu0 }
 0x745   : > { %v1443_v37 = vpack.c.bf16 %v1377_v35, %v1377_v35  ;;  %v2127_v36 = vld [vmem:[%s2837_s9 + $0xc] sm:$0xf] }
 0x746   : > { %v1379_v38 = vpop.f32.mrf.mxu0 }
 0x747   : > { %v1448_v39 = vsel %vm741_vm5, %v1443_v37, 0  ;;  %v1851_v37 = vsel %vm741_vm5, %v2127_v36, 0 }
 0x748   : > { %v2301_v40 = vpop.f32.mrf.mxu0  ;;  %2309 = vmatpush3.bf16.msra.mxu0 %v1448_v39 }
 0x749   : > { %2320 = vmatprep.subr.bf16.mxu0 %v2422_v1 }
 0x801   : > { %v1424_v21 = vpop.f32.mrf.mxu1 }
 0x802   : > { %v1430_v22 = vsel %vm722_vm3, %v1424_v21, -1e+10 }
 0x803   : > { %v2306_v23 = vpop.f32.mrf.mxu1  ;;  %v1431_v24 = vsel %vm724_vm4, %v1430_v22, -inf }
 0x804   : > { %1432 = vmax.xlane.f32.xlu0 %v1431_v24 }
 0x805   : > { %v1427_v25 = vpop.f32.mrf.mxu1 }
 0x807   : > { %v2307_v26 = vpop.f32.mrf.mxu1 }
 0x88d   : > { %v1433_v28 = vpop.xlane.xlu0 %1432 }
 0x88e   : > { %v1434_v29 = vsub.f32 %v1430_v22, %v1433_v28 }
 0x890   : > { %v1435_v30 = vmul.f32 1.442695, %v1434_v29 }
 0x892   : > { %2404 = vpow2.f32 %v1435_v30 }
 0x89f   : > { %v2405_v31 = vpop.eup %2404 }
 0x8a0   : > { %v1437_v32 = vsel %vm724_vm4, %v2405_v31, 0.0 }
 0x8a1   : > { %1438 = vadd.xlane.f32.xlu1 %v1437_v32 }
 0x92a   : > { %v1439_v43 = vpop.xlane.xlu1 %1438 }
 0x92b   : > { %2406 = vrcp.f32 %v1439_v43 }
 0x938   : > { %v2407_v44 = vpop.eup %2406 }
 0x939   : > { %v1441_v45 = vmul.f32 %v2407_v44, %v2405_v31 }
 0x93b   : > { %v1442_v46 = vpack.c.bf16 %v1441_v45, %v1441_v45 }
 0x93d   : > { %2311 = vmatmul.mubr.msk.bf16.vlgmr.msra.gmra.mxu0 %vm675_vm2, %v1442_v46 }
 0x93e   : > { %2324 = vmatprep.mubr.msk.bf16.mxu0 %vm2423_vm0, %v2422_v1  ;;  %2321 = vmatpush3.bf16.msra.mxu0 %v2391_v47 }
 0x93f   : > { %2322 = vmatprep.subr.bf16.mxu0 %v2422_v1 }
 0x942   : > { %2323 = vmatpush3.bf16.msra.mxu0 %v2393_v48  ;;  %v2129_v48 = vld [vmem:[%s2838_s10] ss:$0 sm:$0xff] }
 0x943   : > { %2336 = vmatprep.subr.bf16.mxu0 %v2422_v1 }
 0x945   : > { %2325 = vmatmul.mubr.msk.bf16.vlgmr.msra.gmra.mxu0 %vm499_vm1, %v2538_v7 }
 0x946   : > { %2340 = vmatprep.mubr.msk.bf16.mxu0 %vm2423_vm0, %v2422_v1  ;;  %2337 = vmatpush3.bf16.msra.mxu0 %v2394_v17 }
 0x947   : > { %2338 = vmatprep.subr.bf16.mxu0 %v2422_v1 }
 0x94a   : > { %2339 = vmatpush3.bf16.msra.mxu0 %v2395_v18 }
 0x94b   : > { %2350 = vmatprep.subr.bf16.mxu0 %v2422_v1 }
 0x94d   : > { %2341 = vmatmul.mubr.msk.bf16.vlgmr.msra.gmra.mxu0 %vm499_vm1, %v2540_v8 }
 0x94e   : > { %2352 = vmatprep.mubr.msk.bf16.mxu0 %vm2423_vm0, %v2422_v1 }
 0x9fd   : > { %v1484_v49 = vpop.f32.mrf.mxu0 }
 0x9fe   : > { %v1490_v51 = vpack.c.bf16 %v1484_v49, %v1484_v49 }
 0x9ff   : > { %v2312_v52 = vpop.f32.mrf.mxu0 }
 0xa00   : > { %2317 = vmatmul.mubr.msk.bf16.vlgmr.msra.gmra.mxu1 %vm675_vm2, %v1490_v51 }
 0xa01   : > { %v1487_v53 = vpop.f32.mrf.mxu0  ;;  %2329 = vmatpush3.bf16.msra.mxu1 %v2390_v50  ;;  %2332 = vmatprep.mubr.msk.bf16.mxu1 %vm2423_vm0, %v2422_v1 }
 0xa02   : > { %2330 = vmatprep.subr.bf16.mxu1 %v2422_v1 }
 0xa03   : > { %v2313_v7 = vpop.f32.mrf.mxu0 }
 0xa05   : > { %2331 = vmatpush3.bf16.msra.mxu1 %v2392_v54  ;;  %v1599_v56 = vpop.f32.mrf.mxu0 }
 0xa06   : > { %2344 = vmatprep.subr.bf16.mxu1 %v2422_v1  ;;  %v1600_v11 = vadd.f32 %v2103_v6, %v1599_v56 }
 0xa07   : > { %v2326_v57 = vpop.f32.mrf.mxu0 }
 0xa08   : > { %2333 = vmatmul.mubr.msk.bf16.vlgmr.msra.gmra.mxu1 %vm499_vm1, %v2540_v8  ;;  %v1605_v14 = vmul.f32 0.35355338, %v1600_v11 }
 0xa09   : > { %2346 = vmatprep.mubr.msk.bf16.mxu1 %vm2423_vm0, %v2422_v1  ;;  %v1602_v58 = vpop.f32.mrf.mxu0 }
 0xa0a   : > { %v1736_v16 = vpack.c.bf16 %v1605_v14, %v1605_v14 }
 0xa0b   : > { %v2327_v59 = vpop.f32.mrf.mxu0 }
 0xa0d   : > { %v1730_v27 = vpop.f32.mrf.mxu0 }
 0xa0f   : > { %v2342_v31 = vpop.f32.mrf.mxu0 }
 0xa11   : > { %v1733_v33 = vpop.f32.mrf.mxu0 }
 0xa13   : > { %v2343_v35 = vpop.f32.mrf.mxu0 }
 0xac0   : > { %v1533_v61 = vpop.f32.mrf.mxu1 }
 0xac1   : > { %v2768_v62 = vadd.f32 %v1533_v61, %v1181_v60 }
 0xac2   : > { %v2318_v63 = vpop.f32.mrf.mxu1 }
 0xac4   : > { %v1536_v0 = vpop.f32.mrf.mxu1 }
 0xac6   : > { %v2319_v2 = vpop.f32.mrf.mxu1 }
 0xac8   : > { %v1665_v9 = vpop.f32.mrf.mxu1 }
 0xac9   : > { %v1666_v10 = vadd.f32 %v2112_v3, %v1665_v9  ;;  %v2131_v3 = vld [vmem:[%s2840_s12] ss:$0 sm:$0xff] }
 0xaca   : > { %v2334_v12 = vpop.f32.mrf.mxu1 }
 0xacb   : > { %v1737_v13 = vpack.c.bf16 %v1666_v10, %v1666_v10 }
 0xacc   : > { %v1668_v55 = vpop.f32.mrf.mxu1 }
 0xacd   : > { %v1742_v4 = vsel %vm675_vm2, %v1737_v13, 0 }
 0xace   : > { %v2335_v15 = vpop.f32.mrf.mxu1  ;;  %2345 = vmatpush3.bf16.xpose.msra.mxu1 %v1742_v4 }
 0xacf   : > { %2356 = vmatprep.subr.bf16.mxu1 %v2422_v1 }
 0xad5   : > { %2347 = vmatmul.mubr.msk.bf16.vlgmr.msra.gmra.mxu1 %vm675_vm2, %v1736_v16 }
 0xad6   : > { %2358 = vmatprep.mubr.msk.bf16.mxu1 %vm2423_vm0, %v2422_v1  ;;  %v2121_v1 = vld [vmem:[%s2836_s8 + $0x3] ss:$0 sm:$0xff]  ;;  %2357 = vmatpush3.bf16.msra.mxu1 %v1851_v37 }
 0xad7   : > { %v1731_v30 = vadd.f32 %v2121_v1, %v1730_v27 }
 0xad9   : > { %v1797_v32 = vpack.c.bf16 %v1731_v30, %v1731_v30 }
 0xadb   : > { %v1802_v34 = vsel %vm741_vm5, %v1797_v32, 0 }
 0xadc   : > { %2351 = vmatpush3.bf16.msra.mxu0 %v1802_v34 }
 0xb95   : > { %v1778_v19 = vpop.f32.mrf.mxu1 }
 0xb96   : > { %v1784_v20 = vsel %vm722_vm3, %v1778_v19, -1e+10 }
 0xb97   : > { %v2348_v21 = vpop.f32.mrf.mxu1  ;;  %v1785_v22 = vsel %vm724_vm4, %v1784_v20, -inf }
 0xb98   : > { %1786 = vmax.xlane.f32.xlu0 %v1785_v22 }
 0xb99   : > { %v1781_v23 = vpop.f32.mrf.mxu1 }
 0xb9b   : > { %v2349_v24 = vpop.f32.mrf.mxu1 }
 0xc21   : > { %v1787_v25 = vpop.xlane.xlu0 %1786 }
 0xc22   : > { %v1788_v26 = vsub.f32 %v1784_v20, %v1787_v25 }
 0xc24   : > { %v1789_v28 = vmul.f32 1.442695, %v1788_v26 }
 0xc26   : > { %2408 = vpow2.f32 %v1789_v28 }
 0xc33   : > { %v2409_v29 = vpop.eup %2408 }
 0xc34   : > { %v1791_v8 = vsel %vm724_vm4, %v2409_v29, 0.0 }
 0xc35   : > { %1792 = vadd.xlane.f32.xlu1 %v1791_v8 }
 0xcbe   : > { %v1793_v38 = vpop.xlane.xlu1 %1792 }
 0xcbf   : > { %2410 = vrcp.f32 %v1793_v38 }
 0xccc   : > { %v2411_v39 = vpop.eup %2410 }
 0xccd   : > { %v1795_v40 = vmul.f32 %v2411_v39, %v2409_v29 }
 0xccf   : > { %v1796_v41 = vpack.c.bf16 %v1795_v40, %v1795_v40 }
 0xcd1   : > { %2353 = vmatmul.mubr.msk.bf16.vlgmr.msra.gmra.mxu0 %vm675_vm2, %v1796_v41 }
 0xd91   : > { %v1838_v42 = vpop.f32.mrf.mxu0 }
 0xd92   : > { %v1844_v43 = vpack.c.bf16 %v1838_v42, %v1838_v42 }
 0xd93   : > { %v2354_v44 = vpop.f32.mrf.mxu0 }
 0xd94   : > { %2359 = vmatmul.mubr.msk.bf16.vlgmr.msra.gmra.mxu1 %vm675_vm2, %v1844_v43 }
 0xd95   : > { %v1841_v45 = vpop.f32.mrf.mxu0 }
 0xd97   : > { %v2355_v46 = vpop.f32.mrf.mxu0 }
 0xe54   : > { %v1887_v47 = vpop.f32.mrf.mxu1 }
 0xe55   : > { %v1893_v49 = vadd.f32 %v1887_v47, %v2768_v62 }
 0xe56   : > { %v2360_v50 = vpop.f32.mrf.mxu1 }
 0xe57   : > { %v1901_v51 = vadd.f32 %v2129_v48, %v1893_v49 }
 0xe58   : > { %v1890_v52 = vpop.f32.mrf.mxu1 }
 0xe59   : > { %v1902_v53 = vadd.f32 %v1901_v51, %v2533_v5  ;;  %v2130_v5 = vld [vmem:[%s2839_s11] ss:$0 sm:$0xff] }
 0xe5a   : > { %v2361_v54 = vpop.f32.mrf.mxu1 }
 0xe5b   : > { %v1904_v7 = vsel %vm1903_vm6, %v1902_v53, 0.0 }
 0xe5c   : > { %1905 = vadd.xlane.f32.xlu0 %v1904_v7 }
 0xee5   : > { %v1906_v56 = vpop.xlane.xlu0 %1905 }
 0xee6   : > { %v1908_v57 = vmul.f32 0.03125, %v1906_v56 }
 0xee8   : > { %v1909_v58 = vsub.f32 %v1902_v53, %v1908_v57 }
 0xeea   : > { %v1910_v59 = vmul.f32 %v1909_v58, %v1909_v58 }
 0xeec   : > { %v1911_v60 = vsel %vm1903_vm6, %v1910_v59, 0.0 }
 0xeed   : > { %1912 = vadd.xlane.f32.xlu1 %v1911_v60 }
 0xf76   : > { %v1913_v61 = vpop.xlane.xlu1 %1912 }
 0xf77   : > { %v1914_v62 = vmul.f32 0.03125, %v1913_v61 }
 0xf79   : > { %v1915_v63 = vadd.f32 1e-05, %v1914_v62 }
 0xf7b   : > { %2412 = vrsqrt.f32 %v1915_v63 }
 0xf88   : > { %v2413_v0 = vpop.eup %2412 }
 0xf89   : > { %v1917_v2 = vmul.f32 %v2413_v0, %v1909_v58 }
 0xf8b   : > { %v1925_v6 = vmul.f32 %v2130_v5, %v1917_v2 }
 0xf8d   : > { %v1933_v9 = vadd.f32 %v2131_v3, %v1925_v6 }
 0xf8f   : > { %1934 = vst.msk [vmem:[%s469_s17] sm:$0x3f] %vm1903_vm6, %v1933_v9 }
 0xf90 PF: > { %s23_s25 = sadd.s32 1, %s2420_s25  }
 0xf91   : > { %p20_p4 = scmp.ge.s32.totalorder %s23_s25, 4  }
 0xf93   :  { %22 = sbr.rel (!%p20_p4) target bundleno = 1 (0x1), region = 129 }

// kernel: transformer_forward.21
= control target key start
LH: loop header
LB: loop body
LE: loop exit
PB: predicated region body
PF: predicated region fallthrough
CT: control target
= control target key end

     0   :  { %vm19_vm0 = vcmask 146432   ;;  %v134_v0 = vmov 0.0   ;;  %vm135_vm1 = vmmov 0   ;;  %vm44_vm2 = vcmask 261120   ;;  %s183_s1 = inlined_call_operand.vmem [shape: bf16[32,18], index: 1, kind: input, shape index: {}]   ;;  %s184_s0 = inlined_call_operand.vmem [shape: f32[12,32], index: 0, kind: input, shape index: {}]   ;;  %s185_s2 = inlined_call_operand.vmem [shape: f32[1,18], index: 2, kind: input, shape index: {}]   ;;  %s186_s3 = inlined_call_operand.vmem [shape: f32[12,18], index: 3, kind: output, shape index: {}]  }
   0x1   :  { %122 = vmatprep.subr.bf16.mxu0 %v134_v0  ;;  %v132_v1 = vld [vmem:[%s183_s1 + $0x8] sm:$0xff]   ;;  %126 = vmatprep.mubr.msk.bf16.mxu0 %vm135_vm1, %v134_v0  ;;  %20 = vst.msk [vmem:[#allocation2] sm:$0xff] %vm19_vm0, %v134_v0  ;;  %v133_v2 = vld [vmem:[%s183_s1] sm:$0xff]   ;;  %vm21_vm3 = vcmask 142336  }
   0x2   :  { %123 = vmatpush3.bf16.msra.mxu0 %v132_v1  ;;  %v25_v3 = vld [vmem:[%s184_s0] sm:$0xff]  ;;  %v26_v4 = vld [vmem:[%s184_s0 + $0x8] sm:$0xf]  ;;  %22 = vst.msk [vmem:[#allocation2 + $0x8] sm:$0xf] %vm21_vm3, %v134_v0 }
   0x3   :  { %124 = vmatprep.subr.bf16.mxu0 %v134_v0  ;;  %v27_v5 = vpack.c.bf16 %v26_v4, %v25_v3  ;;  %v118_v14 = vld [vmem:[%s185_s2] ss:$0 sm:$0xff] }
   0x6   :  { %125 = vmatpush3.bf16.msra.mxu0 %v133_v2 }
   0x8   :  { %v23_v6 = vld [vmem:[#allocation2] sm:$0xff] }
   0x9   :  { %127 = vmatmul.mubr.msk.bf16.vlgmr.msra.gmra.mxu0 %vm44_vm2, %v27_v5  ;;  %v24_v10 = vld [vmem:[#allocation2 + $0x8] sm:$0xf] }
  0xc9   :  { %v82_v7 = vpop.f32.mrf.mxu0 }
  0xca   :  { %v89_v8 = vadd.f32 %v82_v7, %v23_v6 }
  0xcb   :  { %v128_v9 = vpop.f32.mrf.mxu0 }
  0xcc   :  { %92 = vst.msk [vmem:[#allocation2] sm:$0xff] %vm19_vm0, %v89_v8 }
  0xcd   :  { %v85_v11 = vpop.f32.mrf.mxu0 }
  0xce   :  { %v90_v12 = vadd.f32 %v85_v11, %v24_v10 }
  0xcf   :  { %v129_v13 = vpop.f32.mrf.mxu0 }
  0xd0   :  { %94 = vst.msk [vmem:[#allocation2 + $0x8] sm:$0xf] %vm21_vm3, %v90_v12 }
  0xd3   :  { %v98_v15 = vld [vmem:[#allocation2] sm:$0xff] }
  0xd4   :  { %v107_v16 = vadd.f32 %v118_v14, %v98_v15 }
  0xd6   :  { %109 = vst.msk [vmem:[%s186_s3] sm:$0xff] %vm19_vm0, %v107_v16 }
  0xd7   :  { %v99_v17 = vld [vmem:[#allocation2 + $0x8] sm:$0xf] }
  0xd8   :  { %v108_v18 = vadd.f32 %v118_v14, %v99_v17 }
  0xda   :  { %110 = vst.msk [vmem:[%s186_s3 + $0x8] sm:$0xf] %vm21_vm3, %v108_v18 }

// kernel: transformer_forward.19
= control target key start
LH: loop header
LB: loop body
LE: loop exit
PB: predicated region body
PF: predicated region fallthrough
CT: control target
= control target key end

     0   :  { %s2585_s29 = smov 0   ;;  %s2936_s0 = inlined_call_operand.vmem [shape: f32[2,6,32], index: 0, kind: input, shape index: {}]   ;;  %s2937_s1 = inlined_call_operand.vmem [shape: f32[2,8,32], index: 1, kind: input, shape index: {}]   ;;  %s2938_s2 = inlined_call_operand.vmem [shape: f32[2,6,8], index: 2, kind: input, shape index: {}]   ;;  %s2939_s3 = inlined_call_operand.vmem [shape: bf16[4,32,8], index: 3, kind: input, shape index: {}]   ;;  %s2940_s4 = inlined_call_operand.vmem [shape: f32[4,1,8], index: 4, kind: input, shape index: {}]   ;;  %s2941_s5 = inlined_call_operand.vmem [shape: bf16[4,32,8], index: 5, kind: input, shape index: {}]   ;;  %s2942_s6 = inlined_call_operand.vmem [shape: f32[4,1,8], index: 6, kind: input, shape index: {}]   ;;  %s2943_s7 = inlined_call_operand.vmem [shape: bf16[4,32,8], index: 7, kind: input, shape index: {}]   ;;  %s2944_s8 = inlined_call_operand.vmem [shape: f32[4,1,8], index: 8, kind: input, shape index: {}]   ;;  %s2945_s9 = inlined_call_operand.vmem [shape: bf16[4,8,32], index: 9, kind: input, shape index: {}]   ;;  %s2946_s10 = inlined_call_operand.vmem [shape: f32[1,32], index: 10, kind: input, shape index: {}]   ;;  %s2947_s11 = inlined_call_operand.vmem [shape: f32[1,32], index: 11, kind: input, shape index: {}]   ;;  %s2948_s12 = inlined_call_operand.vmem [shape: f32[1,32], index: 12, kind: input, shape index: {}]   ;;  %s2949_s13 = inlined_call_operand.vmem [shape: f32[2,6,32], index: 13, kind: output, shape index: {0}]   ;;  %s2950_s14 = inlined_call_operand.vmem [shape: f32[2,4,6,8], index: 14, kind: output, shape index: {1}]  }
   0x1 LB: > { %s2092_s30 = sadd.s32 4294967295, %s2506_s29   ;;  %p2096_p0 = scmp.ge.s32.totalorder %s2506_s29, 1  ;;  %s2506_s29 = sphi %s2585_s29, %s25_s29  }
   0x2   : > { %p432_p1 = scmp.lt.s32.totalorder %s2506_s29, 3 }
   0x4   : > { %p433_p2 = pnand %p2096_p0, %p432_p1 }
   0x5   : > { %p489_p3 = scmp.lt.s32.totalorder (!%p433_p2), %s2092_s30, 1 }
   0x6   : > { %436 = sbr.rel (%p433_p2) target bundleno = 3984 (0xf90), region = 72 }
   0xb   : > { %v2458_v0 = vld [vmem:[%s2939_s3 + $0x8] sm:$0xff]   ;;  %v2508_v1 = vmov 0.0   ;;  %v2460_v3 = vld [vmem:[%s2939_s3] sm:$0xff]   ;;  %vm2509_vm0 = vmmov 0   ;;  %s2952_s30 = smov (!%p489_p3, %s2092_s30), 1  ;;  %vm539_vm1 = vcmask 261120  }
   0xc   : > { %2280 = vmatprep.subr.bf16.mxu0 %v2508_v1  ;;  %2288 = vmatprep.subr.bf16.mxu1 %v2508_v1  ;;  %v2459_v2 = vld [vmem:[%s2941_s5 + $0x8] sm:$0xff]   ;;  %v2461_v4 = vld [vmem:[%s2941_s5] sm:$0xff]   ;;  %s2616_s23 = sshll.u32 %s2952_s30, 3  ;;  %vm715_vm2 = vcmask 64512   ;;  %vm764_vm4 = vcmask 62464   ;;  %vm782_vm5 = vcmask 1043456  }
   0xd   : > { %2281 = vmatpush3.bf16.msra.mxu0 %v2458_v0  ;;  %2284 = vmatprep.mubr.msk.bf16.mxu0 %vm2509_vm0, %v2508_v1  ;;  %s492_s26 = scalar_lea.vmem %s2936_s0, %s2616_s23  ;;  %s496_s15 = scalar_lea.vmem %s2937_s1, %s2616_s23  ;;  %v2103_v9 = vld [vmem:[%s2940_s4] ss:$0 sm:$0xff]  ;;  %v2462_v25 = vld [vmem:[%s2943_s7 + $0x8] sm:$0xff]   ;;  %v2464_v47 = vld [vmem:[%s2939_s3 + $0x18] sm:$0xff]   ;;  %vm1950_vm6 = vcmask 259072  }
   0xe   : > { %2289 = vmatpush3.bf16.msra.mxu1 %v2459_v2  ;;  %2282 = vmatprep.subr.bf16.mxu0 %v2508_v1  ;;  %v2627_v5 = vld [vmem:[%s492_s26] sm:$0x3f]  ;;  %s500_s27 = scalar_lea.vmem %s2938_s2, %s2616_s23  ;;  %v2466_v48 = vld [vmem:[%s2939_s3 + $0x10] sm:$0xff]   ;;  %s2219_s20 = sshll.u32 %s2952_s30, 5  ;;  %v2465_v52 = vld [vmem:[%s2941_s5 + $0x18] sm:$0xff]  }
   0xf   : > { %2290 = vmatprep.subr.bf16.mxu1 %v2508_v1  ;;  %2292 = vmatprep.mubr.msk.bf16.mxu1 %vm2509_vm0, %v2508_v1  ;;  %v512_v6 = vld [vmem:[%s496_s15] sm:$0xff]  ;;  %v2632_v7 = vpack.c.bf16 %v2627_v5, %v2627_v5  ;;  %s2699_s24 = scalar_lea.vmem %s2950_s14, %s2219_s20  ;;  %v2467_v54 = vld [vmem:[%s2941_s5 + $0x10] sm:$0xff]   ;;  %s504_s25 = scalar_lea.vmem %s2949_s13, %s2616_s23 }
  0x10   : > { %v2634_v8 = vpack.c.bf16 %v512_v6, %v512_v6  ;;  %v2107_v10 = vld [vmem:[%s2942_s6] ss:$0 sm:$0xff]  ;;  %v2122_v63 = vld [vmem:[%s2940_s4 + $0x1] ss:$0 sm:$0xff] }
  0x11   : > { %2283 = vmatpush3.bf16.msra.mxu0 %v2460_v3  ;;  %v2463_v26 = vld [vmem:[%s2943_s7] sm:$0xff]  }
  0x12   : > { %2291 = vmatpush3.bf16.msra.mxu1 %v2461_v4  ;;  %2296 = vmatprep.subr.bf16.mxu0 %v2508_v1  ;;  %v2671_v27 = vld [vmem:[%s500_s27] sm:$0x3f] }
  0x13   : > { %2304 = vmatprep.subr.bf16.mxu1 %v2508_v1  ;;  %vm762_vm3 = vcmp.gt.f32.partialorder %v2671_v27, 0.0  ;;  %v2111_v39 = vld [vmem:[%s2944_s8] ss:$0 sm:$0xff]  ;;  %v2131_v0 = vld [vmem:[%s2942_s6 + $0x1] ss:$0 sm:$0xff] }
  0x14   : > { %2285 = vmatmul.mubr.msk.bf16.vlgmr.msra.gmra.mxu0 %vm539_vm1, %v2632_v7 }
  0x15   : > { %2293 = vmatmul.mubr.msk.bf16.vlgmr.msra.gmra.mxu1 %vm539_vm1, %v2634_v8  ;;  %2300 = vmatprep.mubr.msk.bf16.mxu0 %vm2509_vm0, %v2508_v1 }
  0x16   : > { %2306 = vmatprep.mubr.msk.bf16.mxu1 %vm2509_vm0, %v2508_v1  ;;  %2297 = vmatpush3.bf16.msra.mxu0 %v2462_v25 }
  0x17   : > { %2298 = vmatprep.subr.bf16.mxu0 %v2508_v1 }
  0x1a   : > { %2299 = vmatpush3.bf16.msra.mxu0 %v2463_v26 }
  0x1b   : > { %2310 = vmatprep.subr.bf16.mxu0 %v2508_v1 }
  0x1d   : > { %2301 = vmatmul.mubr.msk.bf16.vlgmr.msra.gmra.mxu0 %vm539_vm1, %v2634_v8 }
  0x1e   : > { %2312 = vmatprep.mubr.msk.bf16.mxu0 %vm2509_vm0, %v2508_v1 }
  0xd4   : > { %v577_v11 = vpop.f32.mrf.mxu0 }
  0xd5   : > { %v644_v12 = vpop.f32.mrf.mxu1  ;;  %v578_v13 = vadd.f32 %v2103_v9, %v577_v11 }
  0xd6   : > { %v645_v14 = vadd.f32 %v2107_v10, %v644_v12  ;;  %v2286_v15 = vpop.f32.mrf.mxu0 }
  0xd7   : > { %v2294_v16 = vpop.f32.mrf.mxu1  ;;  %v583_v20 = vmul.f32 0.35355338, %v578_v13  ;;  %v2468_v15 = vld [vmem:[%s2943_s7 + $0x18] sm:$0xff]  }
  0xd8   : > { %v714_v17 = vpack.c.bf16 %v645_v14, %v645_v14  ;;  %v580_v18 = vpop.f32.mrf.mxu0  ;;  %v2469_v16 = vld [vmem:[%s2943_s7 + $0x10] sm:$0xff]  }
  0xd9   : > { %v647_v19 = vpop.f32.mrf.mxu1  ;;  %v713_v24 = vpack.c.bf16 %v583_v20, %v583_v20 }
  0xda   : > { %v720_v21 = vsel %vm715_vm2, %v714_v17, 0  ;;  %v2287_v22 = vpop.f32.mrf.mxu0 }
  0xdb   : > { %v2295_v23 = vpop.f32.mrf.mxu1  ;;  %2305 = vmatpush3.bf16.xpose.msra.mxu1 %v720_v21 }
  0xdc   : > { %2316 = vmatprep.subr.bf16.mxu1 %v2508_v1  ;;  %v2140_v23 = vld [vmem:[%s2944_s8 + $0x1] ss:$0 sm:$0xff] }
  0xdd   : > { %v707_v40 = vpop.f32.mrf.mxu0 }
  0xde   : > { %v708_v41 = vadd.f32 %v2111_v39, %v707_v40 }
  0xdf   : > { %v2302_v42 = vpop.f32.mrf.mxu0 }
  0xe0   : > { %v778_v43 = vpack.c.bf16 %v708_v41, %v708_v41  ;;  %v827_v41 = vld [vmem:[%s2945_s9] sm:$0xf] }
  0xe1   : > { %v710_v44 = vpop.f32.mrf.mxu0 }
  0xe2   : > { %2307 = vmatmul.mubr.msk.bf16.vlgmr.msra.gmra.mxu1 %vm715_vm2, %v713_v24  ;;  %v784_v45 = vsel %vm782_vm5, %v778_v43, 0  ;;  %v1187_v44 = vsel %vm782_vm5, %v827_v41, 0  ;;  %v2180_v41 = vld [vmem:[%s2945_s9 + $0x8] sm:$0xf] }
  0xe3   : > { %2320 = vmatprep.mubr.msk.bf16.mxu1 %vm2509_vm0, %v2508_v1  ;;  %v2303_v46 = vpop.f32.mrf.mxu0  ;;  %2311 = vmatpush3.bf16.msra.mxu0 %v784_v45  ;;  %v2470_v45 = vld [vmem:[%s2941_s5 + $0x28] sm:$0xff]  }
  0xe4   : > { %2324 = vmatprep.subr.bf16.mxu0 %v2508_v1  ;;  %2317 = vmatpush3.bf16.msra.mxu1 %v2464_v47  ;;  %v2471_v47 = vld [vmem:[%s2941_s5 + $0x20] sm:$0xff]  }
  0xe5   : > { %2318 = vmatprep.subr.bf16.mxu1 %v2508_v1 }
  0xe8   : > { %2319 = vmatpush3.bf16.msra.mxu1 %v2466_v48 }
  0xe9   : > { %2332 = vmatprep.subr.bf16.mxu1 %v2508_v1 }
  0xeb   : > { %2321 = vmatmul.mubr.msk.bf16.vlgmr.msra.gmra.mxu1 %vm539_vm1, %v2632_v7 }
  0xec   : > { %2336 = vmatprep.mubr.msk.bf16.mxu1 %vm2509_vm0, %v2508_v1  ;;  %2333 = vmatpush3.bf16.msra.mxu1 %v2468_v15 }
  0xed   : > { %2334 = vmatprep.subr.bf16.mxu1 %v2508_v1 }
  0xf0   : > { %2335 = vmatpush3.bf16.msra.mxu1 %v2469_v16 }
  0xf1   : > { %2346 = vmatprep.subr.bf16.mxu1 %v2508_v1 }
  0xf3   : > { %2337 = vmatmul.mubr.msk.bf16.vlgmr.msra.gmra.mxu1 %vm539_vm1, %v2634_v8 }
  0xf4   : > { %2348 = vmatprep.mubr.msk.bf16.mxu1 %vm2509_vm0, %v2508_v1 }
 0x1a2   : > { %v756_v28 = vpop.f32.mrf.mxu1 }
 0x1a3   : > { %v763_v29 = vsel %vm762_vm3, %v756_v28, -1e+10 }
 0x1a4   : > { %v2308_v30 = vpop.f32.mrf.mxu1  ;;  %v765_v31 = vsel %vm764_vm4, %v763_v29, -inf }
 0x1a5   : > { %766 = vmax.xlane.f32.xlu0 %v765_v31 }
 0x1a6   : > { %v759_v32 = vpop.f32.mrf.mxu1 }
 0x1a8   : > { %v2309_v33 = vpop.f32.mrf.mxu1 }
 0x1ab   : > { %v887_v55 = vpop.f32.mrf.mxu1 }
 0x1ac   : > { %v888_v3 = vadd.f32 %v2122_v63, %v887_v55 }
 0x1ad   : > { %v2322_v56 = vpop.f32.mrf.mxu1 }
 0x1ae   : > { %v893_v11 = vmul.f32 0.35355338, %v888_v3 }
 0x1af   : > { %v890_v57 = vpop.f32.mrf.mxu1 }
 0x1b0   : > { %v1024_v14 = vpack.c.bf16 %v893_v11, %v893_v11  ;;  %v2155_v11 = vld [vmem:[%s2940_s4 + $0x2] ss:$0 sm:$0xff] }
 0x1b1   : > { %v2323_v58 = vpop.f32.mrf.mxu1 }
 0x1b3   : > { %v1018_v24 = vpop.f32.mrf.mxu1 }
 0x1b4   : > { %v1019_v25 = vadd.f32 %v2140_v23, %v1018_v24 }
 0x1b5   : > { %v2338_v26 = vpop.f32.mrf.mxu1 }
 0x1b6   : > { %v1087_v28 = vpack.c.bf16 %v1019_v25, %v1019_v25 }
 0x1b8   : > { %v1092_v30 = vsel %vm782_vm5, %v1087_v28, 0 }
 0x1b9   : > { %2347 = vmatpush3.bf16.msra.mxu1 %v1092_v30 }
 0x1ba   : > { %2358 = vmatprep.subr.bf16.mxu1 %v2508_v1 }
 0x22e   : > { %v767_v34 = vpop.xlane.xlu0 %766 }
 0x22f   : > { %v768_v35 = vsub.f32 %v763_v29, %v767_v34  ;;  %v1021_v29 = vpop.f32.mrf.mxu1 }
 0x231   : > { %v769_v36 = vmul.f32 1.442695, %v768_v35  ;;  %v2339_v31 = vpop.f32.mrf.mxu1 }
 0x233   : > { %2482 = vpow2.f32 %v769_v36 }
 0x240   : > { %v2483_v37 = vpop.eup %2482 }
 0x241   : > { %v771_v38 = vsel %vm764_vm4, %v2483_v37, 0.0 }
 0x242   : > { %772 = vadd.xlane.f32.xlu0 %v771_v38 }
 0x2cb   : > { %v773_v49 = vpop.xlane.xlu0 %772 }
 0x2cc   : > { %2484 = vrcp.f32 %v773_v49  ;;  %v2472_v49 = vld [vmem:[%s2939_s3 + $0x28] sm:$0xff]  }
 0x2d9   : > { %v2485_v50 = vpop.eup %2484 }
 0x2da   : > { %v775_v51 = vmul.f32 %v2485_v50, %v2483_v37  ;;  %v2147_v37 = vld [vmem:[%s2945_s9 + $0x4] sm:$0xf] }
 0x2db   : > { %v1141_v38 = vsel %vm782_vm5, %v2147_v37, 0 }
 0x2dc   : > { %776 = vst.msk [vmem:[%s2699_s24] sm:$0x3f] %vm764_vm4, %v775_v51  ;;  %v777_v53 = vpack.c.bf16 %v775_v51, %v775_v51 }
 0x2de   : > { %2313 = vmatmul.mubr.msk.bf16.vlgmr.msra.gmra.mxu0 %vm715_vm2, %v777_v53  ;;  %v2473_v53 = vld [vmem:[%s2939_s3 + $0x20] sm:$0xff]  }
 0x2df   : > { %2325 = vmatpush3.bf16.msra.mxu0 %v2465_v52  ;;  %2328 = vmatprep.mubr.msk.bf16.mxu0 %vm2509_vm0, %v2508_v1 }
 0x2e0   : > { %2326 = vmatprep.subr.bf16.mxu0 %v2508_v1 }
 0x2e3   : > { %2327 = vmatpush3.bf16.msra.mxu0 %v2467_v54 }
 0x2e4   : > { %2340 = vmatprep.subr.bf16.mxu0 %v2508_v1 }
 0x2e6   : > { %2329 = vmatmul.mubr.msk.bf16.vlgmr.msra.gmra.mxu0 %vm539_vm1, %v2634_v8 }
 0x2e7   : > { %2342 = vmatprep.mubr.msk.bf16.mxu0 %vm2509_vm0, %v2508_v1 }
 0x39e   : > { %v2718_v59 = vpop.f32.mrf.mxu0 }
 0x39f   : > { %v826_v46 = vpack.c.bf16 %v2718_v59, %v2718_v59  ;;  %v2164_v59 = vld [vmem:[%s2942_s6 + $0x2] ss:$0 sm:$0xff] }
 0x3a0   : > { %v2314_v60 = vpop.f32.mrf.mxu0 }
 0x3a2   : > { %v823_v61 = vpop.f32.mrf.mxu0 }
 0x3a4   : > { %v2315_v62 = vpop.f32.mrf.mxu0 }
 0x3a6   : > { %v953_v2 = vpop.f32.mrf.mxu0 }
 0x3a7   : > { %v954_v4 = vadd.f32 %v2131_v0, %v953_v2 }
 0x3a8   : > { %v2330_v6 = vpop.f32.mrf.mxu0 }
 0x3a9   : > { %v1025_v9 = vpack.c.bf16 %v954_v4, %v954_v4 }
 0x3aa   : > { %v956_v10 = vpop.f32.mrf.mxu0 }
 0x3ab   : > { %v1030_v12 = vsel %vm715_vm2, %v1025_v9, 0 }
 0x3ac   : > { %v2331_v13 = vpop.f32.mrf.mxu0  ;;  %2341 = vmatpush3.bf16.xpose.msra.mxu0 %v1030_v12 }
 0x3ad   : > { %2352 = vmatprep.subr.bf16.mxu0 %v2508_v1 }
 0x3b3   : > { %2343 = vmatmul.mubr.msk.bf16.vlgmr.msra.gmra.mxu0 %vm715_vm2, %v1024_v14 }
 0x3b4   : > { %2354 = vmatprep.mubr.msk.bf16.mxu0 %vm2509_vm0, %v2508_v1  ;;  %2353 = vmatpush3.bf16.msra.mxu0 %v1141_v38 }
 0x3b5   : > { %2364 = vmatprep.subr.bf16.mxu0 %v2508_v1 }
 0x473   : > { %v1066_v17 = vpop.f32.mrf.mxu0 }
 0x474   : > { %v1072_v18 = vsel %vm762_vm3, %v1066_v17, -1e+10 }
 0x475   : > { %v2344_v19 = vpop.f32.mrf.mxu0  ;;  %v1073_v20 = vsel %vm764_vm4, %v1072_v18, -inf }
 0x476   : > { %1074 = vmax.xlane.f32.xlu1 %v1073_v20  ;;  %v2474_v19 = vld [vmem:[%s2943_s7 + $0x28] sm:$0xff]   ;;  %v2475_v20 = vld [vmem:[%s2943_s7 + $0x20] sm:$0xff]  }
 0x477   : > { %v1069_v21 = vpop.f32.mrf.mxu0 }
 0x479   : > { %v2345_v22 = vpop.f32.mrf.mxu0 }
 0x4ff   : > { %v1075_v32 = vpop.xlane.xlu1 %1074 }
 0x500   : > { %v1076_v33 = vsub.f32 %v1072_v18, %v1075_v32 }
 0x502   : > { %v1077_v34 = vmul.f32 1.442695, %v1076_v33  ;;  %v2173_v33 = vld [vmem:[%s2944_s8 + $0x2] ss:$0 sm:$0xff] }
 0x504   : > { %2486 = vpow2.f32 %v1077_v34 }
 0x511   : > { %v2487_v35 = vpop.eup %2486 }
 0x512   : > { %v1079_v36 = vsel %vm764_vm4, %v2487_v35, 0.0 }
 0x513   : > { %1080 = vadd.xlane.f32.xlu1 %v1079_v36 }
 0x59c   : > { %v1081_v39 = vpop.xlane.xlu1 %1080 }
 0x59d   : > { %2488 = vrcp.f32 %v1081_v39 }
 0x5aa   : > { %v2489_v40 = vpop.eup %2488 }
 0x5ab   : > { %v1083_v42 = vmul.f32 %v2489_v40, %v2487_v35 }
 0x5ad   : > { %2145 = vst.msk [vmem:[%s2699_s24 + $0x8] sm:$0x3f] %vm764_vm4, %v1083_v42  ;;  %v1086_v43 = vpack.c.bf16 %v1083_v42, %v1083_v42  ;;  %v1542_v42 = vsel %vm782_vm5, %v2180_v41, 0 }
 0x5af   : > { %2349 = vmatmul.mubr.msk.bf16.vlgmr.msra.gmra.mxu1 %vm715_vm2, %v1086_v43 }
 0x5b0   : > { %2359 = vmatpush3.bf16.msra.mxu1 %v1187_v44  ;;  %2360 = vmatprep.mubr.msk.bf16.mxu1 %vm2509_vm0, %v2508_v1 }
 0x5b1   : > { %2372 = vmatprep.subr.bf16.mxu1 %v2508_v1 }
 0x5b7   : > { %2361 = vmatmul.mubr.msk.bf16.vlgmr.msra.gmra.mxu1 %vm715_vm2, %v826_v46 }
 0x5b8   : > { %2373 = vmatpush3.bf16.msra.mxu1 %v2470_v45  ;;  %2376 = vmatprep.mubr.msk.bf16.mxu1 %vm2509_vm0, %v2508_v1 }
 0x5b9   : > { %2374 = vmatprep.subr.bf16.mxu1 %v2508_v1 }
 0x5bc   : > { %2375 = vmatpush3.bf16.msra.mxu1 %v2471_v47  ;;  %v2477_v47 = vld [vmem:[%s2939_s3 + $0x38] sm:$0xff]  }
 0x5bd   : > { %2388 = vmatprep.subr.bf16.mxu1 %v2508_v1 }
 0x5bf   : > { %2377 = vmatmul.mubr.msk.bf16.vlgmr.msra.gmra.mxu1 %vm539_vm1, %v2634_v8 }
 0x5c0   : > { %2390 = vmatprep.mubr.msk.bf16.mxu1 %vm2509_vm0, %v2508_v1 }
 0x66f   : > { %v1128_v48 = vpop.f32.mrf.mxu1 }
 0x670   : > { %v1134_v50 = vpack.c.bf16 %v1128_v48, %v1128_v48  ;;  %v2479_v48 = vld [vmem:[%s2939_s3 + $0x30] sm:$0xff]  }
 0x671   : > { %v2350_v51 = vpop.f32.mrf.mxu1 }
 0x672   : > { %2355 = vmatmul.mubr.msk.bf16.vlgmr.msra.gmra.mxu0 %vm715_vm2, %v1134_v50  ;;  %v2476_v50 = vld [vmem:[%s2941_s5 + $0x38] sm:$0xff]  }
 0x673   : > { %v1131_v52 = vpop.f32.mrf.mxu1  ;;  %2365 = vmatpush3.bf16.msra.mxu0 %v2472_v49  ;;  %2368 = vmatprep.mubr.msk.bf16.mxu0 %vm2509_vm0, %v2508_v1 }
 0x674   : > { %2366 = vmatprep.subr.bf16.mxu0 %v2508_v1 }
 0x675   : > { %v2351_v54 = vpop.f32.mrf.mxu1 }
 0x676   : > { %v2478_v54 = vld [vmem:[%s2941_s5 + $0x30] sm:$0xff]  }
 0x677   : > { %v2794_v55 = vpop.f32.mrf.mxu1  ;;  %2367 = vmatpush3.bf16.msra.mxu0 %v2473_v53 }
 0x678   : > { %2380 = vmatprep.subr.bf16.mxu0 %v2508_v1 }
 0x679   : > { %v2362_v56 = vpop.f32.mrf.mxu1 }
 0x67a   : > { %2369 = vmatmul.mubr.msk.bf16.vlgmr.msra.gmra.mxu0 %vm539_vm1, %v2632_v7 }
 0x67b   : > { %v1226_v57 = vpop.f32.mrf.mxu1  ;;  %2384 = vmatprep.mubr.msk.bf16.mxu0 %vm2509_vm0, %v2508_v1  ;;  %2381 = vmatpush3.bf16.msra.mxu0 %v2474_v19 }
 0x67c   : > { %2382 = vmatprep.subr.bf16.mxu0 %v2508_v1 }
 0x67d   : > { %v2363_v58 = vpop.f32.mrf.mxu1 }
 0x67f   : > { %v1354_v60 = vpop.f32.mrf.mxu1  ;;  %2383 = vmatpush3.bf16.msra.mxu0 %v2475_v20 }
 0x680   : > { %v1355_v61 = vadd.f32 %v2164_v59, %v1354_v60  ;;  %2394 = vmatprep.subr.bf16.mxu0 %v2508_v1 }
 0x681   : > { %v2378_v62 = vpop.f32.mrf.mxu1 }
 0x682   : > { %v1426_v63 = vpack.c.bf16 %v1355_v61, %v1355_v61  ;;  %2385 = vmatmul.mubr.msk.bf16.vlgmr.msra.gmra.mxu0 %vm539_vm1, %v2634_v8 }
 0x683   : > { %v1357_v0 = vpop.f32.mrf.mxu1  ;;  %2396 = vmatprep.mubr.msk.bf16.mxu0 %vm2509_vm0, %v2508_v1 }
 0x684   : > { %v1431_v2 = vsel %vm715_vm2, %v1426_v63, 0 }
 0x685   : > { %v2379_v3 = vpop.f32.mrf.mxu1  ;;  %2389 = vmatpush3.bf16.xpose.msra.mxu1 %v1431_v2 }
 0x686   : > { %2400 = vmatprep.subr.bf16.mxu1 %v2508_v1  ;;  %v2196_v3 = vld [vmem:[%s2942_s6 + $0x3] ss:$0 sm:$0xff] }
 0x732   : > { %v2806_v4 = vpop.f32.mrf.mxu0 }
 0x733   : > { %v1224_v60 = vadd.f32 %v2794_v55, %v2806_v4 }
 0x734   : > { %v2356_v6 = vpop.f32.mrf.mxu0 }
 0x735   : > { %v2187_v6 = vld [vmem:[%s2940_s4 + $0x3] ss:$0 sm:$0xff] }
 0x736   : > { %v1180_v9 = vpop.f32.mrf.mxu0 }
 0x738   : > { %v2357_v10 = vpop.f32.mrf.mxu0 }
 0x73a   : > { %v1288_v12 = vpop.f32.mrf.mxu0 }
 0x73b   : > { %v1289_v13 = vadd.f32 %v2155_v11, %v1288_v12 }
 0x73c   : > { %v2370_v14 = vpop.f32.mrf.mxu0 }
 0x73d   : > { %v1294_v15 = vmul.f32 0.35355338, %v1289_v13 }
 0x73e   : > { %v1291_v16 = vpop.f32.mrf.mxu0 }
 0x73f   : > { %v1425_v17 = vpack.c.bf16 %v1294_v15, %v1294_v15 }
 0x740   : > { %v2371_v18 = vpop.f32.mrf.mxu0 }
 0x741   : > { %2391 = vmatmul.mubr.msk.bf16.vlgmr.msra.gmra.mxu1 %vm715_vm2, %v1425_v17  ;;  %v2480_v17 = vld [vmem:[%s2943_s7 + $0x38] sm:$0xff]   ;;  %v2481_v18 = vld [vmem:[%s2943_s7 + $0x30] sm:$0xff]  }
 0x742   : > { %2402 = vmatprep.mubr.msk.bf16.mxu1 %vm2509_vm0, %v2508_v1  ;;  %v1419_v34 = vpop.f32.mrf.mxu0  ;;  %2401 = vmatpush3.bf16.msra.mxu1 %v1542_v42 }
 0x743   : > { %v1420_v35 = vadd.f32 %v2173_v33, %v1419_v34  ;;  %2414 = vmatprep.subr.bf16.mxu1 %v2508_v1 }
 0x744   : > { %v2386_v36 = vpop.f32.mrf.mxu0 }
 0x745   : > { %v1488_v37 = vpack.c.bf16 %v1420_v35, %v1420_v35  ;;  %v2212_v36 = vld [vmem:[%s2945_s9 + $0xc] sm:$0xf] }
 0x746   : > { %v1422_v38 = vpop.f32.mrf.mxu0 }
 0x747   : > { %v1493_v39 = vsel %vm782_vm5, %v1488_v37, 0  ;;  %v1898_v37 = vsel %vm782_vm5, %v2212_v36, 0 }
 0x748   : > { %v2387_v40 = vpop.f32.mrf.mxu0  ;;  %2395 = vmatpush3.bf16.msra.mxu0 %v1493_v39 }
 0x749   : > { %2406 = vmatprep.subr.bf16.mxu0 %v2508_v1 }
 0x801   : > { %v1467_v21 = vpop.f32.mrf.mxu1 }
 0x802   : > { %v1473_v22 = vsel %vm762_vm3, %v1467_v21, -1e+10 }
 0x803   : > { %v2392_v23 = vpop.f32.mrf.mxu1  ;;  %v1474_v24 = vsel %vm764_vm4, %v1473_v22, -inf }
 0x804   : > { %1475 = vmax.xlane.f32.xlu0 %v1474_v24 }
 0x805   : > { %v1470_v25 = vpop.f32.mrf.mxu1 }
 0x807   : > { %v2393_v26 = vpop.f32.mrf.mxu1 }
 0x88d   : > { %v1476_v28 = vpop.xlane.xlu0 %1475 }
 0x88e   : > { %v1477_v29 = vsub.f32 %v1473_v22, %v1476_v28 }
 0x890   : > { %v1478_v30 = vmul.f32 1.442695, %v1477_v29 }
 0x892   : > { %2490 = vpow2.f32 %v1478_v30 }
 0x89f   : > { %v2491_v31 = vpop.eup %2490 }
 0x8a0   : > { %v1480_v32 = vsel %vm764_vm4, %v2491_v31, 0.0 }
 0x8a1   : > { %1481 = vadd.xlane.f32.xlu1 %v1480_v32 }
 0x92a   : > { %v1482_v43 = vpop.xlane.xlu1 %1481 }
 0x92b   : > { %2492 = vrcp.f32 %v1482_v43 }
 0x938   : > { %v2493_v44 = vpop.eup %2492 }
 0x939   : > { %v1484_v45 = vmul.f32 %v2493_v44, %v2491_v31 }
 0x93b   : > { %2178 = vst.msk [vmem:[%s2699_s24 + $0x10] sm:$0x3f] %vm764_vm4, %v1484_v45  ;;  %v1487_v46 = vpack.c.bf16 %v1484_v45, %v1484_v45 }
 0x93d   : > { %2397 = vmatmul.mubr.msk.bf16.vlgmr.msra.gmra.mxu0 %vm715_vm2, %v1487_v46 }
 0x93e   : > { %2410 = vmatprep.mubr.msk.bf16.mxu0 %vm2509_vm0, %v2508_v1  ;;  %2407 = vmatpush3.bf16.msra.mxu0 %v2477_v47 }
 0x93f   : > { %2408 = vmatprep.subr.bf16.mxu0 %v2508_v1 }
 0x942   : > { %2409 = vmatpush3.bf16.msra.mxu0 %v2479_v48  ;;  %v2214_v48 = vld [vmem:[%s2946_s10] ss:$0 sm:$0xff] }
 0x943   : > { %2422 = vmatprep.subr.bf16.mxu0 %v2508_v1 }
 0x945   : > { %2411 = vmatmul.mubr.msk.bf16.vlgmr.msra.gmra.mxu0 %vm539_vm1, %v2632_v7 }
 0x946   : > { %2426 = vmatprep.mubr.msk.bf16.mxu0 %vm2509_vm0, %v2508_v1  ;;  %2423 = vmatpush3.bf16.msra.mxu0 %v2480_v17 }
 0x947   : > { %2424 = vmatprep.subr.bf16.mxu0 %v2508_v1 }
 0x94a   : > { %2425 = vmatpush3.bf16.msra.mxu0 %v2481_v18 }
 0x94b   : > { %2436 = vmatprep.subr.bf16.mxu0 %v2508_v1 }
 0x94d   : > { %2427 = vmatmul.mubr.msk.bf16.vlgmr.msra.gmra.mxu0 %vm539_vm1, %v2634_v8 }
 0x94e   : > { %2438 = vmatprep.mubr.msk.bf16.mxu0 %vm2509_vm0, %v2508_v1 }
 0x9fd   : > { %v1529_v49 = vpop.f32.mrf.mxu0 }
 0x9fe   : > { %v1535_v51 = vpack.c.bf16 %v1529_v49, %v1529_v49 }
 0x9ff   : > { %v2398_v52 = vpop.f32.mrf.mxu0 }
 0xa00   : > { %2403 = vmatmul.mubr.msk.bf16.vlgmr.msra.gmra.mxu1 %vm715_vm2, %v1535_v51 }
 0xa01   : > { %v1532_v53 = vpop.f32.mrf.mxu0  ;;  %2415 = vmatpush3.bf16.msra.mxu1 %v2476_v50  ;;  %2418 = vmatprep.mubr.msk.bf16.mxu1 %vm2509_vm0, %v2508_v1 }
 0xa02   : > { %2416 = vmatprep.subr.bf16.mxu1 %v2508_v1 }
 0xa03   : > { %v2399_v7 = vpop.f32.mrf.mxu0 }
 0xa05   : > { %2417 = vmatpush3.bf16.msra.mxu1 %v2478_v54  ;;  %v1644_v56 = vpop.f32.mrf.mxu0 }
 0xa06   : > { %2430 = vmatprep.subr.bf16.mxu1 %v2508_v1  ;;  %v1645_v11 = vadd.f32 %v2187_v6, %v1644_v56 }
 0xa07   : > { %v2412_v57 = vpop.f32.mrf.mxu0 }
 0xa08   : > { %2419 = vmatmul.mubr.msk.bf16.vlgmr.msra.gmra.mxu1 %vm539_vm1, %v2634_v8  ;;  %v1650_v14 = vmul.f32 0.35355338, %v1645_v11 }
 0xa09   : > { %2432 = vmatprep.mubr.msk.bf16.mxu1 %vm2509_vm0, %v2508_v1  ;;  %v1647_v58 = vpop.f32.mrf.mxu0 }
 0xa0a   : > { %v1781_v16 = vpack.c.bf16 %v1650_v14, %v1650_v14 }
 0xa0b   : > { %v2413_v59 = vpop.f32.mrf.mxu0 }
 0xa0d   : > { %v1775_v27 = vpop.f32.mrf.mxu0 }
 0xa0f   : > { %v2428_v31 = vpop.f32.mrf.mxu0 }
 0xa11   : > { %v1778_v33 = vpop.f32.mrf.mxu0 }
 0xa13   : > { %v2429_v35 = vpop.f32.mrf.mxu0 }
 0xac0   : > { %v1578_v61 = vpop.f32.mrf.mxu1 }
 0xac1   : > { %v2874_v62 = vadd.f32 %v1578_v61, %v1224_v60 }
 0xac2   : > { %v2404_v63 = vpop.f32.mrf.mxu1 }
 0xac4   : > { %v1581_v0 = vpop.f32.mrf.mxu1 }
 0xac6   : > { %v2405_v2 = vpop.f32.mrf.mxu1 }
 0xac8   : > { %v1710_v9 = vpop.f32.mrf.mxu1 }
 0xac9   : > { %v1711_v10 = vadd.f32 %v2196_v3, %v1710_v9  ;;  %v2216_v3 = vld [vmem:[%s2948_s12] ss:$0 sm:$0xff] }
 0xaca   : > { %v2420_v12 = vpop.f32.mrf.mxu1 }
 0xacb   : > { %v1782_v13 = vpack.c.bf16 %v1711_v10, %v1711_v10 }
 0xacc   : > { %v1713_v55 = vpop.f32.mrf.mxu1 }
 0xacd   : > { %v1787_v4 = vsel %vm715_vm2, %v1782_v13, 0 }
 0xace   : > { %v2421_v15 = vpop.f32.mrf.mxu1  ;;  %2431 = vmatpush3.bf16.xpose.msra.mxu1 %v1787_v4 }
 0xacf   : > { %2442 = vmatprep.subr.bf16.mxu1 %v2508_v1 }
 0xad5   : > { %2433 = vmatmul.mubr.msk.bf16.vlgmr.msra.gmra.mxu1 %vm715_vm2, %v1781_v16 }
 0xad6   : > { %2444 = vmatprep.mubr.msk.bf16.mxu1 %vm2509_vm0, %v2508_v1  ;;  %v2205_v1 = vld [vmem:[%s2944_s8 + $0x3] ss:$0 sm:$0xff]  ;;  %2443 = vmatpush3.bf16.msra.mxu1 %v1898_v37 }
 0xad7   : > { %v1776_v30 = vadd.f32 %v2205_v1, %v1775_v27 }
 0xad9   : > { %v1844_v32 = vpack.c.bf16 %v1776_v30, %v1776_v30 }
 0xadb   : > { %v1849_v34 = vsel %vm782_vm5, %v1844_v32, 0 }
 0xadc   : > { %2437 = vmatpush3.bf16.msra.mxu0 %v1849_v34 }
 0xb95   : > { %v1823_v19 = vpop.f32.mrf.mxu1 }
 0xb96   : > { %v1829_v20 = vsel %vm762_vm3, %v1823_v19, -1e+10 }
 0xb97   : > { %v2434_v21 = vpop.f32.mrf.mxu1  ;;  %v1830_v22 = vsel %vm764_vm4, %v1829_v20, -inf }
 0xb98   : > { %1831 = vmax.xlane.f32.xlu0 %v1830_v22 }
 0xb99   : > { %v1826_v23 = vpop.f32.mrf.mxu1 }
 0xb9b   : > { %v2435_v24 = vpop.f32.mrf.mxu1 }
 0xc21   : > { %v1832_v25 = vpop.xlane.xlu0 %1831 }
 0xc22   : > { %v1833_v26 = vsub.f32 %v1829_v20, %v1832_v25 }
 0xc24   : > { %v1834_v28 = vmul.f32 1.442695, %v1833_v26 }
 0xc26   : > { %2494 = vpow2.f32 %v1834_v28 }
 0xc33   : > { %v2495_v29 = vpop.eup %2494 }
 0xc34   : > { %v1836_v8 = vsel %vm764_vm4, %v2495_v29, 0.0 }
 0xc35   : > { %1837 = vadd.xlane.f32.xlu1 %v1836_v8 }
 0xcbe   : > { %v1838_v38 = vpop.xlane.xlu1 %1837 }
 0xcbf   : > { %2496 = vrcp.f32 %v1838_v38 }
 0xccc   : > { %v2497_v39 = vpop.eup %2496 }
 0xccd   : > { %v1840_v40 = vmul.f32 %v2497_v39, %v2495_v29 }
 0xccf   : > { %2210 = vst.msk [vmem:[%s2699_s24 + $0x18] sm:$0x3f] %vm764_vm4, %v1840_v40  ;;  %v1843_v41 = vpack.c.bf16 %v1840_v40, %v1840_v40 }
 0xcd1   : > { %2439 = vmatmul.mubr.msk.bf16.vlgmr.msra.gmra.mxu0 %vm715_vm2, %v1843_v41 }
 0xd91   : > { %v1885_v42 = vpop.f32.mrf.mxu0 }
 0xd92   : > { %v1891_v43 = vpack.c.bf16 %v1885_v42, %v1885_v42 }
 0xd93   : > { %v2440_v44 = vpop.f32.mrf.mxu0 }
 0xd94   : > { %2445 = vmatmul.mubr.msk.bf16.vlgmr.msra.gmra.mxu1 %vm715_vm2, %v1891_v43 }
 0xd95   : > { %v1888_v45 = vpop.f32.mrf.mxu0 }
 0xd97   : > { %v2441_v46 = vpop.f32.mrf.mxu0 }
 0xe54   : > { %v1934_v47 = vpop.f32.mrf.mxu1 }
 0xe55   : > { %v1940_v49 = vadd.f32 %v1934_v47, %v2874_v62 }
 0xe56   : > { %v2446_v50 = vpop.f32.mrf.mxu1 }
 0xe57   : > { %v1948_v51 = vadd.f32 %v2214_v48, %v1940_v49 }
 0xe58   : > { %v1937_v52 = vpop.f32.mrf.mxu1 }
 0xe59   : > { %v1949_v53 = vadd.f32 %v1948_v51, %v2627_v5  ;;  %v2215_v5 = vld [vmem:[%s2947_s11] ss:$0 sm:$0xff] }
 0xe5a   : > { %v2447_v54 = vpop.f32.mrf.mxu1 }
 0xe5b   : > { %v1951_v7 = vsel %vm1950_vm6, %v1949_v53, 0.0 }
 0xe5c   : > { %1952 = vadd.xlane.f32.xlu0 %v1951_v7 }
 0xee5   : > { %v1953_v56 = vpop.xlane.xlu0 %1952 }
 0xee6   : > { %v1955_v57 = vmul.f32 0.03125, %v1953_v56 }
 0xee8   : > { %v1956_v58 = vsub.f32 %v1949_v53, %v1955_v57 }
 0xeea   : > { %v1957_v59 = vmul.f32 %v1956_v58, %v1956_v58 }
 0xeec   : > { %v1958_v60 = vsel %vm1950_vm6, %v1957_v59, 0.0 }
 0xeed   : > { %1959 = vadd.xlane.f32.xlu1 %v1958_v60 }
 0xf76   : > { %v1960_v61 = vpop.xlane.xlu1 %1959 }
 0xf77   : > { %v1961_v62 = vmul.f32 0.03125, %v1960_v61 }
 0xf79   : > { %v1962_v63 = vadd.f32 1e-05, %v1961_v62 }
 0xf7b   : > { %2498 = vrsqrt.f32 %v1962_v63 }
 0xf88   : > { %v2499_v0 = vpop.eup %2498 }
 0xf89   : > { %v1964_v2 = vmul.f32 %v2499_v0, %v1956_v58 }
 0xf8b   : > { %v1972_v6 = vmul.f32 %v2215_v5, %v1964_v2 }
 0xf8d   : > { %v1980_v9 = vadd.f32 %v2216_v3, %v1972_v6 }
 0xf8f   : > { %1981 = vst.msk [vmem:[%s504_s25] sm:$0x3f] %vm1950_vm6, %v1980_v9 }
 0xf90 PF: > { %s25_s29 = sadd.s32 1, %s2506_s29  }
 0xf91   : > { %p22_p4 = scmp.ge.s32.totalorder %s25_s29, 4  }
 0xf93   :  { %24 = sbr.rel (!%p22_p4) target bundleno = 1 (0x1), region = 144 }

</bundles_post_ra>
